<compile_context>
chip_gen: v7x
topology: tpu7x:2x2x1
jax: 0.10.0
libtpu: 0.0.40
codegen_flags: <defaults>
</compile_context>

<pallas_src>
import functools
import math

import jax
import jax.numpy as jnp
from jax.experimental import pallas as pl
from jax.experimental.pallas import tpu as pltpu


# ------------------------------------------------------------------ in-kernel helpers
def _layer_norm(x, gamma, beta, eps):
    mu = jnp.mean(x, axis=-1, keepdims=True)
    var = jnp.mean((x - mu) ** 2, axis=-1, keepdims=True)
    return (x - mu) * jax.lax.rsqrt(var + eps) * gamma + beta


def _attend(kx, skf, sqf, B, kL, qL):
    """Batched MLP-score attention with heads folded into the lane dimension.

    kx, skf: (B*kL, E);  sqf: (B*qL, E).  skf/sqf hold each head's mlp score
    replicated across that head's hd lanes (baked into the packed weights), so
    everything below is full-lane-width vector work.
    Returns (B*qL, E): head-concatenated attention output (pre output-projection).
    """
    E = kx.shape[-1]
    sk = skf.reshape(B, 1, kL, E)
    sq = sqf.reshape(B, qL, 1, E)
    # tanh bounds logits to [-1, 1] -> exp is safe without max-subtraction.
    ex = jnp.exp(jnp.tanh(sq + sk))                                # (B, qL, kL, E)
    inv = pl.reciprocal(jnp.sum(ex, axis=2, keepdims=True), approx=True)
    att = ex * inv
    out = jnp.sum(att * kx.reshape(B, 1, kL, E), axis=2)           # (B, qL, E)
    return out.reshape(B * qL, E)


def _self_att_block(x, p, B, L, E):
    """self_att: x + Attention(x, x), then LayerNorm (eps=1e-5).  x: (B*L, E) value."""
    xe = jnp.dot(x, p["wkqs"][...], preferred_element_type=jnp.float32) + p["bkqs"][...]
    kx, skf, sqf = xe[:, :E], xe[:, E:2 * E], xe[:, 2 * E:3 * E]
    o = _attend(kx, skf, sqf, B, L, L)
    att = jnp.dot(o, p["wp"][...], preferred_element_type=jnp.float32) + p["bp"][...]
    return _layer_norm(x + att, p["g"][...], p["b"][...], 1e-5)


def _ffn(x1, x2, p):
    """FeedForward: relu(downsample(tanh(cat(x1,x2)))) -> LN -> 2-layer MLP + residual -> LN.

    Matches the PyTorch module: the SAME LayerNorm (eps=1e-6) is applied twice.
    """
    x = jnp.dot(jnp.tanh(jnp.concatenate([x1, x2], axis=-1)), p["wd"][...],
                preferred_element_type=jnp.float32) + p["bd"][...]
    x = jnp.maximum(x, 0.0)
    x = _layer_norm(x, p["g"][...], p["b"][...], 1e-6)
    resid = x
    h = jnp.maximum(jnp.dot(x, p["w1"][...], preferred_element_type=jnp.float32)
                    + p["b1"][...], 0.0)
    x = jnp.dot(h, p["w2"][...], preferred_element_type=jnp.float32) + p["b2"][...]
    # TODO(synk): dropout omitted (inference / eval semantics).
    return _layer_norm(x + resid, p["g"][...], p["b"][...], 1e-6)


# ------------------------------------------------------------------ the fused kernel
def _forward_kernel(*refs, treedef, n_params, B, T, E, hops):
    q_ref, a_ref, v_ref = refs[0], refs[1], refs[2]
    param_refs = list(refs[3:3 + n_params])
    out_a_ref, out_v_ref = refs[3 + n_params], refs[4 + n_params]
    P = jax.tree_util.tree_unflatten(treedef, param_refs)

    # ---- self-attention preamble (attention + residual + LayerNorm fused in-register)
    q_sa = _self_att_block(q_ref[...], P["q_sa"], B, 1, E)        # (B, E)
    a_sa = _self_att_block(a_ref[...], P["a_sa"], B, T, E)        # (B*T, E)
    v_sa = _self_att_block(v_ref[...], P["v_sa"], B, T, E)        # (B*T, E)

    hp = P["hop"]
    # ---- key-side projections are hop-invariant: one 256-wide matmul per memory,
    #      covering both attentions that share that key (a2a+v2a / v2v+a2v) and
    #      their folded mlp-score projections.
    kxe_a = jnp.dot(a_sa, hp["wk_a"][...], preferred_element_type=jnp.float32) + hp["bk_a"][...]
    kxe_v = jnp.dot(v_sa, hp["wk_v"][...], preferred_element_type=jnp.float32) + hp["bk_v"][...]
    kx_a2a, skf_a2a = kxe_a[:, 0 * E:1 * E], kxe_a[:, 1 * E:2 * E]
    kx_v2a, skf_v2a = kxe_a[:, 2 * E:3 * E], kxe_a[:, 3 * E:4 * E]
    kx_v2v, skf_v2v = kxe_v[:, 0 * E:1 * E], kxe_v[:, 1 * E:2 * E]
    kx_a2v, skf_a2v = kxe_v[:, 2 * E:3 * E], kxe_v[:, 3 * E:4 * E]

    et_a = q_sa
    et_v = q_sa
    for _ in range(hops):        # static unroll: state carried in registers, weights reused
        # query-side score projections, packed per query source (two 128-wide matmuls)
        sqp_a = jnp.dot(et_a, hp["wq_qa"][...], preferred_element_type=jnp.float32) + hp["bq_qa"][...]
        sqp_v = jnp.dot(et_v, hp["wq_qv"][...], preferred_element_type=jnp.float32) + hp["bq_qv"][...]

        o_a2a = _attend(kx_a2a, skf_a2a, sqp_a[:, :E], B, T, 1)   # attention_audio(a, et_audio)
        o_a2v = _attend(kx_a2v, skf_a2v, sqp_a[:, E:], B, T, 1)   # attention_audio2video(v, et_audio)
        o_v2a = _attend(kx_v2a, skf_v2a, sqp_v[:, :E], B, T, 1)   # attention_video2audio(a, et_video)
        o_v2v = _attend(kx_v2v, skf_v2v, sqp_v[:, E:], B, T, 1)   # attention_video(v, et_video)

        # paired output projections; the 0.5 averaging is folded into the packed weights
        it_a = jnp.dot(jnp.concatenate([o_a2a, o_v2a], axis=-1), hp["wp_a"][...],
                       preferred_element_type=jnp.float32) + hp["bp_a"][...]
        it_v = jnp.dot(jnp.concatenate([o_v2v, o_a2v], axis=-1), hp["wp_v"][...],
                       preferred_element_type=jnp.float32) + hp["bp_v"][...]

        et_a = _ffn(it_a, et_a, hp["ffn_a"])
        et_v = _ffn(it_v, et_v, hp["ffn_v"])

    out_a_ref[...] = et_a.astype(out_a_ref.dtype)
    out_v_ref[...] = et_v.astype(out_v_ref.dtype)


# ------------------------------------------------------------------ wrapper
def question_oriented_attention(packed_params, question_memory, audio_memory, video_memory,
                                *, hops):
    B, T, E = audio_memory.shape
    q2d = question_memory.reshape(B, E)
    a2d = audio_memory.reshape(B * T, E)
    v2d = video_memory.reshape(B * T, E)

    flat, treedef = jax.tree_util.tree_flatten(packed_params)
    n_params = len(flat)
    kernel = functools.partial(_forward_kernel, treedef=treedef, n_params=n_params,
                               B=B, T=T, E=E, hops=hops)
    in_specs = [pl.BlockSpec(memory_space=pltpu.MemorySpace.VMEM) for _ in range(3 + n_params)]
    out_specs = (pl.BlockSpec(memory_space=pltpu.MemorySpace.VMEM),
                 pl.BlockSpec(memory_space=pltpu.MemorySpace.VMEM))
    out_a, out_v = pl.pallas_call(
        kernel,
        out_shape=(jax.ShapeDtypeStruct((B, E), jnp.float32),
                   jax.ShapeDtypeStruct((B, E), jnp.float32)),
        in_specs=in_specs,
        out_specs=out_specs,
    )(q2d, a2d, v2d, *flat)
    return out_a, out_v


# ------------------------------------------------------------------ parameter packing
def _pack_attention(p, E, n_head):
    """Fold the separable mlp-score vector into head-replicated (E,E) matrices and
    pre-multiply through the k/q projections so the kernel only needs matmuls."""
    hd = E // n_head
    rep_k = jnp.kron(jnp.eye(n_head, dtype=jnp.float32),
                     jnp.outer(p["w_mlp"][:hd], jnp.ones((hd,), jnp.float32)))
    rep_q = jnp.kron(jnp.eye(n_head, dtype=jnp.float32),
                     jnp.outer(p["w_mlp"][hd:], jnp.ones((hd,), jnp.float32)))
    return dict(
        wk=p["wk"], bk=p["bk"],
        wk_s=p["wk"] @ rep_k, bk_s=p["bk"] @ rep_k,     # per-head k-score, lane-replicated
        wq_s=p["wq"] @ rep_q, bq_s=p["bq"] @ rep_q,     # per-head q-score, lane-replicated
        wp=p["wp"], bp=p["bp"])


def pack_params(raw, E, n_head):
    def pack_self(sa):
        a = _pack_attention(sa["att"], E, n_head)
        return dict(
            wkqs=jnp.concatenate([a["wk"], a["wk_s"], a["wq_s"]], axis=1),   # (E, 3E)
            bkqs=jnp.concatenate([a["bk"], a["bk_s"], a["bq_s"]], axis=1),
            wp=a["wp"], bp=a["bp"], g=sa["gamma"], b=sa["beta"])

    a2a = _pack_attention(raw["attention_audio"], E, n_head)
    v2a = _pack_attention(raw["attention_video2audio"], E, n_head)
    v2v = _pack_attention(raw["attention_video"], E, n_head)
    a2v = _pack_attention(raw["attention_audio2video"], E, n_head)

    hop = dict(
        # key-side packs: [kx | score] for the two attentions sharing each memory
        wk_a=jnp.concatenate([a2a["wk"], a2a["wk_s"], v2a["wk"], v2a["wk_s"]], axis=1),  # (E, 4E)
        bk_a=jnp.concatenate([a2a["bk"], a2a["bk_s"], v2a["bk"], v2a["bk_s"]], axis=1),
        wk_v=jnp.concatenate([v2v["wk"], v2v["wk_s"], a2v["wk"], a2v["wk_s"]], axis=1),
        bk_v=jnp.concatenate([v2v["bk"], v2v["bk_s"], a2v["bk"], a2v["bk_s"]], axis=1),
        # query-side score packs, grouped by query source (et_audio / et_video)
        wq_qa=jnp.concatenate([a2a["wq_s"], a2v["wq_s"]], axis=1),                       # (E, 2E)
        bq_qa=jnp.concatenate([a2a["bq_s"], a2v["bq_s"]], axis=1),
        wq_qv=jnp.concatenate([v2a["wq_s"], v2v["wq_s"]], axis=1),
        bq_qv=jnp.concatenate([v2a["bq_s"], v2v["bq_s"]], axis=1),
        # paired output projections with the /2 averaging folded in
        wp_a=0.5 * jnp.concatenate([a2a["wp"], v2a["wp"]], axis=0),                      # (2E, E)
        bp_a=0.5 * (a2a["bp"] + v2a["bp"]),
        wp_v=0.5 * jnp.concatenate([v2v["wp"], a2v["wp"]], axis=0),
        bp_v=0.5 * (v2v["bp"] + a2v["bp"]),
        ffn_a=raw["ffn_audio"],
        ffn_v=raw["ffn_video"])

    return dict(q_sa=pack_self(raw["question_self_att"]),
                a_sa=pack_self(raw["audio_self_att"]),
                v_sa=pack_self(raw["video_self_att"]),
                hop=hop)


# ------------------------------------------------------------------ raw param init (mirrors PyTorch)
def _uniform(key, shape, bound):
    return jax.random.uniform(key, shape, jnp.float32, -bound, bound)


def init_linear(key, d_in, d_out):
    kw, kb = jax.random.split(key)
    bound = 1.0 / math.sqrt(d_in)
    return _uniform(kw, (d_in, d_out), bound), _uniform(kb, (1, d_out), bound)


def init_attention(key, E, n_head):
    hd = E // n_head
    k1, k2, k3, k4 = jax.random.split(key, 4)
    wk, bk = init_linear(k1, E, n_head * hd)
    wq, bq = init_linear(k2, E, n_head * hd)
    wp, bp = init_linear(k3, n_head * hd, E)
    w_mlp = _uniform(k4, (2 * hd,), 1.0 / math.sqrt(hd))
    return dict(wk=wk, bk=bk, wq=wq, bq=bq, wp=wp, bp=bp, w_mlp=w_mlp)


def init_ffn(key, E):
    d_hid = 2 * E
    k1, k2, k3 = jax.random.split(key, 3)
    wd, bd = init_linear(k1, 2 * E, E)
    w1, b1 = init_linear(k2, E, d_hid)
    w2, b2 = init_linear(k3, d_hid, E)
    return dict(wd=wd, bd=bd, w1=w1, b1=b1, w2=w2, b2=b2,
                g=jnp.ones((1, E), jnp.float32), b=jnp.zeros((1, E), jnp.float32))


def init_self_att(key, E, n_head):
    return dict(att=init_attention(key, E, n_head),
                gamma=jnp.ones((1, E), jnp.float32), beta=jnp.zeros((1, E), jnp.float32))


def init_question_oriented_attention(key, hidden_dim, num_heads):
    E = hidden_dim * 2
    ks = jax.random.split(key, 9)
    return dict(
        attention_audio=init_attention(ks[0], E, num_heads),
        attention_video=init_attention(ks[1], E, num_heads),
        attention_audio2video=init_attention(ks[2], E, num_heads),
        attention_video2audio=init_attention(ks[3], E, num_heads),
        ffn_audio=init_ffn(ks[4], E),
        ffn_video=init_ffn(ks[5], E),
        video_self_att=init_self_att(ks[6], E, num_heads),
        audio_self_att=init_self_att(ks[7], E, num_heads),
        question_self_att=init_self_att(ks[8], E, num_heads),
    )


# ------------------------------------------------------------------ pure-JAX reference (for checking)
def _ref_ln(x, g, b, eps):
    mu = x.mean(-1, keepdims=True)
    var = ((x - mu) ** 2).mean(-1, keepdims=True)
    return (x - mu) / jnp.sqrt(var + eps) * g + b


def _ref_attention(p, k, q, n_head):
    if q.ndim == 2:
        q = q[:, None, :]
    if k.ndim == 2:
        k = k[:, None, :]
    B, kL, E = k.shape
    qL = q.shape[1]
    hd = E // n_head
    kx = (k.reshape(B * kL, E) @ p["wk"] + p["bk"]).reshape(B, kL, n_head, hd)
    qx = (q.reshape(B * qL, E) @ p["wq"] + p["bq"]).reshape(B, qL, n_head, hd)
    sk = jnp.einsum("bkhd,d->bkh", kx, p["w_mlp"][:hd])
    sq = jnp.einsum("bqhd,d->bqh", qx, p["w_mlp"][hd:])
    att = jax.nn.softmax(jnp.tanh(sq[:, :, None, :] + sk[:, None, :, :]), axis=2)
    out = jnp.einsum("bqkh,bkhd->bqhd", att, kx).reshape(B, qL, n_head * hd)
    return out @ p["wp"] + p["bp"]


def _ref_self_att(sa, x, n_head):
    att = _ref_attention(sa["att"], x, x, n_head)
    if x.ndim == 2:
        att = att[:, 0, :]
    return _ref_ln(x + att, sa["gamma"], sa["beta"], 1e-5)


def _ref_ffn(p, x1, x2):
    x = jax.nn.relu(jnp.tanh(jnp.concatenate([x1, x2], axis=-1)) @ p["wd"] + p["bd"])
    x = _ref_ln(x, p["g"], p["b"], 1e-6)
    resid = x
    x = jax.nn.relu(x @ p["w1"] + p["b1"]) @ p["w2"] + p["b2"]
    return _ref_ln(x + resid, p["g"], p["b"], 1e-6)


def reference_forward(raw, question, audio, video, *, hops, num_heads):
    q = _ref_self_att(raw["question_self_att"], question, num_heads)
    a = _ref_self_att(raw["audio_self_att"], audio, num_heads)
    v = _ref_self_att(raw["video_self_att"], video, num_heads)
    et_a, et_v = q, q
    for _ in range(hops):
        a2a = _ref_attention(raw["attention_audio"], a, et_a, num_heads)[:, 0]
        v2a = _ref_attention(raw["attention_video2audio"], a, et_v, num_heads)[:, 0]
        it_a = 0.5 * (a2a + v2a)
        v2v = _ref_attention(raw["attention_video"], v, et_v, num_heads)[:, 0]
        a2v = _ref_attention(raw["attention_audio2video"], v, et_a, num_heads)[:, 0]
        it_v = 0.5 * (v2v + a2v)
        et_a = _ref_ffn(raw["ffn_audio"], it_a, et_a)
        et_v = _ref_ffn(raw["ffn_video"], it_v, et_v)
    return et_a, et_v


# ------------------------------------------------------------------ main
if __name__ == "__main__":
    hops, hidden_dim, num_heads = 2, 32, 4
    B, T = 2, 8
    E = hidden_dim * 2

    key = jax.random.PRNGKey(0)
    kq, ka, kv, kp = jax.random.split(key, 4)
    question_memory = jax.random.normal(kq, (B, E), jnp.float32)
    audio_memory = jax.random.normal(ka, (B, T, E), jnp.float32)
    video_memory = jax.random.normal(kv, (B, T, E), jnp.float32)

    raw_params = init_question_oriented_attention(kp, hidden_dim, num_heads)
    packed = pack_params(raw_params, E, num_heads)

    et_audio, et_video = question_oriented_attention(
        packed, question_memory, audio_memory, video_memory, hops=hops)
    jax.block_until_ready((et_audio, et_video))

    assert et_audio.shape == (B, E) and et_video.shape == (B, E)
    assert bool(jnp.all(jnp.isfinite(et_audio))) and bool(jnp.all(jnp.isfinite(et_video)))

    # cross-check against a pure-JAX reference (tolerance covers the approx EUP reciprocal)
    ref_a, ref_v = reference_forward(raw_params, question_memory, audio_memory, video_memory,
                                     hops=hops, num_heads=num_heads)
    assert float(jnp.max(jnp.abs(et_audio - ref_a))) < 5e-2
    assert float(jnp.max(jnp.abs(et_video - ref_v))) < 5e-2

    print("KERNEL_OK")
</pallas_src>

<mosaic_0001>
module attributes {stable_mosaic.version = 11 : i64} {
  func.func @_forward_kernel(%arg0: memref<2x64xf32, #tpu.memory_space<vmem>>, %arg1: memref<16x64xf32, #tpu.memory_space<vmem>>, %arg2: memref<16x64xf32, #tpu.memory_space<vmem>>, %arg3: memref<1x64xf32, #tpu.memory_space<vmem>>, %arg4: memref<1x192xf32, #tpu.memory_space<vmem>>, %arg5: memref<1x64xf32, #tpu.memory_space<vmem>>, %arg6: memref<1x64xf32, #tpu.memory_space<vmem>>, %arg7: memref<64x192xf32, #tpu.memory_space<vmem>>, %arg8: memref<64x64xf32, #tpu.memory_space<vmem>>, %arg9: memref<1x256xf32, #tpu.memory_space<vmem>>, %arg10: memref<1x256xf32, #tpu.memory_space<vmem>>, %arg11: memref<1x64xf32, #tpu.memory_space<vmem>>, %arg12: memref<1x64xf32, #tpu.memory_space<vmem>>, %arg13: memref<1x128xf32, #tpu.memory_space<vmem>>, %arg14: memref<1x128xf32, #tpu.memory_space<vmem>>, %arg15: memref<1x64xf32, #tpu.memory_space<vmem>>, %arg16: memref<1x128xf32, #tpu.memory_space<vmem>>, %arg17: memref<1x64xf32, #tpu.memory_space<vmem>>, %arg18: memref<1x64xf32, #tpu.memory_space<vmem>>, %arg19: memref<1x64xf32, #tpu.memory_space<vmem>>, %arg20: memref<64x128xf32, #tpu.memory_space<vmem>>, %arg21: memref<128x64xf32, #tpu.memory_space<vmem>>, %arg22: memref<128x64xf32, #tpu.memory_space<vmem>>, %arg23: memref<1x64xf32, #tpu.memory_space<vmem>>, %arg24: memref<1x128xf32, #tpu.memory_space<vmem>>, %arg25: memref<1x64xf32, #tpu.memory_space<vmem>>, %arg26: memref<1x64xf32, #tpu.memory_space<vmem>>, %arg27: memref<1x64xf32, #tpu.memory_space<vmem>>, %arg28: memref<64x128xf32, #tpu.memory_space<vmem>>, %arg29: memref<128x64xf32, #tpu.memory_space<vmem>>, %arg30: memref<128x64xf32, #tpu.memory_space<vmem>>, %arg31: memref<64x256xf32, #tpu.memory_space<vmem>>, %arg32: memref<64x256xf32, #tpu.memory_space<vmem>>, %arg33: memref<128x64xf32, #tpu.memory_space<vmem>>, %arg34: memref<128x64xf32, #tpu.memory_space<vmem>>, %arg35: memref<64x128xf32, #tpu.memory_space<vmem>>, %arg36: memref<64x128xf32, #tpu.memory_space<vmem>>, %arg37: memref<1x64xf32, #tpu.memory_space<vmem>>, %arg38: memref<1x192xf32, #tpu.memory_space<vmem>>, %arg39: memref<1x64xf32, #tpu.memory_space<vmem>>, %arg40: memref<1x64xf32, #tpu.memory_space<vmem>>, %arg41: memref<64x192xf32, #tpu.memory_space<vmem>>, %arg42: memref<64x64xf32, #tpu.memory_space<vmem>>, %arg43: memref<1x64xf32, #tpu.memory_space<vmem>>, %arg44: memref<1x192xf32, #tpu.memory_space<vmem>>, %arg45: memref<1x64xf32, #tpu.memory_space<vmem>>, %arg46: memref<1x64xf32, #tpu.memory_space<vmem>>, %arg47: memref<64x192xf32, #tpu.memory_space<vmem>>, %arg48: memref<64x64xf32, #tpu.memory_space<vmem>>, %arg49: memref<2x64xf32, #tpu.memory_space<vmem>>, %arg50: memref<2x64xf32, #tpu.memory_space<vmem>>) attributes {dimension_semantics = [], scalar_prefetch = 0 : i64, scratch_operands = 0 : i64, tpu.core_type = #tpu.core_type<tc>} {
    %c0 = arith.constant 0 : index
    %c0_0 = arith.constant 0 : index
    %0 = vector.load %arg0[%c0, %c0_0] : memref<2x64xf32, #tpu.memory_space<vmem>>, vector<2x64xf32>
    %c0_1 = arith.constant 0 : index
    %c0_2 = arith.constant 0 : index
    %1 = vector.load %arg41[%c0_1, %c0_2] : memref<64x192xf32, #tpu.memory_space<vmem>>, vector<64x192xf32>
    %cst = arith.constant dense<0.000000e+00> : vector<2x192xf32>
    %2 = tpu.matmul %0, %1, %cst {dimension_numbers = #tpu.dot_dimension_numbers<[1], [0], [0], [1], [0, 0, 1, 1], [], []>} : vector<2x64xf32>, vector<64x192xf32>, vector<2x192xf32> -> vector<2x192xf32>
    %c0_3 = arith.constant 0 : index
    %c0_4 = arith.constant 0 : index
    %3 = vector.load %arg38[%c0_3, %c0_4] : memref<1x192xf32, #tpu.memory_space<vmem>>, vector<1x192xf32>
    %4 = vector.broadcast %3 : vector<1x192xf32> to vector<2x192xf32>
    %5 = arith.addf %2, %4 : vector<2x192xf32>
    %6 = vector.extract_strided_slice %5 {offsets = [0, 0], sizes = [2, 64], strides = [1, 1]} : vector<2x192xf32> to vector<2x64xf32>
    %7 = vector.extract_strided_slice %5 {offsets = [0, 64], sizes = [2, 64], strides = [1, 1]} : vector<2x192xf32> to vector<2x64xf32>
    %8 = vector.extract_strided_slice %5 {offsets = [0, 128], sizes = [2, 64], strides = [1, 1]} : vector<2x192xf32> to vector<2x64xf32>
    %9 = vector.shape_cast %7 : vector<2x64xf32> to vector<2x1x1x64xf32>
    %10 = vector.shape_cast %8 : vector<2x64xf32> to vector<2x1x1x64xf32>
    %11 = arith.addf %10, %9 : vector<2x1x1x64xf32>
    %12 = math.tanh %11 : vector<2x1x1x64xf32>
    %13 = math.exp %12 : vector<2x1x1x64xf32>
    %cst_5 = arith.constant dense<0.000000e+00> : vector<2x1x64xf32>
    %14 = vector.multi_reduction <add>, %13, %cst_5 [2] : vector<2x1x1x64xf32> to vector<2x1x64xf32>
    %15 = vector.shape_cast %14 : vector<2x1x64xf32> to vector<2x1x1x64xf32>
    %16 = tpu.reciprocal %15 {approx = true} : vector<2x1x1x64xf32> -> vector<2x1x1x64xf32>
    %17 = arith.mulf %13, %16 : vector<2x1x1x64xf32>
    %18 = vector.shape_cast %6 : vector<2x64xf32> to vector<2x1x1x64xf32>
    %19 = arith.mulf %17, %18 : vector<2x1x1x64xf32>
    %cst_6 = arith.constant dense<0.000000e+00> : vector<2x1x64xf32>
    %20 = vector.multi_reduction <add>, %19, %cst_6 [2] : vector<2x1x1x64xf32> to vector<2x1x64xf32>
    %21 = vector.shape_cast %20 : vector<2x1x64xf32> to vector<2x64xf32>
    %c0_7 = arith.constant 0 : index
    %c0_8 = arith.constant 0 : index
    %22 = vector.load %arg42[%c0_7, %c0_8] : memref<64x64xf32, #tpu.memory_space<vmem>>, vector<64x64xf32>
    %cst_9 = arith.constant dense<0.000000e+00> : vector<2x64xf32>
    %23 = tpu.matmul %21, %22, %cst_9 {dimension_numbers = #tpu.dot_dimension_numbers<[1], [0], [0], [1], [0, 0, 1, 1], [], []>} : vector<2x64xf32>, vector<64x64xf32>, vector<2x64xf32> -> vector<2x64xf32>
    %c0_10 = arith.constant 0 : index
    %c0_11 = arith.constant 0 : index
    %24 = vector.load %arg39[%c0_10, %c0_11] : memref<1x64xf32, #tpu.memory_space<vmem>>, vector<1x64xf32>
    %25 = vector.broadcast %24 : vector<1x64xf32> to vector<2x64xf32>
    %26 = arith.addf %23, %25 : vector<2x64xf32>
    %27 = arith.addf %0, %26 : vector<2x64xf32>
    %c0_12 = arith.constant 0 : index
    %c0_13 = arith.constant 0 : index
    %28 = vector.load %arg40[%c0_12, %c0_13] : memref<1x64xf32, #tpu.memory_space<vmem>>, vector<1x64xf32>
    %c0_14 = arith.constant 0 : index
    %c0_15 = arith.constant 0 : index
    %29 = vector.load %arg37[%c0_14, %c0_15] : memref<1x64xf32, #tpu.memory_space<vmem>>, vector<1x64xf32>
    %cst_16 = arith.constant dense<0.000000e+00> : vector<2xf32>
    %30 = vector.multi_reduction <add>, %27, %cst_16 [1] : vector<2x64xf32> to vector<2xf32>
    %31 = vector.shape_cast %30 : vector<2xf32> to vector<2x1xf32>
    %cst_17 = arith.constant 6.400000e+01 : f32
    %32 = vector.broadcast %cst_17 : f32 to vector<2x1xf32>
    %33 = arith.divf %31, %32 : vector<2x1xf32>
    %34 = vector.broadcast %33 : vector<2x1xf32> to vector<2x64xf32>
    %35 = arith.subf %27, %34 : vector<2x64xf32>
    %36 = arith.mulf %35, %35 : vector<2x64xf32>
    %cst_18 = arith.constant dense<0.000000e+00> : vector<2xf32>
    %37 = vector.multi_reduction <add>, %36, %cst_18 [1] : vector<2x64xf32> to vector<2xf32>
    %38 = vector.shape_cast %37 : vector<2xf32> to vector<2x1xf32>
    %cst_19 = arith.constant 6.400000e+01 : f32
    %39 = vector.broadcast %cst_19 : f32 to vector<2x1xf32>
    %40 = arith.divf %38, %39 : vector<2x1xf32>
    %41 = vector.broadcast %33 : vector<2x1xf32> to vector<2x64xf32>
    %42 = arith.subf %27, %41 : vector<2x64xf32>
    %cst_20 = arith.constant 9.99999974E-6 : f32
    %43 = vector.broadcast %cst_20 : f32 to vector<2x1xf32>
    %44 = arith.addf %40, %43 : vector<2x1xf32>
    %45 = math.rsqrt %44 : vector<2x1xf32>
    %46 = vector.broadcast %45 : vector<2x1xf32> to vector<2x64xf32>
    %47 = arith.mulf %42, %46 : vector<2x64xf32>
    %48 = vector.broadcast %28 : vector<1x64xf32> to vector<2x64xf32>
    %49 = arith.mulf %47, %48 : vector<2x64xf32>
    %50 = vector.broadcast %29 : vector<1x64xf32> to vector<2x64xf32>
    %51 = arith.addf %49, %50 : vector<2x64xf32>
    %c0_21 = arith.constant 0 : index
    %c0_22 = arith.constant 0 : index
    %52 = vector.load %arg1[%c0_21, %c0_22] : memref<16x64xf32, #tpu.memory_space<vmem>>, vector<16x64xf32>
    %c0_23 = arith.constant 0 : index
    %c0_24 = arith.constant 0 : index
    %53 = vector.load %arg7[%c0_23, %c0_24] : memref<64x192xf32, #tpu.memory_space<vmem>>, vector<64x192xf32>
    %cst_25 = arith.constant dense<0.000000e+00> : vector<16x192xf32>
    %54 = tpu.matmul %52, %53, %cst_25 {dimension_numbers = #tpu.dot_dimension_numbers<[1], [0], [0], [1], [0, 0, 1, 1], [], []>} : vector<16x64xf32>, vector<64x192xf32>, vector<16x192xf32> -> vector<16x192xf32>
    %c0_26 = arith.constant 0 : index
    %c0_27 = arith.constant 0 : index
    %55 = vector.load %arg4[%c0_26, %c0_27] : memref<1x192xf32, #tpu.memory_space<vmem>>, vector<1x192xf32>
    %56 = vector.broadcast %55 : vector<1x192xf32> to vector<16x192xf32>
    %57 = arith.addf %54, %56 : vector<16x192xf32>
    %58 = vector.extract_strided_slice %57 {offsets = [0, 0], sizes = [16, 64], strides = [1, 1]} : vector<16x192xf32> to vector<16x64xf32>
    %59 = vector.extract_strided_slice %57 {offsets = [0, 64], sizes = [16, 64], strides = [1, 1]} : vector<16x192xf32> to vector<16x64xf32>
    %60 = vector.extract_strided_slice %57 {offsets = [0, 128], sizes = [16, 64], strides = [1, 1]} : vector<16x192xf32> to vector<16x64xf32>
    %61 = vector.shape_cast %59 : vector<16x64xf32> to vector<2x1x8x64xf32>
    %62 = vector.shape_cast %60 : vector<16x64xf32> to vector<2x8x1x64xf32>
    %63 = vector.broadcast %62 : vector<2x8x1x64xf32> to vector<2x8x8x64xf32>
    %64 = vector.broadcast %61 : vector<2x1x8x64xf32> to vector<2x8x8x64xf32>
    %65 = arith.addf %63, %64 : vector<2x8x8x64xf32>
    %66 = math.tanh %65 : vector<2x8x8x64xf32>
    %67 = math.exp %66 : vector<2x8x8x64xf32>
    %cst_28 = arith.constant dense<0.000000e+00> : vector<2x8x64xf32>
    %68 = vector.multi_reduction <add>, %67, %cst_28 [2] : vector<2x8x8x64xf32> to vector<2x8x64xf32>
    %69 = vector.shape_cast %68 : vector<2x8x64xf32> to vector<2x8x1x64xf32>
    %70 = tpu.reciprocal %69 {approx = true} : vector<2x8x1x64xf32> -> vector<2x8x1x64xf32>
    %71 = vector.broadcast %70 : vector<2x8x1x64xf32> to vector<2x8x8x64xf32>
    %72 = arith.mulf %67, %71 : vector<2x8x8x64xf32>
    %73 = vector.shape_cast %58 : vector<16x64xf32> to vector<2x1x8x64xf32>
    %74 = vector.broadcast %73 : vector<2x1x8x64xf32> to vector<2x8x8x64xf32>
    %75 = arith.mulf %72, %74 : vector<2x8x8x64xf32>
    %cst_29 = arith.constant dense<0.000000e+00> : vector<2x8x64xf32>
    %76 = vector.multi_reduction <add>, %75, %cst_29 [2] : vector<2x8x8x64xf32> to vector<2x8x64xf32>
    %77 = vector.shape_cast %76 : vector<2x8x64xf32> to vector<16x64xf32>
    %c0_30 = arith.constant 0 : index
    %c0_31 = arith.constant 0 : index
    %78 = vector.load %arg8[%c0_30, %c0_31] : memref<64x64xf32, #tpu.memory_space<vmem>>, vector<64x64xf32>
    %cst_32 = arith.constant dense<0.000000e+00> : vector<16x64xf32>
    %79 = tpu.matmul %77, %78, %cst_32 {dimension_numbers = #tpu.dot_dimension_numbers<[1], [0], [0], [1], [0, 0, 1, 1], [], []>} : vector<16x64xf32>, vector<64x64xf32>, vector<16x64xf32> -> vector<16x64xf32>
    %c0_33 = arith.constant 0 : index
    %c0_34 = arith.constant 0 : index
    %80 = vector.load %arg5[%c0_33, %c0_34] : memref<1x64xf32, #tpu.memory_space<vmem>>, vector<1x64xf32>
    %81 = vector.broadcast %80 : vector<1x64xf32> to vector<16x64xf32>
    %82 = arith.addf %79, %81 : vector<16x64xf32>
    %83 = arith.addf %52, %82 : vector<16x64xf32>
    %c0_35 = arith.constant 0 : index
    %c0_36 = arith.constant 0 : index
    %84 = vector.load %arg6[%c0_35, %c0_36] : memref<1x64xf32, #tpu.memory_space<vmem>>, vector<1x64xf32>
    %c0_37 = arith.constant 0 : index
    %c0_38 = arith.constant 0 : index
    %85 = vector.load %arg3[%c0_37, %c0_38] : memref<1x64xf32, #tpu.memory_space<vmem>>, vector<1x64xf32>
    %cst_39 = arith.constant dense<0.000000e+00> : vector<16xf32>
    %86 = vector.multi_reduction <add>, %83, %cst_39 [1] : vector<16x64xf32> to vector<16xf32>
    %87 = vector.shape_cast %86 : vector<16xf32> to vector<16x1xf32>
    %cst_40 = arith.constant 6.400000e+01 : f32
    %88 = vector.broadcast %cst_40 : f32 to vector<16x1xf32>
    %89 = arith.divf %87, %88 : vector<16x1xf32>
    %90 = vector.broadcast %89 : vector<16x1xf32> to vector<16x64xf32>
    %91 = arith.subf %83, %90 : vector<16x64xf32>
    %92 = arith.mulf %91, %91 : vector<16x64xf32>
    %cst_41 = arith.constant dense<0.000000e+00> : vector<16xf32>
    %93 = vector.multi_reduction <add>, %92, %cst_41 [1] : vector<16x64xf32> to vector<16xf32>
    %94 = vector.shape_cast %93 : vector<16xf32> to vector<16x1xf32>
    %cst_42 = arith.constant 6.400000e+01 : f32
    %95 = vector.broadcast %cst_42 : f32 to vector<16x1xf32>
    %96 = arith.divf %94, %95 : vector<16x1xf32>
    %97 = vector.broadcast %89 : vector<16x1xf32> to vector<16x64xf32>
    %98 = arith.subf %83, %97 : vector<16x64xf32>
    %cst_43 = arith.constant 9.99999974E-6 : f32
    %99 = vector.broadcast %cst_43 : f32 to vector<16x1xf32>
    %100 = arith.addf %96, %99 : vector<16x1xf32>
    %101 = math.rsqrt %100 : vector<16x1xf32>
    %102 = vector.broadcast %101 : vector<16x1xf32> to vector<16x64xf32>
    %103 = arith.mulf %98, %102 : vector<16x64xf32>
    %104 = vector.broadcast %84 : vector<1x64xf32> to vector<16x64xf32>
    %105 = arith.mulf %103, %104 : vector<16x64xf32>
    %106 = vector.broadcast %85 : vector<1x64xf32> to vector<16x64xf32>
    %107 = arith.addf %105, %106 : vector<16x64xf32>
    %c0_44 = arith.constant 0 : index
    %c0_45 = arith.constant 0 : index
    %108 = vector.load %arg2[%c0_44, %c0_45] : memref<16x64xf32, #tpu.memory_space<vmem>>, vector<16x64xf32>
    %c0_46 = arith.constant 0 : index
    %c0_47 = arith.constant 0 : index
    %109 = vector.load %arg47[%c0_46, %c0_47] : memref<64x192xf32, #tpu.memory_space<vmem>>, vector<64x192xf32>
    %cst_48 = arith.constant dense<0.000000e+00> : vector<16x192xf32>
    %110 = tpu.matmul %108, %109, %cst_48 {dimension_numbers = #tpu.dot_dimension_numbers<[1], [0], [0], [1], [0, 0, 1, 1], [], []>} : vector<16x64xf32>, vector<64x192xf32>, vector<16x192xf32> -> vector<16x192xf32>
    %c0_49 = arith.constant 0 : index
    %c0_50 = arith.constant 0 : index
    %111 = vector.load %arg44[%c0_49, %c0_50] : memref<1x192xf32, #tpu.memory_space<vmem>>, vector<1x192xf32>
    %112 = vector.broadcast %111 : vector<1x192xf32> to vector<16x192xf32>
    %113 = arith.addf %110, %112 : vector<16x192xf32>
    %114 = vector.extract_strided_slice %113 {offsets = [0, 0], sizes = [16, 64], strides = [1, 1]} : vector<16x192xf32> to vector<16x64xf32>
    %115 = vector.extract_strided_slice %113 {offsets = [0, 64], sizes = [16, 64], strides = [1, 1]} : vector<16x192xf32> to vector<16x64xf32>
    %116 = vector.extract_strided_slice %113 {offsets = [0, 128], sizes = [16, 64], strides = [1, 1]} : vector<16x192xf32> to vector<16x64xf32>
    %117 = vector.shape_cast %115 : vector<16x64xf32> to vector<2x1x8x64xf32>
    %118 = vector.shape_cast %116 : vector<16x64xf32> to vector<2x8x1x64xf32>
    %119 = vector.broadcast %118 : vector<2x8x1x64xf32> to vector<2x8x8x64xf32>
    %120 = vector.broadcast %117 : vector<2x1x8x64xf32> to vector<2x8x8x64xf32>
    %121 = arith.addf %119, %120 : vector<2x8x8x64xf32>
    %122 = math.tanh %121 : vector<2x8x8x64xf32>
    %123 = math.exp %122 : vector<2x8x8x64xf32>
    %cst_51 = arith.constant dense<0.000000e+00> : vector<2x8x64xf32>
    %124 = vector.multi_reduction <add>, %123, %cst_51 [2] : vector<2x8x8x64xf32> to vector<2x8x64xf32>
    %125 = vector.shape_cast %124 : vector<2x8x64xf32> to vector<2x8x1x64xf32>
    %126 = tpu.reciprocal %125 {approx = true} : vector<2x8x1x64xf32> -> vector<2x8x1x64xf32>
    %127 = vector.broadcast %126 : vector<2x8x1x64xf32> to vector<2x8x8x64xf32>
    %128 = arith.mulf %123, %127 : vector<2x8x8x64xf32>
    %129 = vector.shape_cast %114 : vector<16x64xf32> to vector<2x1x8x64xf32>
    %130 = vector.broadcast %129 : vector<2x1x8x64xf32> to vector<2x8x8x64xf32>
    %131 = arith.mulf %128, %130 : vector<2x8x8x64xf32>
    %cst_52 = arith.constant dense<0.000000e+00> : vector<2x8x64xf32>
    %132 = vector.multi_reduction <add>, %131, %cst_52 [2] : vector<2x8x8x64xf32> to vector<2x8x64xf32>
    %133 = vector.shape_cast %132 : vector<2x8x64xf32> to vector<16x64xf32>
    %c0_53 = arith.constant 0 : index
    %c0_54 = arith.constant 0 : index
    %134 = vector.load %arg48[%c0_53, %c0_54] : memref<64x64xf32, #tpu.memory_space<vmem>>, vector<64x64xf32>
    %cst_55 = arith.constant dense<0.000000e+00> : vector<16x64xf32>
    %135 = tpu.matmul %133, %134, %cst_55 {dimension_numbers = #tpu.dot_dimension_numbers<[1], [0], [0], [1], [0, 0, 1, 1], [], []>} : vector<16x64xf32>, vector<64x64xf32>, vector<16x64xf32> -> vector<16x64xf32>
    %c0_56 = arith.constant 0 : index
    %c0_57 = arith.constant 0 : index
    %136 = vector.load %arg45[%c0_56, %c0_57] : memref<1x64xf32, #tpu.memory_space<vmem>>, vector<1x64xf32>
    %137 = vector.broadcast %136 : vector<1x64xf32> to vector<16x64xf32>
    %138 = arith.addf %135, %137 : vector<16x64xf32>
    %139 = arith.addf %108, %138 : vector<16x64xf32>
    %c0_58 = arith.constant 0 : index
    %c0_59 = arith.constant 0 : index
    %140 = vector.load %arg46[%c0_58, %c0_59] : memref<1x64xf32, #tpu.memory_space<vmem>>, vector<1x64xf32>
    %c0_60 = arith.constant 0 : index
    %c0_61 = arith.constant 0 : index
    %141 = vector.load %arg43[%c0_60, %c0_61] : memref<1x64xf32, #tpu.memory_space<vmem>>, vector<1x64xf32>
    %cst_62 = arith.constant dense<0.000000e+00> : vector<16xf32>
    %142 = vector.multi_reduction <add>, %139, %cst_62 [1] : vector<16x64xf32> to vector<16xf32>
    %143 = vector.shape_cast %142 : vector<16xf32> to vector<16x1xf32>
    %cst_63 = arith.constant 6.400000e+01 : f32
    %144 = vector.broadcast %cst_63 : f32 to vector<16x1xf32>
    %145 = arith.divf %143, %144 : vector<16x1xf32>
    %146 = vector.broadcast %145 : vector<16x1xf32> to vector<16x64xf32>
    %147 = arith.subf %139, %146 : vector<16x64xf32>
    %148 = arith.mulf %147, %147 : vector<16x64xf32>
    %cst_64 = arith.constant dense<0.000000e+00> : vector<16xf32>
    %149 = vector.multi_reduction <add>, %148, %cst_64 [1] : vector<16x64xf32> to vector<16xf32>
    %150 = vector.shape_cast %149 : vector<16xf32> to vector<16x1xf32>
    %cst_65 = arith.constant 6.400000e+01 : f32
    %151 = vector.broadcast %cst_65 : f32 to vector<16x1xf32>
    %152 = arith.divf %150, %151 : vector<16x1xf32>
    %153 = vector.broadcast %145 : vector<16x1xf32> to vector<16x64xf32>
    %154 = arith.subf %139, %153 : vector<16x64xf32>
    %cst_66 = arith.constant 9.99999974E-6 : f32
    %155 = vector.broadcast %cst_66 : f32 to vector<16x1xf32>
    %156 = arith.addf %152, %155 : vector<16x1xf32>
    %157 = math.rsqrt %156 : vector<16x1xf32>
    %158 = vector.broadcast %157 : vector<16x1xf32> to vector<16x64xf32>
    %159 = arith.mulf %154, %158 : vector<16x64xf32>
    %160 = vector.broadcast %140 : vector<1x64xf32> to vector<16x64xf32>
    %161 = arith.mulf %159, %160 : vector<16x64xf32>
    %162 = vector.broadcast %141 : vector<1x64xf32> to vector<16x64xf32>
    %163 = arith.addf %161, %162 : vector<16x64xf32>
    %c0_67 = arith.constant 0 : index
    %c0_68 = arith.constant 0 : index
    %164 = vector.load %arg31[%c0_67, %c0_68] : memref<64x256xf32, #tpu.memory_space<vmem>>, vector<64x256xf32>
    %cst_69 = arith.constant dense<0.000000e+00> : vector<16x256xf32>
    %165 = tpu.matmul %107, %164, %cst_69 {dimension_numbers = #tpu.dot_dimension_numbers<[1], [0], [0], [1], [0, 0, 1, 1], [], []>} : vector<16x64xf32>, vector<64x256xf32>, vector<16x256xf32> -> vector<16x256xf32>
    %c0_70 = arith.constant 0 : index
    %c0_71 = arith.constant 0 : index
    %166 = vector.load %arg9[%c0_70, %c0_71] : memref<1x256xf32, #tpu.memory_space<vmem>>, vector<1x256xf32>
    %167 = vector.broadcast %166 : vector<1x256xf32> to vector<16x256xf32>
    %168 = arith.addf %165, %167 : vector<16x256xf32>
    %c0_72 = arith.constant 0 : index
    %c0_73 = arith.constant 0 : index
    %169 = vector.load %arg32[%c0_72, %c0_73] : memref<64x256xf32, #tpu.memory_space<vmem>>, vector<64x256xf32>
    %cst_74 = arith.constant dense<0.000000e+00> : vector<16x256xf32>
    %170 = tpu.matmul %163, %169, %cst_74 {dimension_numbers = #tpu.dot_dimension_numbers<[1], [0], [0], [1], [0, 0, 1, 1], [], []>} : vector<16x64xf32>, vector<64x256xf32>, vector<16x256xf32> -> vector<16x256xf32>
    %c0_75 = arith.constant 0 : index
    %c0_76 = arith.constant 0 : index
    %171 = vector.load %arg10[%c0_75, %c0_76] : memref<1x256xf32, #tpu.memory_space<vmem>>, vector<1x256xf32>
    %172 = vector.broadcast %171 : vector<1x256xf32> to vector<16x256xf32>
    %173 = arith.addf %170, %172 : vector<16x256xf32>
    %174 = vector.extract_strided_slice %168 {offsets = [0, 0], sizes = [16, 64], strides = [1, 1]} : vector<16x256xf32> to vector<16x64xf32>
    %175 = vector.extract_strided_slice %168 {offsets = [0, 64], sizes = [16, 64], strides = [1, 1]} : vector<16x256xf32> to vector<16x64xf32>
    %176 = vector.extract_strided_slice %168 {offsets = [0, 128], sizes = [16, 64], strides = [1, 1]} : vector<16x256xf32> to vector<16x64xf32>
    %177 = vector.extract_strided_slice %168 {offsets = [0, 192], sizes = [16, 64], strides = [1, 1]} : vector<16x256xf32> to vector<16x64xf32>
    %178 = vector.extract_strided_slice %173 {offsets = [0, 0], sizes = [16, 64], strides = [1, 1]} : vector<16x256xf32> to vector<16x64xf32>
    %179 = vector.extract_strided_slice %173 {offsets = [0, 64], sizes = [16, 64], strides = [1, 1]} : vector<16x256xf32> to vector<16x64xf32>
    %180 = vector.extract_strided_slice %173 {offsets = [0, 128], sizes = [16, 64], strides = [1, 1]} : vector<16x256xf32> to vector<16x64xf32>
    %181 = vector.extract_strided_slice %173 {offsets = [0, 192], sizes = [16, 64], strides = [1, 1]} : vector<16x256xf32> to vector<16x64xf32>
    %c0_77 = arith.constant 0 : index
    %c0_78 = arith.constant 0 : index
    %182 = vector.load %arg35[%c0_77, %c0_78] : memref<64x128xf32, #tpu.memory_space<vmem>>, vector<64x128xf32>
    %cst_79 = arith.constant dense<0.000000e+00> : vector<2x128xf32>
    %183 = tpu.matmul %51, %182, %cst_79 {dimension_numbers = #tpu.dot_dimension_numbers<[1], [0], [0], [1], [0, 0, 1, 1], [], []>} : vector<2x64xf32>, vector<64x128xf32>, vector<2x128xf32> -> vector<2x128xf32>
    %c0_80 = arith.constant 0 : index
    %c0_81 = arith.constant 0 : index
    %184 = vector.load %arg13[%c0_80, %c0_81] : memref<1x128xf32, #tpu.memory_space<vmem>>, vector<1x128xf32>
    %185 = vector.broadcast %184 : vector<1x128xf32> to vector<2x128xf32>
    %186 = arith.addf %183, %185 : vector<2x128xf32>
    %c0_82 = arith.constant 0 : index
    %c0_83 = arith.constant 0 : index
    %187 = vector.load %arg36[%c0_82, %c0_83] : memref<64x128xf32, #tpu.memory_space<vmem>>, vector<64x128xf32>
    %cst_84 = arith.constant dense<0.000000e+00> : vector<2x128xf32>
    %188 = tpu.matmul %51, %187, %cst_84 {dimension_numbers = #tpu.dot_dimension_numbers<[1], [0], [0], [1], [0, 0, 1, 1], [], []>} : vector<2x64xf32>, vector<64x128xf32>, vector<2x128xf32> -> vector<2x128xf32>
    %c0_85 = arith.constant 0 : index
    %c0_86 = arith.constant 0 : index
    %189 = vector.load %arg14[%c0_85, %c0_86] : memref<1x128xf32, #tpu.memory_space<vmem>>, vector<1x128xf32>
    %190 = vector.broadcast %189 : vector<1x128xf32> to vector<2x128xf32>
    %191 = arith.addf %188, %190 : vector<2x128xf32>
    %192 = vector.extract_strided_slice %186 {offsets = [0, 0], sizes = [2, 64], strides = [1, 1]} : vector<2x128xf32> to vector<2x64xf32>
    %193 = vector.shape_cast %175 : vector<16x64xf32> to vector<2x1x8x64xf32>
    %194 = vector.shape_cast %192 : vector<2x64xf32> to vector<2x1x1x64xf32>
    %195 = vector.broadcast %194 : vector<2x1x1x64xf32> to vector<2x1x8x64xf32>
    %196 = arith.addf %195, %193 : vector<2x1x8x64xf32>
    %197 = math.tanh %196 : vector<2x1x8x64xf32>
    %198 = math.exp %197 : vector<2x1x8x64xf32>
    %cst_87 = arith.constant dense<0.000000e+00> : vector<2x1x64xf32>
    %199 = vector.multi_reduction <add>, %198, %cst_87 [2] : vector<2x1x8x64xf32> to vector<2x1x64xf32>
    %200 = vector.shape_cast %199 : vector<2x1x64xf32> to vector<2x1x1x64xf32>
    %201 = tpu.reciprocal %200 {approx = true} : vector<2x1x1x64xf32> -> vector<2x1x1x64xf32>
    %202 = vector.broadcast %201 : vector<2x1x1x64xf32> to vector<2x1x8x64xf32>
    %203 = arith.mulf %198, %202 : vector<2x1x8x64xf32>
    %204 = vector.shape_cast %174 : vector<16x64xf32> to vector<2x1x8x64xf32>
    %205 = arith.mulf %203, %204 : vector<2x1x8x64xf32>
    %cst_88 = arith.constant dense<0.000000e+00> : vector<2x1x64xf32>
    %206 = vector.multi_reduction <add>, %205, %cst_88 [2] : vector<2x1x8x64xf32> to vector<2x1x64xf32>
    %207 = vector.shape_cast %206 : vector<2x1x64xf32> to vector<2x64xf32>
    %208 = vector.extract_strided_slice %186 {offsets = [0, 64], sizes = [2, 64], strides = [1, 1]} : vector<2x128xf32> to vector<2x64xf32>
    %209 = vector.shape_cast %181 : vector<16x64xf32> to vector<2x1x8x64xf32>
    %210 = vector.shape_cast %208 : vector<2x64xf32> to vector<2x1x1x64xf32>
    %211 = vector.broadcast %210 : vector<2x1x1x64xf32> to vector<2x1x8x64xf32>
    %212 = arith.addf %211, %209 : vector<2x1x8x64xf32>
    %213 = math.tanh %212 : vector<2x1x8x64xf32>
    %214 = math.exp %213 : vector<2x1x8x64xf32>
    %cst_89 = arith.constant dense<0.000000e+00> : vector<2x1x64xf32>
    %215 = vector.multi_reduction <add>, %214, %cst_89 [2] : vector<2x1x8x64xf32> to vector<2x1x64xf32>
    %216 = vector.shape_cast %215 : vector<2x1x64xf32> to vector<2x1x1x64xf32>
    %217 = tpu.reciprocal %216 {approx = true} : vector<2x1x1x64xf32> -> vector<2x1x1x64xf32>
    %218 = vector.broadcast %217 : vector<2x1x1x64xf32> to vector<2x1x8x64xf32>
    %219 = arith.mulf %214, %218 : vector<2x1x8x64xf32>
    %220 = vector.shape_cast %180 : vector<16x64xf32> to vector<2x1x8x64xf32>
    %221 = arith.mulf %219, %220 : vector<2x1x8x64xf32>
    %cst_90 = arith.constant dense<0.000000e+00> : vector<2x1x64xf32>
    %222 = vector.multi_reduction <add>, %221, %cst_90 [2] : vector<2x1x8x64xf32> to vector<2x1x64xf32>
    %223 = vector.shape_cast %222 : vector<2x1x64xf32> to vector<2x64xf32>
    %224 = vector.extract_strided_slice %191 {offsets = [0, 0], sizes = [2, 64], strides = [1, 1]} : vector<2x128xf32> to vector<2x64xf32>
    %225 = vector.shape_cast %177 : vector<16x64xf32> to vector<2x1x8x64xf32>
    %226 = vector.shape_cast %224 : vector<2x64xf32> to vector<2x1x1x64xf32>
    %227 = vector.broadcast %226 : vector<2x1x1x64xf32> to vector<2x1x8x64xf32>
    %228 = arith.addf %227, %225 : vector<2x1x8x64xf32>
    %229 = math.tanh %228 : vector<2x1x8x64xf32>
    %230 = math.exp %229 : vector<2x1x8x64xf32>
    %cst_91 = arith.constant dense<0.000000e+00> : vector<2x1x64xf32>
    %231 = vector.multi_reduction <add>, %230, %cst_91 [2] : vector<2x1x8x64xf32> to vector<2x1x64xf32>
    %232 = vector.shape_cast %231 : vector<2x1x64xf32> to vector<2x1x1x64xf32>
    %233 = tpu.reciprocal %232 {approx = true} : vector<2x1x1x64xf32> -> vector<2x1x1x64xf32>
    %234 = vector.broadcast %233 : vector<2x1x1x64xf32> to vector<2x1x8x64xf32>
    %235 = arith.mulf %230, %234 : vector<2x1x8x64xf32>
    %236 = vector.shape_cast %176 : vector<16x64xf32> to vector<2x1x8x64xf32>
    %237 = arith.mulf %235, %236 : vector<2x1x8x64xf32>
    %cst_92 = arith.constant dense<0.000000e+00> : vector<2x1x64xf32>
    %238 = vector.multi_reduction <add>, %237, %cst_92 [2] : vector<2x1x8x64xf32> to vector<2x1x64xf32>
    %239 = vector.shape_cast %238 : vector<2x1x64xf32> to vector<2x64xf32>
    %240 = vector.extract_strided_slice %191 {offsets = [0, 64], sizes = [2, 64], strides = [1, 1]} : vector<2x128xf32> to vector<2x64xf32>
    %241 = vector.shape_cast %179 : vector<16x64xf32> to vector<2x1x8x64xf32>
    %242 = vector.shape_cast %240 : vector<2x64xf32> to vector<2x1x1x64xf32>
    %243 = vector.broadcast %242 : vector<2x1x1x64xf32> to vector<2x1x8x64xf32>
    %244 = arith.addf %243, %241 : vector<2x1x8x64xf32>
    %245 = math.tanh %244 : vector<2x1x8x64xf32>
    %246 = math.exp %245 : vector<2x1x8x64xf32>
    %cst_93 = arith.constant dense<0.000000e+00> : vector<2x1x64xf32>
    %247 = vector.multi_reduction <add>, %246, %cst_93 [2] : vector<2x1x8x64xf32> to vector<2x1x64xf32>
    %248 = vector.shape_cast %247 : vector<2x1x64xf32> to vector<2x1x1x64xf32>
    %249 = tpu.reciprocal %248 {approx = true} : vector<2x1x1x64xf32> -> vector<2x1x1x64xf32>
    %250 = vector.broadcast %249 : vector<2x1x1x64xf32> to vector<2x1x8x64xf32>
    %251 = arith.mulf %246, %250 : vector<2x1x8x64xf32>
    %252 = vector.shape_cast %178 : vector<16x64xf32> to vector<2x1x8x64xf32>
    %253 = arith.mulf %251, %252 : vector<2x1x8x64xf32>
    %cst_94 = arith.constant dense<0.000000e+00> : vector<2x1x64xf32>
    %254 = vector.multi_reduction <add>, %253, %cst_94 [2] : vector<2x1x8x64xf32> to vector<2x1x64xf32>
    %255 = vector.shape_cast %254 : vector<2x1x64xf32> to vector<2x64xf32>
    %256 = tpu.concatenate %207, %239 in 1 : vector<2x64xf32>, vector<2x64xf32> -> vector<2x128xf32>
    %c0_95 = arith.constant 0 : index
    %c0_96 = arith.constant 0 : index
    %257 = vector.load %arg33[%c0_95, %c0_96] : memref<128x64xf32, #tpu.memory_space<vmem>>, vector<128x64xf32>
    %cst_97 = arith.constant dense<0.000000e+00> : vector<2x64xf32>
    %258 = tpu.matmul %256, %257, %cst_97 {dimension_numbers = #tpu.dot_dimension_numbers<[1], [0], [0], [1], [0, 0, 1, 1], [], []>} : vector<2x128xf32>, vector<128x64xf32>, vector<2x64xf32> -> vector<2x64xf32>
    %c0_98 = arith.constant 0 : index
    %c0_99 = arith.constant 0 : index
    %259 = vector.load %arg11[%c0_98, %c0_99] : memref<1x64xf32, #tpu.memory_space<vmem>>, vector<1x64xf32>
    %260 = vector.broadcast %259 : vector<1x64xf32> to vector<2x64xf32>
    %261 = arith.addf %258, %260 : vector<2x64xf32>
    %262 = tpu.concatenate %255, %223 in 1 : vector<2x64xf32>, vector<2x64xf32> -> vector<2x128xf32>
    %c0_100 = arith.constant 0 : index
    %c0_101 = arith.constant 0 : index
    %263 = vector.load %arg34[%c0_100, %c0_101] : memref<128x64xf32, #tpu.memory_space<vmem>>, vector<128x64xf32>
    %cst_102 = arith.constant dense<0.000000e+00> : vector<2x64xf32>
    %264 = tpu.matmul %262, %263, %cst_102 {dimension_numbers = #tpu.dot_dimension_numbers<[1], [0], [0], [1], [0, 0, 1, 1], [], []>} : vector<2x128xf32>, vector<128x64xf32>, vector<2x64xf32> -> vector<2x64xf32>
    %c0_103 = arith.constant 0 : index
    %c0_104 = arith.constant 0 : index
    %265 = vector.load %arg12[%c0_103, %c0_104] : memref<1x64xf32, #tpu.memory_space<vmem>>, vector<1x64xf32>
    %266 = vector.broadcast %265 : vector<1x64xf32> to vector<2x64xf32>
    %267 = arith.addf %264, %266 : vector<2x64xf32>
    %268 = tpu.concatenate %261, %51 in 1 : vector<2x64xf32>, vector<2x64xf32> -> vector<2x128xf32>
    %269 = math.tanh %268 : vector<2x128xf32>
    %c0_105 = arith.constant 0 : index
    %c0_106 = arith.constant 0 : index
    %270 = vector.load %arg22[%c0_105, %c0_106] : memref<128x64xf32, #tpu.memory_space<vmem>>, vector<128x64xf32>
    %cst_107 = arith.constant dense<0.000000e+00> : vector<2x64xf32>
    %271 = tpu.matmul %269, %270, %cst_107 {dimension_numbers = #tpu.dot_dimension_numbers<[1], [0], [0], [1], [0, 0, 1, 1], [], []>} : vector<2x128xf32>, vector<128x64xf32>, vector<2x64xf32> -> vector<2x64xf32>
    %c0_108 = arith.constant 0 : index
    %c0_109 = arith.constant 0 : index
    %272 = vector.load %arg18[%c0_108, %c0_109] : memref<1x64xf32, #tpu.memory_space<vmem>>, vector<1x64xf32>
    %273 = vector.broadcast %272 : vector<1x64xf32> to vector<2x64xf32>
    %274 = arith.addf %271, %273 : vector<2x64xf32>
    %cst_110 = arith.constant 0.000000e+00 : f32
    %275 = vector.broadcast %cst_110 : f32 to vector<2x64xf32>
    %276 = arith.maximumf %274, %275 : vector<2x64xf32>
    %c0_111 = arith.constant 0 : index
    %c0_112 = arith.constant 0 : index
    %277 = vector.load %arg19[%c0_111, %c0_112] : memref<1x64xf32, #tpu.memory_space<vmem>>, vector<1x64xf32>
    %c0_113 = arith.constant 0 : index
    %c0_114 = arith.constant 0 : index
    %278 = vector.load %arg15[%c0_113, %c0_114] : memref<1x64xf32, #tpu.memory_space<vmem>>, vector<1x64xf32>
    %cst_115 = arith.constant dense<0.000000e+00> : vector<2xf32>
    %279 = vector.multi_reduction <add>, %276, %cst_115 [1] : vector<2x64xf32> to vector<2xf32>
    %280 = vector.shape_cast %279 : vector<2xf32> to vector<2x1xf32>
    %cst_116 = arith.constant 6.400000e+01 : f32
    %281 = vector.broadcast %cst_116 : f32 to vector<2x1xf32>
    %282 = arith.divf %280, %281 : vector<2x1xf32>
    %283 = vector.broadcast %282 : vector<2x1xf32> to vector<2x64xf32>
    %284 = arith.subf %276, %283 : vector<2x64xf32>
    %285 = arith.mulf %284, %284 : vector<2x64xf32>
    %cst_117 = arith.constant dense<0.000000e+00> : vector<2xf32>
    %286 = vector.multi_reduction <add>, %285, %cst_117 [1] : vector<2x64xf32> to vector<2xf32>
    %287 = vector.shape_cast %286 : vector<2xf32> to vector<2x1xf32>
    %cst_118 = arith.constant 6.400000e+01 : f32
    %288 = vector.broadcast %cst_118 : f32 to vector<2x1xf32>
    %289 = arith.divf %287, %288 : vector<2x1xf32>
    %290 = vector.broadcast %282 : vector<2x1xf32> to vector<2x64xf32>
    %291 = arith.subf %276, %290 : vector<2x64xf32>
    %cst_119 = arith.constant 9.99999997E-7 : f32
    %292 = vector.broadcast %cst_119 : f32 to vector<2x1xf32>
    %293 = arith.addf %289, %292 : vector<2x1xf32>
    %294 = math.rsqrt %293 : vector<2x1xf32>
    %295 = vector.broadcast %294 : vector<2x1xf32> to vector<2x64xf32>
    %296 = arith.mulf %291, %295 : vector<2x64xf32>
    %297 = vector.broadcast %277 : vector<1x64xf32> to vector<2x64xf32>
    %298 = arith.mulf %296, %297 : vector<2x64xf32>
    %299 = vector.broadcast %278 : vector<1x64xf32> to vector<2x64xf32>
    %300 = arith.addf %298, %299 : vector<2x64xf32>
    %c0_120 = arith.constant 0 : index
    %c0_121 = arith.constant 0 : index
    %301 = vector.load %arg20[%c0_120, %c0_121] : memref<64x128xf32, #tpu.memory_space<vmem>>, vector<64x128xf32>
    %cst_122 = arith.constant dense<0.000000e+00> : vector<2x128xf32>
    %302 = tpu.matmul %300, %301, %cst_122 {dimension_numbers = #tpu.dot_dimension_numbers<[1], [0], [0], [1], [0, 0, 1, 1], [], []>} : vector<2x64xf32>, vector<64x128xf32>, vector<2x128xf32> -> vector<2x128xf32>
    %c0_123 = arith.constant 0 : index
    %c0_124 = arith.constant 0 : index
    %303 = vector.load %arg16[%c0_123, %c0_124] : memref<1x128xf32, #tpu.memory_space<vmem>>, vector<1x128xf32>
    %304 = vector.broadcast %303 : vector<1x128xf32> to vector<2x128xf32>
    %305 = arith.addf %302, %304 : vector<2x128xf32>
    %cst_125 = arith.constant 0.000000e+00 : f32
    %306 = vector.broadcast %cst_125 : f32 to vector<2x128xf32>
    %307 = arith.maximumf %305, %306 : vector<2x128xf32>
    %c0_126 = arith.constant 0 : index
    %c0_127 = arith.constant 0 : index
    %308 = vector.load %arg21[%c0_126, %c0_127] : memref<128x64xf32, #tpu.memory_space<vmem>>, vector<128x64xf32>
    %cst_128 = arith.constant dense<0.000000e+00> : vector<2x64xf32>
    %309 = tpu.matmul %307, %308, %cst_128 {dimension_numbers = #tpu.dot_dimension_numbers<[1], [0], [0], [1], [0, 0, 1, 1], [], []>} : vector<2x128xf32>, vector<128x64xf32>, vector<2x64xf32> -> vector<2x64xf32>
    %c0_129 = arith.constant 0 : index
    %c0_130 = arith.constant 0 : index
    %310 = vector.load %arg17[%c0_129, %c0_130] : memref<1x64xf32, #tpu.memory_space<vmem>>, vector<1x64xf32>
    %311 = vector.broadcast %310 : vector<1x64xf32> to vector<2x64xf32>
    %312 = arith.addf %309, %311 : vector<2x64xf32>
    %313 = arith.addf %312, %300 : vector<2x64xf32>
    %c0_131 = arith.constant 0 : index
    %c0_132 = arith.constant 0 : index
    %314 = vector.load %arg19[%c0_131, %c0_132] : memref<1x64xf32, #tpu.memory_space<vmem>>, vector<1x64xf32>
    %c0_133 = arith.constant 0 : index
    %c0_134 = arith.constant 0 : index
    %315 = vector.load %arg15[%c0_133, %c0_134] : memref<1x64xf32, #tpu.memory_space<vmem>>, vector<1x64xf32>
    %cst_135 = arith.constant dense<0.000000e+00> : vector<2xf32>
    %316 = vector.multi_reduction <add>, %313, %cst_135 [1] : vector<2x64xf32> to vector<2xf32>
    %317 = vector.shape_cast %316 : vector<2xf32> to vector<2x1xf32>
    %cst_136 = arith.constant 6.400000e+01 : f32
    %318 = vector.broadcast %cst_136 : f32 to vector<2x1xf32>
    %319 = arith.divf %317, %318 : vector<2x1xf32>
    %320 = vector.broadcast %319 : vector<2x1xf32> to vector<2x64xf32>
    %321 = arith.subf %313, %320 : vector<2x64xf32>
    %322 = arith.mulf %321, %321 : vector<2x64xf32>
    %cst_137 = arith.constant dense<0.000000e+00> : vector<2xf32>
    %323 = vector.multi_reduction <add>, %322, %cst_137 [1] : vector<2x64xf32> to vector<2xf32>
    %324 = vector.shape_cast %323 : vector<2xf32> to vector<2x1xf32>
    %cst_138 = arith.constant 6.400000e+01 : f32
    %325 = vector.broadcast %cst_138 : f32 to vector<2x1xf32>
    %326 = arith.divf %324, %325 : vector<2x1xf32>
    %327 = vector.broadcast %319 : vector<2x1xf32> to vector<2x64xf32>
    %328 = arith.subf %313, %327 : vector<2x64xf32>
    %cst_139 = arith.constant 9.99999997E-7 : f32
    %329 = vector.broadcast %cst_139 : f32 to vector<2x1xf32>
    %330 = arith.addf %326, %329 : vector<2x1xf32>
    %331 = math.rsqrt %330 : vector<2x1xf32>
    %332 = vector.broadcast %331 : vector<2x1xf32> to vector<2x64xf32>
    %333 = arith.mulf %328, %332 : vector<2x64xf32>
    %334 = vector.broadcast %314 : vector<1x64xf32> to vector<2x64xf32>
    %335 = arith.mulf %333, %334 : vector<2x64xf32>
    %336 = vector.broadcast %315 : vector<1x64xf32> to vector<2x64xf32>
    %337 = arith.addf %335, %336 : vector<2x64xf32>
    %338 = tpu.concatenate %267, %51 in 1 : vector<2x64xf32>, vector<2x64xf32> -> vector<2x128xf32>
    %339 = math.tanh %338 : vector<2x128xf32>
    %c0_140 = arith.constant 0 : index
    %c0_141 = arith.constant 0 : index
    %340 = vector.load %arg30[%c0_140, %c0_141] : memref<128x64xf32, #tpu.memory_space<vmem>>, vector<128x64xf32>
    %cst_142 = arith.constant dense<0.000000e+00> : vector<2x64xf32>
    %341 = tpu.matmul %339, %340, %cst_142 {dimension_numbers = #tpu.dot_dimension_numbers<[1], [0], [0], [1], [0, 0, 1, 1], [], []>} : vector<2x128xf32>, vector<128x64xf32>, vector<2x64xf32> -> vector<2x64xf32>
    %c0_143 = arith.constant 0 : index
    %c0_144 = arith.constant 0 : index
    %342 = vector.load %arg26[%c0_143, %c0_144] : memref<1x64xf32, #tpu.memory_space<vmem>>, vector<1x64xf32>
    %343 = vector.broadcast %342 : vector<1x64xf32> to vector<2x64xf32>
    %344 = arith.addf %341, %343 : vector<2x64xf32>
    %cst_145 = arith.constant 0.000000e+00 : f32
    %345 = vector.broadcast %cst_145 : f32 to vector<2x64xf32>
    %346 = arith.maximumf %344, %345 : vector<2x64xf32>
    %c0_146 = arith.constant 0 : index
    %c0_147 = arith.constant 0 : index
    %347 = vector.load %arg27[%c0_146, %c0_147] : memref<1x64xf32, #tpu.memory_space<vmem>>, vector<1x64xf32>
    %c0_148 = arith.constant 0 : index
    %c0_149 = arith.constant 0 : index
    %348 = vector.load %arg23[%c0_148, %c0_149] : memref<1x64xf32, #tpu.memory_space<vmem>>, vector<1x64xf32>
    %cst_150 = arith.constant dense<0.000000e+00> : vector<2xf32>
    %349 = vector.multi_reduction <add>, %346, %cst_150 [1] : vector<2x64xf32> to vector<2xf32>
    %350 = vector.shape_cast %349 : vector<2xf32> to vector<2x1xf32>
    %cst_151 = arith.constant 6.400000e+01 : f32
    %351 = vector.broadcast %cst_151 : f32 to vector<2x1xf32>
    %352 = arith.divf %350, %351 : vector<2x1xf32>
    %353 = vector.broadcast %352 : vector<2x1xf32> to vector<2x64xf32>
    %354 = arith.subf %346, %353 : vector<2x64xf32>
    %355 = arith.mulf %354, %354 : vector<2x64xf32>
    %cst_152 = arith.constant dense<0.000000e+00> : vector<2xf32>
    %356 = vector.multi_reduction <add>, %355, %cst_152 [1] : vector<2x64xf32> to vector<2xf32>
    %357 = vector.shape_cast %356 : vector<2xf32> to vector<2x1xf32>
    %cst_153 = arith.constant 6.400000e+01 : f32
    %358 = vector.broadcast %cst_153 : f32 to vector<2x1xf32>
    %359 = arith.divf %357, %358 : vector<2x1xf32>
    %360 = vector.broadcast %352 : vector<2x1xf32> to vector<2x64xf32>
    %361 = arith.subf %346, %360 : vector<2x64xf32>
    %cst_154 = arith.constant 9.99999997E-7 : f32
    %362 = vector.broadcast %cst_154 : f32 to vector<2x1xf32>
    %363 = arith.addf %359, %362 : vector<2x1xf32>
    %364 = math.rsqrt %363 : vector<2x1xf32>
    %365 = vector.broadcast %364 : vector<2x1xf32> to vector<2x64xf32>
    %366 = arith.mulf %361, %365 : vector<2x64xf32>
    %367 = vector.broadcast %347 : vector<1x64xf32> to vector<2x64xf32>
    %368 = arith.mulf %366, %367 : vector<2x64xf32>
    %369 = vector.broadcast %348 : vector<1x64xf32> to vector<2x64xf32>
    %370 = arith.addf %368, %369 : vector<2x64xf32>
    %c0_155 = arith.constant 0 : index
    %c0_156 = arith.constant 0 : index
    %371 = vector.load %arg28[%c0_155, %c0_156] : memref<64x128xf32, #tpu.memory_space<vmem>>, vector<64x128xf32>
    %cst_157 = arith.constant dense<0.000000e+00> : vector<2x128xf32>
    %372 = tpu.matmul %370, %371, %cst_157 {dimension_numbers = #tpu.dot_dimension_numbers<[1], [0], [0], [1], [0, 0, 1, 1], [], []>} : vector<2x64xf32>, vector<64x128xf32>, vector<2x128xf32> -> vector<2x128xf32>
    %c0_158 = arith.constant 0 : index
    %c0_159 = arith.constant 0 : index
    %373 = vector.load %arg24[%c0_158, %c0_159] : memref<1x128xf32, #tpu.memory_space<vmem>>, vector<1x128xf32>
    %374 = vector.broadcast %373 : vector<1x128xf32> to vector<2x128xf32>
    %375 = arith.addf %372, %374 : vector<2x128xf32>
    %cst_160 = arith.constant 0.000000e+00 : f32
    %376 = vector.broadcast %cst_160 : f32 to vector<2x128xf32>
    %377 = arith.maximumf %375, %376 : vector<2x128xf32>
    %c0_161 = arith.constant 0 : index
    %c0_162 = arith.constant 0 : index
    %378 = vector.load %arg29[%c0_161, %c0_162] : memref<128x64xf32, #tpu.memory_space<vmem>>, vector<128x64xf32>
    %cst_163 = arith.constant dense<0.000000e+00> : vector<2x64xf32>
    %379 = tpu.matmul %377, %378, %cst_163 {dimension_numbers = #tpu.dot_dimension_numbers<[1], [0], [0], [1], [0, 0, 1, 1], [], []>} : vector<2x128xf32>, vector<128x64xf32>, vector<2x64xf32> -> vector<2x64xf32>
    %c0_164 = arith.constant 0 : index
    %c0_165 = arith.constant 0 : index
    %380 = vector.load %arg25[%c0_164, %c0_165] : memref<1x64xf32, #tpu.memory_space<vmem>>, vector<1x64xf32>
    %381 = vector.broadcast %380 : vector<1x64xf32> to vector<2x64xf32>
    %382 = arith.addf %379, %381 : vector<2x64xf32>
    %383 = arith.addf %382, %370 : vector<2x64xf32>
    %c0_166 = arith.constant 0 : index
    %c0_167 = arith.constant 0 : index
    %384 = vector.load %arg27[%c0_166, %c0_167] : memref<1x64xf32, #tpu.memory_space<vmem>>, vector<1x64xf32>
    %c0_168 = arith.constant 0 : index
    %c0_169 = arith.constant 0 : index
    %385 = vector.load %arg23[%c0_168, %c0_169] : memref<1x64xf32, #tpu.memory_space<vmem>>, vector<1x64xf32>
    %cst_170 = arith.constant dense<0.000000e+00> : vector<2xf32>
    %386 = vector.multi_reduction <add>, %383, %cst_170 [1] : vector<2x64xf32> to vector<2xf32>
    %387 = vector.shape_cast %386 : vector<2xf32> to vector<2x1xf32>
    %cst_171 = arith.constant 6.400000e+01 : f32
    %388 = vector.broadcast %cst_171 : f32 to vector<2x1xf32>
    %389 = arith.divf %387, %388 : vector<2x1xf32>
    %390 = vector.broadcast %389 : vector<2x1xf32> to vector<2x64xf32>
    %391 = arith.subf %383, %390 : vector<2x64xf32>
    %392 = arith.mulf %391, %391 : vector<2x64xf32>
    %cst_172 = arith.constant dense<0.000000e+00> : vector<2xf32>
    %393 = vector.multi_reduction <add>, %392, %cst_172 [1] : vector<2x64xf32> to vector<2xf32>
    %394 = vector.shape_cast %393 : vector<2xf32> to vector<2x1xf32>
    %cst_173 = arith.constant 6.400000e+01 : f32
    %395 = vector.broadcast %cst_173 : f32 to vector<2x1xf32>
    %396 = arith.divf %394, %395 : vector<2x1xf32>
    %397 = vector.broadcast %389 : vector<2x1xf32> to vector<2x64xf32>
    %398 = arith.subf %383, %397 : vector<2x64xf32>
    %cst_174 = arith.constant 9.99999997E-7 : f32
    %399 = vector.broadcast %cst_174 : f32 to vector<2x1xf32>
    %400 = arith.addf %396, %399 : vector<2x1xf32>
    %401 = math.rsqrt %400 : vector<2x1xf32>
    %402 = vector.broadcast %401 : vector<2x1xf32> to vector<2x64xf32>
    %403 = arith.mulf %398, %402 : vector<2x64xf32>
    %404 = vector.broadcast %384 : vector<1x64xf32> to vector<2x64xf32>
    %405 = arith.mulf %403, %404 : vector<2x64xf32>
    %406 = vector.broadcast %385 : vector<1x64xf32> to vector<2x64xf32>
    %407 = arith.addf %405, %406 : vector<2x64xf32>
    %c0_175 = arith.constant 0 : index
    %c0_176 = arith.constant 0 : index
    %408 = vector.load %arg35[%c0_175, %c0_176] : memref<64x128xf32, #tpu.memory_space<vmem>>, vector<64x128xf32>
    %cst_177 = arith.constant dense<0.000000e+00> : vector<2x128xf32>
    %409 = tpu.matmul %337, %408, %cst_177 {dimension_numbers = #tpu.dot_dimension_numbers<[1], [0], [0], [1], [0, 0, 1, 1], [], []>} : vector<2x64xf32>, vector<64x128xf32>, vector<2x128xf32> -> vector<2x128xf32>
    %c0_178 = arith.constant 0 : index
    %c0_179 = arith.constant 0 : index
    %410 = vector.load %arg13[%c0_178, %c0_179] : memref<1x128xf32, #tpu.memory_space<vmem>>, vector<1x128xf32>
    %411 = vector.broadcast %410 : vector<1x128xf32> to vector<2x128xf32>
    %412 = arith.addf %409, %411 : vector<2x128xf32>
    %c0_180 = arith.constant 0 : index
    %c0_181 = arith.constant 0 : index
    %413 = vector.load %arg36[%c0_180, %c0_181] : memref<64x128xf32, #tpu.memory_space<vmem>>, vector<64x128xf32>
    %cst_182 = arith.constant dense<0.000000e+00> : vector<2x128xf32>
    %414 = tpu.matmul %407, %413, %cst_182 {dimension_numbers = #tpu.dot_dimension_numbers<[1], [0], [0], [1], [0, 0, 1, 1], [], []>} : vector<2x64xf32>, vector<64x128xf32>, vector<2x128xf32> -> vector<2x128xf32>
    %c0_183 = arith.constant 0 : index
    %c0_184 = arith.constant 0 : index
    %415 = vector.load %arg14[%c0_183, %c0_184] : memref<1x128xf32, #tpu.memory_space<vmem>>, vector<1x128xf32>
    %416 = vector.broadcast %415 : vector<1x128xf32> to vector<2x128xf32>
    %417 = arith.addf %414, %416 : vector<2x128xf32>
    %418 = vector.extract_strided_slice %412 {offsets = [0, 0], sizes = [2, 64], strides = [1, 1]} : vector<2x128xf32> to vector<2x64xf32>
    %419 = vector.shape_cast %175 : vector<16x64xf32> to vector<2x1x8x64xf32>
    %420 = vector.shape_cast %418 : vector<2x64xf32> to vector<2x1x1x64xf32>
    %421 = vector.broadcast %420 : vector<2x1x1x64xf32> to vector<2x1x8x64xf32>
    %422 = arith.addf %421, %419 : vector<2x1x8x64xf32>
    %423 = math.tanh %422 : vector<2x1x8x64xf32>
    %424 = math.exp %423 : vector<2x1x8x64xf32>
    %cst_185 = arith.constant dense<0.000000e+00> : vector<2x1x64xf32>
    %425 = vector.multi_reduction <add>, %424, %cst_185 [2] : vector<2x1x8x64xf32> to vector<2x1x64xf32>
    %426 = vector.shape_cast %425 : vector<2x1x64xf32> to vector<2x1x1x64xf32>
    %427 = tpu.reciprocal %426 {approx = true} : vector<2x1x1x64xf32> -> vector<2x1x1x64xf32>
    %428 = vector.broadcast %427 : vector<2x1x1x64xf32> to vector<2x1x8x64xf32>
    %429 = arith.mulf %424, %428 : vector<2x1x8x64xf32>
    %430 = vector.shape_cast %174 : vector<16x64xf32> to vector<2x1x8x64xf32>
    %431 = arith.mulf %429, %430 : vector<2x1x8x64xf32>
    %cst_186 = arith.constant dense<0.000000e+00> : vector<2x1x64xf32>
    %432 = vector.multi_reduction <add>, %431, %cst_186 [2] : vector<2x1x8x64xf32> to vector<2x1x64xf32>
    %433 = vector.shape_cast %432 : vector<2x1x64xf32> to vector<2x64xf32>
    %434 = vector.extract_strided_slice %412 {offsets = [0, 64], sizes = [2, 64], strides = [1, 1]} : vector<2x128xf32> to vector<2x64xf32>
    %435 = vector.shape_cast %181 : vector<16x64xf32> to vector<2x1x8x64xf32>
    %436 = vector.shape_cast %434 : vector<2x64xf32> to vector<2x1x1x64xf32>
    %437 = vector.broadcast %436 : vector<2x1x1x64xf32> to vector<2x1x8x64xf32>
    %438 = arith.addf %437, %435 : vector<2x1x8x64xf32>
    %439 = math.tanh %438 : vector<2x1x8x64xf32>
    %440 = math.exp %439 : vector<2x1x8x64xf32>
    %cst_187 = arith.constant dense<0.000000e+00> : vector<2x1x64xf32>
    %441 = vector.multi_reduction <add>, %440, %cst_187 [2] : vector<2x1x8x64xf32> to vector<2x1x64xf32>
    %442 = vector.shape_cast %441 : vector<2x1x64xf32> to vector<2x1x1x64xf32>
    %443 = tpu.reciprocal %442 {approx = true} : vector<2x1x1x64xf32> -> vector<2x1x1x64xf32>
    %444 = vector.broadcast %443 : vector<2x1x1x64xf32> to vector<2x1x8x64xf32>
    %445 = arith.mulf %440, %444 : vector<2x1x8x64xf32>
    %446 = vector.shape_cast %180 : vector<16x64xf32> to vector<2x1x8x64xf32>
    %447 = arith.mulf %445, %446 : vector<2x1x8x64xf32>
    %cst_188 = arith.constant dense<0.000000e+00> : vector<2x1x64xf32>
    %448 = vector.multi_reduction <add>, %447, %cst_188 [2] : vector<2x1x8x64xf32> to vector<2x1x64xf32>
    %449 = vector.shape_cast %448 : vector<2x1x64xf32> to vector<2x64xf32>
    %450 = vector.extract_strided_slice %417 {offsets = [0, 0], sizes = [2, 64], strides = [1, 1]} : vector<2x128xf32> to vector<2x64xf32>
    %451 = vector.shape_cast %177 : vector<16x64xf32> to vector<2x1x8x64xf32>
    %452 = vector.shape_cast %450 : vector<2x64xf32> to vector<2x1x1x64xf32>
    %453 = vector.broadcast %452 : vector<2x1x1x64xf32> to vector<2x1x8x64xf32>
    %454 = arith.addf %453, %451 : vector<2x1x8x64xf32>
    %455 = math.tanh %454 : vector<2x1x8x64xf32>
    %456 = math.exp %455 : vector<2x1x8x64xf32>
    %cst_189 = arith.constant dense<0.000000e+00> : vector<2x1x64xf32>
    %457 = vector.multi_reduction <add>, %456, %cst_189 [2] : vector<2x1x8x64xf32> to vector<2x1x64xf32>
    %458 = vector.shape_cast %457 : vector<2x1x64xf32> to vector<2x1x1x64xf32>
    %459 = tpu.reciprocal %458 {approx = true} : vector<2x1x1x64xf32> -> vector<2x1x1x64xf32>
    %460 = vector.broadcast %459 : vector<2x1x1x64xf32> to vector<2x1x8x64xf32>
    %461 = arith.mulf %456, %460 : vector<2x1x8x64xf32>
    %462 = vector.shape_cast %176 : vector<16x64xf32> to vector<2x1x8x64xf32>
    %463 = arith.mulf %461, %462 : vector<2x1x8x64xf32>
    %cst_190 = arith.constant dense<0.000000e+00> : vector<2x1x64xf32>
    %464 = vector.multi_reduction <add>, %463, %cst_190 [2] : vector<2x1x8x64xf32> to vector<2x1x64xf32>
    %465 = vector.shape_cast %464 : vector<2x1x64xf32> to vector<2x64xf32>
    %466 = vector.extract_strided_slice %417 {offsets = [0, 64], sizes = [2, 64], strides = [1, 1]} : vector<2x128xf32> to vector<2x64xf32>
    %467 = vector.shape_cast %179 : vector<16x64xf32> to vector<2x1x8x64xf32>
    %468 = vector.shape_cast %466 : vector<2x64xf32> to vector<2x1x1x64xf32>
    %469 = vector.broadcast %468 : vector<2x1x1x64xf32> to vector<2x1x8x64xf32>
    %470 = arith.addf %469, %467 : vector<2x1x8x64xf32>
    %471 = math.tanh %470 : vector<2x1x8x64xf32>
    %472 = math.exp %471 : vector<2x1x8x64xf32>
    %cst_191 = arith.constant dense<0.000000e+00> : vector<2x1x64xf32>
    %473 = vector.multi_reduction <add>, %472, %cst_191 [2] : vector<2x1x8x64xf32> to vector<2x1x64xf32>
    %474 = vector.shape_cast %473 : vector<2x1x64xf32> to vector<2x1x1x64xf32>
    %475 = tpu.reciprocal %474 {approx = true} : vector<2x1x1x64xf32> -> vector<2x1x1x64xf32>
    %476 = vector.broadcast %475 : vector<2x1x1x64xf32> to vector<2x1x8x64xf32>
    %477 = arith.mulf %472, %476 : vector<2x1x8x64xf32>
    %478 = vector.shape_cast %178 : vector<16x64xf32> to vector<2x1x8x64xf32>
    %479 = arith.mulf %477, %478 : vector<2x1x8x64xf32>
    %cst_192 = arith.constant dense<0.000000e+00> : vector<2x1x64xf32>
    %480 = vector.multi_reduction <add>, %479, %cst_192 [2] : vector<2x1x8x64xf32> to vector<2x1x64xf32>
    %481 = vector.shape_cast %480 : vector<2x1x64xf32> to vector<2x64xf32>
    %482 = tpu.concatenate %433, %465 in 1 : vector<2x64xf32>, vector<2x64xf32> -> vector<2x128xf32>
    %c0_193 = arith.constant 0 : index
    %c0_194 = arith.constant 0 : index
    %483 = vector.load %arg33[%c0_193, %c0_194] : memref<128x64xf32, #tpu.memory_space<vmem>>, vector<128x64xf32>
    %cst_195 = arith.constant dense<0.000000e+00> : vector<2x64xf32>
    %484 = tpu.matmul %482, %483, %cst_195 {dimension_numbers = #tpu.dot_dimension_numbers<[1], [0], [0], [1], [0, 0, 1, 1], [], []>} : vector<2x128xf32>, vector<128x64xf32>, vector<2x64xf32> -> vector<2x64xf32>
    %c0_196 = arith.constant 0 : index
    %c0_197 = arith.constant 0 : index
    %485 = vector.load %arg11[%c0_196, %c0_197] : memref<1x64xf32, #tpu.memory_space<vmem>>, vector<1x64xf32>
    %486 = vector.broadcast %485 : vector<1x64xf32> to vector<2x64xf32>
    %487 = arith.addf %484, %486 : vector<2x64xf32>
    %488 = tpu.concatenate %481, %449 in 1 : vector<2x64xf32>, vector<2x64xf32> -> vector<2x128xf32>
    %c0_198 = arith.constant 0 : index
    %c0_199 = arith.constant 0 : index
    %489 = vector.load %arg34[%c0_198, %c0_199] : memref<128x64xf32, #tpu.memory_space<vmem>>, vector<128x64xf32>
    %cst_200 = arith.constant dense<0.000000e+00> : vector<2x64xf32>
    %490 = tpu.matmul %488, %489, %cst_200 {dimension_numbers = #tpu.dot_dimension_numbers<[1], [0], [0], [1], [0, 0, 1, 1], [], []>} : vector<2x128xf32>, vector<128x64xf32>, vector<2x64xf32> -> vector<2x64xf32>
    %c0_201 = arith.constant 0 : index
    %c0_202 = arith.constant 0 : index
    %491 = vector.load %arg12[%c0_201, %c0_202] : memref<1x64xf32, #tpu.memory_space<vmem>>, vector<1x64xf32>
    %492 = vector.broadcast %491 : vector<1x64xf32> to vector<2x64xf32>
    %493 = arith.addf %490, %492 : vector<2x64xf32>
    %494 = tpu.concatenate %487, %337 in 1 : vector<2x64xf32>, vector<2x64xf32> -> vector<2x128xf32>
    %495 = math.tanh %494 : vector<2x128xf32>
    %c0_203 = arith.constant 0 : index
    %c0_204 = arith.constant 0 : index
    %496 = vector.load %arg22[%c0_203, %c0_204] : memref<128x64xf32, #tpu.memory_space<vmem>>, vector<128x64xf32>
    %cst_205 = arith.constant dense<0.000000e+00> : vector<2x64xf32>
    %497 = tpu.matmul %495, %496, %cst_205 {dimension_numbers = #tpu.dot_dimension_numbers<[1], [0], [0], [1], [0, 0, 1, 1], [], []>} : vector<2x128xf32>, vector<128x64xf32>, vector<2x64xf32> -> vector<2x64xf32>
    %c0_206 = arith.constant 0 : index
    %c0_207 = arith.constant 0 : index
    %498 = vector.load %arg18[%c0_206, %c0_207] : memref<1x64xf32, #tpu.memory_space<vmem>>, vector<1x64xf32>
    %499 = vector.broadcast %498 : vector<1x64xf32> to vector<2x64xf32>
    %500 = arith.addf %497, %499 : vector<2x64xf32>
    %cst_208 = arith.constant 0.000000e+00 : f32
    %501 = vector.broadcast %cst_208 : f32 to vector<2x64xf32>
    %502 = arith.maximumf %500, %501 : vector<2x64xf32>
    %c0_209 = arith.constant 0 : index
    %c0_210 = arith.constant 0 : index
    %503 = vector.load %arg19[%c0_209, %c0_210] : memref<1x64xf32, #tpu.memory_space<vmem>>, vector<1x64xf32>
    %c0_211 = arith.constant 0 : index
    %c0_212 = arith.constant 0 : index
    %504 = vector.load %arg15[%c0_211, %c0_212] : memref<1x64xf32, #tpu.memory_space<vmem>>, vector<1x64xf32>
    %cst_213 = arith.constant dense<0.000000e+00> : vector<2xf32>
    %505 = vector.multi_reduction <add>, %502, %cst_213 [1] : vector<2x64xf32> to vector<2xf32>
    %506 = vector.shape_cast %505 : vector<2xf32> to vector<2x1xf32>
    %cst_214 = arith.constant 6.400000e+01 : f32
    %507 = vector.broadcast %cst_214 : f32 to vector<2x1xf32>
    %508 = arith.divf %506, %507 : vector<2x1xf32>
    %509 = vector.broadcast %508 : vector<2x1xf32> to vector<2x64xf32>
    %510 = arith.subf %502, %509 : vector<2x64xf32>
    %511 = arith.mulf %510, %510 : vector<2x64xf32>
    %cst_215 = arith.constant dense<0.000000e+00> : vector<2xf32>
    %512 = vector.multi_reduction <add>, %511, %cst_215 [1] : vector<2x64xf32> to vector<2xf32>
    %513 = vector.shape_cast %512 : vector<2xf32> to vector<2x1xf32>
    %cst_216 = arith.constant 6.400000e+01 : f32
    %514 = vector.broadcast %cst_216 : f32 to vector<2x1xf32>
    %515 = arith.divf %513, %514 : vector<2x1xf32>
    %516 = vector.broadcast %508 : vector<2x1xf32> to vector<2x64xf32>
    %517 = arith.subf %502, %516 : vector<2x64xf32>
    %cst_217 = arith.constant 9.99999997E-7 : f32
    %518 = vector.broadcast %cst_217 : f32 to vector<2x1xf32>
    %519 = arith.addf %515, %518 : vector<2x1xf32>
    %520 = math.rsqrt %519 : vector<2x1xf32>
    %521 = vector.broadcast %520 : vector<2x1xf32> to vector<2x64xf32>
    %522 = arith.mulf %517, %521 : vector<2x64xf32>
    %523 = vector.broadcast %503 : vector<1x64xf32> to vector<2x64xf32>
    %524 = arith.mulf %522, %523 : vector<2x64xf32>
    %525 = vector.broadcast %504 : vector<1x64xf32> to vector<2x64xf32>
    %526 = arith.addf %524, %525 : vector<2x64xf32>
    %c0_218 = arith.constant 0 : index
    %c0_219 = arith.constant 0 : index
    %527 = vector.load %arg20[%c0_218, %c0_219] : memref<64x128xf32, #tpu.memory_space<vmem>>, vector<64x128xf32>
    %cst_220 = arith.constant dense<0.000000e+00> : vector<2x128xf32>
    %528 = tpu.matmul %526, %527, %cst_220 {dimension_numbers = #tpu.dot_dimension_numbers<[1], [0], [0], [1], [0, 0, 1, 1], [], []>} : vector<2x64xf32>, vector<64x128xf32>, vector<2x128xf32> -> vector<2x128xf32>
    %c0_221 = arith.constant 0 : index
    %c0_222 = arith.constant 0 : index
    %529 = vector.load %arg16[%c0_221, %c0_222] : memref<1x128xf32, #tpu.memory_space<vmem>>, vector<1x128xf32>
    %530 = vector.broadcast %529 : vector<1x128xf32> to vector<2x128xf32>
    %531 = arith.addf %528, %530 : vector<2x128xf32>
    %cst_223 = arith.constant 0.000000e+00 : f32
    %532 = vector.broadcast %cst_223 : f32 to vector<2x128xf32>
    %533 = arith.maximumf %531, %532 : vector<2x128xf32>
    %c0_224 = arith.constant 0 : index
    %c0_225 = arith.constant 0 : index
    %534 = vector.load %arg21[%c0_224, %c0_225] : memref<128x64xf32, #tpu.memory_space<vmem>>, vector<128x64xf32>
    %cst_226 = arith.constant dense<0.000000e+00> : vector<2x64xf32>
    %535 = tpu.matmul %533, %534, %cst_226 {dimension_numbers = #tpu.dot_dimension_numbers<[1], [0], [0], [1], [0, 0, 1, 1], [], []>} : vector<2x128xf32>, vector<128x64xf32>, vector<2x64xf32> -> vector<2x64xf32>
    %c0_227 = arith.constant 0 : index
    %c0_228 = arith.constant 0 : index
    %536 = vector.load %arg17[%c0_227, %c0_228] : memref<1x64xf32, #tpu.memory_space<vmem>>, vector<1x64xf32>
    %537 = vector.broadcast %536 : vector<1x64xf32> to vector<2x64xf32>
    %538 = arith.addf %535, %537 : vector<2x64xf32>
    %539 = arith.addf %538, %526 : vector<2x64xf32>
    %c0_229 = arith.constant 0 : index
    %c0_230 = arith.constant 0 : index
    %540 = vector.load %arg19[%c0_229, %c0_230] : memref<1x64xf32, #tpu.memory_space<vmem>>, vector<1x64xf32>
    %c0_231 = arith.constant 0 : index
    %c0_232 = arith.constant 0 : index
    %541 = vector.load %arg15[%c0_231, %c0_232] : memref<1x64xf32, #tpu.memory_space<vmem>>, vector<1x64xf32>
    %cst_233 = arith.constant dense<0.000000e+00> : vector<2xf32>
    %542 = vector.multi_reduction <add>, %539, %cst_233 [1] : vector<2x64xf32> to vector<2xf32>
    %543 = vector.shape_cast %542 : vector<2xf32> to vector<2x1xf32>
    %cst_234 = arith.constant 6.400000e+01 : f32
    %544 = vector.broadcast %cst_234 : f32 to vector<2x1xf32>
    %545 = arith.divf %543, %544 : vector<2x1xf32>
    %546 = vector.broadcast %545 : vector<2x1xf32> to vector<2x64xf32>
    %547 = arith.subf %539, %546 : vector<2x64xf32>
    %548 = arith.mulf %547, %547 : vector<2x64xf32>
    %cst_235 = arith.constant dense<0.000000e+00> : vector<2xf32>
    %549 = vector.multi_reduction <add>, %548, %cst_235 [1] : vector<2x64xf32> to vector<2xf32>
    %550 = vector.shape_cast %549 : vector<2xf32> to vector<2x1xf32>
    %cst_236 = arith.constant 6.400000e+01 : f32
    %551 = vector.broadcast %cst_236 : f32 to vector<2x1xf32>
    %552 = arith.divf %550, %551 : vector<2x1xf32>
    %553 = vector.broadcast %545 : vector<2x1xf32> to vector<2x64xf32>
    %554 = arith.subf %539, %553 : vector<2x64xf32>
    %cst_237 = arith.constant 9.99999997E-7 : f32
    %555 = vector.broadcast %cst_237 : f32 to vector<2x1xf32>
    %556 = arith.addf %552, %555 : vector<2x1xf32>
    %557 = math.rsqrt %556 : vector<2x1xf32>
    %558 = vector.broadcast %557 : vector<2x1xf32> to vector<2x64xf32>
    %559 = arith.mulf %554, %558 : vector<2x64xf32>
    %560 = vector.broadcast %540 : vector<1x64xf32> to vector<2x64xf32>
    %561 = arith.mulf %559, %560 : vector<2x64xf32>
    %562 = vector.broadcast %541 : vector<1x64xf32> to vector<2x64xf32>
    %563 = arith.addf %561, %562 : vector<2x64xf32>
    %564 = tpu.concatenate %493, %407 in 1 : vector<2x64xf32>, vector<2x64xf32> -> vector<2x128xf32>
    %565 = math.tanh %564 : vector<2x128xf32>
    %c0_238 = arith.constant 0 : index
    %c0_239 = arith.constant 0 : index
    %566 = vector.load %arg30[%c0_238, %c0_239] : memref<128x64xf32, #tpu.memory_space<vmem>>, vector<128x64xf32>
    %cst_240 = arith.constant dense<0.000000e+00> : vector<2x64xf32>
    %567 = tpu.matmul %565, %566, %cst_240 {dimension_numbers = #tpu.dot_dimension_numbers<[1], [0], [0], [1], [0, 0, 1, 1], [], []>} : vector<2x128xf32>, vector<128x64xf32>, vector<2x64xf32> -> vector<2x64xf32>
    %c0_241 = arith.constant 0 : index
    %c0_242 = arith.constant 0 : index
    %568 = vector.load %arg26[%c0_241, %c0_242] : memref<1x64xf32, #tpu.memory_space<vmem>>, vector<1x64xf32>
    %569 = vector.broadcast %568 : vector<1x64xf32> to vector<2x64xf32>
    %570 = arith.addf %567, %569 : vector<2x64xf32>
    %cst_243 = arith.constant 0.000000e+00 : f32
    %571 = vector.broadcast %cst_243 : f32 to vector<2x64xf32>
    %572 = arith.maximumf %570, %571 : vector<2x64xf32>
    %c0_244 = arith.constant 0 : index
    %c0_245 = arith.constant 0 : index
    %573 = vector.load %arg27[%c0_244, %c0_245] : memref<1x64xf32, #tpu.memory_space<vmem>>, vector<1x64xf32>
    %c0_246 = arith.constant 0 : index
    %c0_247 = arith.constant 0 : index
    %574 = vector.load %arg23[%c0_246, %c0_247] : memref<1x64xf32, #tpu.memory_space<vmem>>, vector<1x64xf32>
    %cst_248 = arith.constant dense<0.000000e+00> : vector<2xf32>
    %575 = vector.multi_reduction <add>, %572, %cst_248 [1] : vector<2x64xf32> to vector<2xf32>
    %576 = vector.shape_cast %575 : vector<2xf32> to vector<2x1xf32>
    %cst_249 = arith.constant 6.400000e+01 : f32
    %577 = vector.broadcast %cst_249 : f32 to vector<2x1xf32>
    %578 = arith.divf %576, %577 : vector<2x1xf32>
    %579 = vector.broadcast %578 : vector<2x1xf32> to vector<2x64xf32>
    %580 = arith.subf %572, %579 : vector<2x64xf32>
    %581 = arith.mulf %580, %580 : vector<2x64xf32>
    %cst_250 = arith.constant dense<0.000000e+00> : vector<2xf32>
    %582 = vector.multi_reduction <add>, %581, %cst_250 [1] : vector<2x64xf32> to vector<2xf32>
    %583 = vector.shape_cast %582 : vector<2xf32> to vector<2x1xf32>
    %cst_251 = arith.constant 6.400000e+01 : f32
    %584 = vector.broadcast %cst_251 : f32 to vector<2x1xf32>
    %585 = arith.divf %583, %584 : vector<2x1xf32>
    %586 = vector.broadcast %578 : vector<2x1xf32> to vector<2x64xf32>
    %587 = arith.subf %572, %586 : vector<2x64xf32>
    %cst_252 = arith.constant 9.99999997E-7 : f32
    %588 = vector.broadcast %cst_252 : f32 to vector<2x1xf32>
    %589 = arith.addf %585, %588 : vector<2x1xf32>
    %590 = math.rsqrt %589 : vector<2x1xf32>
    %591 = vector.broadcast %590 : vector<2x1xf32> to vector<2x64xf32>
    %592 = arith.mulf %587, %591 : vector<2x64xf32>
    %593 = vector.broadcast %573 : vector<1x64xf32> to vector<2x64xf32>
    %594 = arith.mulf %592, %593 : vector<2x64xf32>
    %595 = vector.broadcast %574 : vector<1x64xf32> to vector<2x64xf32>
    %596 = arith.addf %594, %595 : vector<2x64xf32>
    %c0_253 = arith.constant 0 : index
    %c0_254 = arith.constant 0 : index
    %597 = vector.load %arg28[%c0_253, %c0_254] : memref<64x128xf32, #tpu.memory_space<vmem>>, vector<64x128xf32>
    %cst_255 = arith.constant dense<0.000000e+00> : vector<2x128xf32>
    %598 = tpu.matmul %596, %597, %cst_255 {dimension_numbers = #tpu.dot_dimension_numbers<[1], [0], [0], [1], [0, 0, 1, 1], [], []>} : vector<2x64xf32>, vector<64x128xf32>, vector<2x128xf32> -> vector<2x128xf32>
    %c0_256 = arith.constant 0 : index
    %c0_257 = arith.constant 0 : index
    %599 = vector.load %arg24[%c0_256, %c0_257] : memref<1x128xf32, #tpu.memory_space<vmem>>, vector<1x128xf32>
    %600 = vector.broadcast %599 : vector<1x128xf32> to vector<2x128xf32>
    %601 = arith.addf %598, %600 : vector<2x128xf32>
    %cst_258 = arith.constant 0.000000e+00 : f32
    %602 = vector.broadcast %cst_258 : f32 to vector<2x128xf32>
    %603 = arith.maximumf %601, %602 : vector<2x128xf32>
    %c0_259 = arith.constant 0 : index
    %c0_260 = arith.constant 0 : index
    %604 = vector.load %arg29[%c0_259, %c0_260] : memref<128x64xf32, #tpu.memory_space<vmem>>, vector<128x64xf32>
    %cst_261 = arith.constant dense<0.000000e+00> : vector<2x64xf32>
    %605 = tpu.matmul %603, %604, %cst_261 {dimension_numbers = #tpu.dot_dimension_numbers<[1], [0], [0], [1], [0, 0, 1, 1], [], []>} : vector<2x128xf32>, vector<128x64xf32>, vector<2x64xf32> -> vector<2x64xf32>
    %c0_262 = arith.constant 0 : index
    %c0_263 = arith.constant 0 : index
    %606 = vector.load %arg25[%c0_262, %c0_263] : memref<1x64xf32, #tpu.memory_space<vmem>>, vector<1x64xf32>
    %607 = vector.broadcast %606 : vector<1x64xf32> to vector<2x64xf32>
    %608 = arith.addf %605, %607 : vector<2x64xf32>
    %609 = arith.addf %608, %596 : vector<2x64xf32>
    %c0_264 = arith.constant 0 : index
    %c0_265 = arith.constant 0 : index
    %610 = vector.load %arg27[%c0_264, %c0_265] : memref<1x64xf32, #tpu.memory_space<vmem>>, vector<1x64xf32>
    %c0_266 = arith.constant 0 : index
    %c0_267 = arith.constant 0 : index
    %611 = vector.load %arg23[%c0_266, %c0_267] : memref<1x64xf32, #tpu.memory_space<vmem>>, vector<1x64xf32>
    %cst_268 = arith.constant dense<0.000000e+00> : vector<2xf32>
    %612 = vector.multi_reduction <add>, %609, %cst_268 [1] : vector<2x64xf32> to vector<2xf32>
    %613 = vector.shape_cast %612 : vector<2xf32> to vector<2x1xf32>
    %cst_269 = arith.constant 6.400000e+01 : f32
    %614 = vector.broadcast %cst_269 : f32 to vector<2x1xf32>
    %615 = arith.divf %613, %614 : vector<2x1xf32>
    %616 = vector.broadcast %615 : vector<2x1xf32> to vector<2x64xf32>
    %617 = arith.subf %609, %616 : vector<2x64xf32>
    %618 = arith.mulf %617, %617 : vector<2x64xf32>
    %cst_270 = arith.constant dense<0.000000e+00> : vector<2xf32>
    %619 = vector.multi_reduction <add>, %618, %cst_270 [1] : vector<2x64xf32> to vector<2xf32>
    %620 = vector.shape_cast %619 : vector<2xf32> to vector<2x1xf32>
    %cst_271 = arith.constant 6.400000e+01 : f32
    %621 = vector.broadcast %cst_271 : f32 to vector<2x1xf32>
    %622 = arith.divf %620, %621 : vector<2x1xf32>
    %623 = vector.broadcast %615 : vector<2x1xf32> to vector<2x64xf32>
    %624 = arith.subf %609, %623 : vector<2x64xf32>
    %cst_272 = arith.constant 9.99999997E-7 : f32
    %625 = vector.broadcast %cst_272 : f32 to vector<2x1xf32>
    %626 = arith.addf %622, %625 : vector<2x1xf32>
    %627 = math.rsqrt %626 : vector<2x1xf32>
    %628 = vector.broadcast %627 : vector<2x1xf32> to vector<2x64xf32>
    %629 = arith.mulf %624, %628 : vector<2x64xf32>
    %630 = vector.broadcast %610 : vector<1x64xf32> to vector<2x64xf32>
    %631 = arith.mulf %629, %630 : vector<2x64xf32>
    %632 = vector.broadcast %611 : vector<1x64xf32> to vector<2x64xf32>
    %633 = arith.addf %631, %632 : vector<2x64xf32>
    %c0_273 = arith.constant 0 : index
    %c0_274 = arith.constant 0 : index
    %634 = vector.load %arg49[%c0_273, %c0_274] : memref<2x64xf32, #tpu.memory_space<vmem>>, vector<2x64xf32>
    tpu.vector_store %arg49[%c0_273, %c0_274], %563 {strides = array<i32>} : memref<2x64xf32, #tpu.memory_space<vmem>>, vector<2x64xf32>,
    %c0_275 = arith.constant 0 : index
    %c0_276 = arith.constant 0 : index
    %635 = vector.load %arg50[%c0_275, %c0_276] : memref<2x64xf32, #tpu.memory_space<vmem>>, vector<2x64xf32>
    tpu.vector_store %arg50[%c0_275, %c0_276], %633 {strides = array<i32>} : memref<2x64xf32, #tpu.memory_space<vmem>>, vector<2x64xf32>,
    return
  }
}

</mosaic_0001>

<bundles_post_ra>
// kernel: tpu_custom_call.1
= control target key start
LH: loop header
LB: loop body
LE: loop exit
PB: predicated region body
PF: predicated region fallthrough
CT: control target
= control target key end

     0   :  { %s7641_s6 = smov 1   ;;  %s7642_s10 = smov 2   ;;  %s9847_s0 = inlined_call_operand.smem [shape: u32[51], index: -1, kind: input, shape index: {}] }
   0x1   :  { %s7733_s5 = sld [smem:[%s9847_s0]]   ;;  %s7643_s14 = smov 3  }
   0x2   :  { %s7738_s9 = sld [smem:[%s9847_s0 + %s7641_s6]]   ;;  %s7644_s18 = smov 4  }
   0x3   :  { %s7743_s13 = sld [smem:[%s9847_s0 + %s7642_s10]]   ;;  %s7645_s22 = smov 5  }
   0x4   :  { %s7748_s17 = sld [smem:[%s9847_s0 + %s7643_s14]]   ;;  %s7646_s26 = smov 6  }
   0x5   :  { %s7753_s21 = sld [smem:[%s9847_s0 + %s7644_s18]]   ;;  %s7647_s30 = smov 7  }
   0x6   :  { %s7758_s25 = sld [smem:[%s9847_s0 + %s7645_s22]]   ;;  %s7648_s4 = smov 8  }
   0x7   :  { %s7763_s29 = sld [smem:[%s9847_s0 + %s7646_s26]]   ;;  %s7649_s10 = smov 9  }
   0x8   :  { %s7768_s3 = sld [smem:[%s9847_s0 + %s7647_s30]]   ;;  %s7650_s15 = smov 10  }
   0x9   :  { %s7773_s8 = sld [smem:[%s9847_s0 + %s7648_s4]]   ;;  %s7651_s20 = smov 11  }
   0xa   :  { %s7778_s14 = sld [smem:[%s9847_s0 + %s7649_s10]]   ;;  %s7652_s26 = smov 12  }
   0xb   :  { %9932 = sst [smem:[#allocation59_spill]] %s7753_s21  ;;  %s7653_s1 = smov 13  }
   0xc   :  { %9933 = sst [smem:[#allocation60_spill]] %s7758_s25  ;;  %s7654_s7 = smov 14  }
   0xd   :  { %s7783_s19 = sld [smem:[%s9847_s0 + %s7650_s15]]   ;;  %s7655_s15 = smov 15  }
   0xe   :  { %9934 = sst [smem:[#allocation61_spill]] %s7768_s3  ;;  %s7656_s22 = smov 16  }
   0xf   :  { %9935 = sst [smem:[#allocation62_spill]] %s7773_s8  ;;  %s7657_s28 = smov 17  }
  0x10   :  { %9936 = sst [smem:[#allocation63_spill]] %s7778_s14 }
  0x11   :  { %s7788_s24 = sld [smem:[%s9847_s0 + %s7651_s20]]  }
  0x12   :  { %s7793_s30 = sld [smem:[%s9847_s0 + %s7652_s26]]  }
  0x13   :  { %9937 = sst [smem:[#allocation64_spill]] %s7783_s19 }
  0x14   :  { %s7798_s6 = sld [smem:[%s9847_s0 + %s7653_s1]]  }
  0x15   :  { %s7803_s12 = sld [smem:[%s9847_s0 + %s7654_s7]]   ;;  %s7658_s7 = smov 18  }
  0x16   :  { %s7808_s20 = sld [smem:[%s9847_s0 + %s7655_s15]]   ;;  %s7659_s15 = smov 19  }
  0x17   :  { %9938 = sst [smem:[#allocation65_spill]] %s7788_s24 }
  0x18   :  { %s7813_s27 = sld [smem:[%s9847_s0 + %s7656_s22]]   ;;  %s7660_s22 = smov 20  }
  0x19   :  { %s7818_s4 = sld [smem:[%s9847_s0 + %s7657_s28]]   ;;  %s7661_s28 = smov 21  }
  0x1a   :  { %9939 = sst [smem:[#allocation66_spill]] %s7798_s6 }
  0x1b   :  { %s7823_s19 = sld [smem:[%s9847_s0 + %s7658_s7]]   ;;  %s7662_s7 = smov 22  }
  0x1c   :  { %9940 = sst [smem:[#allocation67_spill]] %s7808_s20 }
  0x1d   :  { %s7828_s14 = sld [smem:[%s9847_s0 + %s7659_s15]]   ;;  %s7663_s15 = smov 23  }
  0x1e   :  { %s7833_s8 = sld [smem:[%s9847_s0 + %s7660_s22]]   ;;  %s7664_s22 = smov 24  }
  0x1f   :  { %9941 = sst [smem:[#allocation68_spill]] %s7818_s4 }
  0x20   :  { %s7838_s21 = sld [smem:[%s9847_s0 + %s7661_s28]]   ;;  %s7665_s28 = smov 25  }
  0x21   :  { %s7843_s3 = sld [smem:[%s9847_s0 + %s7662_s7]]   ;;  %s7666_s7 = smov 26  }
  0x23   :  { %9942 = sst [smem:[#allocation69_spill]] %s7828_s14 }
  0x24   :  { %9943 = sst [smem:[#allocation70_spill]] %s7833_s8 }
  0x25   :  { %s7848_s14 = sld [smem:[%s9847_s0 + %s7663_s15]]   ;;  %s7667_s15 = smov 27  }
  0x26   :  { %9944 = sst [smem:[#allocation71_spill]] %s7838_s21 }
  0x27   :  { %9945 = sst [smem:[#allocation72_spill]] %s7843_s3 }
  0x28   :  { %s7853_s8 = sld [smem:[%s9847_s0 + %s7664_s22]]   ;;  %s7668_s22 = smov 28  }
  0x29   :  { %s7858_s21 = sld [smem:[%s9847_s0 + %s7665_s28]]   ;;  %s7669_s28 = smov 29  }
  0x2a   :  { %s7863_s3 = sld [smem:[%s9847_s0 + %s7666_s7]]   ;;  %s7670_s7 = smov 30  }
  0x2b   :  { %s7868_s4 = sld [smem:[%s9847_s0 + %s7667_s15]]   ;;  %s7671_s15 = smov 31  }
  0x2c   :  { %s7878_s20 = sld [smem:[%s9847_s0 + %s7669_s28]]   ;;  %s7673_s28 = smov 33  }
  0x2d   :  { %s7888_s6 = sld [smem:[%s9847_s0 + %s7671_s15]]   ;;  %s7675_s15 = smov 35  }
  0x2e   :  { %9946 = sst [smem:[#allocation73_spill]] %s7853_s8 }
  0x2f   :  { %s7873_s8 = sld [smem:[%s9847_s0 + %s7668_s22]]   ;;  %s7672_s22 = smov 32  }
  0x30   :  { %9947 = sst [smem:[#allocation74_spill]] %s7863_s3 }
  0x31   :  { %s7883_s3 = sld [smem:[%s9847_s0 + %s7670_s7]]   ;;  %s7674_s7 = smov 34  }
  0x32   :  { %9949 = sst [smem:[#allocation76_spill]] %s7878_s20 }
  0x33   :  { %9951 = sst [smem:[#allocation78_spill]] %s7888_s6 }
  0x34   :  { %s7898_s20 = sld [smem:[%s9847_s0 + %s7673_s28]]   ;;  %s7677_s28 = smov 37  }
  0x35   :  { %9948 = sst [smem:[#allocation75_spill]] %s7873_s8 }
  0x36   :  { %s7893_s8 = sld [smem:[%s9847_s0 + %s7672_s22]]   ;;  %s7676_s22 = smov 36  }
  0x37   :  { %9950 = sst [smem:[#allocation77_spill]] %s7883_s3 }
  0x38   :  { %s7903_s3 = sld [smem:[%s9847_s0 + %s7674_s7]]   ;;  %s7678_s7 = smov 38  }
  0x39   :  { %s7908_s6 = sld [smem:[%s9847_s0 + %s7675_s15]]   ;;  %s7679_s15 = smov 39  }
  0x3a   :  { %9953 = sst [smem:[#allocation80_spill]] %s7898_s20 }
  0x3b   :  { %s7918_s20 = sld [smem:[%s9847_s0 + %s7677_s28]]   ;;  %s7681_s28 = smov 41  }
  0x3c   :  { %9952 = sst [smem:[#allocation79_spill]] %s7893_s8 }
  0x3d   :  { %s7913_s8 = sld [smem:[%s9847_s0 + %s7676_s22]]   ;;  %s7680_s22 = smov 40  }
  0x3e   :  { %9954 = sst [smem:[#allocation81_spill]] %s7903_s3 }
  0x3f   :  { %9955 = sst [smem:[#allocation82_spill]] %s7908_s6 }
  0x40   :  { %s7923_s3 = sld [smem:[%s9847_s0 + %s7678_s7]]   ;;  %s7682_s7 = smov 42  }
  0x41   :  { %s7928_s6 = sld [smem:[%s9847_s0 + %s7679_s15]]   ;;  %s7683_s15 = smov 43  }
  0x42   :  { %s7938_s24 = sld [smem:[%s9847_s0 + %s7681_s28]]   ;;  %s7685_s28 = smov 45  }
  0x43   :  { %9956 = sst [smem:[#allocation83_spill]] %s7913_s8 }
  0x44   :  { %s7933_s8 = sld [smem:[%s9847_s0 + %s7680_s22]]   ;;  %s7684_s22 = smov 44  }
  0x46   :  { %9957 = sst [smem:[#allocation84_spill]] %s7923_s3 }
  0x47   :  { %9958 = sst [smem:[#allocation85_spill]] %s7928_s6 }
  0x48   :  { %9960 = sst [smem:[#allocation87_spill]] %s7938_s24 }
  0x49   :  { %s7943_s3 = sld [smem:[%s9847_s0 + %s7682_s7]]   ;;  %s7686_s7 = smov 46  }
  0x4a   :  { %9959 = sst [smem:[#allocation86_spill]] %s7933_s8 }
  0x4b   :  { %s7948_s6 = sld [smem:[%s9847_s0 + %s7683_s15]]   ;;  %s7687_s15 = smov 47  }
  0x4c   :  { %s7953_s8 = sld [smem:[%s9847_s0 + %s7684_s22]]   ;;  %s7688_s22 = smov 48  }
  0x4d   :  { %s7958_s24 = sld [smem:[%s9847_s0 + %s7685_s28]]   ;;  %s7689_s28 = smov 49  }
  0x4e   :  { %s7963_s25 = sld [smem:[%s9847_s0 + %s7686_s7]]   ;;  %s7690_s7 = smov 50  }
  0x51   :  { %9961 = sst [smem:[#allocation88_spill]] %s7948_s6 }
  0x52   :  { %9962 = sst [smem:[#allocation89_spill]] %s7953_s8 }
  0x53   :  { %9963 = sst [smem:[#allocation90_spill]] %s7958_s24 }
  0x54   :  { %9964 = sst [smem:[#allocation91_spill]] %s7963_s25 }
  0x55   :  { %s7968_s6 = sld [smem:[%s9847_s0 + %s7687_s15]]  }
  0x56   :  { %s7973_s8 = sld [smem:[%s9847_s0 + %s7688_s22]]  }
  0x57   :  { %s7978_s24 = sld [smem:[%s9847_s0 + %s7689_s28]]  }
  0x58   :  { %s7983_s25 = sld [smem:[%s9847_s0 + %s7690_s7]]  }
  0x59   :  { %107 = vsyncpa [#allocation3], 0 }
  0x5a   :  { %108 = vsyncpa [#allocation6], 0 }
  0x5b   :  { %109 = vsyncpa [#allocation9], 0 }
  0x5c   :  { %110 = vsyncpa [#allocation12], 0 }
  0x5d   :  { %111 = vsyncpa [#allocation15], 0 }
  0x5e   :  { %112 = vsyncpa [#allocation18], 0 }
  0x5f   :  { %113 = vsyncpa [#allocation21], 0 }
  0x60   :  { %114 = vsyncpa [#allocation24], 0 }
  0x61   :  { %115 = vsyncpa [#allocation27], 0 }
  0x62   :  { %116 = vsyncpa [#allocation30], 0 }
  0x63   :  { %117 = vsyncpa [#allocation33], 0 }
  0x64   :  { %118 = vsyncpa [#allocation36], 0 }
  0x65   :  { %119 = vsyncpa [#allocation39], 0 }
  0x66   :  { %120 = vsyncpa [#allocation4], 0 }
  0x67   :  { %121 = vsyncpa [#allocation43], 0  ;;  %s7691_s0 = smov [#allocation5]   ;;  %s7017_s16 = scalar_lea.hbm %s7738_s9, 256 }
  0x68   :  { %s137_s15 = sshll.u32 %s7691_s0, 4  ;;  %p7018_p0 = scmp.ne.s32.totalorder %s7738_s9, %s7017_s16  ;;  %s138_s15 = int_to_ptr.vmem [resolvable:$true] %s137_s15 }
  0x69   :  { %p7021_p1 = scmp.lt.u32.totalorder %s7017_s16, %s7738_s9 }
  0x6b   :  { %p7023_p2 = pnand %p7021_p1, %p7018_p0 }
  0x6d   :  { %7026 = shalt.err (!%p7023_p2)
}
  0x6e   :  { %s7027_s18 = scalar_lea.vmem %s138_s15, 256  ;;  %p7032_p4 = scmp.lt.s32.totalorder %s138_s15, %s138_s15 }
  0x6f   :  { %p7028_p3 = scmp.ne.s32.totalorder %s138_s15, %s7027_s18  ;;  %p7033_p5 = scmp.lt.s32.totalorder %s7027_s18, %s7027_s18 }
  0x71   :  { %p7034_p6 = por %p7033_p5, %p7032_p4 }
  0x73   :  { %p7035_p7 = pnand %p7034_p6, %p7028_p3 }
  0x75   :  { %7038 = shalt.err (!%p7035_p7)
}
  0x76   :  { %s7692_s22 = smov 128   ;;  %s7693_s23 = smov 8  }
  0x77   :  { %143 = dma.hbm_to_vmem [thread:$0]  %s7738_s9, 256, %s138_s15, [#allocation6], %s7692_s22, %s7692_s22, %s7693_s23  }
  0x78   :  { %s7694_s26 = smov [#allocation8]   ;;  %s7695_s1 = smov [#allocation11]  }
  0x79   :  { %s162_s28 = sshll.u32 %s7694_s26, 4  ;;  %s184_s2 = sshll.u32 %s7695_s1, 4  ;;  %s163_s28 = int_to_ptr.vmem [resolvable:$true] %s162_s28  ;;  %s185_s2 = int_to_ptr.vmem [resolvable:$true] %s184_s2 }
  0x7a   :  { %s7039_s7 = scalar_lea.hbm %s7748_s17, 16 }
  0x7b   :  { %p7040_p8 = scmp.ne.s32.totalorder %s7748_s17, %s7039_s7  ;;  %p7043_p9 = scmp.lt.u32.totalorder %s7039_s7, %s7748_s17 }
  0x7d   :  { %p7045_p10 = pnand %p7043_p9, %p7040_p8 }
  0x7f   :  { %7048 = shalt.err (!%p7045_p10)
}
  0x80   :  { %s7049_s10 = scalar_lea.vmem %s163_s28, 16  ;;  %s7053_s11 = scalar_lea.vmem %s163_s28, 32 }
  0x81   :  { %p7050_p11 = scmp.ne.s32.totalorder %s163_s28, %s7049_s10  ;;  %p7054_p12 = scmp.lt.s32.totalorder %s163_s28, %s163_s28 }
  0x82   :  { %p7055_p13 = scmp.lt.s32.totalorder %s7053_s11, %s7049_s10 }
  0x84   :  { %p7056_p0 = por %p7055_p13, %p7054_p12 }
  0x86   :  { %p7057_p1 = pnand %p7056_p0, %p7050_p11 }
  0x88   :  { %7060 = shalt.err (!%p7057_p1)
}
  0x89   :  { %165 = dma.hbm_to_vmem [thread:$0]  %s7748_s17, 16, %s163_s28, [#allocation9]  }
  0x8a   :  { %s7061_s9 = scalar_lea.hbm %s7763_s29, 16 }
  0x8b   :  { %p7062_p2 = scmp.ne.s32.totalorder %s7763_s29, %s7061_s9  ;;  %p7065_p3 = scmp.lt.u32.totalorder %s7061_s9, %s7763_s29 }
  0x8d   :  { %p7067_p4 = pnand %p7065_p3, %p7062_p2 }
  0x8f   :  { %7070 = shalt.err (!%p7067_p4)
}
  0x90   :  { %s7071_s0 = scalar_lea.vmem %s185_s2, 16  ;;  %s7075_s15 = scalar_lea.vmem %s185_s2, 32 }
  0x91   :  { %p7072_p5 = scmp.ne.s32.totalorder %s185_s2, %s7071_s0  ;;  %p7076_p6 = scmp.lt.s32.totalorder %s185_s2, %s185_s2 }
  0x92   :  { %p7077_p7 = scmp.lt.s32.totalorder %s7075_s15, %s7071_s0 }
  0x94   :  { %p7078_p8 = por %p7077_p7, %p7076_p6 }
  0x96   :  { %p7079_p9 = pnand %p7078_p8, %p7072_p5 }
  0x98   :  { %7082 = shalt.err (!%p7079_p9)
}
  0x99   :  { %187 = dma.hbm_to_vmem [thread:$0]  %s7763_s29, 16, %s185_s2, [#allocation12]  }
  0x9a   :  { %s7696_s17 = smov [#allocation14]   ;;  %s7697_s18 = smov [#allocation17]  }
  0x9b   :  { %s212_s16 = sshll.u32 %s7696_s17, 4  ;;  %s232_s26 = sshll.u32 %s7697_s18, 4  ;;  %s213_s16 = int_to_ptr.vmem [resolvable:$true] %s212_s16  ;;  %s233_s26 = int_to_ptr.vmem [resolvable:$true] %s232_s26 }
  0x9c   :  { %s7083_s28 = scalar_lea.hbm %s7793_s30, 16 }
  0x9d   :  { %p7084_p10 = scmp.ne.s32.totalorder %s7793_s30, %s7083_s28  ;;  %p7087_p11 = scmp.lt.u32.totalorder %s7083_s28, %s7793_s30 }
  0x9f   :  { %p7089_p12 = pnand %p7087_p11, %p7084_p10 }
  0xa1   :  { %7092 = shalt.err (!%p7089_p12)
}
  0xa2   :  { %s7093_s1 = scalar_lea.vmem %s213_s16, 16  ;;  %s7097_s7 = scalar_lea.vmem %s213_s16, 32 }
  0xa3   :  { %p7094_p13 = scmp.ne.s32.totalorder %s213_s16, %s7093_s1  ;;  %p7098_p0 = scmp.lt.s32.totalorder %s213_s16, %s213_s16 }
  0xa4   :  { %p7099_p1 = scmp.lt.s32.totalorder %s7097_s7, %s7093_s1 }
  0xa6   :  { %p7100_p2 = por %p7099_p1, %p7098_p0 }
  0xa8   :  { %p7101_p3 = pnand %p7100_p2, %p7094_p13 }
  0xaa   :  { %7104 = shalt.err (!%p7101_p3)
}
  0xab   :  { %215 = dma.hbm_to_vmem [thread:$0]  %s7793_s30, 16, %s213_s16, [#allocation15]  }
  0xac   :  { %s7105_s29 = scalar_lea.hbm %s7803_s12, 16 }
  0xad   :  { %p7106_p4 = scmp.ne.s32.totalorder %s7803_s12, %s7105_s29  ;;  %p7109_p5 = scmp.lt.u32.totalorder %s7105_s29, %s7803_s12 }
  0xaf   :  { %p7111_p6 = pnand %p7109_p5, %p7106_p4 }
  0xb1   :  { %7114 = shalt.err (!%p7111_p6)
}
  0xb2   :  { %s7115_s2 = scalar_lea.vmem %s233_s26, 16  ;;  %s7119_s10 = scalar_lea.vmem %s233_s26, 32 }
  0xb3   :  { %p7116_p7 = scmp.ne.s32.totalorder %s233_s26, %s7115_s2  ;;  %p7120_p8 = scmp.lt.s32.totalorder %s233_s26, %s233_s26 }
  0xb4   :  { %p7121_p9 = scmp.lt.s32.totalorder %s7119_s10, %s7115_s2 }
  0xb6   :  { %p7122_p10 = por %p7121_p9, %p7120_p8 }
  0xb8   :  { %p7123_p11 = pnand %p7122_p10, %p7116_p7 }
  0xba   :  { %7126 = shalt.err (!%p7123_p11)
}
  0xbb   :  { %235 = dma.hbm_to_vmem [thread:$0]  %s7803_s12, 16, %s233_s26, [#allocation18]  }
  0xbc   :  { %s7698_s30 = smov [#allocation20]   ;;  %s7699_s9 = smov [#allocation23]  }
  0xbd   :  { %s252_s11 = sshll.u32 %s7698_s30, 4  ;;  %s272_s0 = sshll.u32 %s7699_s9, 4  ;;  %s253_s11 = int_to_ptr.vmem [resolvable:$true] %s252_s11  ;;  %s273_s0 = int_to_ptr.vmem [resolvable:$true] %s272_s0 }
  0xbe   :  { %s7127_s15 = scalar_lea.hbm %s7813_s27, 16 }
  0xbf   :  { %p7128_p12 = scmp.ne.s32.totalorder %s7813_s27, %s7127_s15  ;;  %p7131_p13 = scmp.lt.u32.totalorder %s7127_s15, %s7813_s27 }
  0xc1   :  { %p7133_p0 = pnand %p7131_p13, %p7128_p12 }
  0xc3   :  { %7136 = shalt.err (!%p7133_p0)
}
  0xc4   :  { %s7137_s17 = scalar_lea.vmem %s253_s11, 16  ;;  %s7141_s16 = scalar_lea.vmem %s253_s11, 32 }
  0xc5   :  { %p7138_p1 = scmp.ne.s32.totalorder %s253_s11, %s7137_s17  ;;  %p7142_p2 = scmp.lt.s32.totalorder %s253_s11, %s253_s11 }
  0xc6   :  { %p7143_p3 = scmp.lt.s32.totalorder %s7141_s16, %s7137_s17 }
  0xc8   :  { %p7144_p4 = por %p7143_p3, %p7142_p2 }
  0xca   :  { %p7145_p5 = pnand %p7144_p4, %p7138_p1 }
  0xcc   :  { %7148 = shalt.err (!%p7145_p5)
}
  0xcd   :  { %255 = dma.hbm_to_vmem [thread:$0]  %s7813_s27, 16, %s253_s11, [#allocation21]  }
  0xce   :  { %s7149_s12 = scalar_lea.hbm %s7823_s19, 16 }
  0xcf   :  { %p7150_p6 = scmp.ne.s32.totalorder %s7823_s19, %s7149_s12  ;;  %p7153_p7 = scmp.lt.u32.totalorder %s7149_s12, %s7823_s19 }
  0xd1   :  { %p7155_p8 = pnand %p7153_p7, %p7150_p6 }
  0xd3   :  { %7158 = shalt.err (!%p7155_p8)
}
  0xd4   :  { %s7159_s18 = scalar_lea.vmem %s273_s0, 16  ;;  %s7163_s26 = scalar_lea.vmem %s273_s0, 32 }
  0xd5   :  { %p7160_p9 = scmp.ne.s32.totalorder %s273_s0, %s7159_s18  ;;  %p7164_p10 = scmp.lt.s32.totalorder %s273_s0, %s273_s0 }
  0xd6   :  { %p7165_p11 = scmp.lt.s32.totalorder %s7163_s26, %s7159_s18 }
  0xd8   :  { %p7166_p12 = por %p7165_p11, %p7164_p10 }
  0xda   :  { %p7167_p13 = pnand %p7166_p12, %p7160_p9 }
  0xdc   :  { %7170 = shalt.err (!%p7167_p13)
}
  0xdd   :  { %275 = dma.hbm_to_vmem [thread:$0]  %s7823_s19, 16, %s273_s0, [#allocation24]  }
  0xde   :  { %s7700_s27 = smov [#allocation26]   ;;  %s7701_s1 = smov [#allocation29]  }
  0xdf   :  { %s298_s28 = sshll.u32 %s7700_s27, 4  ;;  %s318_s7 = sshll.u32 %s7701_s1, 4  ;;  %s299_s28 = int_to_ptr.vmem [resolvable:$true] %s298_s28  ;;  %s319_s7 = int_to_ptr.vmem [resolvable:$true] %s318_s7 }
  0xe0   :  { %s7171_s29 = scalar_lea.hbm %s7848_s14, 16 }
  0xe1   :  { %p7172_p0 = scmp.ne.s32.totalorder %s7848_s14, %s7171_s29  ;;  %p7175_p1 = scmp.lt.u32.totalorder %s7171_s29, %s7848_s14 }
  0xe3   :  { %p7177_p2 = pnand %p7175_p1, %p7172_p0 }
  0xe5   :  { %7180 = shalt.err (!%p7177_p2)
}
  0xe6   :  { %s7181_s2 = scalar_lea.vmem %s299_s28, 16  ;;  %s7185_s10 = scalar_lea.vmem %s299_s28, 32 }
  0xe7   :  { %p7182_p3 = scmp.ne.s32.totalorder %s299_s28, %s7181_s2  ;;  %p7186_p4 = scmp.lt.s32.totalorder %s299_s28, %s299_s28 }
  0xe8   :  { %p7187_p5 = scmp.lt.s32.totalorder %s7185_s10, %s7181_s2 }
  0xea   :  { %p7188_p6 = por %p7187_p5, %p7186_p4 }
  0xec   :  { %p7189_p7 = pnand %p7188_p6, %p7182_p3 }
  0xee   :  { %7192 = shalt.err (!%p7189_p7)
}
  0xef   :  { %301 = dma.hbm_to_vmem [thread:$0]  %s7848_s14, 16, %s299_s28, [#allocation27]  }
  0xf0   :  { %s7193_s19 = scalar_lea.hbm %s7858_s21, 16 }
  0xf1   :  { %p7194_p8 = scmp.ne.s32.totalorder %s7858_s21, %s7193_s19  ;;  %p7197_p9 = scmp.lt.u32.totalorder %s7193_s19, %s7858_s21 }
  0xf3   :  { %p7199_p10 = pnand %p7197_p9, %p7194_p8 }
  0xf5   :  { %7202 = shalt.err (!%p7199_p10)
}
  0xf6   :  { %s7203_s30 = scalar_lea.vmem %s319_s7, 16  ;;  %s7207_s11 = scalar_lea.vmem %s319_s7, 32 }
  0xf7   :  { %p7204_p11 = scmp.ne.s32.totalorder %s319_s7, %s7203_s30  ;;  %p7208_p12 = scmp.lt.s32.totalorder %s319_s7, %s319_s7 }
  0xf8   :  { %p7209_p13 = scmp.lt.s32.totalorder %s7207_s11, %s7203_s30 }
  0xfa   :  { %p7210_p0 = por %p7209_p13, %p7208_p12 }
  0xfc   :  { %p7211_p1 = pnand %p7210_p0, %p7204_p11 }
  0xfe   :  { %7214 = shalt.err (!%p7211_p1)
}
  0xff   :  { %321 = dma.hbm_to_vmem [thread:$0]  %s7858_s21, 16, %s319_s7, [#allocation30]  }
 0x100   :  { %s7702_s14 = smov [#allocation32]   ;;  %s7703_s0 = smov [#allocation35]  }
 0x101   :  { %s338_s9 = sshll.u32 %s7702_s14, 4  ;;  %s376_s15 = sshll.u32 %s7703_s0, 4  ;;  %s339_s9 = int_to_ptr.vmem [resolvable:$true] %s338_s9  ;;  %s377_s15 = int_to_ptr.vmem [resolvable:$true] %s376_s15 }
 0x102   :  { %s7215_s17 = scalar_lea.hbm %s7868_s4, 16 }
 0x103   :  { %p7216_p2 = scmp.ne.s32.totalorder %s7868_s4, %s7215_s17  ;;  %p7219_p3 = scmp.lt.u32.totalorder %s7215_s17, %s7868_s4 }
 0x105   :  { %p7221_p4 = pnand %p7219_p3, %p7216_p2 }
 0x107   :  { %7224 = shalt.err (!%p7221_p4)
}
 0x108   :  { %s7225_s16 = scalar_lea.vmem %s339_s9, 16  ;;  %s7229_s12 = scalar_lea.vmem %s339_s9, 32 }
 0x109   :  { %p7226_p5 = scmp.ne.s32.totalorder %s339_s9, %s7225_s16  ;;  %p7230_p6 = scmp.lt.s32.totalorder %s339_s9, %s339_s9 }
 0x10a   :  { %p7231_p7 = scmp.lt.s32.totalorder %s7229_s12, %s7225_s16 }
 0x10c   :  { %p7232_p8 = por %p7231_p7, %p7230_p6 }
 0x10e   :  { %p7233_p9 = pnand %p7232_p8, %p7226_p5 }
 0x110   :  { %7236 = shalt.err (!%p7233_p9)
}
 0x111   :  { %341 = dma.hbm_to_vmem [thread:$0]  %s7868_s4, 16, %s339_s9, [#allocation33]  }
 0x112   :  { %s7237_s21 = scalar_lea.hbm %s7918_s20, 16 }
 0x113   :  { %p7238_p10 = scmp.ne.s32.totalorder %s7918_s20, %s7237_s21  ;;  %p7241_p11 = scmp.lt.u32.totalorder %s7237_s21, %s7918_s20 }
 0x115   :  { %p7243_p12 = pnand %p7241_p11, %p7238_p10 }
 0x117   :  { %7246 = shalt.err (!%p7243_p12)
}
 0x118   :  { %s7247_s18 = scalar_lea.vmem %s377_s15, 16  ;;  %s7251_s26 = scalar_lea.vmem %s377_s15, 32 }
 0x119   :  { %p7248_p13 = scmp.ne.s32.totalorder %s377_s15, %s7247_s18  ;;  %p7252_p0 = scmp.lt.s32.totalorder %s377_s15, %s377_s15 }
 0x11a   :  { %p7253_p1 = scmp.lt.s32.totalorder %s7251_s26, %s7247_s18 }
 0x11c   :  { %p7254_p2 = por %p7253_p1, %p7252_p0 }
 0x11e   :  { %p7255_p3 = pnand %p7254_p2, %p7248_p13 }
 0x120   :  { %7258 = shalt.err (!%p7255_p3)
}
 0x121   :  { %379 = dma.hbm_to_vmem [thread:$0]  %s7918_s20, 16, %s377_s15, [#allocation36]  }
 0x122   :  { %s7704_s4 = smov [#allocation38]   ;;  %s7705_s28 = smov [#allocation2]  }
 0x123   :  { %s401_s27 = sshll.u32 %s7704_s4, 4  ;;  %s128_s1 = sshll.u32 %s7705_s28, 4  ;;  %s402_s27 = int_to_ptr.vmem [resolvable:$true] %s401_s27  ;;  %s129_s1 = int_to_ptr.vmem [resolvable:$true] %s128_s1 }
 0x124   :  { %s7259_s7 = scalar_lea.hbm %s7943_s3, 1024 }
 0x125   :  { %p7260_p4 = scmp.ne.s32.totalorder %s7943_s3, %s7259_s7  ;;  %p7263_p5 = scmp.lt.u32.totalorder %s7259_s7, %s7943_s3 }
 0x127   :  { %p7265_p6 = pnand %p7263_p5, %p7260_p4 }
 0x129   :  { %7268 = shalt.err (!%p7265_p6)
}
 0x12a   :  { %s7269_s29 = scalar_lea.vmem %s402_s27, 1024  ;;  %p7274_p8 = scmp.lt.s32.totalorder %s402_s27, %s402_s27 }
 0x12b   :  { %p7270_p7 = scmp.ne.s32.totalorder %s402_s27, %s7269_s29  ;;  %p7275_p9 = scmp.lt.s32.totalorder %s7269_s29, %s7269_s29 }
 0x12d   :  { %p7276_p10 = por %p7275_p9, %p7274_p8 }
 0x12f   :  { %p7277_p11 = pnand %p7276_p10, %p7270_p7 }
 0x131   :  { %7280 = shalt.err (!%p7277_p11)
}
 0x132   :  { %407 = dma.hbm_to_vmem [thread:$0]  %s7943_s3, 1024, %s402_s27, [#allocation39], %s7692_s22, %s7692_s22, %s7693_s23  }
 0x133   :  { %s7281_s20 = scalar_lea.hbm %s7733_s5, 32 }
 0x134   :  { %p7282_p12 = scmp.ne.s32.totalorder %s7733_s5, %s7281_s20  ;;  %p7285_p13 = scmp.lt.u32.totalorder %s7281_s20, %s7733_s5 }
 0x136   :  { %p7287_p0 = pnand %p7285_p13, %p7282_p12 }
 0x138   :  { %7290 = shalt.err (!%p7287_p0)
}
 0x139   :  { %s7291_s2 = scalar_lea.vmem %s129_s1, 32  ;;  %p7296_p2 = scmp.lt.s32.totalorder %s129_s1, %s129_s1 }
 0x13a   :  { %p7292_p1 = scmp.ne.s32.totalorder %s129_s1, %s7291_s2  ;;  %p7297_p3 = scmp.lt.s32.totalorder %s7291_s2, %s7291_s2 }
 0x13c   :  { %p7298_p4 = por %p7297_p3, %p7296_p2 }
 0x13e   :  { %p7299_p5 = pnand %p7298_p4, %p7292_p1 }
 0x140   :  { %7302 = shalt.err (!%p7299_p5)
}
 0x141   :  { %131 = dma.hbm_to_vmem [thread:$0]  %s7733_s5, 32, %s129_s1, [#allocation3]  }
 0x142   :  { %s7706_s10 = smov [#allocation7]   ;;  %s7707_s19 = smov [#allocation10]  }
 0x143   :  { %s149_s3 = sshll.u32 %s7706_s10, 4  ;;  %s174_s30 = sshll.u32 %s7707_s19, 4  ;;  %s150_s3 = int_to_ptr.vmem [resolvable:$true] %s149_s3  ;;  %s175_s30 = int_to_ptr.vmem [resolvable:$true] %s174_s30 }
 0x144   :  { %s7303_s11 = scalar_lea.hbm %s7743_s13, 256 }
 0x145   :  { %p7304_p6 = scmp.ne.s32.totalorder %s7743_s13, %s7303_s11  ;;  %p7307_p7 = scmp.lt.u32.totalorder %s7303_s11, %s7743_s13 }
 0x147   :  { %p7309_p8 = pnand %p7307_p7, %p7304_p6 }
 0x149   :  { %7312 = shalt.err (!%p7309_p8)
}
 0x14a   :  { %s7313_s14 = scalar_lea.vmem %s150_s3, 256  ;;  %p7318_p10 = scmp.lt.s32.totalorder %s150_s3, %s150_s3 }
 0x14b   :  { %p7314_p9 = scmp.ne.s32.totalorder %s150_s3, %s7313_s14  ;;  %p7319_p11 = scmp.lt.s32.totalorder %s7313_s14, %s7313_s14 }
 0x14d   :  { %p7320_p12 = por %p7319_p11, %p7318_p10 }
 0x14f   :  { %p7321_p13 = pnand %p7320_p12, %p7314_p9 }
 0x151   :  { %7324 = shalt.err (!%p7321_p13)
}
 0x152   :  { %s9965_s5 = sld [smem:[#allocation60_spill]] }
 0x153   :  { %155 = dma.hbm_to_vmem [thread:$0]  %s7743_s13, 256, %s150_s3, [#allocation6], %s7692_s22, %s7692_s22, %s7693_s23  }
 0x158   :  { %s7325_s9 = scalar_lea.hbm %s9965_s5, 16 }
 0x159   :  { %p7326_p0 = scmp.ne.s32.totalorder %s9965_s5, %s7325_s9  ;;  %p7329_p1 = scmp.lt.u32.totalorder %s7325_s9, %s9965_s5 }
 0x15b   :  { %p7331_p2 = pnand %p7329_p1, %p7326_p0 }
 0x15d   :  { %7334 = shalt.err (!%p7331_p2)
}
 0x15e   :  { %s7335_s0 = scalar_lea.vmem %s175_s30, 16  ;;  %s7339_s15 = scalar_lea.vmem %s175_s30, 32 }
 0x15f   :  { %p7336_p3 = scmp.ne.s32.totalorder %s175_s30, %s7335_s0  ;;  %p7340_p4 = scmp.lt.s32.totalorder %s175_s30, %s175_s30 }
 0x160   :  { %p7341_p5 = scmp.lt.s32.totalorder %s7339_s15, %s7335_s0 }
 0x162   :  { %p7342_p6 = por %p7341_p5, %p7340_p4 }
 0x164   :  { %p7343_p7 = pnand %p7342_p6, %p7336_p3 }
 0x166   :  { %7346 = shalt.err (!%p7343_p7)
}
 0x167   :  { %s9966_s17 = sld [smem:[#allocation65_spill]]  ;;  %s7708_s13 = smov [#allocation13]  }
 0x168   :  { %177 = dma.hbm_to_vmem [thread:$0]  %s9965_s5, 16, %s175_s30, [#allocation9]  }
 0x169   :  { %s202_s16 = sshll.u32 %s7708_s13, 4  ;;  %s7709_s12 = smov [#allocation16]   ;;  %s203_s16 = int_to_ptr.vmem [resolvable:$true] %s202_s16 }
 0x16a   :  { %s222_s21 = sshll.u32 %s7709_s12, 4  ;;  %s223_s21 = int_to_ptr.vmem [resolvable:$true] %s222_s21 }
 0x16d   :  { %s7347_s18 = scalar_lea.hbm %s9966_s17, 16 }
 0x16e   :  { %p7348_p8 = scmp.ne.s32.totalorder %s9966_s17, %s7347_s18  ;;  %p7351_p9 = scmp.lt.u32.totalorder %s7347_s18, %s9966_s17 }
 0x170   :  { %p7353_p10 = pnand %p7351_p9, %p7348_p8 }
 0x172   :  { %7356 = shalt.err (!%p7353_p10)
}
 0x173   :  { %s7357_s26 = scalar_lea.vmem %s203_s16, 16  ;;  %s7361_s4 = scalar_lea.vmem %s203_s16, 32 }
 0x174   :  { %p7358_p11 = scmp.ne.s32.totalorder %s203_s16, %s7357_s26  ;;  %p7362_p12 = scmp.lt.s32.totalorder %s203_s16, %s203_s16 }
 0x175   :  { %p7363_p13 = scmp.lt.s32.totalorder %s7361_s4, %s7357_s26 }
 0x177   :  { %p7364_p0 = por %p7363_p13, %p7362_p12 }
 0x179   :  { %p7365_p1 = pnand %p7364_p0, %p7358_p11 }
 0x17b   :  { %7368 = shalt.err (!%p7365_p1)
}
 0x17c   :  { %s9967_s27 = sld [smem:[#allocation66_spill]] }
 0x17d   :  { %205 = dma.hbm_to_vmem [thread:$0]  %s9966_s17, 16, %s203_s16, [#allocation12]  }
 0x182   :  { %s7369_s28 = scalar_lea.hbm %s9967_s27, 16 }
 0x183   :  { %p7370_p2 = scmp.ne.s32.totalorder %s9967_s27, %s7369_s28  ;;  %p7373_p3 = scmp.lt.u32.totalorder %s7369_s28, %s9967_s27 }
 0x185   :  { %p7375_p4 = pnand %p7373_p3, %p7370_p2 }
 0x187   :  { %7378 = shalt.err (!%p7375_p4)
}
 0x188   :  { %s7379_s1 = scalar_lea.vmem %s223_s21, 16  ;;  %s7383_s7 = scalar_lea.vmem %s223_s21, 32 }
 0x189   :  { %p7380_p5 = scmp.ne.s32.totalorder %s223_s21, %s7379_s1  ;;  %p7384_p6 = scmp.lt.s32.totalorder %s223_s21, %s223_s21 }
 0x18a   :  { %p7385_p7 = scmp.lt.s32.totalorder %s7383_s7, %s7379_s1 }
 0x18c   :  { %p7386_p8 = por %p7385_p7, %p7384_p6 }
 0x18e   :  { %p7387_p9 = pnand %p7386_p8, %p7380_p5 }
 0x190   :  { %7390 = shalt.err (!%p7387_p9)
}
 0x191   :  { %s9968_s29 = sld [smem:[#allocation67_spill]]  ;;  %s7710_s20 = smov [#allocation19]  }
 0x192   :  { %225 = dma.hbm_to_vmem [thread:$0]  %s9967_s27, 16, %s223_s21, [#allocation15]  }
 0x193   :  { %s242_s2 = sshll.u32 %s7710_s20, 4  ;;  %s7711_s10 = smov [#allocation22]   ;;  %s243_s2 = int_to_ptr.vmem [resolvable:$true] %s242_s2 }
 0x194   :  { %s262_s3 = sshll.u32 %s7711_s10, 4  ;;  %s263_s3 = int_to_ptr.vmem [resolvable:$true] %s262_s3 }
 0x197   :  { %s7391_s19 = scalar_lea.hbm %s9968_s29, 16 }
 0x198   :  { %p7392_p10 = scmp.ne.s32.totalorder %s9968_s29, %s7391_s19  ;;  %p7395_p11 = scmp.lt.u32.totalorder %s7391_s19, %s9968_s29 }
 0x19a   :  { %p7397_p12 = pnand %p7395_p11, %p7392_p10 }
 0x19c   :  { %7400 = shalt.err (!%p7397_p12)
}
 0x19d   :  { %s7401_s30 = scalar_lea.vmem %s243_s2, 16  ;;  %s7405_s11 = scalar_lea.vmem %s243_s2, 32 }
 0x19e   :  { %p7402_p13 = scmp.ne.s32.totalorder %s243_s2, %s7401_s30  ;;  %p7406_p0 = scmp.lt.s32.totalorder %s243_s2, %s243_s2 }
 0x19f   :  { %p7407_p1 = scmp.lt.s32.totalorder %s7405_s11, %s7401_s30 }
 0x1a1   :  { %p7408_p2 = por %p7407_p1, %p7406_p0 }
 0x1a3   :  { %p7409_p3 = pnand %p7408_p2, %p7402_p13 }
 0x1a5   :  { %7412 = shalt.err (!%p7409_p3)
}
 0x1a6   :  { %s9969_s14 = sld [smem:[#allocation68_spill]] }
 0x1a7   :  { %245 = dma.hbm_to_vmem [thread:$0]  %s9968_s29, 16, %s243_s2, [#allocation18]  }
 0x1ac   :  { %s7413_s5 = scalar_lea.hbm %s9969_s14, 16 }
 0x1ad   :  { %p7414_p4 = scmp.ne.s32.totalorder %s9969_s14, %s7413_s5  ;;  %p7417_p5 = scmp.lt.u32.totalorder %s7413_s5, %s9969_s14 }
 0x1af   :  { %p7419_p6 = pnand %p7417_p5, %p7414_p4 }
 0x1b1   :  { %7422 = shalt.err (!%p7419_p6)
}
 0x1b2   :  { %s7423_s9 = scalar_lea.vmem %s263_s3, 16  ;;  %s7427_s0 = scalar_lea.vmem %s263_s3, 32 }
 0x1b3   :  { %p7424_p7 = scmp.ne.s32.totalorder %s263_s3, %s7423_s9  ;;  %p7428_p8 = scmp.lt.s32.totalorder %s263_s3, %s263_s3 }
 0x1b4   :  { %p7429_p9 = scmp.lt.s32.totalorder %s7427_s0, %s7423_s9 }
 0x1b6   :  { %p7430_p10 = por %p7429_p9, %p7428_p8 }
 0x1b8   :  { %p7431_p11 = pnand %p7430_p10, %p7424_p7 }
 0x1ba   :  { %7434 = shalt.err (!%p7431_p11)
}
 0x1bb   :  { %s9970_s15 = sld [smem:[#allocation69_spill]]  ;;  %s7712_s17 = smov [#allocation25]  }
 0x1bc   :  { %265 = dma.hbm_to_vmem [thread:$0]  %s9969_s14, 16, %s263_s3, [#allocation21]  }
 0x1bd   :  { %s282_s13 = sshll.u32 %s7712_s17, 4  ;;  %s7713_s16 = smov [#allocation28]   ;;  %s283_s13 = int_to_ptr.vmem [resolvable:$true] %s282_s13 }
 0x1be   :  { %s308_s12 = sshll.u32 %s7713_s16, 4  ;;  %s309_s12 = int_to_ptr.vmem [resolvable:$true] %s308_s12 }
 0x1c1   :  { %s7435_s21 = scalar_lea.hbm %s9970_s15, 16 }
 0x1c2   :  { %p7436_p12 = scmp.ne.s32.totalorder %s9970_s15, %s7435_s21  ;;  %p7439_p13 = scmp.lt.u32.totalorder %s7435_s21, %s9970_s15 }
 0x1c4   :  { %p7441_p0 = pnand %p7439_p13, %p7436_p12 }
 0x1c6   :  { %7444 = shalt.err (!%p7441_p0)
}
 0x1c7   :  { %s7445_s18 = scalar_lea.vmem %s283_s13, 16  ;;  %s7449_s26 = scalar_lea.vmem %s283_s13, 32 }
 0x1c8   :  { %p7446_p1 = scmp.ne.s32.totalorder %s283_s13, %s7445_s18  ;;  %p7450_p2 = scmp.lt.s32.totalorder %s283_s13, %s283_s13 }
 0x1c9   :  { %p7451_p3 = scmp.lt.s32.totalorder %s7449_s26, %s7445_s18 }
 0x1cb   :  { %p7452_p4 = por %p7451_p3, %p7450_p2 }
 0x1cd   :  { %p7453_p5 = pnand %p7452_p4, %p7446_p1 }
 0x1cf   :  { %7456 = shalt.err (!%p7453_p5)
}
 0x1d0   :  { %s9971_s4 = sld [smem:[#allocation73_spill]] }
 0x1d1   :  { %285 = dma.hbm_to_vmem [thread:$0]  %s9970_s15, 16, %s283_s13, [#allocation24]  }
 0x1d6   :  { %s7457_s27 = scalar_lea.hbm %s9971_s4, 16 }
 0x1d7   :  { %p7458_p6 = scmp.ne.s32.totalorder %s9971_s4, %s7457_s27  ;;  %p7461_p7 = scmp.lt.u32.totalorder %s7457_s27, %s9971_s4 }
 0x1d9   :  { %p7463_p8 = pnand %p7461_p7, %p7458_p6 }
 0x1db   :  { %7466 = shalt.err (!%p7463_p8)
}
 0x1dc   :  { %s7467_s28 = scalar_lea.vmem %s309_s12, 16  ;;  %s7471_s1 = scalar_lea.vmem %s309_s12, 32 }
 0x1dd   :  { %p7468_p9 = scmp.ne.s32.totalorder %s309_s12, %s7467_s28  ;;  %p7472_p10 = scmp.lt.s32.totalorder %s309_s12, %s309_s12 }
 0x1de   :  { %p7473_p11 = scmp.lt.s32.totalorder %s7471_s1, %s7467_s28 }
 0x1e0   :  { %p7474_p12 = por %p7473_p11, %p7472_p10 }
 0x1e2   :  { %p7475_p13 = pnand %p7474_p12, %p7468_p9 }
 0x1e4   :  { %7478 = shalt.err (!%p7475_p13)
}
 0x1e5   :  { %s9972_s7 = sld [smem:[#allocation74_spill]]  ;;  %s7714_s29 = smov [#allocation31]  }
 0x1e6   :  { %311 = dma.hbm_to_vmem [thread:$0]  %s9971_s4, 16, %s309_s12, [#allocation27]  }
 0x1e7   :  { %s328_s20 = sshll.u32 %s7714_s29, 4  ;;  %s7715_s2 = smov [#allocation34]   ;;  %s329_s20 = int_to_ptr.vmem [resolvable:$true] %s328_s20 }
 0x1e8   :  { %s361_s10 = sshll.u32 %s7715_s2, 4  ;;  %s362_s10 = int_to_ptr.vmem [resolvable:$true] %s361_s10 }
 0x1eb   :  { %s7479_s3 = scalar_lea.hbm %s9972_s7, 16 }
 0x1ec   :  { %p7480_p0 = scmp.ne.s32.totalorder %s9972_s7, %s7479_s3  ;;  %p7483_p1 = scmp.lt.u32.totalorder %s7479_s3, %s9972_s7 }
 0x1ee   :  { %p7485_p2 = pnand %p7483_p1, %p7480_p0 }
 0x1f0   :  { %7488 = shalt.err (!%p7485_p2)
}
 0x1f1   :  { %s7489_s19 = scalar_lea.vmem %s329_s20, 16  ;;  %s7493_s30 = scalar_lea.vmem %s329_s20, 32 }
 0x1f2   :  { %p7490_p3 = scmp.ne.s32.totalorder %s329_s20, %s7489_s19  ;;  %p7494_p4 = scmp.lt.s32.totalorder %s329_s20, %s329_s20 }
 0x1f3   :  { %p7495_p5 = scmp.lt.s32.totalorder %s7493_s30, %s7489_s19 }
 0x1f5   :  { %p7496_p6 = por %p7495_p5, %p7494_p4 }
 0x1f7   :  { %p7497_p7 = pnand %p7496_p6, %p7490_p3 }
 0x1f9   :  { %7500 = shalt.err (!%p7497_p7)
}
 0x1fa   :  { %s9973_s11 = sld [smem:[#allocation82_spill]] }
 0x1fb   :  { %331 = dma.hbm_to_vmem [thread:$0]  %s9972_s7, 16, %s329_s20, [#allocation30]  }
 0x200   :  { %s7501_s14 = scalar_lea.hbm %s9973_s11, 1024 }
 0x201   :  { %p7502_p8 = scmp.ne.s32.totalorder %s9973_s11, %s7501_s14  ;;  %p7505_p9 = scmp.lt.u32.totalorder %s7501_s14, %s9973_s11 }
 0x203   :  { %p7507_p10 = pnand %p7505_p9, %p7502_p8 }
 0x205   :  { %7510 = shalt.err (!%p7507_p10)
}
 0x206   :  { %s7511_s5 = scalar_lea.vmem %s362_s10, 1024  ;;  %p7516_p12 = scmp.lt.s32.totalorder %s362_s10, %s362_s10 }
 0x207   :  { %p7512_p11 = scmp.ne.s32.totalorder %s362_s10, %s7511_s5  ;;  %p7517_p13 = scmp.lt.s32.totalorder %s7511_s5, %s7511_s5 }
 0x209   :  { %p7518_p0 = por %p7517_p13, %p7516_p12 }
 0x20b   :  { %p7519_p1 = pnand %p7518_p0, %p7512_p11 }
 0x20d   :  { %7522 = shalt.err (!%p7519_p1)
}
 0x20e   :  { %s9974_s9 = sld [smem:[#allocation85_spill]]  ;;  %s7716_s0 = smov [#allocation37]  }
 0x20f   :  { %367 = dma.hbm_to_vmem [thread:$0]  %s9973_s11, 1024, %s362_s10, [#allocation33], %s7692_s22, %s7692_s22, %s7693_s23  }
 0x210   :  { %s388_s15 = sshll.u32 %s7716_s0, 4  ;;  %s7717_s17 = smov [#allocation40]   ;;  %s389_s15 = int_to_ptr.vmem [resolvable:$true] %s388_s15 }
 0x211   :  { %s423_s13 = sshll.u32 %s7717_s17, 4  ;;  %s424_s13 = int_to_ptr.vmem [resolvable:$true] %s423_s13 }
 0x214   :  { %s7523_s16 = scalar_lea.hbm %s9974_s9, 16 }
 0x215   :  { %p7524_p2 = scmp.ne.s32.totalorder %s9974_s9, %s7523_s16  ;;  %p7527_p3 = scmp.lt.u32.totalorder %s7523_s16, %s9974_s9 }
 0x217   :  { %p7529_p4 = pnand %p7527_p3, %p7524_p2 }
 0x219   :  { %7532 = shalt.err (!%p7529_p4)
}
 0x21a   :  { %s7533_s12 = scalar_lea.vmem %s389_s15, 16  ;;  %s7537_s21 = scalar_lea.vmem %s389_s15, 32 }
 0x21b   :  { %p7534_p5 = scmp.ne.s32.totalorder %s389_s15, %s7533_s12  ;;  %p7538_p6 = scmp.lt.s32.totalorder %s389_s15, %s389_s15 }
 0x21c   :  { %p7539_p7 = scmp.lt.s32.totalorder %s7537_s21, %s7533_s12 }
 0x21e   :  { %p7540_p8 = por %p7539_p7, %p7538_p6 }
 0x220   :  { %p7541_p9 = pnand %p7540_p8, %p7534_p5 }
 0x222   :  { %7544 = shalt.err (!%p7541_p9)
}
 0x223   :  { %391 = dma.hbm_to_vmem [thread:$0]  %s9974_s9, 16, %s389_s15, [#allocation36]  }
 0x224   :  { %s7545_s18 = scalar_lea.hbm %s7973_s8, 1024 }
 0x225   :  { %p7546_p10 = scmp.ne.s32.totalorder %s7973_s8, %s7545_s18  ;;  %p7549_p11 = scmp.lt.u32.totalorder %s7545_s18, %s7973_s8 }
 0x227   :  { %p7551_p12 = pnand %p7549_p11, %p7546_p10 }
 0x229   :  { %7554 = shalt.err (!%p7551_p12)
}
 0x22a   :  { %s7555_s26 = scalar_lea.vmem %s424_s13, 1024  ;;  %p7560_p0 = scmp.lt.s32.totalorder %s424_s13, %s424_s13 }
 0x22b   :  { %p7556_p13 = scmp.ne.s32.totalorder %s424_s13, %s7555_s26  ;;  %p7561_p1 = scmp.lt.s32.totalorder %s7555_s26, %s7555_s26 }
 0x22d   :  { %p7562_p2 = por %p7561_p1, %p7560_p0 }
 0x22f   :  { %p7563_p3 = pnand %p7562_p2, %p7556_p13 }
 0x231   :  { %7566 = shalt.err (!%p7563_p3)
}
 0x232   :  { %429 = dma.hbm_to_vmem [thread:$0]  %s7973_s8, 1024, %s424_s13, [#allocation39], %s7692_s22, %s7692_s22, %s7693_s23  }
 0x233   :  { %7611 = dma.done.wait [#allocation3], 32  }
 0x234   :  { %7612 = vsyncadd [#allocation3], 4294967264 }
 0x235   :  { %7613 = dma.done.wait [#allocation6], 512  }
 0x236   :  { %7614 = vsyncadd [#allocation6], 4294966784 }
 0x237   :  { %7615 = dma.done.wait [#allocation9], 32  }
 0x238   :  { %7616 = vsyncadd [#allocation9], 4294967264 }
 0x239   :  { %7617 = dma.done.wait [#allocation12], 32  }
 0x23a   :  { %7618 = vsyncadd [#allocation12], 4294967264 }
 0x23b   :  { %7619 = dma.done.wait [#allocation15], 32  }
 0x23c   :  { %7620 = vsyncadd [#allocation15], 4294967264 }
 0x23d   :  { %7621 = dma.done.wait [#allocation18], 32  }
 0x23e   :  { %7622 = vsyncadd [#allocation18], 4294967264 }
 0x23f   :  { %7623 = dma.done.wait [#allocation21], 32  }
 0x240   :  { %7624 = vsyncadd [#allocation21], 4294967264 }
 0x241   :  { %7625 = dma.done.wait [#allocation24], 32  }
 0x242   :  { %7626 = vsyncadd [#allocation24], 4294967264 }
 0x243   :  { %7627 = dma.done.wait [#allocation27], 32  }
 0x244   :  { %7628 = vsyncadd [#allocation27], 4294967264 }
 0x245   :  { %7629 = dma.done.wait [#allocation30], 32  }
 0x246   :  { %7630 = vsyncadd [#allocation30], 4294967264 }
 0x247   :  { %7631 = dma.done.wait [#allocation33], 1040  }
 0x248   :  { %7632 = vsyncadd [#allocation33], 4294966256 }
 0x249   :  { %7633 = dma.done.wait [#allocation36], 32  }
 0x24a   :  { %7634 = vsyncadd [#allocation36], 4294967264 }
 0x24b   :  { %7635 = dma.done.wait [#allocation39], 2048  }
 0x24c   :  { %7636 = vsyncadd [#allocation39], 4294965248  ;;  %s9975_s8 = sld [smem:[#allocation87_spill]]  ;;  %s9976_s22 = sld [smem:[#allocation61_spill]]  ;;  %v9874_v0 = vmov 0.0   ;;  %v1636_v47 = vld [vmem:[%s7968_s6 + $0x8] sm:$0xff] }
 0x24d   :  { %602 = vmatprep.mubr.f32.mxu1 %v9874_v0  ;;  %919 = vmatprep.mubr.f32.mxu0 %v9874_v0  ;;  %v1638_v48 = vld [vmem:[%s7968_s6 + $0x18] sm:$0xff]  ;;  %v1635_v52 = vld [vmem:[%s7968_s6] sm:$0xff]  ;;  %v1637_v53 = vld [vmem:[%s7968_s6 + $0x10] sm:$0xff]  ;;  %vm534_vm0 = vcmask 523264   ;;  %s9977_s23 = sld [smem:[#allocation84_spill]]  ;;  %s9978_s4 = sld [smem:[#allocation59_spill]] }
 0x24e   :  { %v6135_v51 = vpack.c.bf16 %v1638_v48, %v1636_v47  ;;  %v1640_v54 = vld [vmem:[%s7968_s6 + $0x28] sm:$0xff]  ;;  %v1642_v55 = vld [vmem:[%s7968_s6 + $0x38] sm:$0xff]  ;;  %v505_v56 = vld [vmem:[#allocation2] sm:$0x3]  ;;  %v6137_v58 = vpack.c.bf16 %v1637_v53, %v1635_v52  ;;  %s7720_s27 = smov 64   ;;  %s9984_s28 = sld [smem:[#allocation62_spill]] }
 0x24f   :  { %v819_v57 = vld [vmem:[#allocation5] sm:$0xff]  ;;  %v6139_v59 = vpack.c.bf16 %v1642_v55, %v1640_v54  ;;  %v1641_v61 = vld [vmem:[%s7968_s6 + $0x30] sm:$0xff]  ;;  %v1646_v63 = vld [vmem:[%s7968_s6 + $0x58] sm:$0xff]  ;;  %vm7722_vm1 = vmmov 0   ;;  %vm1487_vm2 = vcmask 1041409   ;;  %vm1489_vm3 = vcmask 1042434  }
 0x250   :  { %v1639_v60 = vld [vmem:[%s7968_s6 + $0x20] sm:$0xff]  ;;  %v1644_v62 = vld [vmem:[%s7968_s6 + $0x48] sm:$0xff]  ;;  %v684_v55 = vld [vmem:[#allocation38 + $0x8] sm:$0xff]  ;;  %vm1491_vm4 = vcmask 1043459   ;;  %vm1493_vm5 = vcmask 1044484   ;;  %vm1495_vm6 = vcmask 1045509  }
 0x251   :  { %v683_v54 = vld [vmem:[#allocation38] sm:$0xff]  ;;  %vm1497_vm7 = vcmask 1046534   ;;  %vm1499_vm8 = vcmask 1047559   ;;  %s10024_s1 = sld [smem:[#allocation90_spill]]  ;;  %vm790_vm9 = vcmask 517120   ;;  %s10025_s7 = sld [smem:[#allocation78_spill]] }
 0x252   :  { %v507_v1 = vld [vmem:[%s9975_s8 + $0x8] sm:$0xff]  ;;  %v509_v2 = vld [vmem:[%s9975_s8 + $0x18] sm:$0xff]  ;;  %v506_v6 = vld [vmem:[%s9975_s8] sm:$0xff]  ;;  %s10026_s29 = sld [smem:[#allocation79_spill]]  ;;  %s10028_s20 = sld [smem:[#allocation91_spill]]  ;;  %vm2926_vm10 = vcmask 1048064  }
 0x253   :  { %v822_v3 = vld [vmem:[%s9976_s22 + $0x8] sm:$0xff]  ;;  %v6075_v4 = vpack.c.bf16 %v509_v2, %v507_v1  ;;  %v824_v5 = vld [vmem:[%s9976_s22 + $0x18] sm:$0xff]  ;;  %v508_v7 = vld [vmem:[%s9975_s8 + $0x10] sm:$0xff]  ;;  %v6141_v2 = vpack.c.bf16 %v1641_v61, %v1639_v60  ;;  %s10029_s2 = sld [smem:[#allocation83_spill]]  ;;  %s10030_s10 = sld [smem:[#allocation88_spill]] }
 0x254   :  { %v6103_v8 = vpack.c.bf16 %v824_v5, %v822_v3  ;;  %v6077_v9 = vpack.c.bf16 %v508_v7, %v506_v6  ;;  %v821_v10 = vld [vmem:[%s9976_s22] sm:$0xff]  ;;  %v823_v11 = vld [vmem:[%s9976_s22 + $0x10] sm:$0xff]  ;;  %v511_v12 = vld [vmem:[%s9975_s8 + $0x28] sm:$0xff]  ;;  %v6143_v3 = vpack.c.bf16 %v1646_v63, %v1644_v62  ;;  %s10031_s3 = sld [smem:[#allocation86_spill]]  ;;  %s10032_s19 = sld [smem:[#allocation63_spill]] }
 0x255   :  { %6076 = vmatprep.subr.bf16.mxu1 %v6075_v4  ;;  %v6105_v13 = vpack.c.bf16 %v823_v11, %v821_v10  ;;  %v513_v14 = vld [vmem:[%s9975_s8 + $0x38] sm:$0xff]  ;;  %v826_v15 = vld [vmem:[%s9976_s22 + $0x28] sm:$0xff]  ;;  %v510_v19 = vld [vmem:[%s9975_s8 + $0x20] sm:$0xff]  ;;  %s10033_s30 = sld [smem:[#allocation64_spill]]  ;;  %s10040_s14 = sld [smem:[#allocation81_spill]] }
 0x256   :  { %v828_v16 = vld [vmem:[%s9976_s22 + $0x38] sm:$0xff]  ;;  %6104 = vmatprep.subr.bf16.mxu0 %v6103_v8  ;;  %6078 = vmatpush1.bf16.msra.mxu1 %v6077_v9  ;;  %v6079_v17 = vpack.c.bf16 %v513_v14, %v511_v12  ;;  %v512_v20 = vld [vmem:[%s9975_s8 + $0x30] sm:$0xff]  ;;  %v825_v21 = vld [vmem:[%s9976_s22 + $0x20] sm:$0xff]  ;;  %s10037_s11 = sld [smem:[#allocation80_spill]]  ;;  %s10047_s9 = sld [smem:[#allocation77_spill]] }
 0x257   :  { %v6107_v18 = vpack.c.bf16 %v828_v16, %v826_v15  ;;  %6106 = vmatpush1.bf16.msra.mxu0 %v6105_v13  ;;  %v6081_v22 = vpack.c.bf16 %v512_v20, %v510_v19  ;;  %v827_v23 = vld [vmem:[%s9976_s22 + $0x30] sm:$0xff]  ;;  %v515_v24 = vld [vmem:[%s9975_s8 + $0x48] sm:$0xff]  ;;  %v517_v25 = vld [vmem:[%s9975_s8 + $0x58] sm:$0xff]  ;;  %v524_v15 = vlaneseq  ;;  %s10043_s5 = sld [smem:[#allocation72_spill]]  ;;  %s10057_s0 = sld [smem:[#allocation70_spill]] }
 0x258   :  { %6080 = vmatprep.subr.bf16.mxu1 %v6079_v17  ;;  %v6109_v26 = vpack.c.bf16 %v827_v23, %v825_v21  ;;  %v6083_v27 = vpack.c.bf16 %v517_v25, %v515_v24  ;;  %v830_v28 = vld [vmem:[%s9976_s22 + $0x48] sm:$0xff]  ;;  %v832_v29 = vld [vmem:[%s9976_s22 + $0x58] sm:$0xff]  ;;  %v514_v30 = vld [vmem:[%s9975_s8 + $0x40] sm:$0xff]  ;;  %v7719_v17 = vmov 1966171168   ;;  %s10058_s15 = sld [smem:[#allocation71_spill]] }
 0x259   :  { %6108 = vmatprep.subr.bf16.mxu0 %v6107_v18  ;;  %v6111_v31 = vpack.c.bf16 %v832_v29, %v830_v28  ;;  %v516_v32 = vld [vmem:[%s9975_s8 + $0x50] sm:$0xff]  ;;  %v829_v33 = vld [vmem:[%s9976_s22 + $0x40] sm:$0xff]  ;;  %v519_v36 = vld [vmem:[%s9975_s8 + $0x68] sm:$0xff]  ;;  %v525_v16 = vshrl.u32 %v524_v15, 7  ;;  %v611_v18 = vunpack.c.l.s4 %v7719_v17  ;;  %s10064_s17 = sld [smem:[#allocation76_spill]]  ;;  %s10069_s13 = sld [smem:[#allocation75_spill]] }
 0x25a   :  { %v831_v34 = vld [vmem:[%s9976_s22 + $0x50] sm:$0xff]  ;;  %6082 = vmatpush1.bf16.msra.mxu1 %v6081_v22  ;;  %v6085_v35 = vpack.c.bf16 %v516_v32, %v514_v30  ;;  %v521_v37 = vld [vmem:[%s9975_s8 + $0x78] sm:$0xff]  ;;  %v834_v38 = vld [vmem:[%s9976_s22 + $0x68] sm:$0xff]  ;;  %s7723_s16 = smov [#allocation41]  }
 0x25b   :  { %6110 = vmatpush1.bf16.msra.mxu0 %v6109_v26  ;;  %6084 = vmatprep.subr.bf16.mxu1 %v6083_v27  ;;  %v6113_v39 = vpack.c.bf16 %v831_v34, %v829_v33  ;;  %v6087_v40 = vpack.c.bf16 %v521_v37, %v519_v36  ;;  %v836_v41 = vld [vmem:[%s9976_s22 + $0x78] sm:$0xff]  ;;  %v518_v42 = vld [vmem:[%s9975_s8 + $0x60] sm:$0xff]  ;;  %v520_v43 = vld [vmem:[%s9975_s8 + $0x70] sm:$0xff]  ;;  %v8159_v19 = vsub.s32 0, %v525_v16  ;;  %v612_v21 = vunpack.c.0.s8 %v611_v18  ;;  %s5011_s12 = sshll.u32 %s7723_s16, 4  ;;  %s5012_s12 = int_to_ptr.vmem [resolvable:$true] %s5011_s12 }
 0x25c   :  { %6112 = vmatprep.subr.bf16.mxu0 %v6111_v31  ;;  %v6115_v44 = vpack.c.bf16 %v836_v41, %v834_v38  ;;  %v833_v45 = vld [vmem:[%s9976_s22 + $0x60] sm:$0xff]  ;;  %v835_v46 = vld [vmem:[%s9976_s22 + $0x70] sm:$0xff]  ;;  %v6089_v49 = vpack.c.bf16 %v520_v43, %v518_v42  ;;  %v1648_v6 = vld [vmem:[%s7968_s6 + $0x68] sm:$0xff]  ;;  %v8165_v23 = vsub.s32 1, %v525_v16  ;;  %s7567_s21 = scalar_lea.vmem %s5012_s12, 32  ;;  %p7572_p5 = scmp.lt.s32.totalorder %s5012_s12, %s5012_s12 }
 0x25d   :  { %v6117_v50 = vpack.c.bf16 %v835_v46, %v833_v45  ;;  %v820_v1 = vld [vmem:[#allocation5 + $0x8] sm:$0xff]  ;;  %v1643_v4 = vld [vmem:[%s7968_s6 + $0x40] sm:$0xff]  ;;  %v1650_v7 = vld [vmem:[%s7968_s6 + $0x78] sm:$0xff]  ;;  %9979 = vst [vmem:[#allocation92_spill] sm:$0xff] %v8159_v19  ;;  %v8170_v26 = vsub.s32 %v612_v21, %v525_v16  ;;  %p7568_p4 = scmp.ne.s32.totalorder %s5012_s12, %s7567_s21  ;;  %p7573_p6 = scmp.lt.s32.totalorder %s7567_s21, %s7567_s21 }
 0x25e   :  { %6086 = vmatpush1.bf16.msra.mxu1 %v6085_v35  ;;  %v1645_v5 = vld [vmem:[%s7968_s6 + $0x50] sm:$0xff]  ;;  %v6147_v9 = vpack.c.bf16 %v1650_v7, %v1648_v6  ;;  %v1647_v10 = vld [vmem:[%s7968_s6 + $0x60] sm:$0xff]  ;;  %9980 = vst [vmem:[#allocation93_spill] sm:$0xff] %v8165_v23  ;;  %v687_v61 = vld [vmem:[#allocation38 + $0x20] sm:$0xff] }
 0x25f   :  { %6114 = vmatpush1.bf16.msra.mxu0 %v6113_v39  ;;  %6088 = vmatprep.subr.bf16.mxu1 %v6087_v40  ;;  %v6145_v8 = vpack.c.bf16 %v1645_v5, %v1643_v4  ;;  %v1649_v11 = vld [vmem:[%s7968_s6 + $0x70] sm:$0xff]  ;;  %v1634_v14 = vld [vmem:[#allocation7 + $0x8] sm:$0xff]  ;;  %s9981_s6 = sld [smem:[#allocation89_spill]]  ;;  %p7574_p7 = por %p7573_p6, %p7572_p5 }
 0x260   :  { %6116 = vmatprep.subr.bf16.mxu0 %v6115_v44  ;;  %v6149_v12 = vpack.c.bf16 %v1649_v11, %v1647_v10  ;;  %v1633_v13 = vld [vmem:[#allocation7] sm:$0xff]  ;;  %v8162_v20 = vld [vmem:[%s9977_s23] sm:$0x3] }
 0x261   :  { %v837_v22 = vld [vmem:[%s9978_s4] sm:$0x3]  ;;  %v527_v24 = vrot.slane %v8162_v20, %v8159_v19  ;;  %v688_v62 = vld [vmem:[#allocation38 + $0x28] sm:$0xff]  ;;  %v531_v63 = vrot.slane %v8162_v20, %v8165_v23  ;;  %v689_v4 = vld [vmem:[#allocation38 + $0x30] sm:$0xff]  ;;  %p7575_p8 = pnand %p7574_p7, %p7568_p4 }
 0x262   :  { %6090 = vmatpush1.bf16.msra.mxu1 %v6089_v49  ;;  %v842_v25 = vrot.slane %v837_v22, %v8159_v19  ;;  %v846_v27 = vrot.slane %v837_v22, %v8165_v23  ;;  %v690_v5 = vld [vmem:[#allocation38 + $0x38] sm:$0xff] }
 0x263   :  { %6118 = vmatpush1.bf16.msra.mxu0 %v6117_v50 }
 0x264   :  { %6136 = vmatprep.subr.bf16.mxu0 %v6135_v51 }
 0x265   :  { %5096 = vmatmul.mubr.msk.f32.vlgmr.msra.gmra.mrb[0].mxu1 %vm534_vm0, %v505_v56  ;;  %v1651_v43 = vld [vmem:[%s9981_s6] sm:$0x3]  ;;  %v6092_v56 = vpack.c.bf16 %v684_v55, %v683_v54 }
 0x266   :  { %5101 = vmatmul.mubr.msk.f32.vlgmr.msra.gmra.mrb[0].mxu0 %vm534_vm0, %v819_v57  ;;  %v1656_v44 = vrot.slane %v1651_v43, %v8159_v19  ;;  %v1660_v45 = vrot.slane %v1651_v43, %v8165_v23  ;;  %v9872_v57 = vmov 0.0|0.0   ;;  %5462 = vmatprep.mubr.msk.f32.mxu1 %vm7722_vm1, %v9874_v0 }
 0x267   :  { %6138 = vmatpush1.bf16.msra.mxu0 %v6137_v58  ;;  %925 = vmatprep.mubr.f32.mxu0 %v9874_v0  ;;  %v685_v58 = vld [vmem:[#allocation38 + $0x10] sm:$0xff] }
 0x268   :  { %6140 = vmatprep.subr.bf16.mxu0 %v6139_v59  ;;  %6091 = vmatprep.subr.bf16.mxu1 %v9872_v57  ;;  %v686_v59 = vld [vmem:[#allocation38 + $0x18] sm:$0xff] }
 0x269   :  { %6093 = vmatpush3.bf16.msra.mxu1 %v6092_v56  ;;  %v6095_v60 = vpack.c.bf16 %v686_v59, %v685_v58 }
 0x26a   :  { %5102 = vmatmul.mubr.msk.f32.gmra.mrb[2].mxu0 %vm534_vm0, %v820_v1  ;;  %6094 = vmatprep.subr.bf16.mxu1 %v9872_v57  ;;  %v6098_v1 = vpack.c.bf16 %v688_v62, %v687_v61 }
 0x26b   :  { %6142 = vmatpush1.bf16.msra.mxu0 %v6141_v2  ;;  %1733 = vmatprep.mubr.f32.mxu0 %v9874_v0 }
 0x26c   :  { %6144 = vmatprep.subr.bf16.mxu0 %v6143_v3 }
 0x26d   :  { %6096 = vmatpush3.bf16.msra.mxu1 %v6095_v60 }
 0x26e   :  { %6097 = vmatprep.subr.bf16.mxu1 %v9872_v57 }
 0x26f   :  { %6146 = vmatpush1.bf16.msra.mxu0 %v6145_v8  ;;  %v6101_v8 = vpack.c.bf16 %v690_v5, %v689_v4 }
 0x270   :  { %6148 = vmatprep.subr.bf16.mxu0 %v6147_v9 }
 0x271   :  { %6099 = vmatpush3.bf16.msra.mxu1 %v6098_v1 }
 0x272   :  { %6100 = vmatprep.subr.bf16.mxu1 %v9872_v57 }
 0x273   :  { %6150 = vmatpush1.bf16.msra.mxu0 %v6149_v12  ;;  %v1456_v12 = vld [vmem:[%s9984_s28] sm:$0xff] }
 0x275   :  { %6102 = vmatpush3.bf16.msra.mxu1 %v6101_v8 }
 0x276   :  { %5108 = vmatmul.mubr.msk.f32.vlgmr.msra.gmra.mrb[4].mxu0 %vm534_vm0, %v1633_v13  ;;  %v1457_v13 = vld [vmem:[%s9984_s28 + $0x8] sm:$0xff] }
 0x277   :  { %1739 = vmatprep.mubr.f32.mxu0 %v9874_v0  ;;  %v8224_v16 = vpack.c.bf16 %v1457_v13, %v1456_v12 }
 0x279   :  { %6120 = vmatprep.subr.bf16.mxu1 %v8224_v16 }
 0x27a   :  { %5109 = vmatmul.mubr.msk.f32.gmra.mrb[6].mxu0 %vm534_vm0, %v1634_v14 }
 0x27b   :  { %2538 = vmatprep.mubr.f32.mxu0 %v9874_v0 }
 0x338   :  { %v604_v28 = vpop.f32.mrb[0].mxu1 }
 0x339   :  { %v605_v29 = vadd.f32 %v604_v28, %v527_v24  ;;  %v921_v30 = vpop.f32.mrb[0].mxu0  ;;  %v606_v31 = vpop.f32.mrb[1].mxu1 }
 0x33a   :  { %v8173_v32 = vadd.f32 %v921_v30, %v842_v25  ;;  %v923_v33 = vpop.f32.mrb[1].mxu0  ;;  %v607_v7 = vadd.f32 %v606_v31, %v531_v63 }
 0x33b   :  { %v616_v34 = vrot.slane %v605_v29, %v8170_v26  ;;  %v924_v35 = vadd.f32 %v923_v33, %v846_v27 }
 0x33c   :  { %1114 = vrot.lane.b32.xlu0 %v8173_v32, %s7720_s27  ;;  %v8220_v15 = vrot.slane %v607_v7, %v8170_v26 }
 0x33d   :  { %v617_v36 = vcombine.high %v616_v34, %v616_v34  ;;  %v927_v37 = vpop.f32.mrb[2].mxu0  ;;  %v8179_v38 = vrot.slane %v616_v34, %v8170_v26  ;;  %v934_v2 = vcombine.high %v924_v35, %v924_v35  ;;  %v941_v3 = vrot.slane %v924_v35, %v8170_v26 }
 0x33e   :  { %v8181_v39 = vadd.f32 %v927_v37, %v842_v25  ;;  %v929_v40 = vpop.f32.mrb[3].mxu0  ;;  %v640_v24 = vcombine.high %v8220_v15, %v8220_v15  ;;  %v647_v37 = vrot.slane %v8220_v15, %v8170_v26 }
 0x33f   :  { %v930_v41 = vadd.f32 %v929_v40, %v846_v27  ;;  %657 = vrot.lane.b32.xlu1 %v8179_v38, %s7720_s27  ;;  %v8188_v42 = vrot.slane %v617_v36, %v8170_v26  ;;  %v948_v9 = vrot.slane %v934_v2, %v8170_v26  ;;  %v949_v10 = vcombine.high %v941_v3, %v941_v3 }
 0x340   :  { %1116 = vrot.lane.b32.xlu0 %v8181_v39, %s7720_s27  ;;  %v957_v18 = vrot.slane %v941_v3, %v8170_v26  ;;  %v8252_v40 = vrot.slane %v640_v24, %v8170_v26 }
 0x341   :  { %v983_v6 = vcombine.high %v930_v41, %v930_v41  ;;  %v990_v11 = vrot.slane %v930_v41, %v8170_v26  ;;  %v950_v17 = vcombine.high %v948_v9, %v948_v9  ;;  %v971_v20 = vrot.slane %v949_v10, %v8170_v26 }
 0x342   :  { %v964_v25 = vrot.slane %v948_v9, %v8170_v26  ;;  %v979_v28 = vcombine.high %v957_v18, %v957_v18 }
 0x343   :  { %659 = vrot.lane.b32.xlu1 %v8188_v42, %s7720_s27  ;;  %v997_v14 = vrot.slane %v983_v6, %v8170_v26  ;;  %v998_v21 = vcombine.high %v990_v11, %v990_v11  ;;  %v978_v27 = vrot.slane %v950_v17, %v8170_v26  ;;  %v981_v30 = vcombine.high %v971_v20, %v971_v20 }
 0x344   :  { %v8236_v31 = vrot.slane %v990_v11, %v8170_v26  ;;  %v980_v41 = vcombine.high %v964_v25, %v964_v25 }
 0x345   :  { %v999_v22 = vcombine.high %v997_v14, %v997_v14  ;;  %v8239_v33 = vrot.slane %v998_v21, %v8170_v26  ;;  %v8244_v35 = vrot.slane %v997_v14, %v8170_v26  ;;  %v982_v43 = vcombine.high %v978_v27, %v978_v27 }
 0x346   :  { %v1028_v54 = vcombine.high %v8236_v31, %v8236_v31  ;;  %v1055_v58 = vrot.slane %v978_v27, %v8159_v19  ;;  %v1059_v62 = vrot.slane %v980_v41, %v8159_v19  ;;  %v1067_v1 = vrot.slane %v8236_v31, %v8159_v19 }
 0x347   :  { %v8247_v36 = vrot.slane %v999_v22, %v8170_v26  ;;  %v1030_v55 = vcombine.high %v8239_v33, %v8239_v33  ;;  %v1029_v59 = vcombine.high %v8244_v35, %v8244_v35  ;;  %v1063_v63 = vrot.slane %v982_v43, %v8159_v19 }
 0x348   :  { %v1071_v3 = vrot.slane %v8239_v33, %v8159_v19  ;;  %v1083_v4 = vrot.slane %v8244_v35, %v8159_v19  ;;  %v1075_v7 = vrot.slane %v1028_v54, %v8159_v19 }
 0x349   :  { %v1735_v46 = vpop.f32.mrb[4].mxu0  ;;  %v1031_v60 = vcombine.high %v8247_v36, %v8247_v36  ;;  %v1079_v8 = vrot.slane %v1030_v55, %v8159_v19  ;;  %v8296_v11 = vrot.slane %v1029_v59, %v8159_v19 }
 0x34a   :  { %v1737_v47 = vpop.f32.mrb[5].mxu0  ;;  %v8195_v48 = vadd.f32 %v1735_v46, %v1656_v44  ;;  %v1043_v46 = vrot.slane %v979_v28, %v8159_v19 }
 0x34b   :  { %v8197_v49 = vadd.f32 %v1737_v47, %v1660_v45  ;;  %v1051_v47 = vrot.slane %v964_v25, %v8159_v19  ;;  %v8299_v12 = vrot.slane %v1031_v60, %v8159_v19 }
 0x34c   :  { %9982 = vst [vmem:[#allocation94_spill] sm:$0xff] %v8195_v48  ;;  %1928 = vrot.lane.b32.xlu0 %v8195_v48, %s7720_s27 }
 0x34d   :  { %v1741_v50 = vpop.f32.mrb[6].mxu0  ;;  %v1748_v29 = vcombine.high %v8197_v49, %v8197_v49  ;;  %v1755_v34 = vrot.slane %v8197_v49, %v8170_v26 }
 0x34e   :  { %v8201_v51 = vadd.f32 %v1741_v50, %v1656_v44  ;;  %v1743_v52 = vpop.f32.mrb[7].mxu0  ;;  %v1035_v44 = vrot.slane %v957_v18, %v8159_v19 }
 0x34f   :  { %v8203_v53 = vadd.f32 %v1743_v52, %v1660_v45  ;;  %v1039_v45 = vrot.slane %v971_v20, %v8159_v19  ;;  %v1762_v49 = vrot.slane %v1748_v29, %v8170_v26  ;;  %v1047_v52 = vrot.slane %v981_v30, %v8159_v19 }
 0x350   :  { %9983 = vst [vmem:[#allocation95_spill] sm:$0xff] %v8201_v51  ;;  %1930 = vrot.lane.b32.xlu1 %v8201_v51, %s7720_s27  ;;  %v1763_v56 = vcombine.high %v1755_v34, %v1755_v34  ;;  %v8272_v61 = vrot.slane %v1755_v34, %v8170_v26 }
 0x351   :  { %v1797_v50 = vcombine.high %v8203_v53, %v8203_v53  ;;  %v1804_v2 = vrot.slane %v8203_v53, %v8170_v26  ;;  %v1764_v5 = vcombine.high %v1762_v49, %v1762_v49  ;;  %v8288_v9 = vrot.slane %v1762_v49, %v8170_v26 }
 0x352   :  { %v8291_v10 = vrot.slane %v1763_v56, %v8170_v26  ;;  %v1087_v53 = vrot.slane %v8247_v36, %v8159_v19  ;;  %v1793_v13 = vcombine.high %v8272_v61, %v8272_v61  ;;  %v1849_v24 = vrot.slane %v8272_v61, %v8159_v19 }
 0x353   :  { %v1811_v6 = vrot.slane %v1797_v50, %v8170_v26  ;;  %v1812_v17 = vcombine.high %v1804_v2, %v1804_v2  ;;  %v8304_v22 = vrot.slane %v1764_v5, %v8170_v26  ;;  %v1794_v28 = vcombine.high %v8288_v9, %v8288_v9 }
 0x354   :  { %v1795_v29 = vcombine.high %v8291_v10, %v8291_v10  ;;  %v1853_v31 = vrot.slane %v8291_v10, %v8159_v19  ;;  %v8315_v33 = vrot.slane %v1793_v13, %v8159_v19  ;;  %v8320_v41 = vrot.slane %v1804_v2, %v8170_v26 }
 0x355   :  { %v1813_v25 = vcombine.high %v1811_v6, %v1811_v6  ;;  %v8323_v43 = vrot.slane %v1812_v17, %v8170_v26  ;;  %v1796_v49 = vcombine.high %v8304_v22, %v8304_v22  ;;  %v1865_v50 = vrot.slane %v8288_v9, %v8159_v19  ;;  %v1459_v17 = vld [vmem:[%s9984_s28 + $0x18] sm:$0xff] }
 0x356   :  { %v8337_v54 = vrot.slane %v1795_v29, %v8159_v19  ;;  %v1869_v55 = vrot.slane %v8304_v22, %v8159_v19  ;;  %v1881_v13 = vrot.slane %v8320_v41, %v8159_v19  ;;  %v1463_v29 = vld [vmem:[%s9984_s28 + $0x38] sm:$0xff] }
 0x357   :  { %v1844_v59 = vcombine.high %v8323_v43, %v8323_v43  ;;  %v8356_v5 = vrot.slane %v1796_v49, %v8159_v19 }
 0x3ae   :  { %v1115_v14 = vpop.permute.xlu0 %1114 }
 0x3af   :  { %v1120_v18 = vadd.f32 %v1115_v14, %v1035_v44  ;;  %v1121_v20 = vadd.f32 %v1115_v14, %v1039_v45  ;;  %v1122_v21 = vadd.f32 %v1115_v14, %v1043_v46  ;;  %v1123_v27 = vadd.f32 %v1115_v14, %v1047_v52 }
 0x3b0   :  { %v1124_v30 = vadd.f32 %v1115_v14, %v1051_v47  ;;  %v1125_v34 = vadd.f32 %v1115_v14, %v1055_v58  ;;  %v1126_v44 = vadd.f32 %v1115_v14, %v1059_v62  ;;  %v8326_v45 = vrot.slane %v1811_v6, %v8170_v26 }
 0x3b1   :  { %6667 = vtanh.f32 %v1120_v18  ;;  %v8329_v46 = vrot.slane %v1813_v25, %v8170_v26  ;;  %v1127_v47 = vadd.f32 %v1115_v14, %v1063_v63  ;;  %v1842_v58 = vcombine.high %v8320_v41, %v8320_v41  ;;  %v658_v62 = vpop.permute.xlu1 %657  ;;  %v1460_v18 = vld [vmem:[%s9984_s28 + $0x20] sm:$0xff] }
 0x3b2   :  { %6669 = vtanh.f32 %v1121_v20  ;;  %v8317_v35 = vpop.permute.xlu0 %1116  ;;  %v1843_v63 = vcombine.high %v8326_v45, %v8326_v45  ;;  %v1885_v14 = vrot.slane %v8323_v43, %v8159_v19  ;;  %v1461_v20 = vld [vmem:[%s9984_s28 + $0x28] sm:$0xff]  ;;  %v2273_v41 = vld [vmem:[#allocation40 + $0x18] sm:$0xff] }
 0x3b3   :  { %6671 = vtanh.f32 %v1122_v21  ;;  %v1128_v52 = vadd.f32 %v8317_v35, %v1067_v1  ;;  %v1129_v56 = vadd.f32 %v8317_v35, %v1071_v3  ;;  %v1130_v60 = vadd.f32 %v8317_v35, %v1075_v7  ;;  %v1458_v7 = vld [vmem:[%s9984_s28 + $0x10] sm:$0xff] }
 0x3b4   :  { %6673 = vtanh.f32 %v1123_v27  ;;  %v1845_v1 = vcombine.high %v8329_v46, %v8329_v46  ;;  %v1131_v2 = vadd.f32 %v8317_v35, %v1079_v8  ;;  %v8353_v3 = vrot.slane %v1794_v28, %v8159_v19  ;;  %v1462_v28 = vld [vmem:[%s9984_s28 + $0x30] sm:$0xff] }
 0x3b5   :  { %6675 = vtanh.f32 %v1124_v30  ;;  %v1132_v6 = vadd.f32 %v8317_v35, %v1083_v4  ;;  %v1897_v8 = vrot.slane %v8326_v45, %v8159_v19  ;;  %v8370_v25 = vrot.slane %v1842_v58, %v8159_v19 }
 0x3b6   :  { %6677 = vtanh.f32 %v1125_v34  ;;  %v8373_v4 = vrot.slane %v1844_v59, %v8159_v19  ;;  %v1901_v27 = vrot.slane %v8329_v46, %v8159_v19  ;;  %v8380_v34 = vrot.slane %v1843_v63, %v8159_v19 }
 0x3b7   :  { %6679 = vtanh.f32 %v1126_v44  ;;  %v8383_v44 = vrot.slane %v1845_v1, %v8159_v19  ;;  %v8385_v58 = vpack.c.bf16 %v1459_v17, %v1458_v7  ;;  %v8387_v59 = vpack.c.bf16 %v1461_v20, %v1460_v18 }
 0x3b8   :  { %6681 = vtanh.f32 %v1127_v47  ;;  %v8392_v63 = vadd.f32 %v658_v62, %v647_v37  ;;  %v8394_v1 = vpack.c.bf16 %v1463_v29, %v1462_v28  ;;  %v1134_v7 = vadd.f32 %v8317_v35, %v8296_v11 }
 0x3b9   :  { %6683 = vtanh.f32 %v1128_v52  ;;  %v1135_v15 = vadd.f32 %v8317_v35, %v8299_v12 }
 0x3ba   :  { %6685 = vtanh.f32 %v1129_v56  ;;  %v660_v56 = vpop.permute.xlu1 %659 }
 0x3bb   :  { %v6668_v21 = vpop.eup %6667  ;;  %6687 = vtanh.f32 %v1130_v60  ;;  %v8405_v37 = vadd.f32 %v660_v56, %v8252_v40  ;;  %v2271_v56 = vld [vmem:[#allocation40 + $0x8] sm:$0xff] }
 0x3bc   :  { %v6670_v30 = vpop.eup %6669  ;;  %v1152_v47 = vmul.f32 1.442695, %v6668_v21  ;;  %6689 = vtanh.f32 %v1131_v2 }
 0x3bd   :  { %v6672_v49 = vpop.eup %6671  ;;  %v1154_v52 = vmul.f32 1.442695, %v6670_v30  ;;  %6691 = vtanh.f32 %v1132_v6  ;;  %v1133_v6 = vadd.f32 %v8317_v35, %v1087_v53 }
 0x3be   :  { %v6674_v60 = vpop.eup %6673  ;;  %6693 = vpow2.f32 %v1152_v47  ;;  %v1156_v57 = vmul.f32 1.442695, %v6672_v49  ;;  %v1929_v17 = vpop.permute.xlu0 %1928 }
 0x3bf   :  { %v6676_v21 = vpop.eup %6675  ;;  %6695 = vpow2.f32 %v1154_v52  ;;  %v1158_v2 = vmul.f32 1.442695, %v6674_v60  ;;  %v8410_v36 = vadd.f32 %v1929_v17, %v1849_v24  ;;  %v8415_v53 = vadd.f32 %v1929_v17, %v1853_v31  ;;  %v2272_v60 = vld [vmem:[#allocation40 + $0x10] sm:$0xff] }
 0x3c0   :  { %v6678_v18 = vpop.eup %6677  ;;  %6697 = vpow2.f32 %v1156_v57  ;;  %v1160_v20 = vmul.f32 1.442695, %v6676_v21  ;;  %v8418_v12 = vadd.f32 %v1929_v17, %v8315_v33  ;;  %v8421_v40 = vadd.f32 %v1929_v17, %v8337_v54 }
 0x3c1   :  { %v6680_v62 = vpop.eup %6679  ;;  %6699 = vpow2.f32 %v1158_v2  ;;  %v1162_v28 = vmul.f32 1.442695, %v6678_v18  ;;  %v8426_v24 = vadd.f32 %v1929_v17, %v1865_v50  ;;  %v8431_v10 = vadd.f32 %v1929_v17, %v1869_v55  ;;  %v2270_v50 = vld [vmem:[#allocation40] sm:$0xff]  ;;  %v2275_v2 = vld [vmem:[#allocation40 + $0x28] sm:$0xff]  ;;  %v2276_v18 = vld [vmem:[#allocation40 + $0x30] sm:$0xff] }
 0x3c2   :  { %v6682_v57 = vpop.eup %6681  ;;  %6701 = vpow2.f32 %v1160_v20  ;;  %v1164_v11 = vmul.f32 1.442695, %v6680_v62  ;;  %v1931_v35 = vpop.permute.xlu1 %1930  ;;  %v8434_v54 = vadd.f32 %v1929_v17, %v8353_v3  ;;  %v8437_v30 = vadd.f32 %v1929_v17, %v8356_v5  ;;  %v2277_v20 = vld [vmem:[#allocation40 + $0x38] sm:$0xff] }
 0x3c3   :  { %v6684_v29 = vpop.eup %6683  ;;  %6703 = vpow2.f32 %v1162_v28  ;;  %v1166_v61 = vmul.f32 1.442695, %v6682_v57  ;;  %v8442_v9 = vadd.f32 %v1931_v35, %v1881_v13  ;;  %v8447_v22 = vadd.f32 %v1931_v35, %v1885_v14 }
 0x3c4   :  { %v6686_v31 = vpop.eup %6685  ;;  %6705 = vpow2.f32 %v1164_v11  ;;  %v1168_v33 = vmul.f32 1.442695, %v6684_v29  ;;  %v8450_v5 = vadd.f32 %v1931_v35, %v8370_v25  ;;  %v8453_v52 = vadd.f32 %v1931_v35, %v8373_v4  ;;  %v2274_v25 = vld [vmem:[#allocation40 + $0x20] sm:$0xff] }
 0x3c5   :  { %v6688_v47 = vpop.eup %6687  ;;  %6707 = vpow2.f32 %v1166_v61  ;;  %v1170_v49 = vmul.f32 1.442695, %v6686_v31  ;;  %v8458_v43 = vadd.f32 %v1931_v35, %v1897_v8  ;;  %v8463_v14 = vadd.f32 %v1931_v35, %v1901_v27 }
 0x3c6   :  { %v6690_v55 = vpop.eup %6689  ;;  %6709 = vtanh.f32 %v1133_v6  ;;  %v1172_v3 = vmul.f32 1.442695, %v6688_v47  ;;  %v8468_v17 = vadd.f32 %v1931_v35, %v8380_v34  ;;  %v8477_v46 = vpack.c.bf16 %v2271_v56, %v2270_v50 }
 0x3c7   :  { %v6692_v13 = vpop.eup %6691  ;;  %6711 = vtanh.f32 %v1134_v7  ;;  %v1174_v21 = vmul.f32 1.442695, %v6690_v55  ;;  %v8471_v7 = vadd.f32 %v1931_v35, %v8383_v44  ;;  %v8479_v27 = vpack.c.bf16 %v2273_v41, %v2272_v60 }
 0x3c8   :  { %v8465_v4 = vpop.eup %6693  ;;  %6713 = vtanh.f32 %v1135_v15  ;;  %v1176_v6 = vmul.f32 1.442695, %v6692_v13  ;;  %v8485_v44 = vpack.c.bf16 %v2275_v2, %v2274_v25  ;;  %v8491_v35 = vpack.c.bf16 %v2277_v20, %v2276_v18 }
 0x3c9   :  { %v8473_v45 = vpop.eup %6695  ;;  %v1184_v8 = vsel %vm534_vm0, %v8465_v4, 0.0  ;;  %6715 = vpow2.f32 %v1168_v33  ;;  %9985 = vst [vmem:[#allocation96_spill] sm:$0xff] %v8479_v27 }
 0x3ca   :  { %v8481_v15 = vpop.eup %6697  ;;  %v1185_v62 = vrot.slane %v1184_v8, 4  ;;  %v1191_v34 = vsel %vm534_vm0, %v8473_v45, 0.0  ;;  %6717 = vpow2.f32 %v1170_v49  ;;  %9986 = vst [vmem:[#allocation97_spill] sm:$0xff] %v8485_v44  ;;  %9987 = vst [vmem:[#allocation98_spill] sm:$0xff] %v8491_v35 }
 0x3cb   :  { %v8487_v28 = vpop.eup %6699  ;;  %v1192_v57 = vrot.slane %v1191_v34, 4  ;;  %v1198_v11 = vsel %vm534_vm0, %v8481_v15, 0.0  ;;  %6719 = vpow2.f32 %v1172_v3 }
 0x3cc   :  { %v8493_v29 = vpop.eup %6701  ;;  %v1186_v61 = vadd.f32 %v1185_v62, %v1184_v8  ;;  %v1199_v31 = vrot.slane %v1198_v11, 4  ;;  %v1205_v33 = vsel %vm534_vm0, %v8487_v28, 0.0  ;;  %6721 = vpow2.f32 %v1174_v21 }
 0x3cd   :  { %v8497_v47 = vpop.eup %6703  ;;  %v1193_v49 = vadd.f32 %v1192_v57, %v1191_v34  ;;  %v1206_v50 = vrot.slane %v1205_v33, 4  ;;  %v1212_v55 = vsel %vm534_vm0, %v8493_v29, 0.0  ;;  %6723 = vpow2.f32 %v1176_v6 }
 0x3ce   :  { %v8501_v56 = vpop.eup %6705  ;;  %v1187_v3 = vrot.slane %v1186_v61, 2  ;;  %v1200_v60 = vadd.f32 %v1199_v31, %v1198_v11  ;;  %v1213_v41 = vrot.slane %v1212_v55, 4  ;;  %v1219_v13 = vsel %vm534_vm0, %v8497_v47, 0.0 }
 0x3cf   :  { %v8505_v25 = vpop.eup %6707  ;;  %v1194_v2 = vrot.slane %v1193_v49, 2  ;;  %v1207_v21 = vadd.f32 %v1206_v50, %v1205_v33  ;;  %v1220_v8 = vrot.slane %v1219_v13, 4  ;;  %v8509_v18 = vsel %vm534_vm0, %v8501_v56, 0.0 }
 0x3d0   :  { %v6710_v20 = vpop.eup %6709  ;;  %v1188_v62 = vadd.f32 %v1187_v3, %v1186_v61  ;;  %v1201_v6 = vrot.slane %v1200_v60, 2  ;;  %v8511_v34 = vadd.f32 %v1213_v41, %v1212_v55 }
 0x3d1   :  { %v6712_v11 = vpop.eup %6711  ;;  %v1195_v31 = vadd.f32 %v1194_v2, %v1193_v49  ;;  %v1208_v0 = vrot.slane %v1207_v21, 2  ;;  %v8514_v19 = vadd.f32 %v1220_v8, %v1219_v13  ;;  %v1178_v23 = vmul.f32 1.442695, %v6710_v20 }
 0x3d2   :  { %v6714_v51 = vpop.eup %6713  ;;  %v1189_v33 = vrot.slane %v1188_v62, 1  ;;  %v1202_v50 = vadd.f32 %v1201_v6, %v1200_v60  ;;  %v1180_v44 = vmul.f32 1.442695, %v6712_v11 }
 0x3d3   :  { %v8517_v27 = vpop.eup %6715  ;;  %v1196_v61 = vrot.slane %v1195_v31, 1  ;;  %v1209_v3 = vadd.f32 %v1208_v0, %v1207_v21  ;;  %6725 = vpow2.f32 %v1178_v23  ;;  %v1182_v55 = vmul.f32 1.442695, %v6714_v51 }
 0x3d4   :  { %v8519_v41 = vpop.eup %6717  ;;  %v1190_v57 = vadd.f32 %v1189_v33, %v1188_v62  ;;  %v1203_v49 = vrot.slane %v1202_v50, 1  ;;  %6727 = vpow2.f32 %v1180_v44  ;;  %v1240_v13 = vsel %vm534_vm0, %v8517_v27, 0.0 }
 0x3d5   :  { %v8523_v2 = vpop.eup %6719  ;;  %v1197_v60 = vadd.f32 %v1196_v61, %v1195_v31  ;;  %6729 = vpow2.f32 %v1182_v55  ;;  %v1241_v8 = vrot.slane %v1240_v13, 4  ;;  %v1247_v20 = vsel %vm534_vm0, %v8519_v41, 0.0 }
 0x3d6   :  { %v8527_v6 = vpop.eup %6721  ;;  %v8529_v0 = vadd.f32 %v1203_v49, %v1202_v50  ;;  %6731 = vrcp.f32 %v1190_v57  ;;  %v1248_v23 = vrot.slane %v1247_v20, 4  ;;  %v1254_v51 = vsel %vm534_vm0, %v8523_v2, 0.0 }
 0x3d7   :  { %v8533_v44 = vpop.eup %6723  ;;  %6733 = vrcp.f32 %v1197_v60  ;;  %v1242_v21 = vadd.f32 %v1241_v8, %v1240_v13  ;;  %v1255_v62 = vrot.slane %v1254_v51, 4  ;;  %v1261_v11 = vsel %vm534_vm0, %v8527_v6, 0.0 }
 0x3d8   :  { %9988 = vst [vmem:[#allocation99_spill] sm:$0xff] %v8533_v44  ;;  %v1249_v31 = vadd.f32 %v1248_v23, %v1247_v20  ;;  %v1262_v33 = vrot.slane %v1261_v11, 4  ;;  %v1268_v61 = vsel %vm534_vm0, %v8533_v44, 0.0  ;;  %6735 = vtanh.f32 %v8392_v63 }
 0x3d9   :  { %v1243_v57 = vrot.slane %v1242_v21, 2  ;;  %v1256_v50 = vadd.f32 %v1255_v62, %v1254_v51  ;;  %v1269_v55 = vrot.slane %v1268_v61, 4  ;;  %6737 = vtanh.f32 %v8405_v37 }
 0x3da   :  { %v1250_v49 = vrot.slane %v1249_v31, 2  ;;  %v1263_v35 = vadd.f32 %v1262_v33, %v1261_v11  ;;  %6739 = vtanh.f32 %v8410_v36  ;;  %v1210_v13 = vrot.slane %v1209_v3, 1 }
 0x3db   :  { %v1244_v60 = vadd.f32 %v1243_v57, %v1242_v21  ;;  %v1257_v8 = vrot.slane %v1256_v50, 2  ;;  %v1270_v48 = vadd.f32 %v1269_v55, %v1268_v61  ;;  %6741 = vtanh.f32 %v8415_v53 }
 0x3dc   :  { %v1251_v20 = vadd.f32 %v1250_v49, %v1249_v31  ;;  %v1264_v23 = vrot.slane %v1263_v35, 2  ;;  %6743 = vtanh.f32 %v8418_v12  ;;  %v8544_v63 = vadd.f32 %v1210_v13, %v1209_v3 }
 0x3dd   :  { %v8546_v51 = vpop.eup %6725  ;;  %v1245_v62 = vrot.slane %v1244_v60, 1  ;;  %v1258_v37 = vadd.f32 %v1257_v8, %v1256_v50  ;;  %v1271_v44 = vrot.slane %v1270_v48, 2  ;;  %6745 = vtanh.f32 %v8421_v40 }
 0x3de   :  { %9989 = vst [vmem:[#allocation100_spill] sm:$0xff] %v8546_v51  ;;  %v8549_v36 = vpop.eup %6727  ;;  %v1252_v21 = vrot.slane %v1251_v20, 1  ;;  %v1265_v11 = vadd.f32 %v1264_v23, %v1263_v35  ;;  %v1275_v53 = vsel %vm534_vm0, %v8546_v51, 0.0  ;;  %6747 = vtanh.f32 %v8426_v24 }
 0x3df   :  { %9990 = vst [vmem:[#allocation101_spill] sm:$0xff] %v8549_v36  ;;  %v8554_v31 = vpop.eup %6729  ;;  %v1246_v12 = vadd.f32 %v1245_v62, %v1244_v60  ;;  %v1259_v3 = vrot.slane %v1258_v37, 1  ;;  %v8556_v33 = vadd.f32 %v1271_v44, %v1270_v48  ;;  %v1276_v61 = vrot.slane %v1275_v53, 4 }
 0x3e0   :  { %9991 = vst [vmem:[#allocation102_spill] sm:$0xff] %v8554_v31  ;;  %v6732_v57 = vpop.eup %6731  ;;  %v1253_v50 = vadd.f32 %v1252_v21, %v1251_v20  ;;  %v1266_v55 = vrot.slane %v1265_v11, 1  ;;  %v1282_v40 = vsel %vm534_vm0, %v8549_v36, 0.0  ;;  %v8562_v35 = vsel %vm534_vm0, %v8554_v31, 0.0 }
 0x3e1   :  { %v6734_v49 = vpop.eup %6733  ;;  %v1260_v13 = vadd.f32 %v1259_v3, %v1258_v37  ;;  %v1277_v24 = vadd.f32 %v1276_v61, %v1275_v53  ;;  %v1283_v8 = vrot.slane %v1282_v40, 4  ;;  %6749 = vrcp.f32 %v1246_v12 }
 0x3e2   :  { %v6736_v23 = vpop.eup %6735  ;;  %v8565_v48 = vadd.f32 %v1266_v55, %v1265_v11  ;;  %v9992_v44 = vrot.slane %v8511_v34, 2  ;;  %v1222_v62 = vrot.slane %v8514_v19, 2  ;;  %6751 = vrcp.f32 %v1253_v50 }
 0x3e3   :  { %v6738_v21 = vpop.eup %6737  ;;  %v1278_v36 = vrot.slane %v1277_v24, 2  ;;  %v8571_v31 = vadd.f32 %v1283_v8, %v1282_v40  ;;  %v667_v37 = vmul.f32 1.442695, %v6736_v23  ;;  %6753 = vrcp.f32 %v1260_v13 }
 0x3e4   :  { %v1216_v20 = vadd.f32 %v9992_v44, %v8511_v34  ;;  %v6740_v53 = vpop.eup %6739  ;;  %v669_v3 = vmul.f32 1.442695, %v6738_v21  ;;  %v1223_v11 = vadd.f32 %v1222_v62, %v8514_v19  ;;  %v9993_v34 = vrot.slane %v8509_v18, 4 }
 0x3e5   :  { %v6742_v55 = vpop.eup %6741  ;;  %6755 = vpow2.f32 %v667_v37  ;;  %v1966_v12 = vmul.f32 1.442695, %v6740_v53  ;;  %v1233_v60 = vsel %vm534_vm0, %v8505_v25, 0.0 }
 0x3e6   :  { %v1217_v61 = vrot.slane %v1216_v20, 1  ;;  %v1228_v44 = vadd.f32 %v9993_v34, %v8509_v18  ;;  %v6744_v40 = vpop.eup %6743  ;;  %6757 = vpow2.f32 %v669_v3  ;;  %v1968_v50 = vmul.f32 1.442695, %v6742_v55 }
 0x3e7   :  { %v1224_v13 = vrot.slane %v1223_v11, 1  ;;  %v6746_v23 = vpop.eup %6745  ;;  %6759 = vtanh.f32 %v8431_v10  ;;  %v1970_v19 = vmul.f32 1.442695, %v6744_v40  ;;  %v1234_v21 = vrot.slane %v1233_v60, 4 }
 0x3e8   :  { %v8579_v8 = vadd.f32 %v1217_v61, %v1216_v20  ;;  %v1229_v62 = vrot.slane %v1228_v44, 2  ;;  %v6748_v37 = vpop.eup %6747  ;;  %6761 = vtanh.f32 %v8434_v54  ;;  %v1972_v53 = vmul.f32 1.442695, %v6746_v23 }
 0x3e9   :  { %v8583_v18 = vadd.f32 %v1224_v13, %v1223_v11  ;;  %v1312_v34 = vmul.f32 %v6732_v57, %v8465_v4  ;;  %6763 = vtanh.f32 %v8437_v30  ;;  %v1974_v3 = vmul.f32 1.442695, %v6748_v37 }
 0x3ea   :  { %v1230_v20 = vadd.f32 %v1229_v62, %v1228_v44  ;;  %v1235_v61 = vadd.f32 %v1234_v21, %v1233_v60  ;;  %6765 = vpow2.f32 %v1966_v12  ;;  %v1313_v55 = vmul.f32 %v6734_v49, %v8473_v45 }
 0x3eb   :  { %v1328_v10 = vmul.f32 %v1312_v34, %v8173_v32  ;;  %v1273_v40 = vrot.slane %v8556_v33, 1  ;;  %6767 = vpow2.f32 %v1968_v50  ;;  %v1279_v23 = vadd.f32 %v1278_v36, %v1277_v24  ;;  %v8590_v11 = vpop.eup %6749 }
 0x3ec   :  { %v1231_v51 = vrot.slane %v1230_v20, 1  ;;  %v1236_v54 = vrot.slane %v1235_v61, 2  ;;  %6769 = vpow2.f32 %v1970_v19  ;;  %v1329_v4 = vmul.f32 %v1313_v55, %v8173_v32  ;;  %v8597_v60 = vpop.eup %6751 }
 0x3ed   :  { %v1344_v30 = vsel %vm534_vm0, %v1328_v10, 0.0  ;;  %v8595_v57 = vadd.f32 %v1273_v40, %v8556_v33  ;;  %6771 = vpow2.f32 %v1972_v53  ;;  %v8601_v44 = vpop.eup %6753  ;;  %v1280_v24 = vrot.slane %v1279_v23, 1 }
 0x3ee   :  { %v8599_v45 = vadd.f32 %v1231_v51, %v1230_v20  ;;  %v1237_v49 = vadd.f32 %v1236_v54, %v1235_v61  ;;  %v1345_v12 = vrot.slane %v1344_v30, 4  ;;  %6773 = vpow2.f32 %v1974_v3 }
 0x3ef   :  { %v1351_v36 = vsel %vm534_vm0, %v1329_v4, 0.0  ;;  %v1285_v50 = vrot.slane %v8571_v31, 2  ;;  %v6756_v13 = vpop.eup %6755  ;;  %6775 = vtanh.f32 %v8442_v9  ;;  %v8606_v51 = vadd.f32 %v1280_v24, %v1279_v23 }
 0x3f0   :  { %v1238_v33 = vrot.slane %v1237_v49, 1  ;;  %v1346_v19 = vadd.f32 %v1345_v12, %v1344_v30  ;;  %v1352_v62 = vrot.slane %v1351_v36, 4  ;;  %v6758_v21 = vpop.eup %6757  ;;  %6777 = vrcp.f32 %v6756_v13 }
 0x3f1   :  { %v1286_v37 = vadd.f32 %v1285_v50, %v8571_v31  ;;  %v9994_v53 = vrot.slane %v8562_v35, 4  ;;  %v6760_v3 = vpop.eup %6759  ;;  %6779 = vrcp.f32 %v6758_v21 }
 0x3f2   :  { %v8612_v20 = vadd.f32 %v1238_v33, %v1237_v49  ;;  %v1347_v61 = vrot.slane %v1346_v19, 2  ;;  %v1353_v55 = vadd.f32 %v1352_v62, %v1351_v36  ;;  %v6762_v9 = vpop.eup %6761  ;;  %v1976_v10 = vmul.f32 1.442695, %v6760_v3 }
 0x3f3   :  { %v1291_v34 = vadd.f32 %v9994_v53, %v8562_v35  ;;  %6781 = vtanh.f32 %v8447_v22  ;;  %v1287_v40 = vrot.slane %v1286_v37, 1  ;;  %v6764_v23 = vpop.eup %6763  ;;  %v1978_v4 = vmul.f32 1.442695, %v6762_v9 }
 0x3f4   :  { %6783 = vtanh.f32 %v8450_v5  ;;  %v1348_v31 = vadd.f32 %v1347_v61, %v1346_v19  ;;  %v1354_v30 = vrot.slane %v1353_v55, 2  ;;  %v8616_v12 = vpop.eup %6765  ;;  %v1980_v35 = vmul.f32 1.442695, %v6764_v23 }
 0x3f5   :  { %v1292_v54 = vrot.slane %v1291_v34, 2  ;;  %9995 = vst [vmem:[#allocation103_spill] sm:$0xff] %v8616_v12  ;;  %6785 = vpow2.f32 %v1976_v10  ;;  %v8618_v49 = vadd.f32 %v1287_v40, %v1286_v37  ;;  %v8622_v36 = vpop.eup %6767  ;;  %v1998_v22 = vsel %vm534_vm0, %v8616_v12, 0.0 }
 0x3f6   :  { %9996 = vst [vmem:[#allocation104_spill] sm:$0xff] %v8622_v36  ;;  %6787 = vpow2.f32 %v1978_v4  ;;  %v1349_v50 = vrot.slane %v1348_v31, 1  ;;  %v8626_v33 = vadd.f32 %v1354_v30, %v1353_v55  ;;  %v8628_v5 = vpop.eup %6769  ;;  %v1999_v19 = vrot.slane %v1998_v22, 4 }
 0x3f7   :  { %v8620_v24 = vadd.f32 %v1292_v54, %v1291_v34  ;;  %9997 = vst [vmem:[#allocation105_spill] sm:$0xff] %v8628_v5  ;;  %6789 = vpow2.f32 %v1980_v35  ;;  %v2005_v62 = vsel %vm534_vm0, %v8622_v36, 0.0  ;;  %v8633_v53 = vpop.eup %6771  ;;  %v2012_v3 = vsel %vm534_vm0, %v8628_v5, 0.0 }
 0x3f8   :  { %9998 = vst [vmem:[#allocation106_spill] sm:$0xff] %v8633_v53  ;;  %v2006_v34 = vrot.slane %v2005_v62, 4  ;;  %6791 = vtanh.f32 %v8453_v52  ;;  %v8638_v61 = vadd.f32 %v1349_v50, %v1348_v31  ;;  %v8640_v55 = vpop.eup %6773  ;;  %v2000_v9 = vadd.f32 %v1999_v19, %v1998_v22 }
 0x3f9   :  { %9999 = vst [vmem:[#allocation107_spill] sm:$0xff] %v8640_v55  ;;  %v2013_v10 = vrot.slane %v2012_v3, 4  ;;  %v2019_v40 = vsel %vm534_vm0, %v8633_v53, 0.0  ;;  %6793 = vtanh.f32 %v8458_v43  ;;  %v6776_v54 = vpop.eup %6775  ;;  %v2026_v30 = vsel %vm534_vm0, %v8640_v55, 0.0 }
 0x3fa   :  { %v2007_v23 = vadd.f32 %v2006_v34, %v2005_v62  ;;  %v2020_v4 = vrot.slane %v2019_v40, 4  ;;  %6795 = vtanh.f32 %v8463_v14  ;;  %v6778_v52 = vpop.eup %6777  ;;  %v2001_v31 = vrot.slane %v2000_v9, 2 }
 0x3fb   :  { %v2014_v35 = vadd.f32 %v2013_v10, %v2012_v3  ;;  %v2027_v50 = vrot.slane %v2026_v30, 4  ;;  %6797 = vtanh.f32 %v8468_v17  ;;  %v6780_v22 = vpop.eup %6779  ;;  %v675_v19 = vmul.f32 %v6778_v52, %v6756_v13 }
 0x3fc   :  { %v2008_v37 = vrot.slane %v2007_v23, 2  ;;  %v2021_v53 = vadd.f32 %v2020_v4, %v2019_v40  ;;  %6799 = vtanh.f32 %v8471_v7  ;;  %v676_v62 = vmul.f32 %v6780_v22, %v6758_v21 }
 0x3fd   :  { %v6782_v43 = vpop.eup %6781  ;;  %v2002_v34 = vadd.f32 %v2001_v31, %v2000_v9  ;;  %v2015_v5 = vrot.slane %v2014_v35, 2  ;;  %v8650_v36 = vadd.f32 %v2027_v50, %v2026_v30  ;;  %v679_v55 = vmul.f32 %v675_v19, %v8179_v38 }
 0x3fe   :  { %v6784_v14 = vpop.eup %6783  ;;  %v2009_v3 = vadd.f32 %v2008_v37, %v2007_v23  ;;  %v2022_v10 = vrot.slane %v2021_v53, 2  ;;  %v1982_v12 = vmul.f32 1.442695, %v6776_v54  ;;  %v680_v13 = vmul.f32 %v676_v62, %v8188_v42 }
 0x3ff   :  { %v8653_v17 = vpop.eup %6785  ;;  %v2003_v40 = vrot.slane %v2002_v34, 1  ;;  %v2016_v4 = vadd.f32 %v2015_v5, %v2014_v35  ;;  %v2029_v7 = vrot.slane %v8650_v36, 2  ;;  %v1984_v50 = vmul.f32 1.442695, %v6782_v43 }
 0x400   :  { %10000 = vst [vmem:[#allocation108_spill] sm:$0xff] %v8653_v17  ;;  %v8657_v21 = vpop.eup %6787  ;;  %v2010_v9 = vrot.slane %v2009_v3, 1  ;;  %v8659_v30 = vadd.f32 %v2022_v10, %v2021_v53  ;;  %v2033_v52 = vsel %vm534_vm0, %v8653_v17, 0.0  ;;  %6801 = vpow2.f32 %v1982_v12 }
 0x401   :  { %10001 = vst [vmem:[#allocation109_spill] sm:$0xff] %v8657_v21  ;;  %v8663_v38 = vpop.eup %6789  ;;  %v2004_v37 = vadd.f32 %v2003_v40, %v2002_v34  ;;  %v2017_v54 = vrot.slane %v2016_v4, 1  ;;  %v2034_v23 = vrot.slane %v2033_v52, 4  ;;  %v8667_v42 = vsel %vm534_vm0, %v8657_v21, 0.0 }
 0x402   :  { %10002 = vst [vmem:[#allocation110_spill] sm:$0xff] %v8663_v38  ;;  %v6792_v5 = vpop.eup %6791  ;;  %v2011_v31 = vadd.f32 %v2010_v9, %v2009_v3  ;;  %v2041_v35 = vrot.slane %v8667_v42, 4  ;;  %v1986_v53 = vmul.f32 1.442695, %v6784_v14  ;;  %v700_v40 = vcombine.low %v679_v55, %v680_v13 }
 0x403   :  { %v6794_v22 = vpop.eup %6793  ;;  %v8670_v19 = vadd.f32 %v2017_v54, %v2016_v4  ;;  %v2035_v62 = vadd.f32 %v2034_v23, %v2033_v52  ;;  %6803 = vrcp.f32 %v2004_v37  ;;  %v1988_v12 = vmul.f32 1.442695, %v6792_v5 }
 0x404   :  { %v6796_v10 = vpop.eup %6795  ;;  %6805 = vrcp.f32 %v2011_v31  ;;  %v1990_v34 = vmul.f32 1.442695, %v6794_v22  ;;  %v1356_v17 = vrot.slane %v8626_v33, 1  ;;  %v10003_v3 = vrot.slane %v8620_v24, 1 }
 0x405   :  { %v6798_v21 = vpop.eup %6797  ;;  %6807 = vpow2.f32 %v1984_v50  ;;  %v1992_v38 = vmul.f32 1.442695, %v6796_v10  ;;  %v1320_v14 = vmul.f32 %v8590_v11, %v8517_v27  ;;  %v707_v52 = vrot.slane %v700_v40, %v8170_v26 }
 0x406   :  { %v8676_v43 = vadd.f32 %v10003_v3, %v8620_v24  ;;  %v6800_v4 = vpop.eup %6799  ;;  %6809 = vpow2.f32 %v1986_v53  ;;  %v1994_v9 = vmul.f32 1.442695, %v6798_v21  ;;  %v1357_v55 = vadd.f32 %v1356_v17, %v8626_v33 }
 0x407   :  { %6811 = vpow2.f32 %v1988_v12  ;;  %v1996_v13 = vmul.f32 1.442695, %v6800_v4  ;;  %v1321_v37 = vmul.f32 %v8597_v60, %v8519_v41  ;;  %v1322_v54 = vmul.f32 %v8601_v44, %v8523_v2 }
 0x408   :  { %6813 = vpow2.f32 %v1990_v34  ;;  %v714_v24 = vrot.slane %v707_v52, %v8170_v26  ;;  %v8689_v27 = vsel %vm1487_vm2, %v1357_v55, %v8638_v61  ;;  %v1336_v11 = vmul.f32 %v1320_v14, %v8181_v39 }
 0x409   :  { %6815 = vpow2.f32 %v1992_v38  ;;  %v1337_v33 = vmul.f32 %v1321_v37, %v8181_v39  ;;  %v1338_v17 = vmul.f32 %v1322_v54, %v8181_v39  ;;  %v2024_v21 = vrot.slane %v8659_v30, 1 }
 0x40a   :  { %v8695_v41 = vpop.eup %6801  ;;  %6817 = vpow2.f32 %v1994_v9  ;;  %5463 = vmatmul.mubr.msk.f32.vlgmr.msra.gmra.mrb[2].mxu1 %vm534_vm0, %v714_v24  ;;  %v1400_v2 = vsel %vm534_vm0, %v1336_v11, 0.0  ;;  %v8700_v60 = vadd.f32 %v2029_v7, %v8650_v36  ;;  %v2036_v44 = vrot.slane %v2035_v62, 2 }
 0x40b   :  { %6819 = vpow2.f32 %v1996_v13  ;;  %v2054_v61 = vsel %vm534_vm0, %v8695_v41, 0.0  ;;  %6122 = vmatpush3.bf16.msra.mxu1 %v8224_v16  ;;  %v1401_v38 = vrot.slane %v1400_v2, 4  ;;  %v1407_v23 = vsel %vm534_vm0, %v1337_v33, 0.0 }
 0x40c   :  { %v2055_v5 = vrot.slane %v2054_v61, 4  ;;  %6124 = vmatprep.subr.bf16.mxu1 %v8385_v58  ;;  %6821 = vrcp.f32 %v8529_v0  ;;  %v1408_v31 = vrot.slane %v1407_v23, 4  ;;  %v1414_v50 = vsel %vm534_vm0, %v1338_v17, 0.0 }
 0x40d   :  { %v8709_v36 = vpop.eup %6803  ;;  %6823 = vrcp.f32 %v8544_v63  ;;  %v1402_v7 = vadd.f32 %v1401_v38, %v1400_v2  ;;  %v1415_v53 = vrot.slane %v1414_v50, 4  ;;  %v8713_v22 = vadd.f32 %v2024_v21, %v8659_v30 }
 0x40e   :  { %v8715_v16 = vpop.eup %6805  ;;  %v2056_v12 = vadd.f32 %v2055_v5, %v2054_v61  ;;  %6825 = vrcp.f32 %v8579_v8  ;;  %v8718_v10 = vadd.f32 %v1408_v31, %v1407_v23  ;;  %v2031_v0 = vrot.slane %v8700_v60, 1 }
 0x40f   :  { %v8721_v34 = vpop.eup %6807  ;;  %6126 = vmatpush3.bf16.msra.mxu1 %v8385_v58  ;;  %6827 = vrcp.f32 %v8583_v18  ;;  %v1403_v63 = vrot.slane %v1402_v7, 2  ;;  %v8725_v40 = vadd.f32 %v1415_v53, %v1414_v50  ;;  %v8727_v30 = vadd.f32 %v2036_v44, %v2035_v62 }
 0x410   :  { %v8729_v3 = vpop.eup %6809  ;;  %v2057_v14 = vrot.slane %v2056_v12, 2  ;;  %v2061_v8 = vsel %vm534_vm0, %v8721_v34, 0.0  ;;  %6128 = vmatprep.subr.bf16.mxu1 %v8387_v59  ;;  %6829 = vrcp.f32 %v8599_v45  ;;  %v1410_v4 = vrot.slane %v8718_v10, 2 }
 0x411   :  { %v8736_v58 = vpop.eup %6811  ;;  %v2062_v18 = vrot.slane %v2061_v8, 4  ;;  %v2068_v9 = vsel %vm534_vm0, %v8729_v3, 0.0  ;;  %6831 = vrcp.f32 %v8612_v20  ;;  %v8741_v62 = vadd.f32 %v1403_v63, %v1402_v7 }
 0x412   :  { %v8743_v52 = vpop.eup %6813  ;;  %v2058_v55 = vadd.f32 %v2057_v14, %v2056_v12  ;;  %v2069_v13 = vrot.slane %v2068_v9, 4  ;;  %v2075_v37 = vsel %vm534_vm0, %v8736_v58, 0.0  ;;  %6833 = vrcp.f32 %v8565_v48 }
 0x413   :  { %v8748_v45 = vpop.eup %6815  ;;  %v2063_v54 = vadd.f32 %v2062_v18, %v2061_v8  ;;  %v2076_v24 = vrot.slane %v2075_v37, 4  ;;  %v2082_v11 = vsel %vm534_vm0, %v8743_v52, 0.0  ;;  %6130 = vmatpush3.bf16.msra.mxu1 %v8387_v59  ;;  %6835 = vrcp.f32 %v8595_v57 }
 0x414   :  { %v8754_v20 = vpop.eup %6817  ;;  %v2059_v33 = vrot.slane %v2058_v55, 1  ;;  %v2070_v17 = vadd.f32 %v2069_v13, %v2068_v9  ;;  %v2083_v21 = vrot.slane %v2082_v11, 4  ;;  %v2089_v2 = vsel %vm534_vm0, %v8748_v45, 0.0  ;;  %6132 = vmatprep.subr.bf16.mxu1 %v8394_v1 }
 0x415   :  { %v8759_v48 = vpop.eup %6819  ;;  %v2064_v44 = vrot.slane %v2063_v54, 2  ;;  %v2077_v61 = vadd.f32 %v2076_v24, %v2075_v37  ;;  %v2090_v38 = vrot.slane %v2089_v2, 4  ;;  %v2096_v59 = vsel %vm534_vm0, %v8754_v20, 0.0 }
 0x416   :  { %v6822_v23 = vpop.eup %6821  ;;  %v2060_v57 = vadd.f32 %v2059_v33, %v2058_v55  ;;  %v2071_v5 = vrot.slane %v2070_v17, 2  ;;  %v2084_v31 = vadd.f32 %v2083_v21, %v2082_v11  ;;  %v2097_v50 = vrot.slane %v2096_v59, 4 }
 0x417   :  { %v6824_v7 = vpop.eup %6823  ;;  %v2065_v53 = vadd.f32 %v2064_v44, %v2063_v54  ;;  %v2078_v12 = vrot.slane %v2077_v61, 2  ;;  %v8763_v63 = vadd.f32 %v2090_v38, %v2089_v2  ;;  %v8767_v14 = vsel %vm534_vm0, %v8759_v48, 0.0  ;;  %6134 = vmatpush3.bf16.msra.mxu1 %v8394_v1 }
 0x418   :  { %v6826_v8 = vpop.eup %6825  ;;  %v2072_v18 = vadd.f32 %v2071_v5, %v2070_v17  ;;  %v2085_v9 = vrot.slane %v2084_v31, 2  ;;  %v8770_v13 = vadd.f32 %v2097_v50, %v2096_v59  ;;  %6152 = vmatprep.subr.bf16.mxu1 %v8477_v46  ;;  %6837 = vrcp.f32 %v2060_v57 }
 0x419   :  { %v6828_v37 = vpop.eup %6827  ;;  %v2066_v54 = vrot.slane %v2065_v53, 1  ;;  %v2079_v24 = vadd.f32 %v2078_v12, %v2077_v61  ;;  %v1314_v1 = vmul.f32 %v6822_v23, %v8481_v15  ;;  %v1315_v17 = vmul.f32 %v6824_v7, %v8487_v28 }
 0x41a   :  { %v6830_v33 = vpop.eup %6829  ;;  %v2073_v21 = vrot.slane %v2072_v18, 1  ;;  %v8775_v2 = vadd.f32 %v2085_v9, %v2084_v31  ;;  %v1316_v5 = vmul.f32 %v6826_v8, %v8493_v29  ;;  %v1317_v50 = vmul.f32 %v6828_v37, %v8497_v47 }
 0x41b   :  { %v6832_v44 = vpop.eup %6831  ;;  %v2067_v38 = vadd.f32 %v2066_v54, %v2065_v53  ;;  %v2080_v59 = vrot.slane %v2079_v24, 1  ;;  %v1318_v12 = vmul.f32 %v6830_v33, %v8501_v56  ;;  %v1330_v31 = vmul.f32 %v1314_v1, %v8173_v32 }
 0x41c   :  { %v6834_v55 = vpop.eup %6833  ;;  %v2074_v61 = vadd.f32 %v2073_v21, %v2072_v18  ;;  %v1319_v57 = vmul.f32 %v6832_v44, %v8505_v25  ;;  %v1331_v15 = vmul.f32 %v1315_v17, %v8173_v32  ;;  %v1332_v28 = vmul.f32 %v1316_v5, %v8173_v32 }
 0x41d   :  { %v6836_v9 = vpop.eup %6835  ;;  %v8784_v11 = vadd.f32 %v2080_v59, %v2079_v24  ;;  %6839 = vrcp.f32 %v2067_v38  ;;  %v1333_v29 = vmul.f32 %v1317_v50, %v8173_v32  ;;  %v1334_v47 = vmul.f32 %v1318_v12, %v8173_v32 }
 0x41e   :  { %6841 = vrcp.f32 %v2074_v61  ;;  %v1335_v23 = vmul.f32 %v1319_v57, %v8173_v32  ;;  %v1358_v56 = vsel %vm534_vm0, %v1330_v31, 0.0  ;;  %v1365_v25 = vsel %vm534_vm0, %v1331_v15, 0.0  ;;  %v10004_v31 = vld [vmem:[#allocation99_spill] sm:$0xff] }
 0x41f   :  { %v1372_v7 = vsel %vm534_vm0, %v1332_v28, 0.0  ;;  %6843 = vrcp.f32 %v8606_v51  ;;  %v1359_v53 = vrot.slane %v1358_v56, 4  ;;  %v1366_v8 = vrot.slane %v1365_v25, 4 }
 0x420   :  { %v1373_v18 = vrot.slane %v1372_v7, 4  ;;  %v1379_v37 = vsel %vm534_vm0, %v1333_v29, 0.0  ;;  %v1386_v24 = vsel %vm534_vm0, %v1334_v47, 0.0  ;;  %v1393_v33 = vsel %vm534_vm0, %v1335_v23, 0.0 }
 0x421   :  { %v1380_v54 = vrot.slane %v1379_v37, 4  ;;  %6845 = vrcp.f32 %v8618_v49  ;;  %v1360_v32 = vadd.f32 %v1359_v53, %v1358_v56  ;;  %v1367_v21 = vadd.f32 %v1366_v8, %v1365_v25 }
 0x422   :  { %v1374_v1 = vadd.f32 %v1373_v18, %v1372_v7  ;;  %v1387_v17 = vrot.slane %v1386_v24, 4  ;;  %v8799_v44 = vpop.eup %6837  ;;  %v1394_v38 = vrot.slane %v1393_v33, 4  ;;  %6847 = vrcp.f32 %v8676_v43 }
 0x423   :  { %v1381_v51 = vadd.f32 %v1380_v54, %v1379_v37  ;;  %v1323_v59 = vmul.f32 %v6834_v55, %v8527_v6  ;;  %v1361_v5 = vrot.slane %v1360_v32, 2  ;;  %v1368_v50 = vrot.slane %v1367_v21, 2 }
 0x424   :  { %v1375_v61 = vrot.slane %v1374_v1, 2  ;;  %v1388_v12 = vadd.f32 %v1387_v17, %v1386_v24  ;;  %v1395_v57 = vadd.f32 %v1394_v38, %v1393_v33  ;;  %v1324_v15 = vmul.f32 %v6836_v9, %v10004_v31 }
 0x425   :  { %v1382_v49 = vrot.slane %v1381_v51, 2  ;;  %v1339_v28 = vmul.f32 %v1323_v59, %v8181_v39  ;;  %v1362_v29 = vadd.f32 %v1361_v5, %v1360_v32  ;;  %v1369_v47 = vadd.f32 %v1368_v50, %v1367_v21 }
 0x426   :  { %v1376_v23 = vadd.f32 %v1375_v61, %v1374_v1  ;;  %v1389_v56 = vrot.slane %v1388_v12, 2  ;;  %v1396_v55 = vrot.slane %v1395_v57, 2  ;;  %v1340_v25 = vmul.f32 %v1324_v15, %v8181_v39  ;;  %v10005_v61 = vld [vmem:[#allocation100_spill] sm:$0xff]  ;;  %v10006_v15 = vld [vmem:[#allocation101_spill] sm:$0xff] }
 0x427   :  { %v8805_v43 = vpop.eup %6839  ;;  %v1383_v6 = vadd.f32 %v1382_v49, %v1381_v51  ;;  %v1405_v7 = vrot.slane %v8741_v62, 1  ;;  %v1363_v8 = vrot.slane %v1362_v29, 1  ;;  %v1370_v18 = vrot.slane %v1369_v47, 1 }
 0x428   :  { %v8809_v53 = vpop.eup %6841  ;;  %v1377_v9 = vrot.slane %v1376_v23, 1  ;;  %v1390_v37 = vadd.f32 %v1389_v56, %v1388_v12  ;;  %v1397_v33 = vadd.f32 %v1396_v55, %v1395_v57  ;;  %v1411_v21 = vadd.f32 %v1410_v4, %v8718_v10 }
 0x429   :  { %v6844_v54 = vpop.eup %6843  ;;  %v1384_v24 = vrot.slane %v1383_v6, 1  ;;  %v1406_v32 = vadd.f32 %v1405_v7, %v8741_v62  ;;  %v1364_v1 = vadd.f32 %v1363_v8, %v1362_v29  ;;  %v1371_v17 = vadd.f32 %v1370_v18, %v1369_v47 }
 0x42a   :  { %v1378_v51 = vadd.f32 %v1377_v9, %v1376_v23  ;;  %v1391_v38 = vrot.slane %v1390_v37, 1  ;;  %v1398_v50 = vrot.slane %v1397_v33, 1  ;;  %v1325_v49 = vmul.f32 %v6844_v54, %v10005_v61 }
 0x42b   :  { %v6846_v59 = vpop.eup %6845  ;;  %v1385_v5 = vadd.f32 %v1384_v24, %v1383_v6  ;;  %v1412_v31 = vrot.slane %v1411_v21, 1  ;;  %v1490_v57 = vsel %vm1489_vm3, %v1364_v1, %v8689_v27  ;;  %v1417_v56 = vrot.slane %v8725_v40, 2  ;;  %v10007_v6 = vld [vmem:[#allocation102_spill] sm:$0xff] }
 0x42c   :  { %v1392_v12 = vadd.f32 %v1391_v38, %v1390_v37  ;;  %v1326_v62 = vmul.f32 %v6846_v59, %v10006_v15  ;;  %v6848_v55 = vpop.eup %6847  ;;  %v1399_v10 = vadd.f32 %v1398_v50, %v1397_v33  ;;  %v1492_v4 = vsel %vm1491_vm4, %v1371_v17, %v1490_v57 }
 0x42d   :  { %v1341_v29 = vmul.f32 %v1325_v49, %v8181_v39  ;;  %v1413_v47 = vadd.f32 %v1412_v31, %v1411_v21  ;;  %v1494_v23 = vsel %vm1493_vm5, %v1378_v51, %v1492_v4  ;;  %v1327_v7 = vmul.f32 %v6848_v55, %v10007_v6 }
 0x42e   :  { %v1342_v8 = vmul.f32 %v1326_v62, %v8181_v39  ;;  %v1418_v18 = vadd.f32 %v1417_v56, %v8725_v40  ;;  %v1496_v27 = vsel %vm1495_vm6, %v1385_v5, %v1494_v23  ;;  %v1421_v9 = vsel %vm534_vm0, %v1339_v28, 0.0 }
 0x42f   :  { %v1428_v37 = vsel %vm534_vm0, %v1340_v25, 0.0  ;;  %v1435_v54 = vsel %vm534_vm0, %v1341_v29, 0.0  ;;  %v1498_v24 = vsel %vm1497_vm7, %v1392_v12, %v1496_v27  ;;  %v1343_v33 = vmul.f32 %v1327_v7, %v8181_v39 }
 0x430   :  { %v1419_v21 = vrot.slane %v1418_v18, 1  ;;  %v1422_v1 = vrot.slane %v1421_v9, 4  ;;  %v1500_v17 = vsel %vm1499_vm8, %v1399_v10, %v1498_v24  ;;  %v1429_v51 = vrot.slane %v1428_v37, 4 }
 0x431   :  { %v1436_v38 = vrot.slane %v1435_v54, 4  ;;  %v1442_v40 = vsel %vm534_vm0, %v1342_v8, 0.0  ;;  %5481 = vmatprep.mubr.msk.f32.mxu1 %vm534_vm0, %v1500_v17  ;;  %v1449_v25 = vsel %vm534_vm0, %v1343_v33, 0.0  ;;  %v1501_v39 = vsel %vm1487_vm2, %v1413_v47, %v1406_v32  ;;  %v10008_v32 = vld [vmem:[#allocation110_spill] sm:$0xff] }
 0x432   :  { %v1420_v59 = vadd.f32 %v1419_v21, %v1418_v18  ;;  %v1423_v28 = vadd.f32 %v1422_v1, %v1421_v9  ;;  %v1443_v5 = vrot.slane %v1442_v40, 4  ;;  %v1430_v50 = vadd.f32 %v1429_v51, %v1428_v37 }
 0x433   :  { %v1437_v61 = vadd.f32 %v1436_v38, %v1435_v54  ;;  %v1450_v49 = vrot.slane %v1449_v25, 4  ;;  %v2032_v15 = vadd.f32 %v2031_v0, %v8700_v60  ;;  %v2038_v10 = vrot.slane %v8727_v30, 1 }
 0x434   :  { %v1424_v31 = vrot.slane %v1423_v28, 2  ;;  %v1444_v12 = vadd.f32 %v1443_v5, %v1442_v40  ;;  %v1502_v57 = vsel %vm1489_vm3, %v1420_v59, %v1501_v39  ;;  %v1431_v62 = vrot.slane %v1430_v50, 2 }
 0x435   :  { %v1438_v56 = vrot.slane %v1437_v61, 2  ;;  %v1451_v55 = vadd.f32 %v1450_v49, %v1449_v25  ;;  %v2042_v23 = vadd.f32 %v2041_v35, %v8667_v42  ;;  %v2047_v47 = vsel %vm534_vm0, %v10008_v32, 0.0  ;;  %v10009_v25 = vld [vmem:[#allocation103_spill] sm:$0xff] }
 0x436   :  { %v1425_v4 = vadd.f32 %v1424_v31, %v1423_v28  ;;  %v1445_v29 = vrot.slane %v1444_v12, 2  ;;  %v1432_v6 = vadd.f32 %v1431_v62, %v1430_v50  ;;  %v2039_v18 = vadd.f32 %v2038_v10, %v8727_v30 }
 0x437   :  { %v1439_v7 = vadd.f32 %v1438_v56, %v1437_v61  ;;  %v1452_v8 = vrot.slane %v1451_v55, 2  ;;  %v2043_v27 = vrot.slane %v2042_v23, 2  ;;  %v2048_v9 = vrot.slane %v2047_v47, 4 }
 0x438   :  { %v1426_v60 = vrot.slane %v1425_v4, 1  ;;  %v1446_v0 = vadd.f32 %v1445_v29, %v1444_v12  ;;  %v1433_v37 = vrot.slane %v1432_v6, 1  ;;  %6849 = vrcp.f32 %v8670_v19  ;;  %v10011_v12 = vld [vmem:[#allocation94_spill] sm:$0xff] }
 0x439   :  { %v1440_v54 = vrot.slane %v1439_v7, 1  ;;  %v1453_v24 = vadd.f32 %v1452_v8, %v1451_v55  ;;  %v2044_v42 = vadd.f32 %v2043_v27, %v2042_v23  ;;  %v2049_v35 = vadd.f32 %v2048_v9, %v2047_v47 }
 0x43a   :  { %v1427_v33 = vadd.f32 %v1426_v60, %v1425_v4  ;;  %v1447_v21 = vrot.slane %v1446_v0, 1  ;;  %v1434_v1 = vadd.f32 %v1433_v37, %v1432_v6  ;;  %6851 = vrcp.f32 %v8713_v22  ;;  %v10010_v22 = vld [vmem:[#allocation104_spill] sm:$0xff] }
 0x43b   :  { %v1441_v17 = vadd.f32 %v1440_v54, %v1439_v7  ;;  %v1454_v51 = vrot.slane %v1453_v24, 1  ;;  %v2045_v40 = vrot.slane %v2044_v42, 1  ;;  %v2050_v59 = vrot.slane %v2049_v35, 2 }
 0x43c   :  { %v1448_v38 = vadd.f32 %v1447_v21, %v1446_v0  ;;  %v1503_v30 = vsel %vm1491_vm4, %v1427_v33, %v1502_v57  ;;  %6853 = vrcp.f32 %v2032_v15  ;;  %v2126_v19 = vmul.f32 %v8709_v36, %v10009_v25  ;;  %v10016_v21 = vld [vmem:[#allocation106_spill] sm:$0xff]  ;;  %v10019_v25 = vld [vmem:[#allocation108_spill] sm:$0xff] }
 0x43d   :  { %v1455_v28 = vadd.f32 %v1454_v51, %v1453_v24  ;;  %v1504_v5 = vsel %vm1493_vm5, %v1434_v1, %v1503_v30  ;;  %v2046_v61 = vadd.f32 %v2045_v40, %v2044_v42  ;;  %v2051_v49 = vadd.f32 %v2050_v59, %v2049_v35  ;;  %v10018_v30 = vld [vmem:[#allocation107_spill] sm:$0xff] }
 0x43e   :  { %v1505_v50 = vsel %vm1495_vm6, %v1441_v17, %v1504_v5  ;;  %6855 = vrcp.f32 %v2039_v18  ;;  %v2127_v31 = vmul.f32 %v8715_v16, %v10010_v22  ;;  %v2142_v57 = vmul.f32 %v2126_v19, %v10011_v12  ;;  %v10014_v18 = vld [vmem:[#allocation96_spill] sm:$0xff] }
 0x43f   :  { %v1506_v39 = vsel %vm1497_vm7, %v1448_v38, %v1505_v50  ;;  %v2087_v62 = vrot.slane %v8775_v2, 1  ;;  %v2052_v15 = vrot.slane %v2051_v49, 1  ;;  %6857 = vrcp.f32 %v2046_v61 }
 0x440   :  { %v1507_v56 = vsel %vm1499_vm8, %v1455_v28, %v1506_v39  ;;  %v10012_v36 = vrot.slane %v8763_v63, 2  ;;  %v2143_v10 = vmul.f32 %v2127_v31, %v10011_v12  ;;  %v2158_v4 = vsel %vm534_vm0, %v2142_v57, 0.0  ;;  %v10020_v31 = vld [vmem:[#allocation98_spill] sm:$0xff]  ;;  %v10021_v57 = vld [vmem:[#allocation109_spill] sm:$0xff] }
 0x441   :  { %5482 = vmatmul.mubr.msk.f32.vlgmr.msra.gmra.mrb[4].mxu1 %vm534_vm0, %v1507_v56  ;;  %v2088_v16 = vadd.f32 %v2087_v62, %v8775_v2  ;;  %v2099_v29 = vrot.slane %v8770_v13, 2  ;;  %v2053_v23 = vadd.f32 %v2052_v15, %v2051_v49  ;;  %v2159_v47 = vrot.slane %v2158_v4, 4 }
 0x442   :  { %v2093_v55 = vadd.f32 %v10012_v36, %v8763_v63  ;;  %6154 = vmatpush3.bf16.msra.mxu1 %v8477_v46  ;;  %v10013_v7 = vrot.slane %v8767_v14, 4  ;;  %v6850_v63 = vpop.eup %6849  ;;  %v2165_v60 = vsel %vm534_vm0, %v2143_v10, 0.0  ;;  %6859 = vrcp.f32 %v8784_v11  ;;  %v10015_v46 = vld [vmem:[#allocation105_spill] sm:$0xff] }
 0x443   :  { %6156 = vmatprep.subr.bf16.mxu1 %v10014_v18  ;;  %v2100_v0 = vadd.f32 %v2099_v29, %v8770_v13  ;;  %v8879_v2 = vmul.f32 %v8799_v44, %v8695_v41  ;;  %6861 = vrcp.f32 %v2053_v23  ;;  %v2128_v27 = vmul.f32 %v6850_v63, %v10015_v46  ;;  %v10017_v44 = vld [vmem:[#allocation97_spill] sm:$0xff] }
 0x444   :  { %v2094_v6 = vrot.slane %v2093_v55, 1  ;;  %v2105_v8 = vadd.f32 %v10013_v7, %v8767_v14  ;;  %v2160_v9 = vadd.f32 %v2159_v47, %v2158_v4  ;;  %v2166_v37 = vrot.slane %v2165_v60, 4  ;;  %v6852_v54 = vpop.eup %6851 }
 0x445   :  { %v2101_v24 = vrot.slane %v2100_v0, 1  ;;  %6863 = vrcp.f32 %v2088_v16  ;;  %v2129_v13 = vmul.f32 %v6852_v54, %v10016_v21  ;;  %v2144_v11 = vmul.f32 %v2128_v27, %v10011_v12 }
 0x446   :  { %v2095_v14 = vadd.f32 %v2094_v6, %v2093_v55  ;;  %v2106_v33 = vrot.slane %v2105_v8, 2  ;;  %6158 = vmatpush3.bf16.msra.mxu1 %v10014_v18  ;;  %v2161_v42 = vrot.slane %v2160_v9, 2  ;;  %v2167_v35 = vadd.f32 %v2166_v37, %v2165_v60  ;;  %v6854_v41 = vpop.eup %6853 }
 0x447   :  { %6160 = vmatprep.subr.bf16.mxu1 %v10017_v44  ;;  %v2102_v1 = vadd.f32 %v2101_v24, %v2100_v0  ;;  %v8888_v51 = vmul.f32 %v8805_v43, %v8721_v34  ;;  %v2130_v40 = vmul.f32 %v6854_v41, %v10018_v30  ;;  %v2145_v59 = vmul.f32 %v2129_v13, %v10011_v12 }
 0x448   :  { %v2107_v17 = vadd.f32 %v2106_v33, %v2105_v8  ;;  %6865 = vrcp.f32 %v2095_v14  ;;  %v6856_v38 = vpop.eup %6855  ;;  %v2162_v28 = vadd.f32 %v2161_v42, %v2160_v9  ;;  %v2168_v5 = vrot.slane %v2167_v35, 2 }
 0x449   :  { %v2131_v19 = vmul.f32 %v6856_v38, %v10019_v25  ;;  %v2172_v50 = vsel %vm534_vm0, %v2144_v11, 0.0  ;;  %6867 = vrcp.f32 %v2102_v1  ;;  %v6858_v49 = vpop.eup %6857  ;;  %v2146_v39 = vmul.f32 %v2130_v40, %v10011_v12 }
 0x44a   :  { %v2108_v61 = vrot.slane %v2107_v17, 1  ;;  %6162 = vmatpush3.bf16.msra.mxu1 %v10017_v44  ;;  %v2163_v34 = vrot.slane %v2162_v28, 1  ;;  %v2169_v43 = vadd.f32 %v2168_v5, %v2167_v35  ;;  %v2173_v22 = vrot.slane %v2172_v50, 4 }
 0x44b   :  { %6164 = vmatprep.subr.bf16.mxu1 %v10020_v31  ;;  %v2132_v62 = vmul.f32 %v6858_v49, %v10021_v57  ;;  %v2147_v56 = vmul.f32 %v2131_v19, %v10011_v12  ;;  %v2179_v15 = vsel %vm534_vm0, %v2145_v59, 0.0  ;;  %v2186_v47 = vsel %vm534_vm0, %v2146_v39, 0.0  ;;  %v10022_v19 = vld [vmem:[#allocation95_spill] sm:$0xff] }
 0x44c   :  { %v2109_v36 = vadd.f32 %v2108_v61, %v2107_v17  ;;  %v2164_v55 = vadd.f32 %v2163_v34, %v2162_v28  ;;  %v2170_v10 = vrot.slane %v2169_v43, 1  ;;  %v2174_v4 = vadd.f32 %v2173_v22, %v2172_v50  ;;  %v6860_v29 = vpop.eup %6859 }
 0x44d   :  { %v2180_v16 = vrot.slane %v2179_v15, 4  ;;  %v2148_v23 = vmul.f32 %v2132_v62, %v10011_v12  ;;  %v2193_v6 = vsel %vm534_vm0, %v2147_v56, 0.0  ;;  %v6862_v7 = vpop.eup %6861  ;;  %v2187_v60 = vrot.slane %v2186_v47, 4 }
 0x44e   :  { %6869 = vrcp.f32 %v2109_v36  ;;  %v2171_v8 = vadd.f32 %v2170_v10, %v2169_v43  ;;  %v2175_v63 = vrot.slane %v2174_v4, 2  ;;  %6166 = vmatpush3.bf16.msra.mxu1 %v10020_v31  ;;  %v2133_v46 = vmul.f32 %v6862_v7, %v10008_v32 }
 0x44f   :  { %v2181_v18 = vadd.f32 %v2180_v16, %v2179_v15  ;;  %v6864_v0 = vpop.eup %6863  ;;  %v2194_v27 = vrot.slane %v2193_v6, 4  ;;  %v2200_v9 = vsel %vm534_vm0, %v2148_v23, 0.0  ;;  %v2136_v37 = vmul.f32 %v8809_v53, %v8729_v3 }
 0x450   :  { %v2176_v54 = vadd.f32 %v2175_v63, %v2174_v4  ;;  %v2188_v24 = vadd.f32 %v2187_v60, %v2186_v47  ;;  %v2201_v33 = vrot.slane %v2200_v9, 4  ;;  %v2149_v13 = vmul.f32 %v2133_v46, %v10011_v12 }
 0x451   :  { %v2182_v14 = vrot.slane %v2181_v18, 2  ;;  %v2195_v11 = vadd.f32 %v2194_v27, %v2193_v6  ;;  %v2301_v42 = vsel %vm1487_vm2, %v2171_v8, %v2164_v55  ;;  %v2137_v35 = vmul.f32 %v6860_v29, %v8736_v58 }
 0x452   :  { %v6866_v21 = vpop.eup %6865  ;;  %v2177_v41 = vrot.slane %v2176_v54, 1  ;;  %v2189_v44 = vrot.slane %v2188_v24, 2  ;;  %v2202_v1 = vadd.f32 %v2201_v33, %v2200_v9  ;;  %v2207_v3 = vsel %vm534_vm0, %v2149_v13, 0.0 }
 0x453   :  { %v2183_v32 = vadd.f32 %v2182_v14, %v2181_v18  ;;  %v6868_v17 = vpop.eup %6867  ;;  %v2196_v38 = vrot.slane %v2195_v11, 2  ;;  %v2138_v53 = vmul.f32 %v6864_v0, %v8743_v52  ;;  %v2139_v30 = vmul.f32 %v6866_v21, %v8748_v45 }
 0x454   :  { %v2178_v40 = vadd.f32 %v2177_v41, %v2176_v54  ;;  %v2190_v12 = vadd.f32 %v2189_v44, %v2188_v24  ;;  %v2203_v28 = vrot.slane %v2202_v1, 2  ;;  %v2208_v25 = vrot.slane %v2207_v3, 4 }
 0x455   :  { %v2184_v59 = vrot.slane %v2183_v32, 1  ;;  %v2197_v5 = vadd.f32 %v2196_v38, %v2195_v11  ;;  %v2140_v58 = vmul.f32 %v6868_v17, %v8754_v20  ;;  %v2150_v50 = vmul.f32 %v8879_v2, %v10022_v19 }
 0x456   :  { %v2191_v49 = vrot.slane %v2190_v12, 1  ;;  %v2204_v39 = vadd.f32 %v2203_v28, %v2202_v1  ;;  %v2302_v34 = vsel %vm1489_vm3, %v2178_v40, %v2301_v42  ;;  %v2209_v22 = vadd.f32 %v2208_v25, %v2207_v3 }
 0x457   :  { %v2185_v61 = vadd.f32 %v2184_v59, %v2183_v32  ;;  %v2198_v52 = vrot.slane %v2197_v5, 1  ;;  %v2151_v45 = vmul.f32 %v8888_v51, %v10022_v19  ;;  %v2152_v31 = vmul.f32 %v2136_v37, %v10022_v19 }
 0x458   :  { %v6870_v43 = vpop.eup %6869  ;;  %v2192_v57 = vadd.f32 %v2191_v49, %v2190_v12  ;;  %v2205_v62 = vrot.slane %v2204_v39, 1  ;;  %v2210_v15 = vrot.slane %v2209_v22, 2  ;;  %v2153_v36 = vmul.f32 %v2137_v35, %v10022_v19 }
 0x459   :  { %v2303_v20 = vsel %vm1491_vm4, %v2185_v61, %v2302_v34  ;;  %v2141_v56 = vmul.f32 %v6870_v43, %v8759_v48  ;;  %v2199_v2 = vadd.f32 %v2198_v52, %v2197_v5  ;;  %v2154_v55 = vmul.f32 %v2138_v53, %v10022_v19 }
 0x45a   :  { %v2206_v10 = vadd.f32 %v2205_v62, %v2204_v39  ;;  %v2304_v4 = vsel %vm1493_vm5, %v2192_v57, %v2303_v20  ;;  %v2155_v16 = vmul.f32 %v2139_v30, %v10022_v19  ;;  %v2156_v51 = vmul.f32 %v2140_v58, %v10022_v19 }
 0x45b   :  { %v2211_v29 = vadd.f32 %v2210_v15, %v2209_v22  ;;  %v2305_v23 = vsel %vm1495_vm6, %v2199_v2, %v2304_v4  ;;  %v2157_v47 = vmul.f32 %v2141_v56, %v10022_v19  ;;  %v2214_v48 = vsel %vm534_vm0, %v2150_v50, 0.0 }
 0x45c   :  { %v2306_v6 = vsel %vm1497_vm7, %v2206_v10, %v2305_v23  ;;  %v2215_v7 = vrot.slane %v2214_v48, 4  ;;  %v2221_v8 = vsel %vm534_vm0, %v2151_v45, 0.0  ;;  %v2228_v63 = vsel %vm534_vm0, %v2152_v31, 0.0 }
 0x45d   :  { %v2212_v18 = vrot.slane %v2211_v29, 1  ;;  %v2222_v60 = vrot.slane %v2221_v8, 4  ;;  %v2229_v0 = vrot.slane %v2228_v63, 4  ;;  %v2235_v46 = vsel %vm534_vm0, %v2153_v36, 0.0 }
 0x45e   :  { %v2216_v27 = vadd.f32 %v2215_v7, %v2214_v48  ;;  %v2236_v9 = vrot.slane %v2235_v46, 4  ;;  %v2242_v37 = vsel %vm534_vm0, %v2154_v55, 0.0  ;;  %v2249_v54 = vsel %vm534_vm0, %v2155_v16, 0.0 }
 0x45f   :  { %v2213_v14 = vadd.f32 %v2212_v18, %v2211_v29  ;;  %v2223_v24 = vadd.f32 %v2222_v60, %v2221_v8  ;;  %v2230_v33 = vadd.f32 %v2229_v0, %v2228_v63  ;;  %v2243_v21 = vrot.slane %v2242_v37, 4  ;;  %v5097_v0 = vld [vmem:[#allocation37] ss:$0 sm:$0xff] }
 0x460   :  { %v2217_v13 = vrot.slane %v2216_v27, 2  ;;  %v2237_v11 = vadd.f32 %v2236_v9, %v2235_v46  ;;  %v2250_v42 = vrot.slane %v2249_v54, 4  ;;  %v2256_v35 = vsel %vm534_vm0, %v2156_v51, 0.0  ;;  %v5103_v46 = vld [vmem:[#allocation10] ss:$0 sm:$0xff] }
 0x461   :  { %v2307_v41 = vsel %vm1499_vm8, %v2213_v14, %v2306_v6  ;;  %v2224_v32 = vrot.slane %v2223_v24, 2  ;;  %v2231_v44 = vrot.slane %v2230_v33, 2  ;;  %v2244_v1 = vadd.f32 %v2243_v21, %v2242_v37  ;;  %v7002_v21 = vld [vmem:[#allocation5] sm:$0xff] }
 0x462   :  { %5500 = vmatprep.mubr.msk.f32.mxu1 %vm534_vm0, %v2307_v41  ;;  %v2218_v17 = vadd.f32 %v2217_v13, %v2216_v27  ;;  %v2238_v38 = vrot.slane %v2237_v11, 2  ;;  %v2251_v3 = vadd.f32 %v2250_v42, %v2249_v54  ;;  %v2257_v53 = vrot.slane %v2256_v35, 4  ;;  %v7003_v42 = vld [vmem:[#allocation2] sm:$0x3] }
 0x463   :  { %v2225_v30 = vadd.f32 %v2224_v32, %v2223_v24  ;;  %v2232_v40 = vadd.f32 %v2231_v44, %v2230_v33  ;;  %v2245_v59 = vrot.slane %v2244_v1, 2  ;;  %v2263_v12 = vsel %vm534_vm0, %v2157_v47, 0.0  ;;  %v7001_v24 = vld [vmem:[#allocation5 + $0x8] sm:$0xff]  ;;  %v5110_v44 = vld [vmem:[%s10024_s1] ss:$0 sm:$0xff] }
 0x464   :  { %v2219_v28 = vrot.slane %v2218_v17, 1  ;;  %v2239_v5 = vadd.f32 %v2238_v38, %v2237_v11  ;;  %v2252_v25 = vrot.slane %v2251_v3, 2  ;;  %v2258_v58 = vadd.f32 %v2257_v53, %v2256_v35  ;;  %v7004_v53 = vld [vmem:[#allocation7] sm:$0xff] }
 0x465   :  { %v2226_v19 = vrot.slane %v2225_v30, 1  ;;  %v2233_v50 = vrot.slane %v2232_v40, 1  ;;  %v2246_v61 = vadd.f32 %v2245_v59, %v2244_v1  ;;  %v2264_v49 = vrot.slane %v2263_v12, 4  ;;  %v7005_v59 = vld [vmem:[#allocation7 + $0x8] sm:$0xff] }
 0x466   :  { %v2220_v39 = vadd.f32 %v2219_v28, %v2218_v17  ;;  %v2240_v34 = vrot.slane %v2239_v5, 1  ;;  %v2253_v43 = vadd.f32 %v2252_v25, %v2251_v3  ;;  %v2259_v52 = vrot.slane %v2258_v58, 2 }
 0x467   :  { %v2227_v22 = vadd.f32 %v2226_v19, %v2225_v30  ;;  %v2234_v45 = vadd.f32 %v2233_v50, %v2232_v40  ;;  %v2247_v31 = vrot.slane %v2246_v61, 1  ;;  %v2265_v57 = vadd.f32 %v2264_v49, %v2263_v12 }
 0x468   :  { %v2254_v62 = vrot.slane %v2253_v43, 1  ;;  %v2260_v20 = vadd.f32 %v2259_v52, %v2258_v58  ;;  %v2241_v56 = vadd.f32 %v2240_v34, %v2239_v5  ;;  %v10023_v63 = vmov 0.0   ;;  %v2441_v52 = vld [vmem:[%s10025_s7 + $0x8] sm:$0xff] }
 0x469   :  { %v2266_v2 = vrot.slane %v2265_v57, 2  ;;  %v2308_v15 = vsel %vm1487_vm2, %v2227_v22, %v2220_v39  ;;  %v2248_v36 = vadd.f32 %v2247_v31, %v2246_v61  ;;  %v2443_v22 = vld [vmem:[%s10025_s7 + $0x18] sm:$0xff] }
 0x46a   :  { %v2261_v55 = vrot.slane %v2260_v20, 1  ;;  %v2309_v10 = vsel %vm1489_vm3, %v2234_v45, %v2308_v15  ;;  %v2255_v4 = vadd.f32 %v2254_v62, %v2253_v43  ;;  %v2440_v45 = vld [vmem:[%s10025_s7] sm:$0xff]  ;;  %v6167_v31 = vpack.c.bf16 %v2443_v22, %v2441_v52  ;;  %v2445_v62 = vld [vmem:[%s10025_s7 + $0x28] sm:$0xff] }
 0x46b   :  { %v2267_v16 = vadd.f32 %v2266_v2, %v2265_v57  ;;  %v2310_v51 = vsel %vm1491_vm4, %v2241_v56, %v2309_v10  ;;  %v2442_v57 = vld [vmem:[%s10025_s7 + $0x10] sm:$0xff]  ;;  %v2444_v15 = vld [vmem:[%s10025_s7 + $0x20] sm:$0xff]  ;;  %v2451_v10 = vld [vmem:[%s10025_s7 + $0x58] sm:$0xff] }
 0x46c   :  { %v2262_v29 = vadd.f32 %v2261_v55, %v2260_v20  ;;  %v2311_v23 = vsel %vm1493_vm5, %v2248_v36, %v2310_v51  ;;  %v2447_v20 = vld [vmem:[%s10025_s7 + $0x38] sm:$0xff]  ;;  %v6169_v56 = vpack.c.bf16 %v2442_v57, %v2440_v45  ;;  %v2446_v36 = vld [vmem:[%s10025_s7 + $0x30] sm:$0xff]  ;;  %v2449_v55 = vld [vmem:[%s10025_s7 + $0x48] sm:$0xff]  ;;  %6168 = vmatprep.subr.bf16.mxu0 %v6167_v31 }
 0x46d   :  { %v2268_v47 = vrot.slane %v2267_v16, 1  ;;  %v2312_v48 = vsel %vm1495_vm6, %v2255_v4, %v2311_v23  ;;  %v6171_v2 = vpack.c.bf16 %v2447_v20, %v2445_v62  ;;  %v6175_v51 = vpack.c.bf16 %v2451_v10, %v2449_v55  ;;  %v2450_v23 = vld [vmem:[%s10025_s7 + $0x50] sm:$0xff]  ;;  %v2563_v22 = vld [vmem:[%s10026_s29 + $0x60] sm:$0xff] }
 0x46e   :  { %v2313_v6 = vsel %vm1497_vm7, %v2262_v29, %v2312_v48  ;;  %6170 = vmatpush1.bf16.msra.mxu0 %v6169_v56  ;;  %v2448_v29 = vld [vmem:[%s10025_s7 + $0x40] sm:$0xff]  ;;  %v2565_v45 = vld [vmem:[%s10026_s29 + $0x70] sm:$0xff] }
 0x46f   :  { %v2269_v7 = vadd.f32 %v2268_v47, %v2267_v16  ;;  %v6173_v16 = vpack.c.bf16 %v2446_v36, %v2444_v15  ;;  %6172 = vmatprep.subr.bf16.mxu0 %v6171_v2  ;;  %v6197_v31 = vpack.c.bf16 %v2565_v45, %v2563_v22  ;;  %v5106_v10 = vld [vmem:[#allocation11] ss:$0 sm:$0xff] }
 0x471   :  { %v2314_v8 = vsel %vm1499_vm8, %v2269_v7, %v2313_v6  ;;  %v6177_v6 = vpack.c.bf16 %v2450_v23, %v2448_v29  ;;  %v2663_v29 = vld [vmem:[#allocation34 + $0x8] sm:$0xff]  ;;  %v5107_v23 = vld [vmem:[#allocation8] ss:$0 sm:$0xff] }
 0x472   :  { %5501 = vmatmul.mubr.msk.f32.vlgmr.msra.gmra.mrb[6].mxu1 %vm534_vm0, %v2314_v8  ;;  %6174 = vmatpush1.bf16.msra.mxu0 %v6173_v16 }
 0x473   :  { %2649 = vmatprep.mubr.f32.mxu1 %v10023_v63  ;;  %6176 = vmatprep.subr.bf16.mxu0 %v6175_v51  ;;  %v2662_v51 = vld [vmem:[#allocation34] sm:$0xff] }
 0x476   :  { %6178 = vmatpush1.bf16.msra.mxu0 %v6177_v6 }
 0x4dd   :  { %v783_v18 = vpop.f32.mrb[2].mxu1 }
 0x4de   :  { %v5464_v60 = vpop.f32.mrb[3].mxu1  ;;  %v784_v9 = vadd.f32 %v5097_v0, %v783_v18 }
 0x4e0   :  { %v787_v35 = vadd.f32 %v7003_v42, %v784_v9  ;;  %v2454_v42 = vld [vmem:[%s10025_s7 + $0x70] sm:$0xff] }
 0x4e2   :  { %v791_v32 = vsel %vm790_vm9, %v787_v35, 0.0 }
 0x514   :  { %v5483_v27 = vpop.f32.mrb[4].mxu1 }
 0x515   :  { %v1584_v37 = vadd.f32 %v5483_v27, %v5103_v46  ;;  %v1578_v54 = vpop.f32.mrb[5].mxu1 }
 0x516   :  { %v1579_v14 = vadd.f32 %v5103_v46, %v1578_v54 }
 0x517   :  { %v1588_v33 = vadd.f32 %v7001_v24, %v1584_v37 }
 0x518   :  { %v1587_v13 = vadd.f32 %v7002_v21, %v1579_v14  ;;  %v2455_v21 = vld [vmem:[%s10025_s7 + $0x78] sm:$0xff] }
 0x519   :  { %v1594_v11 = vsel %vm534_vm0, %v1588_v33, 0.0 }
 0x51a   :  { %1595 = vadd.xlane.f32.xlu1 %v1594_v11  ;;  %v1591_v41 = vsel %vm534_vm0, %v1587_v13, 0.0  ;;  %v2452_v11 = vld [vmem:[%s10025_s7 + $0x60] sm:$0xff] }
 0x51b   :  { %1592 = vadd.xlane.f32.xlu0 %v1591_v41  ;;  %v2552_v41 = vld [vmem:[%s10026_s29 + $0x8] sm:$0xff] }
 0x51e   :  { %792 = vadd.xlane.f32.xlu1 %v791_v32  ;;  %v2554_v32 = vld [vmem:[%s10026_s29 + $0x18] sm:$0xff] }
 0x545   :  { %v5502_v1 = vpop.f32.mrb[6].mxu1 }
 0x546   :  { %v2385_v17 = vpop.f32.mrb[7].mxu1  ;;  %v2391_v38 = vadd.f32 %v5502_v1, %v5110_v44  ;;  %v2551_v1 = vld [vmem:[%s10026_s29] sm:$0xff] }
 0x547   :  { %v2386_v3 = vadd.f32 %v5110_v44, %v2385_v17  ;;  %v6183_v44 = vpack.c.bf16 %v2554_v32, %v2552_v41  ;;  %v2553_v17 = vld [vmem:[%s10026_s29 + $0x10] sm:$0xff] }
 0x548   :  { %v2395_v12 = vadd.f32 %v7005_v59, %v2391_v38  ;;  %v6185_v38 = vpack.c.bf16 %v2553_v17, %v2551_v1  ;;  %v2555_v59 = vld [vmem:[%s10026_s29 + $0x20] sm:$0xff] }
 0x549   :  { %v2394_v30 = vadd.f32 %v7004_v53, %v2386_v3  ;;  %v10027_v3 = vmov 0.0|0.0   ;;  %6184 = vmatprep.subr.bf16.mxu1 %v6183_v44  ;;  %v2556_v53 = vld [vmem:[%s10026_s29 + $0x28] sm:$0xff]  ;;  %v5113_v17 = vld [vmem:[%s10028_s20] ss:$0 sm:$0xff] }
 0x54a   :  { %v2401_v28 = vsel %vm534_vm0, %v2395_v12, 0.0  ;;  %6186 = vmatpush1.bf16.msra.mxu1 %v6185_v38 }
 0x54b   :  { %v2398_v40 = vsel %vm534_vm0, %v2394_v30, 0.0 }
 0x54c   :  { %2399 = vadd.xlane.f32.xlu0 %v2398_v40 }
 0x550   :  { %2402 = vadd.xlane.f32.xlu0 %v2401_v28 }
 0x5a7   :  { %v1596_v5 = vpop.xlane.xlu1 %1595 }
 0x5a8   :  { %v1598_v25 = vmul.f32 0.015625, %v1596_v5  ;;  %v1593_v58 = vpop.xlane.xlu0 %1592  ;;  %v2560_v5 = vld [vmem:[%s10026_s29 + $0x48] sm:$0xff] }
 0x5a9   :  { %v1597_v19 = vmul.f32 0.015625, %v1593_v58  ;;  %v2559_v58 = vld [vmem:[%s10026_s29 + $0x40] sm:$0xff] }
 0x5aa   :  { %v8956_v50 = vsub.f32 %v1588_v33, %v1598_v25  ;;  %v2453_v33 = vld [vmem:[%s10025_s7 + $0x68] sm:$0xff]  ;;  %v2562_v25 = vld [vmem:[%s10026_s29 + $0x58] sm:$0xff] }
 0x5ab   :  { %v8958_v61 = vsub.f32 %v1587_v13, %v1597_v19  ;;  %v793_v4 = vpop.xlane.xlu1 %792  ;;  %v6179_v13 = vpack.c.bf16 %v2455_v21, %v2453_v33  ;;  %v2561_v19 = vld [vmem:[%s10026_s29 + $0x50] sm:$0xff] }
 0x5ac   :  { %v1602_v49 = vmul.f32 %v8956_v50, %v8956_v50  ;;  %v795_v47 = vmul.f32 0.015625, %v793_v4 }
 0x5ad   :  { %v1601_v39 = vmul.f32 %v8958_v61, %v8958_v61  ;;  %6180 = vmatprep.subr.bf16.mxu0 %v6179_v13 }
 0x5ae   :  { %v1606_v34 = vsel %vm534_vm0, %v1602_v49, 0.0  ;;  %v8978_v8 = vsub.f32 %v787_v35, %v795_v47  ;;  %v6181_v35 = vpack.c.bf16 %v2454_v42, %v2452_v11  ;;  %v6191_v49 = vpack.c.bf16 %v2562_v25, %v2560_v5 }
 0x5af   :  { %1607 = vadd.xlane.f32.xlu1 %v1606_v34  ;;  %v1603_v43 = vsel %vm534_vm0, %v1601_v39, 0.0  ;;  %v6193_v39 = vpack.c.bf16 %v2561_v19, %v2559_v58  ;;  %v2564_v34 = vld [vmem:[%s10026_s29 + $0x68] sm:$0xff] }
 0x5b0   :  { %1604 = vadd.xlane.f32.xlu0 %v1603_v43  ;;  %v797_v37 = vmul.f32 %v8978_v8, %v8978_v8  ;;  %6182 = vmatpush1.bf16.msra.mxu0 %v6181_v35  ;;  %v2566_v43 = vld [vmem:[%s10026_s29 + $0x78] sm:$0xff] }
 0x5b1   :  { %6199 = vmatprep.subr.bf16.mxu0 %v10027_v3  ;;  %v6195_v52 = vpack.c.bf16 %v2566_v43, %v2564_v34  ;;  %v2752_v34 = vld [vmem:[%s10029_s2 + $0x10] sm:$0xff]  ;;  %v2753_v43 = vld [vmem:[%s10029_s2 + $0x18] sm:$0xff] }
 0x5b2   :  { %v798_v24 = vsel %vm790_vm9, %v797_v37, 0.0 }
 0x5d9   :  { %v2400_v48 = vpop.xlane.xlu0 %2399 }
 0x5da   :  { %v2404_v7 = vmul.f32 0.015625, %v2400_v48  ;;  %v9017_v48 = vpack.c.bf16 %v2663_v29, %v2662_v51 }
 0x5dc   :  { %v8980_v18 = vsub.f32 %v2394_v30, %v2404_v7  ;;  %v2558_v30 = vld [vmem:[%s10026_s29 + $0x38] sm:$0xff] }
 0x5dd   :  { %v2403_v60 = vpop.xlane.xlu0 %2402  ;;  %v6187_v40 = vpack.c.bf16 %v2558_v30, %v2556_v53  ;;  %v2750_v53 = vld [vmem:[%s10029_s2] sm:$0xff]  ;;  %v2751_v30 = vld [vmem:[%s10029_s2 + $0x8] sm:$0xff] }
 0x5de   :  { %v2405_v0 = vmul.f32 0.015625, %v2403_v60  ;;  %v2408_v46 = vmul.f32 %v8980_v18, %v8980_v18  ;;  %v2664_v60 = vld [vmem:[#allocation34 + $0x10] sm:$0xff]  ;;  %v9044_v5 = vpack.c.bf16 %v2751_v30, %v2750_v53 }
 0x5df   :  { %6188 = vmatprep.subr.bf16.mxu1 %v6187_v40  ;;  %v5114_v40 = vld [vmem:[%s10030_s10] ss:$0 sm:$0xff]  ;;  %v3116_v53 = vld [vmem:[%s10037_s11 + $0x18] sm:$0xff] }
 0x5e0   :  { %v8984_v27 = vsub.f32 %v2395_v12, %v2405_v0  ;;  %v2410_v9 = vsel %vm534_vm0, %v2408_v46, 0.0  ;;  %v2557_v12 = vld [vmem:[%s10026_s29 + $0x30] sm:$0xff]  ;;  %v2665_v0 = vld [vmem:[#allocation34 + $0x18] sm:$0xff] }
 0x5e1   :  { %2411 = vadd.xlane.f32.xlu0 %v2410_v9  ;;  %v6189_v28 = vpack.c.bf16 %v2557_v12, %v2555_v59  ;;  %v9022_v46 = vpack.c.bf16 %v2665_v0, %v2664_v60  ;;  %v2667_v9 = vld [vmem:[#allocation34 + $0x28] sm:$0xff]  ;;  %v2567_v60 = vld [vmem:[%s10033_s30] sm:$0x3] }
 0x5e2   :  { %v2409_v54 = vmul.f32 %v8984_v27, %v8984_v27 }
 0x5e3   :  { %6190 = vmatpush1.bf16.msra.mxu1 %v6189_v28  ;;  %v5099_v28 = vld [vmem:[%s10031_s3] ss:$0 sm:$0xff] }
 0x5e4   :  { %v2413_v14 = vsel %vm534_vm0, %v2409_v54, 0.0  ;;  %6192 = vmatprep.subr.bf16.mxu1 %v6191_v49  ;;  %v2668_v54 = vld [vmem:[#allocation34 + $0x30] sm:$0xff]  ;;  %v5100_v49 = vld [vmem:[#allocation35] ss:$0 sm:$0xff] }
 0x5e5   :  { %2414 = vadd.xlane.f32.xlu1 %v2413_v14  ;;  %799 = vadd.xlane.f32.xlu0 %v798_v24  ;;  %v2669_v14 = vld [vmem:[#allocation34 + $0x38] sm:$0xff] }
 0x5e6   :  { %v9033_v24 = vpack.c.bf16 %v2669_v14, %v2668_v54 }
 0x5e7   :  { %6194 = vmatpush1.bf16.msra.mxu1 %v6193_v39 }
 0x5e8   :  { %6196 = vmatprep.subr.bf16.mxu1 %v6195_v52 }
 0x5eb   :  { %6198 = vmatpush1.bf16.msra.mxu1 %v6197_v31  ;;  %v2754_v31 = vld [vmem:[%s10029_s2 + $0x20] sm:$0xff] }
 0x5ec   :  { %6211 = vmatprep.subr.bf16.mxu1 %v10027_v3 }
 0x63c   :  { %v1608_v57 = vpop.xlane.xlu1 %1607 }
 0x63d   :  { %v1610_v62 = vmul.f32 0.015625, %v1608_v57  ;;  %v1605_v20 = vpop.xlane.xlu0 %1604 }
 0x63e   :  { %v1609_v56 = vmul.f32 0.015625, %v1605_v20  ;;  %v2757_v20 = vld [vmem:[%s10029_s2 + $0x38] sm:$0xff] }
 0x63f   :  { %v1612_v2 = vadd.f32 1e-05, %v1610_v62  ;;  %v2756_v62 = vld [vmem:[%s10029_s2 + $0x30] sm:$0xff] }
 0x640   :  { %v1611_v15 = vadd.f32 1e-05, %v1609_v56  ;;  %v9071_v56 = vpack.c.bf16 %v2757_v20, %v2756_v62  ;;  %v5121_v20 = vld [vmem:[#allocation17] ss:$0 sm:$0xff] }
 0x641   :  { %6871 = vrsqrt.f32 %v1612_v2  ;;  %v2456_v2 = vld [vmem:[%s10032_s19] sm:$0x3] }
 0x642   :  { %6873 = vrsqrt.f32 %v1611_v15  ;;  %v10034_v15 = vld [vmem:[#allocation93_spill] sm:$0xff] }
 0x64b   :  { %v6872_v36 = vpop.eup %6871 }
 0x64c   :  { %v6874_v55 = vpop.eup %6873  ;;  %v1616_v16 = vmul.f32 %v6872_v36, %v8956_v50  ;;  %v2666_v50 = vld [vmem:[#allocation34 + $0x20] sm:$0xff]  ;;  %v2465_v36 = vrot.slane %v2456_v2, %v10034_v15 }
 0x64d   :  { %v1615_v4 = vmul.f32 %v6874_v55, %v8958_v61  ;;  %v9027_v37 = vpack.c.bf16 %v2667_v9, %v2666_v50  ;;  %v2576_v9 = vrot.slane %v2567_v60, %v10034_v15 }
 0x64e   :  { %v1624_v7 = vmul.f32 %v5106_v10, %v1616_v16 }
 0x64f   :  { %v1623_v47 = vmul.f32 %v5106_v10, %v1615_v4  ;;  %v10035_v4 = vld [vmem:[#allocation92_spill] sm:$0xff] }
 0x650   :  { %v1632_v61 = vadd.f32 %v5107_v23, %v1624_v7  ;;  %v2461_v16 = vrot.slane %v2456_v2, %v10035_v4  ;;  %v2572_v0 = vrot.slane %v2567_v60, %v10035_v4 }
 0x651   :  { %v1631_v6 = vadd.f32 %v5107_v23, %v1623_v47 }
 0x653   :  { %5115 = vmatmul.mubr.msk.f32.vlgmr.msra.gmra.mrb[8].mxu0 %vm534_vm0, %v1631_v6 }
 0x654   :  { %2544 = vmatprep.mubr.f32.mxu0 %v10023_v63  ;;  %6201 = vmatpush3.bf16.msra.mxu0 %v9017_v48 }
 0x655   :  { %6202 = vmatprep.subr.bf16.mxu0 %v10027_v3 }
 0x657   :  { %5116 = vmatmul.mubr.msk.f32.gmra.mrb[10].mxu0 %vm534_vm0, %v1632_v61 }
 0x658   :  { %6204 = vmatpush3.bf16.msra.mxu0 %v9022_v46  ;;  %5519 = vmatprep.mubr.msk.f32.mxu0 %vm7722_vm1, %v10023_v63 }
 0x659   :  { %6205 = vmatprep.subr.bf16.mxu0 %v10027_v3 }
 0x65c   :  { %6207 = vmatpush3.bf16.msra.mxu0 %v9027_v37 }
 0x65d   :  { %6208 = vmatprep.subr.bf16.mxu0 %v10027_v3 }
 0x660   :  { %6210 = vmatpush3.bf16.msra.mxu0 %v9033_v24 }
 0x661   :  { %6223 = vmatprep.subr.bf16.mxu0 %v10027_v3 }
 0x66e   :  { %v2412_v33 = vpop.xlane.xlu0 %2411 }
 0x66f   :  { %v2416_v21 = vmul.f32 0.015625, %v2412_v33 }
 0x671   :  { %v2418_v13 = vadd.f32 1e-05, %v2416_v21 }
 0x672   :  { %v800_v11 = vpop.xlane.xlu0 %799  ;;  %v2415_v42 = vpop.xlane.xlu1 %2414 }
 0x673   :  { %6875 = vrsqrt.f32 %v2418_v13  ;;  %v801_v35 = vmul.f32 0.015625, %v800_v11  ;;  %v2417_v41 = vmul.f32 0.015625, %v2415_v42 }
 0x675   :  { %v802_v32 = vadd.f32 1e-05, %v801_v35  ;;  %v2419_v44 = vadd.f32 1e-05, %v2417_v41 }
 0x677   :  { %6877 = vrsqrt.f32 %v802_v32 }
 0x678   :  { %6879 = vrsqrt.f32 %v2419_v44  ;;  %v3113_v44 = vld [vmem:[%s10037_s11] sm:$0xff] }
 0x67d   :  { %v6876_v1 = vpop.eup %6875 }
 0x67e   :  { %v2422_v38 = vmul.f32 %v6876_v1, %v8980_v18  ;;  %v3114_v1 = vld [vmem:[%s10037_s11 + $0x8] sm:$0xff] }
 0x680   :  { %v2430_v59 = vmul.f32 %v5113_v17, %v2422_v38  ;;  %v9119_v38 = vpack.c.bf16 %v3114_v1, %v3113_v44 }
 0x681   :  { %v6878_v12 = vpop.eup %6877 }
 0x682   :  { %v6880_v25 = vpop.eup %6879  ;;  %v804_v58 = vmul.f32 %v6878_v12, %v8978_v8  ;;  %v2438_v19 = vadd.f32 %v5114_v40, %v2430_v59  ;;  %v9054_v8 = vpack.c.bf16 %v2753_v43, %v2752_v34  ;;  %v3118_v59 = vld [vmem:[%s10037_s11 + $0x28] sm:$0xff]  ;;  %v3123_v34 = vld [vmem:[%s10037_s11 + $0x50] sm:$0xff]  ;;  %v3124_v43 = vld [vmem:[%s10037_s11 + $0x58] sm:$0xff] }
 0x683   :  { %v2423_v39 = vmul.f32 %v6880_v25, %v8984_v27  ;;  %v2755_v27 = vld [vmem:[%s10029_s2 + $0x28] sm:$0xff]  ;;  %v3120_v25 = vld [vmem:[%s10037_s11 + $0x38] sm:$0xff] }
 0x684   :  { %v811_v18 = vmul.f32 %v5099_v28, %v804_v58  ;;  %5117 = vmatmul.mubr.msk.f32.vlgmr.msra.gmra.mrb[8].mxu1 %vm534_vm0, %v2438_v19  ;;  %v9063_v57 = vpack.c.bf16 %v2755_v27, %v2754_v31  ;;  %v3119_v28 = vld [vmem:[%s10037_s11 + $0x30] sm:$0xff]  ;;  %v3121_v19 = vld [vmem:[%s10037_s11 + $0x40] sm:$0xff]  ;;  %v3128_v27 = vld [vmem:[%s10037_s11 + $0x78] sm:$0xff] }
 0x685   :  { %6213 = vmatpush3.bf16.msra.mxu1 %v9044_v5  ;;  %2655 = vmatprep.mubr.f32.mxu1 %v10023_v63  ;;  %v2431_v52 = vmul.f32 %v5113_v17, %v2423_v39  ;;  %v3115_v17 = vld [vmem:[%s10037_s11 + $0x10] sm:$0xff]  ;;  %v9135_v58 = vpack.c.bf16 %v3120_v25, %v3119_v28 }
 0x686   :  { %v818_v22 = vadd.f32 %v5100_v49, %v811_v18  ;;  %6214 = vmatprep.subr.bf16.mxu1 %v10027_v3  ;;  %v9123_v30 = vpack.c.bf16 %v3116_v53, %v3115_v17  ;;  %v3122_v49 = vld [vmem:[%s10037_s11 + $0x48] sm:$0xff]  ;;  %v9147_v18 = vpack.c.bf16 %v3124_v43, %v3123_v34  ;;  %v3127_v31 = vld [vmem:[%s10037_s11 + $0x70] sm:$0xff] }
 0x687   :  { %v2439_v45 = vadd.f32 %v5114_v40, %v2431_v52  ;;  %v3117_v40 = vld [vmem:[%s10037_s11 + $0x20] sm:$0xff]  ;;  %v9141_v39 = vpack.c.bf16 %v3122_v49, %v3121_v19  ;;  %v9159_v62 = vpack.c.bf16 %v3128_v27, %v3127_v31 }
 0x688   :  { %5520 = vmatmul.mubr.msk.f32.vlgmr.msra.gmra.mrb[12].mxu0 %vm534_vm0, %v818_v22  ;;  %v9129_v12 = vpack.c.bf16 %v3118_v59, %v3117_v40  ;;  %v3125_v52 = vld [vmem:[%s10037_s11 + $0x60] sm:$0xff] }
 0x689   :  { %5118 = vmatmul.mubr.msk.f32.gmra.mrb[10].mxu1 %vm534_vm0, %v2439_v45  ;;  %5573 = vmatprep.mubr.msk.f32.mxu0 %vm7722_vm1, %v10023_v63 }
 0x68a   :  { %6216 = vmatpush3.bf16.msra.mxu1 %v9054_v8  ;;  %5538 = vmatprep.mubr.msk.f32.mxu1 %vm7722_vm1, %v10023_v63 }
 0x68b   :  { %6217 = vmatprep.subr.bf16.mxu1 %v10027_v3  ;;  %6225 = vmatpush3.bf16.msra.mxu0 %v9119_v38 }
 0x68c   :  { %6226 = vmatprep.subr.bf16.mxu0 %v10027_v3 }
 0x68e   :  { %6219 = vmatpush3.bf16.msra.mxu1 %v9063_v57 }
 0x68f   :  { %6220 = vmatprep.subr.bf16.mxu1 %v10027_v3  ;;  %6228 = vmatpush3.bf16.msra.mxu0 %v9123_v30 }
 0x690   :  { %6229 = vmatprep.subr.bf16.mxu0 %v10027_v3 }
 0x692   :  { %6222 = vmatpush3.bf16.msra.mxu1 %v9071_v56 }
 0x693   :  { %6247 = vmatprep.subr.bf16.mxu1 %v10027_v3  ;;  %6231 = vmatpush3.bf16.msra.mxu0 %v9129_v12 }
 0x694   :  { %6232 = vmatprep.subr.bf16.mxu0 %v10027_v3 }
 0x695   :  { %5539 = vmatmul.mubr.msk.f32.vlgmr.msra.gmra.mrb[12].mxu1 %vm534_vm0, %v818_v22 }
 0x696   :  { %5608 = vmatprep.mubr.msk.f32.mxu1 %vm7722_vm1, %v10023_v63 }
 0x697   :  { %6234 = vmatpush3.bf16.msra.mxu0 %v9135_v58 }
 0x698   :  { %6235 = vmatprep.subr.bf16.mxu0 %v10027_v3 }
 0x69b   :  { %6237 = vmatpush3.bf16.msra.mxu0 %v9141_v39 }
 0x69c   :  { %6238 = vmatprep.subr.bf16.mxu0 %v10027_v3 }
 0x69f   :  { %6240 = vmatpush3.bf16.msra.mxu0 %v9147_v18 }
 0x6a0   :  { %6241 = vmatprep.subr.bf16.mxu0 %v10027_v3 }
 0x726   :  { %v2540_v55 = vpop.f32.mrb[8].mxu0 }
 0x727   :  { %v2542_v10 = vpop.f32.mrb[9].mxu0  ;;  %v9086_v47 = vadd.f32 %v2540_v55, %v2461_v16 }
 0x728   :  { %v9082_v51 = vadd.f32 %v2542_v10, %v2465_v36 }
 0x729   :  { %10036 = vst [vmem:[#allocation99_spill] sm:$0xff] %v9086_v47 }
 0x72a   :  { %3004 = vrot.lane.b32.xlu1 %v9082_v51, %s7720_s27  ;;  %v2546_v29 = vpop.f32.mrb[10].mxu0 }
 0x72b   :  { %v2548_v23 = vpop.f32.mrb[11].mxu0  ;;  %v9094_v7 = vadd.f32 %v2546_v29, %v2461_v16 }
 0x72c   :  { %v9088_v6 = vadd.f32 %v2548_v23, %v2465_v36 }
 0x72e   :  { %2870 = vrot.lane.b32.xlu1 %v9086_v47, %s7720_s27  ;;  %3006 = vrot.lane.b32.xlu0 %v9088_v6, %s7720_s27 }
 0x732   :  { %2872 = vrot.lane.b32.xlu1 %v9094_v7, %s7720_s27 }
 0x757   :  { %v2651_v61 = vpop.f32.mrb[8].mxu1 }
 0x758   :  { %v9100_v50 = vadd.f32 %v2651_v61, %v2572_v0  ;;  %v2653_v54 = vpop.f32.mrb[9].mxu1 }
 0x759   :  { %v9107_v33 = vadd.f32 %v2653_v54, %v2576_v9 }
 0x75a   :  { %3080 = vrot.lane.b32.xlu1 %v9100_v50, %s7720_s27 }
 0x75b   :  { %v9105_v14 = vpop.f32.mrb[12].mxu0  ;;  %10038 = vst [vmem:[#allocation100_spill] sm:$0xff] %v9107_v33 }
 0x75c   :  { %v2657_v21 = vpop.f32.mrb[10].mxu1  ;;  %v5521_v13 = vpop.f32.mrb[13].mxu0 }
 0x75d   :  { %v9109_v11 = vadd.f32 %v2657_v21, %v2572_v0  ;;  %v2659_v42 = vpop.f32.mrb[11].mxu1 }
 0x75e   :  { %v9111_v35 = vadd.f32 %v2659_v42, %v2576_v9  ;;  %2947 = vrot.lane.b32.xlu1 %v9107_v33, %s7720_s27 }
 0x760   :  { %10039 = vst [vmem:[#allocation101_spill] sm:$0xff] %v9111_v35 }
 0x762   :  { %3310 = vrot.lane.b32.xlu1 %v818_v22, %s7720_s27  ;;  %v3126_v22 = vld [vmem:[%s10037_s11 + $0x68] sm:$0xff] }
 0x763   :  { %v9153_v45 = vpack.c.bf16 %v3126_v22, %v3125_v52 }
 0x765   :  { %6243 = vmatpush3.bf16.msra.mxu0 %v9153_v45 }
 0x766   :  { %6244 = vmatprep.subr.bf16.mxu0 %v10027_v3 }
 0x768   :  { %v2831_v41 = vpop.f32.mrb[12].mxu1 }
 0x769   :  { %v5540_v32 = vpop.f32.mrb[13].mxu1  ;;  %6246 = vmatpush3.bf16.msra.mxu0 %v9159_v62  ;;  %v2832_v2 = vadd.f32 %v5121_v20, %v2831_v41 }
 0x76a   :  { %6271 = vmatprep.subr.bf16.mxu0 %v10027_v3 }
 0x76b   :  { %v2976_v15 = vrot.slane %v2832_v2, %v8170_v26 }
 0x76d   :  { %v2977_v36 = vcombine.high %v2976_v15, %v2976_v15  ;;  %v2984_v55 = vrot.slane %v2976_v15, %v8170_v26 }
 0x76f   :  { %v9167_v10 = vrot.slane %v2984_v55, %v10035_v4  ;;  %v2991_v16 = vrot.slane %v2977_v36, %v8170_v26  ;;  %v5119_v55 = vld [vmem:[#allocation16] ss:$0 sm:$0xff] }
 0x771   :  { %v9175_v60 = vrot.slane %v2991_v16, %v10035_v4 }
 0x79c   :  { %v9170_v29 = vpop.permute.xlu1 %3004 }
 0x79d   :  { %v3010_v23 = vadd.f32 %v9170_v29, %v9167_v10 }
 0x79f   :  { %6881 = vtanh.f32 %v3010_v23 }
 0x7a0   :  { %v9177_v0 = vpop.permute.xlu0 %3006 }
 0x7a1   :  { %v3011_v61 = vadd.f32 %v9177_v0, %v9175_v60 }
 0x7a3   :  { %6883 = vtanh.f32 %v3011_v61 }
 0x7a9   :  { %v6882_v9 = vpop.eup %6881 }
 0x7aa   :  { %v3014_v54 = vmul.f32 1.442695, %v6882_v9  ;;  %v2747_v9 = vadd.f32 %v5119_v55, %v9105_v14  ;;  %v3221_v55 = vld [vmem:[%s10040_s14 + $0x20] sm:$0xff] }
 0x7ac   :  { %6885 = vpow2.f32 %v3014_v54 }
 0x7ad   :  { %v6884_v21 = vpop.eup %6883 }
 0x7ae   :  { %v3016_v13 = vmul.f32 1.442695, %v6884_v21 }
 0x7b0   :  { %6887 = vpow2.f32 %v3016_v13 }
 0x7b6   :  { %v6886_v42 = vpop.eup %6885 }
 0x7b7   :  { %v3018_v41 = vsel %vm534_vm0, %v6886_v42, 0.0 }
 0x7b8   :  { %v3019_v32 = vrot.slane %v3018_v41, 4 }
 0x7ba   :  { %v6888_v44 = vpop.eup %6887  ;;  %v3020_v1 = vadd.f32 %v3019_v32, %v3018_v41 }
 0x7bb   :  { %v3025_v17 = vsel %vm534_vm0, %v6888_v44, 0.0 }
 0x7bc   :  { %v3021_v53 = vrot.slane %v3020_v1, 2  ;;  %v3026_v40 = vrot.slane %v3025_v17, 4 }
 0x7be   :  { %v3022_v59 = vadd.f32 %v3021_v53, %v3020_v1  ;;  %v3027_v28 = vadd.f32 %v3026_v40, %v3025_v17  ;;  %v9189_v40 = vpop.permute.xlu1 %2870 }
 0x7bf   :  { %10041 = vst [vmem:[#allocation102_spill] sm:$0xff] %v9189_v40 }
 0x7c0   :  { %v3023_v25 = vrot.slane %v3022_v59, 1  ;;  %v3028_v19 = vrot.slane %v3027_v28, 2 }
 0x7c2   :  { %v3024_v49 = vadd.f32 %v3023_v25, %v3022_v59  ;;  %v3029_v34 = vadd.f32 %v3028_v19, %v3027_v28 }
 0x7c4   :  { %6889 = vrcp.f32 %v3024_v49  ;;  %v3030_v43 = vrot.slane %v3029_v34, 1  ;;  %v9195_v49 = vpop.permute.xlu1 %2872 }
 0x7c5   :  { %10042 = vst [vmem:[#allocation110_spill] sm:$0xff] %v9195_v49 }
 0x7c6   :  { %v3031_v52 = vadd.f32 %v3030_v43, %v3029_v34 }
 0x7c8   :  { %6891 = vrcp.f32 %v3031_v52 }
 0x7ce   :  { %v6890_v22 = vpop.eup %6889 }
 0x7cf   :  { %v3034_v31 = vmul.f32 %v6890_v22, %v6886_v42  ;;  %v2842_v42 = vrot.slane %v2747_v9, %v8170_v26  ;;  %v3224_v9 = vld [vmem:[%s10040_s14 + $0x38] sm:$0xff] }
 0x7d1   :  { %v3036_v27 = vmul.f32 %v3034_v31, %v9082_v51  ;;  %v2843_v17 = vcombine.high %v2842_v42, %v2842_v42  ;;  %v2850_v19 = vrot.slane %v2842_v42, %v8170_v26  ;;  %v3217_v31 = vld [vmem:[%s10040_s14] sm:$0xff] }
 0x7d2   :  { %v6892_v20 = vpop.eup %6891 }
 0x7d3   :  { %v3035_v2 = vmul.f32 %v6892_v20, %v6888_v44  ;;  %v3038_v15 = vsel %vm534_vm0, %v3036_v27, 0.0  ;;  %v2857_v14 = vrot.slane %v2843_v17, %v8170_v26  ;;  %v2861_v43 = vrot.slane %v2850_v19, %v10035_v4  ;;  %v3218_v27 = vld [vmem:[%s10040_s14 + $0x8] sm:$0xff]  ;;  %v3219_v20 = vld [vmem:[%s10040_s14 + $0x10] sm:$0xff]  ;;  %v3228_v17 = vld [vmem:[%s10040_s14 + $0x58] sm:$0xff] }
 0x7d4   :  { %v3039_v36 = vrot.slane %v3038_v15, 4 }
 0x7d5   :  { %v3037_v16 = vmul.f32 %v3035_v2, %v9088_v6  ;;  %v9198_v34 = vrot.slane %v2857_v14, %v10035_v4  ;;  %v2876_v22 = vadd.f32 %v9189_v40, %v2861_v43  ;;  %v9211_v2 = vpack.c.bf16 %v3218_v27, %v3217_v31  ;;  %v3230_v14 = vld [vmem:[%s10040_s14 + $0x68] sm:$0xff] }
 0x7d6   :  { %v3040_v23 = vadd.f32 %v3039_v36, %v3038_v15  ;;  %v3220_v15 = vld [vmem:[%s10040_s14 + $0x18] sm:$0xff]  ;;  %v2918_v31 = vadd.f32 %v2861_v43, %v9107_v33  ;;  %v3053_v43 = vadd.f32 %v9175_v60, %v9109_v11 }
 0x7d7   :  { %v3045_v61 = vsel %vm534_vm0, %v3037_v16, 0.0  ;;  %v2877_v52 = vadd.f32 %v9195_v49, %v9198_v34  ;;  %6249 = vmatpush3.bf16.msra.mxu1 %v9211_v2  ;;  %v9215_v36 = vpack.c.bf16 %v3220_v15, %v3219_v20  ;;  %v3222_v16 = vld [vmem:[%s10040_s14 + $0x28] sm:$0xff] }
 0x7d8   :  { %v3041_v54 = vrot.slane %v3040_v23, 2  ;;  %v3046_v21 = vrot.slane %v3045_v61, 4  ;;  %6250 = vmatprep.subr.bf16.mxu1 %v10027_v3 }
 0x7d9   :  { %6893 = vtanh.f32 %v2877_v52  ;;  %v3231_v52 = vld [vmem:[%s10040_s14 + $0x70] sm:$0xff] }
 0x7da   :  { %v3042_v13 = vadd.f32 %v3041_v54, %v3040_v23  ;;  %v3047_v41 = vadd.f32 %v3046_v21, %v3045_v61  ;;  %6895 = vtanh.f32 %v2876_v22  ;;  %v9221_v23 = vpack.c.bf16 %v3222_v16, %v3221_v55  ;;  %v3223_v61 = vld [vmem:[%s10040_s14 + $0x30] sm:$0xff]  ;;  %v3232_v22 = vld [vmem:[%s10040_s14 + $0x78] sm:$0xff] }
 0x7db   :  { %6252 = vmatpush3.bf16.msra.mxu1 %v9215_v36  ;;  %v9227_v54 = vpack.c.bf16 %v3224_v9, %v3223_v61  ;;  %v9254_v27 = vpack.c.bf16 %v3232_v22, %v3231_v52 }
 0x7dc   :  { %v3048_v32 = vrot.slane %v3047_v41, 2  ;;  %v3043_v1 = vrot.slane %v3042_v13, 1  ;;  %6253 = vmatprep.subr.bf16.mxu1 %v10027_v3 }
 0x7de   :  { %v3049_v44 = vadd.f32 %v3048_v32, %v3047_v41  ;;  %v3044_v59 = vadd.f32 %v3043_v1, %v3042_v13  ;;  %v3225_v13 = vld [vmem:[%s10040_s14 + $0x40] sm:$0xff]  ;;  %v3226_v41 = vld [vmem:[%s10040_s14 + $0x48] sm:$0xff] }
 0x7df   :  { %6255 = vmatpush3.bf16.msra.mxu1 %v9221_v23  ;;  %v9233_v1 = vpack.c.bf16 %v3226_v41, %v3225_v13 }
 0x7e0   :  { %v3050_v53 = vrot.slane %v3049_v44, 1  ;;  %6256 = vmatprep.subr.bf16.mxu1 %v10027_v3 }
 0x7e2   :  { %v3051_v28 = vadd.f32 %v3050_v53, %v3049_v44  ;;  %v3227_v44 = vld [vmem:[%s10040_s14 + $0x50] sm:$0xff] }
 0x7e3   :  { %v6894_v21 = vpop.eup %6893  ;;  %6258 = vmatpush3.bf16.msra.mxu1 %v9227_v54 }
 0x7e4   :  { %v3108_v25 = vsel %vm1487_vm2, %v3051_v28, %v3044_v59  ;;  %v6896_v42 = vpop.eup %6895  ;;  %v2882_v32 = vmul.f32 1.442695, %v6894_v21  ;;  %6259 = vmatprep.subr.bf16.mxu1 %v10027_v3  ;;  %v9239_v59 = vpack.c.bf16 %v3228_v17, %v3227_v44  ;;  %v3229_v28 = vld [vmem:[%s10040_s14 + $0x60] sm:$0xff]  ;;  %v2919_v21 = vadd.f32 %v9198_v34, %v9111_v35 }
 0x7e5   :  { %3109 = vrot.lane.b32.xlu0 %v3108_v25, %s7720_s27  ;;  %v2880_v53 = vmul.f32 1.442695, %v6896_v42  ;;  %v3052_v25 = vadd.f32 %v9167_v10, %v9100_v50  ;;  %v9247_v19 = vpack.c.bf16 %v3230_v14, %v3229_v28 }
 0x7e6   :  { %6897 = vpow2.f32 %v2882_v32 }
 0x7e7   :  { %6261 = vmatpush3.bf16.msra.mxu1 %v9233_v1  ;;  %6899 = vpow2.f32 %v2880_v53 }
 0x7e8   :  { %6262 = vmatprep.subr.bf16.mxu1 %v10027_v3  ;;  %6901 = vtanh.f32 %v3052_v25 }
 0x7e9   :  { %3082 = vrot.lane.b32.xlu0 %v9109_v11, %s7720_s27  ;;  %6903 = vtanh.f32 %v2918_v31 }
 0x7ea   :  { %6905 = vtanh.f32 %v3053_v43 }
 0x7eb   :  { %6264 = vmatpush3.bf16.msra.mxu1 %v9239_v59  ;;  %6907 = vtanh.f32 %v2919_v21 }
 0x7ec   :  { %6265 = vmatprep.subr.bf16.mxu1 %v10027_v3 }
 0x7ed   :  { %2949 = vrot.lane.b32.xlu0 %v9111_v35, %s7720_s27 }
 0x7ef   :  { %6267 = vmatpush3.bf16.msra.mxu1 %v9247_v19 }
 0x7f0   :  { %6268 = vmatprep.subr.bf16.mxu1 %v10027_v3  ;;  %v6898_v20 = vpop.eup %6897 }
 0x7f1   :  { %v6900_v10 = vpop.eup %6899  ;;  %v2891_v15 = vsel %vm534_vm0, %v6898_v20, 0.0 }
 0x7f2   :  { %v2884_v55 = vsel %vm534_vm0, %v6900_v10, 0.0  ;;  %v2892_v16 = vrot.slane %v2891_v15, 4  ;;  %v6902_v61 = vpop.eup %6901 }
 0x7f3   :  { %6270 = vmatpush3.bf16.msra.mxu1 %v9254_v27  ;;  %v2885_v9 = vrot.slane %v2884_v55, 4  ;;  %v3056_v13 = vmul.f32 1.442695, %v6902_v61  ;;  %v6904_v42 = vpop.eup %6903 }
 0x7f4   :  { %6295 = vmatprep.subr.bf16.mxu1 %v10027_v3  ;;  %v2893_v41 = vadd.f32 %v2892_v16, %v2891_v15  ;;  %v2922_v44 = vmul.f32 1.442695, %v6904_v42  ;;  %v6906_v25 = vpop.eup %6905 }
 0x7f5   :  { %v2886_v32 = vadd.f32 %v2885_v9, %v2884_v55  ;;  %6909 = vpow2.f32 %v3056_v13  ;;  %v6908_v60 = vpop.eup %6907  ;;  %v3058_v31 = vmul.f32 1.442695, %v6906_v25 }
 0x7f6   :  { %v2894_v17 = vrot.slane %v2893_v41, 2  ;;  %6911 = vpow2.f32 %v2922_v44  ;;  %v2924_v15 = vmul.f32 1.442695, %v6908_v60 }
 0x7f7   :  { %v2887_v53 = vrot.slane %v2886_v32, 2  ;;  %6913 = vpow2.f32 %v3058_v31 }
 0x7f8   :  { %v2895_v28 = vadd.f32 %v2894_v17, %v2893_v41 }
 0x7f9   :  { %v2888_v14 = vadd.f32 %v2887_v53, %v2886_v32 }
 0x7fa   :  { %v2896_v52 = vrot.slane %v2895_v28, 1 }
 0x7fb   :  { %v2889_v33 = vrot.slane %v2888_v14, 1 }
 0x7fc   :  { %v2897_v34 = vadd.f32 %v2896_v52, %v2895_v28 }
 0x7fd   :  { %v2890_v61 = vadd.f32 %v2889_v33, %v2888_v14 }
 0x7fe   :  { %6915 = vrcp.f32 %v2897_v34 }
 0x7ff   :  { %v6910_v22 = vpop.eup %6909  ;;  %6917 = vpow2.f32 %v2924_v15 }
 0x800   :  { %v3060_v16 = vsel %vm2926_vm10, %v6910_v22, 0.0  ;;  %v6912_v55 = vpop.eup %6911  ;;  %6919 = vrcp.f32 %v2890_v61 }
 0x801   :  { %v3061_v43 = vrot.slane %v3060_v16, 4  ;;  %v2927_v9 = vsel %vm2926_vm10, %v6912_v55, 0.0  ;;  %v9267_v41 = vpop.eup %6913 }
 0x802   :  { %v2928_v13 = vrot.slane %v2927_v9, 4  ;;  %v3067_v53 = vsel %vm2926_vm10, %v9267_v41, 0.0 }
 0x803   :  { %v3062_v21 = vadd.f32 %v3061_v43, %v3060_v16  ;;  %v3068_v52 = vrot.slane %v3067_v53, 4 }
 0x804   :  { %v2929_v32 = vadd.f32 %v2928_v13, %v2927_v9 }
 0x805   :  { %v3063_v42 = vrot.slane %v3062_v21, 2  ;;  %v3069_v61 = vadd.f32 %v3068_v52, %v3067_v53 }
 0x806   :  { %v2930_v14 = vrot.slane %v2929_v32, 2 }
 0x807   :  { %v3064_v33 = vadd.f32 %v3063_v42, %v3062_v21  ;;  %v3070_v21 = vrot.slane %v3069_v61, 2 }
 0x808   :  { %v6916_v44 = vpop.eup %6915  ;;  %v2931_v15 = vadd.f32 %v2930_v14, %v2929_v32 }
 0x809   :  { %v9269_v17 = vpop.eup %6917  ;;  %v2901_v25 = vmul.f32 %v6916_v44, %v6898_v20  ;;  %v3065_v34 = vrot.slane %v3064_v33, 1  ;;  %v3071_v49 = vadd.f32 %v3070_v21, %v3069_v61 }
 0x80a   :  { %v6920_v28 = vpop.eup %6919  ;;  %v2934_v31 = vsel %vm2926_vm10, %v9269_v17, 0.0  ;;  %v2932_v40 = vrot.slane %v2931_v15, 1 }
 0x80b   :  { %v2900_v60 = vmul.f32 %v6920_v28, %v6900_v10  ;;  %v2903_v16 = vmul.f32 %v2901_v25, %v9094_v7  ;;  %v2935_v43 = vrot.slane %v2934_v31, 4  ;;  %v3066_v13 = vadd.f32 %v3065_v34, %v3064_v33  ;;  %v9279_v34 = vpop.permute.xlu1 %3080 }
 0x80c   :  { %v2933_v10 = vadd.f32 %v2932_v40, %v2931_v15  ;;  %v3072_v25 = vrot.slane %v3071_v49, 1 }
 0x80d   :  { %v2902_v9 = vmul.f32 %v2900_v60, %v9086_v47  ;;  %v2911_v35 = vsel %vm534_vm0, %v2903_v16, 0.0  ;;  %v2936_v42 = vadd.f32 %v2935_v43, %v2934_v31  ;;  %6921 = vrcp.f32 %v3066_v13 }
 0x80e   :  { %v2912_v44 = vrot.slane %v2911_v35, 4  ;;  %6923 = vrcp.f32 %v2933_v10  ;;  %v3073_v47 = vadd.f32 %v3072_v25, %v3071_v49 }
 0x80f   :  { %v2904_v20 = vsel %vm534_vm0, %v2902_v9, 0.0  ;;  %v2937_v32 = vrot.slane %v2936_v42, 2  ;;  %v9282_v21 = vpop.permute.xlu1 %2947 }
 0x810   :  { %v2905_v28 = vrot.slane %v2904_v20, 4  ;;  %v2913_v14 = vadd.f32 %v2912_v44, %v2911_v35  ;;  %6925 = vrcp.f32 %v3073_v47 }
 0x811   :  { %v2938_v52 = vadd.f32 %v2937_v32, %v2936_v42 }
 0x812   :  { %v2906_v53 = vadd.f32 %v2905_v28, %v2904_v20  ;;  %v2914_v60 = vrot.slane %v2913_v14, 2 }
 0x813   :  { %v2939_v31 = vrot.slane %v2938_v52, 1 }
 0x814   :  { %v2907_v16 = vrot.slane %v2906_v53, 2  ;;  %v2915_v43 = vadd.f32 %v2914_v60, %v2913_v14 }
 0x815   :  { %v2940_v15 = vadd.f32 %v2939_v31, %v2938_v52 }
 0x816   :  { %v2908_v40 = vadd.f32 %v2907_v16, %v2906_v53  ;;  %v2916_v35 = vrot.slane %v2915_v43, 1 }
 0x817   :  { %v6922_v33 = vpop.eup %6921  ;;  %6927 = vrcp.f32 %v2940_v15 }
 0x818   :  { %v3076_v9 = vmul.f32 %v6922_v33, %v6910_v22  ;;  %v6924_v13 = vpop.eup %6923  ;;  %v2909_v42 = vrot.slane %v2908_v40, 1  ;;  %v2917_v49 = vadd.f32 %v2916_v35, %v2915_v43  ;;  %v3315_v35 = vld [vmem:[%s10043_s5] sm:$0xff] }
 0x819   :  { %v2943_v20 = vmul.f32 %v6924_v13, %v6912_v55 }
 0x81a   :  { %v3086_v61 = vmul.f32 %v9279_v34, %v3076_v9  ;;  %v2910_v32 = vadd.f32 %v2909_v42, %v2908_v40  ;;  %v6926_v14 = vpop.eup %6925  ;;  %v3317_v42 = vld [vmem:[%s10043_s5 + $0x10] sm:$0xff] }
 0x81b   :  { %v2953_v44 = vmul.f32 %v9282_v21, %v2943_v20  ;;  %v3077_v60 = vmul.f32 %v6926_v14, %v9267_v41  ;;  %v3316_v20 = vld [vmem:[%s10043_s5 + $0x8] sm:$0xff] }
 0x81c   :  { %v3088_v10 = vsel %vm2926_vm10, %v3086_v61, 0.0  ;;  %v3104_v53 = vsel %vm1487_vm2, %v2917_v49, %v2910_v32  ;;  %v3318_v32 = vld [vmem:[%s10043_s5 + $0x18] sm:$0xff] }
 0x81d   :  { %v3089_v28 = vrot.slane %v3088_v10, 4  ;;  %v2955_v22 = vsel %vm2926_vm10, %v2953_v44, 0.0 }
 0x81e   :  { %v2956_v55 = vrot.slane %v2955_v22, 4 }
 0x81f   :  { %v3090_v52 = vadd.f32 %v3089_v28, %v3088_v10  ;;  %v9303_v28 = vpack.c.bf16 %v3316_v20, %v3315_v35 }
 0x820   :  { %v2957_v9 = vadd.f32 %v2956_v55, %v2955_v22 }
 0x821   :  { %v6928_v33 = vpop.eup %6927  ;;  %v3091_v43 = vrot.slane %v3090_v52, 2 }
 0x822   :  { %v2944_v40 = vmul.f32 %v6928_v33, %v9269_v17  ;;  %v2958_v44 = vrot.slane %v2957_v9, 2 }
 0x823   :  { %v3092_v10 = vadd.f32 %v3091_v43, %v3090_v52 }
 0x824   :  { %v2959_v52 = vadd.f32 %v2958_v44, %v2957_v9 }
 0x825   :  { %v3093_v33 = vrot.slane %v3092_v10, 1 }
 0x827   :  { %v3094_v20 = vadd.f32 %v3093_v33, %v3092_v10  ;;  %v3323_v10 = vld [vmem:[%s10043_s5 + $0x40] sm:$0xff]  ;;  %v3328_v33 = vld [vmem:[%s10043_s5 + $0x68] sm:$0xff] }
 0x857   :  { %v3110_v47 = vpop.permute.xlu0 %3109 }
 0x858   :  { %v3112_v25 = vsel %vm534_vm0, %v3104_v53, %v3110_v47  ;;  %v9308_v47 = vpack.c.bf16 %v3318_v32, %v3317_v42  ;;  %v3319_v53 = vld [vmem:[%s10043_s5 + $0x20] sm:$0xff] }
 0x859   :  { %5574 = vmatmul.mubr.f32.vlgmr.msra.gmra.mrb[14].mxu0 %v3112_v25  ;;  %v3320_v25 = vld [vmem:[%s10043_s5 + $0x28] sm:$0xff] }
 0x85a   :  { %5643 = vmatprep.mubr.msk.f32.mxu0 %vm7722_vm1, %v10023_v63  ;;  %6273 = vmatpush3.bf16.msra.mxu0 %v9303_v28 }
 0x85b   :  { %v9292_v16 = vpop.permute.xlu0 %3082  ;;  %6274 = vmatprep.subr.bf16.mxu0 %v10027_v3 }
 0x85c   :  { %v3087_v31 = vmul.f32 %v9292_v16, %v3077_v60 }
 0x85e   :  { %v3095_v13 = vsel %vm2926_vm10, %v3087_v31, 0.0  ;;  %6276 = vmatpush3.bf16.msra.mxu0 %v9308_v47 }
 0x85f   :  { %v3096_v15 = vrot.slane %v3095_v13, 4  ;;  %v9297_v61 = vpop.permute.xlu0 %2949  ;;  %6277 = vmatprep.subr.bf16.mxu0 %v10027_v3 }
 0x860   :  { %v2954_v41 = vmul.f32 %v9297_v61, %v2944_v40  ;;  %v3321_v40 = vld [vmem:[%s10043_s5 + $0x30] sm:$0xff] }
 0x861   :  { %v3097_v49 = vadd.f32 %v3096_v15, %v3095_v13  ;;  %v9314_v13 = vpack.c.bf16 %v3320_v25, %v3319_v53  ;;  %v3322_v15 = vld [vmem:[%s10043_s5 + $0x38] sm:$0xff]  ;;  %v3325_v53 = vld [vmem:[%s10043_s5 + $0x50] sm:$0xff] }
 0x862   :  { %v2962_v22 = vsel %vm2926_vm10, %v2954_v41, 0.0  ;;  %v2960_v41 = vrot.slane %v2959_v52, 1 }
 0x863   :  { %v3098_v14 = vrot.slane %v3097_v49, 2  ;;  %v2963_v17 = vrot.slane %v2962_v22, 4  ;;  %6279 = vmatpush3.bf16.msra.mxu0 %v9314_v13 }
 0x864   :  { %6280 = vmatprep.subr.bf16.mxu0 %v10027_v3 }
 0x865   :  { %v3099_v55 = vadd.f32 %v3098_v14, %v3097_v49  ;;  %v2964_v60 = vadd.f32 %v2963_v17, %v2962_v22  ;;  %v9321_v49 = vpack.c.bf16 %v3322_v15, %v3321_v40  ;;  %v2961_v22 = vadd.f32 %v2960_v41, %v2959_v52  ;;  %v3324_v17 = vld [vmem:[%s10043_s5 + $0x48] sm:$0xff]  ;;  %v3327_v52 = vld [vmem:[%s10043_s5 + $0x60] sm:$0xff]  ;;  %v3330_v40 = vld [vmem:[%s10043_s5 + $0x78] sm:$0xff] }
 0x866   :  { %v9331_v25 = vpack.c.bf16 %v3324_v17, %v3323_v10  ;;  %v3638_v10 = vld [vmem:[%s10047_s9] sm:$0xff]  ;;  %v3639_v17 = vld [vmem:[%s10047_s9 + $0x8] sm:$0xff] }
 0x867   :  { %v2965_v31 = vrot.slane %v2964_v60, 2  ;;  %v3100_v43 = vrot.slane %v3099_v55, 1  ;;  %6282 = vmatpush3.bf16.msra.mxu0 %v9321_v49 }
 0x868   :  { %6283 = vmatprep.subr.bf16.mxu0 %v10027_v3  ;;  %10044 = vst [vmem:[#allocation103_spill] sm:$0xff] %v9331_v25 }
 0x869   :  { %v2966_v35 = vadd.f32 %v2965_v31, %v2964_v60  ;;  %v3101_v9 = vadd.f32 %v3100_v43, %v3099_v55  ;;  %v3326_v55 = vld [vmem:[%s10043_s5 + $0x58] sm:$0xff]  ;;  %v9341_v31 = vpack.c.bf16 %v3328_v33, %v3327_v52  ;;  %v3329_v43 = vld [vmem:[%s10043_s5 + $0x70] sm:$0xff] }
 0x86a   :  { %v9335_v60 = vpack.c.bf16 %v3326_v55, %v3325_v53  ;;  %v9347_v15 = vpack.c.bf16 %v3330_v40, %v3329_v43  ;;  %v9358_v53 = vpack.c.bf16 %v3639_v17, %v3638_v10  ;;  %v3641_v55 = vld [vmem:[%s10047_s9 + $0x18] sm:$0xff]  ;;  %v3642_v43 = vld [vmem:[%s10047_s9 + $0x20] sm:$0xff]  ;;  %v3643_v40 = vld [vmem:[%s10047_s9 + $0x28] sm:$0xff] }
 0x86b   :  { %v2967_v42 = vrot.slane %v2966_v35, 1  ;;  %v3208_v44 = vsel %vm1487_vm2, %v3101_v9, %v3094_v20  ;;  %6285 = vmatpush3.bf16.msra.mxu0 %v9331_v25  ;;  %10046 = vst [vmem:[#allocation94_spill] sm:$0xff] %v9341_v31  ;;  %v5123_v20 = vld [vmem:[#allocation13] ss:$0 sm:$0xff]  ;;  %v3648_v10 = vld [vmem:[%s10047_s9 + $0x50] sm:$0xff]  ;;  %v3649_v17 = vld [vmem:[%s10047_s9 + $0x58] sm:$0xff] }
 0x86c   :  { %3209 = vrot.lane.b32.xlu0 %v3208_v44, %s7720_s27  ;;  %10045 = vst [vmem:[#allocation104_spill] sm:$0xff] %v9335_v60  ;;  %6286 = vmatprep.subr.bf16.mxu0 %v10027_v3  ;;  %10048 = vst [vmem:[#allocation96_spill] sm:$0xff] %v9347_v15  ;;  %v3764_v25 = vld [vmem:[%s10069_s13 + $0x18] sm:$0xff] }
 0x86d   :  { %v2968_v32 = vadd.f32 %v2967_v42, %v2966_v35  ;;  %10049 = vst [vmem:[#allocation105_spill] sm:$0xff] %v9358_v53 }
 0x86f   :  { %v3214_v14 = vsel %vm1487_vm2, %v2968_v32, %v2961_v22  ;;  %6288 = vmatpush3.bf16.msra.mxu0 %v9335_v60  ;;  %v3311_v32 = vpop.permute.xlu1 %3310 }
 0x870   :  { %6289 = vmatprep.subr.bf16.mxu0 %v10027_v3 }
 0x873   :  { %6291 = vmatpush3.bf16.msra.mxu0 %v9341_v31 }
 0x874   :  { %6292 = vmatprep.subr.bf16.mxu0 %v10027_v3 }
 0x877   :  { %6294 = vmatpush3.bf16.msra.mxu0 %v9347_v15  ;;  %v3762_v15 = vld [vmem:[%s10069_s13 + $0x8] sm:$0xff] }
 0x878   :  { %6331 = vmatprep.subr.bf16.mxu0 %v10027_v3 }
 0x8de   :  { %v3210_v41 = vpop.permute.xlu0 %3209 }
 0x8df   :  { %v3216_v35 = vsel %vm534_vm0, %v3210_v41, %v3214_v14  ;;  %v3640_v14 = vld [vmem:[%s10047_s9 + $0x10] sm:$0xff]  ;;  %v9371_v41 = vpack.c.bf16 %v3643_v40, %v3642_v43 }
 0x8e0   :  { %5609 = vmatmul.mubr.f32.vlgmr.msra.gmra.mrb[14].mxu1 %v3216_v35  ;;  %v9363_v33 = vpack.c.bf16 %v3641_v55, %v3640_v14  ;;  %v3644_v35 = vld [vmem:[%s10047_s9 + $0x30] sm:$0xff]  ;;  %v9389_v14 = vpack.c.bf16 %v3649_v17, %v3648_v10  ;;  %v3650_v55 = vld [vmem:[%s10047_s9 + $0x60] sm:$0xff] }
 0x8e1   :  { %5662 = vmatprep.mubr.msk.f32.mxu1 %vm7722_vm1, %v10023_v63  ;;  %10051 = vst [vmem:[#allocation97_spill] sm:$0xff] %v9371_v41  ;;  %v3652_v40 = vld [vmem:[%s10047_s9 + $0x70] sm:$0xff] }
 0x8e2   :  { %10050 = vst [vmem:[#allocation106_spill] sm:$0xff] %v9363_v33  ;;  %10054 = vst [vmem:[#allocation98_spill] sm:$0xff] %v9389_v14 }
 0x92c   :  { %v3202_v9 = vpop.f32.mrb[14].mxu0 }
 0x92d   :  { %v3203_v42 = vadd.f32 %v5123_v20, %v3202_v9  ;;  %v5575_v44 = vpop.f32.mrb[15].mxu0  ;;  %v3645_v20 = vld [vmem:[%s10047_s9 + $0x38] sm:$0xff] }
 0x92e   :  { %v9377_v9 = vpack.c.bf16 %v3645_v20, %v3644_v35  ;;  %v3647_v44 = vld [vmem:[%s10047_s9 + $0x48] sm:$0xff]  ;;  %v3653_v35 = vld [vmem:[%s10047_s9 + $0x78] sm:$0xff] }
 0x92f   :  { %v3313_v22 = vsel %vm534_vm0, %v3203_v42, %v3311_v32  ;;  %v3646_v42 = vld [vmem:[%s10047_s9 + $0x40] sm:$0xff]  ;;  %v9401_v20 = vpack.c.bf16 %v3653_v35, %v3652_v40  ;;  %v5125_v40 = vld [vmem:[#allocation23] ss:$0 sm:$0xff] }
 0x930   :  { %6929 = vtanh.f32 %v3313_v22  ;;  %10052 = vst [vmem:[#allocation107_spill] sm:$0xff] %v9377_v9  ;;  %v9383_v22 = vpack.c.bf16 %v3647_v44, %v3646_v42  ;;  %v5124_v42 = vld [vmem:[#allocation14] ss:$0 sm:$0xff] }
 0x931   :  { %10056 = vst [vmem:[#allocation95_spill] sm:$0xff] %v9401_v20 }
 0x932   :  { %10053 = vst [vmem:[#allocation108_spill] sm:$0xff] %v9383_v22 }
 0x93a   :  { %v6930_v52 = vpop.eup %6929 }
 0x93b   :  { %5644 = vmatmul.mubr.f32.vlgmr.msra.gmra.mrb[16].mxu0 %v6930_v52  ;;  %v3651_v52 = vld [vmem:[%s10047_s9 + $0x68] sm:$0xff] }
 0x93c   :  { %6333 = vmatpush3.bf16.msra.mxu0 %v9358_v53  ;;  %5732 = vmatprep.mubr.msk.f32.mxu0 %vm7722_vm1, %v10023_v63  ;;  %v9395_v43 = vpack.c.bf16 %v3651_v52, %v3650_v55 }
 0x93d   :  { %6334 = vmatprep.subr.bf16.mxu0 %v10027_v3 }
 0x93e   :  { %10055 = vst [vmem:[#allocation109_spill] sm:$0xff] %v9395_v43 }
 0x940   :  { %6336 = vmatpush3.bf16.msra.mxu0 %v9363_v33  ;;  %v9441_v33 = vld [vmem:[#allocation25] ss:$0 sm:$0xff] }
 0x941   :  { %6337 = vmatprep.subr.bf16.mxu0 %v10027_v3 }
 0x944   :  { %6339 = vmatpush3.bf16.msra.mxu0 %v9371_v41 }
 0x945   :  { %6340 = vmatprep.subr.bf16.mxu0 %v10027_v3 }
 0x948   :  { %6342 = vmatpush3.bf16.msra.mxu0 %v9377_v9 }
 0x949   :  { %6343 = vmatprep.subr.bf16.mxu0 %v10027_v3 }
 0x94c   :  { %6345 = vmatpush3.bf16.msra.mxu0 %v9383_v22 }
 0x94d   :  { %6346 = vmatprep.subr.bf16.mxu0 %v10027_v3 }
 0x950   :  { %6348 = vmatpush3.bf16.msra.mxu0 %v9389_v14 }
 0x951   :  { %6349 = vmatprep.subr.bf16.mxu0 %v10027_v3 }
 0x954   :  { %6351 = vmatpush3.bf16.msra.mxu0 %v9395_v43 }
 0x955   :  { %6352 = vmatprep.subr.bf16.mxu0 %v10027_v3 }
 0x958   :  { %6354 = vmatpush3.bf16.msra.mxu0 %v9401_v20 }
 0x959   :  { %6367 = vmatprep.subr.bf16.mxu0 %v10027_v3 }
 0x9b3   :  { %v3306_v44 = vpop.f32.mrb[14].mxu1 }
 0x9b4   :  { %v3307_v10 = vadd.f32 %v5124_v42, %v3306_v44  ;;  %v5610_v17 = vpop.f32.mrb[15].mxu1 }
 0x9b6   :  { %v3636_v55 = vsel %vm534_vm0, %v3307_v10, %v3311_v32  ;;  %v5131_v32 = vld [vmem:[#allocation31] ss:$0 sm:$0xff] }
 0x9b7   :  { %6931 = vtanh.f32 %v3636_v55 }
 0x9c1   :  { %v6932_v52 = vpop.eup %6931 }
 0x9c2   :  { %5733 = vmatmul.mubr.f32.vlgmr.msra.gmra.mrb[18].mxu0 %v6932_v52 }
 0x9c3   :  { %5786 = vmatprep.mubr.msk.f32.mxu0 %vm7722_vm1, %v10023_v63 }
 0xa0e   :  { %v3404_v35 = vpop.f32.mrb[16].mxu0 }
 0xa0f   :  { %v3405_v43 = vadd.f32 %v5125_v40, %v3404_v35  ;;  %v5645_v14 = vpop.f32.mrb[17].mxu0  ;;  %v3439_v35 = vld [vmem:[%s10057_s0 + $0x8] sm:$0xff] }
 0xa11   :  { %v3408_v22 = vmax.f32 %v3405_v43, 0.0 }
 0xa13   :  { %v3411_v20 = vsel %vm790_vm9, %v3408_v22, 0.0 }
 0xa14   :  { %3412 = vadd.xlane.f32.xlu1 %v3411_v20  ;;  %v3438_v20 = vld [vmem:[%s10057_s0] sm:$0xff] }
 0xa15   :  { %v9415_v41 = vpack.c.bf16 %v3439_v35, %v3438_v20 }
 0xa17   :  { %6297 = vmatpush3.bf16.msra.mxu1 %v9415_v41 }
 0xa18   :  { %6298 = vmatprep.subr.bf16.mxu1 %v10027_v3 }
 0xa95   :  { %v3727_v42 = vpop.f32.mrb[18].mxu0 }
 0xa96   :  { %v5734_v44 = vpop.f32.mrb[19].mxu0  ;;  %v3728_v55 = vadd.f32 %v5131_v32, %v3727_v42  ;;  %v3442_v42 = vld [vmem:[%s10057_s0 + $0x20] sm:$0xff] }
 0xa97   :  { %v3440_v44 = vld [vmem:[%s10057_s0 + $0x10] sm:$0xff] }
 0xa98   :  { %v3731_v40 = vmax.f32 %v3728_v55, 0.0  ;;  %v3445_v55 = vld [vmem:[%s10057_s0 + $0x38] sm:$0xff] }
 0xa9a   :  { %v3734_v43 = vsel %vm790_vm9, %v3731_v40, 0.0 }
 0xaa1   :  { %v3413_v10 = vpop.xlane.xlu1 %3412 }
 0xaa2   :  { %v3414_v17 = vmul.f32 0.015625, %v3413_v10  ;;  %v3441_v10 = vld [vmem:[%s10057_s0 + $0x18] sm:$0xff] }
 0xaa4   :  { %v3415_v52 = vsub.f32 %v3408_v22, %v3414_v17  ;;  %v9419_v22 = vpack.c.bf16 %v3441_v10, %v3440_v44  ;;  %v3444_v17 = vld [vmem:[%s10057_s0 + $0x30] sm:$0xff] }
 0xaa6   :  { %v3416_v9 = vmul.f32 %v3415_v52, %v3415_v52  ;;  %6300 = vmatpush3.bf16.msra.mxu1 %v9419_v22 }
 0xaa7   :  { %6301 = vmatprep.subr.bf16.mxu1 %v10027_v3 }
 0xaa8   :  { %v3417_v14 = vsel %vm790_vm9, %v3416_v9, 0.0  ;;  %v3443_v9 = vld [vmem:[%s10057_s0 + $0x28] sm:$0xff] }
 0xaa9   :  { %3418 = vadd.xlane.f32.xlu0 %v3417_v14  ;;  %v9425_v32 = vpack.c.bf16 %v3443_v9, %v3442_v42  ;;  %v9431_v14 = vpack.c.bf16 %v3445_v55, %v3444_v17 }
 0xaab   :  { %6303 = vmatpush3.bf16.msra.mxu1 %v9425_v32 }
 0xaac   :  { %6304 = vmatprep.subr.bf16.mxu1 %v10027_v3 }
 0xaad   :  { %3735 = vadd.xlane.f32.xlu0 %v3734_v43 }
 0xaaf   :  { %6306 = vmatpush3.bf16.msra.mxu1 %v9431_v14 }
 0xab0   :  { %6307 = vmatprep.subr.bf16.mxu1 %v10027_v3 }
 0xb36   :  { %v3419_v43 = vpop.xlane.xlu0 %3418 }
 0xb37   :  { %v3420_v20 = vmul.f32 0.015625, %v3419_v43 }
 0xb39   :  { %v3421_v35 = vadd.f32 1e-06, %v3420_v20  ;;  %v9443_v20 = vld [vmem:[#allocation19] ss:$0 sm:$0xff] }
 0xb3a   :  { %v3736_v44 = vpop.xlane.xlu0 %3735 }
 0xb3b   :  { %6933 = vrsqrt.f32 %v3421_v35  ;;  %v3737_v10 = vmul.f32 0.015625, %v3736_v44  ;;  %v3527_v44 = vld [vmem:[%s10058_s15] sm:$0xff] }
 0xb3d   :  { %v9436_v42 = vsub.f32 %v3731_v40, %v3737_v10  ;;  %v3528_v10 = vld [vmem:[%s10058_s15 + $0x8] sm:$0xff] }
 0xb3f   :  { %v3739_v9 = vmul.f32 %v9436_v42, %v9436_v42 }
 0xb41   :  { %v3740_v17 = vsel %vm790_vm9, %v3739_v9, 0.0  ;;  %v3529_v9 = vld [vmem:[%s10058_s15 + $0x10] sm:$0xff] }
 0xb42   :  { %3741 = vadd.xlane.f32.xlu1 %v3740_v17  ;;  %v3530_v17 = vld [vmem:[%s10058_s15 + $0x18] sm:$0xff] }
 0xb45   :  { %v6934_v55 = vpop.eup %6933 }
 0xb46   :  { %v3423_v43 = vmul.f32 %v6934_v55, %v3415_v52  ;;  %v9456_v52 = vpack.c.bf16 %v3528_v10, %v3527_v44  ;;  %v9460_v55 = vpack.c.bf16 %v3530_v17, %v3529_v9  ;;  %v3533_v44 = vld [vmem:[%s10058_s15 + $0x30] sm:$0xff]  ;;  %v3534_v10 = vld [vmem:[%s10058_s15 + $0x38] sm:$0xff]  ;;  %v3535_v17 = vld [vmem:[%s10058_s15 + $0x40] sm:$0xff] }
 0xb47   :  { %v9472_v9 = vpack.c.bf16 %v3534_v10, %v3533_v44  ;;  %v3539_v10 = vld [vmem:[%s10058_s15 + $0x60] sm:$0xff] }
 0xb48   :  { %v3430_v35 = vmul.f32 %v9441_v33, %v3423_v43  ;;  %10059 = vst [vmem:[#allocation93_spill] sm:$0xff] %v9456_v52  ;;  %10060 = vst [vmem:[#allocation92_spill] sm:$0xff] %v9460_v55  ;;  %v3531_v43 = vld [vmem:[%s10058_s15 + $0x20] sm:$0xff] }
 0xb49   :  { %10062 = vst [vmem:[#allocation112_spill] sm:$0xff] %v9472_v9 }
 0xb4a   :  { %v9447_v40 = vadd.f32 %v9443_v20, %v3430_v35  ;;  %v3532_v35 = vld [vmem:[%s10058_s15 + $0x28] sm:$0xff] }
 0xb4b   :  { %v9466_v53 = vpack.c.bf16 %v3532_v35, %v3531_v43  ;;  %v3537_v35 = vld [vmem:[%s10058_s15 + $0x50] sm:$0xff] }
 0xb4c   :  { %5663 = vmatmul.mubr.msk.f32.vlgmr.msra.gmra.mrb[16].mxu1 %vm534_vm0, %v9447_v40 }
 0xb4d   :  { %5697 = vmatprep.mubr.msk.f32.mxu1 %vm7722_vm1, %v10023_v63  ;;  %6309 = vmatpush3.bf16.msra.mxu1 %v9456_v52  ;;  %10061 = vst [vmem:[#allocation111_spill] sm:$0xff] %v9466_v53  ;;  %v3536_v52 = vld [vmem:[%s10058_s15 + $0x48] sm:$0xff] }
 0xb4e   :  { %6310 = vmatprep.subr.bf16.mxu1 %v10027_v3  ;;  %v9478_v43 = vpack.c.bf16 %v3536_v52, %v3535_v17  ;;  %v3542_v17 = vld [vmem:[%s10058_s15 + $0x78] sm:$0xff] }
 0xb50   :  { %10063 = vst [vmem:[#allocation113_spill] sm:$0xff] %v9478_v43 }
 0xb51   :  { %6312 = vmatpush3.bf16.msra.mxu1 %v9460_v55  ;;  %v3538_v55 = vld [vmem:[%s10058_s15 + $0x58] sm:$0xff] }
 0xb52   :  { %6313 = vmatprep.subr.bf16.mxu1 %v10027_v3  ;;  %v9484_v44 = vpack.c.bf16 %v3538_v55, %v3537_v35  ;;  %v3541_v55 = vld [vmem:[%s10058_s15 + $0x70] sm:$0xff] }
 0xb53   :  { %v9497_v35 = vpack.c.bf16 %v3542_v17, %v3541_v55  ;;  %v3854_v55 = vld [vmem:[%s10064_s17 + $0x20] sm:$0xff]  ;;  %v3855_v17 = vld [vmem:[%s10064_s17 + $0x28] sm:$0xff] }
 0xb54   :  { %10065 = vst [vmem:[#allocation114_spill] sm:$0xff] %v9484_v44 }
 0xb55   :  { %6315 = vmatpush3.bf16.msra.mxu1 %v9466_v53  ;;  %v3540_v53 = vld [vmem:[%s10058_s15 + $0x68] sm:$0xff]  ;;  %10067 = vst [vmem:[#allocation116_spill] sm:$0xff] %v9497_v35 }
 0xb56   :  { %6316 = vmatprep.subr.bf16.mxu1 %v10027_v3  ;;  %v9490_v52 = vpack.c.bf16 %v3540_v53, %v3539_v10  ;;  %v3852_v53 = vld [vmem:[%s10064_s17 + $0x10] sm:$0xff] }
 0xb58   :  { %10066 = vst [vmem:[#allocation115_spill] sm:$0xff] %v9490_v52 }
 0xb59   :  { %6318 = vmatpush3.bf16.msra.mxu1 %v9472_v9  ;;  %v3853_v9 = vld [vmem:[%s10064_s17 + $0x18] sm:$0xff] }
 0xb5a   :  { %6319 = vmatprep.subr.bf16.mxu1 %v10027_v3 }
 0xb5d   :  { %6321 = vmatpush3.bf16.msra.mxu1 %v9478_v43  ;;  %v3850_v43 = vld [vmem:[%s10064_s17] sm:$0xff] }
 0xb5e   :  { %6322 = vmatprep.subr.bf16.mxu1 %v10027_v3 }
 0xb61   :  { %6324 = vmatpush3.bf16.msra.mxu1 %v9484_v44  ;;  %v3851_v44 = vld [vmem:[%s10064_s17 + $0x8] sm:$0xff] }
 0xb62   :  { %6325 = vmatprep.subr.bf16.mxu1 %v10027_v3  ;;  %v9504_v10 = vpack.c.bf16 %v3851_v44, %v3850_v43 }
 0xb64   :  { %10068 = vst [vmem:[#allocation117_spill] sm:$0xff] %v9504_v10  ;;  %6369 = vmatpush3.bf16.msra.mxu0 %v9504_v10  ;;  %v3761_v10 = vld [vmem:[%s10069_s13] sm:$0xff] }
 0xb65   :  { %6327 = vmatpush3.bf16.msra.mxu1 %v9490_v52  ;;  %v9508_v52 = vpack.c.bf16 %v3853_v9, %v3852_v53  ;;  %6370 = vmatprep.subr.bf16.mxu0 %v10027_v3  ;;  %v5128_v53 = vld [vmem:[#allocation20] ss:$0 sm:$0xff]  ;;  %v9521_v31 = vpack.c.bf16 %v3762_v15, %v3761_v10 }
 0xb66   :  { %6328 = vmatprep.subr.bf16.mxu1 %v10027_v3 }
 0xb67   :  { %10070 = vst [vmem:[#allocation118_spill] sm:$0xff] %v9508_v52  ;;  %10072 = vst [vmem:[#allocation120_spill] sm:$0xff] %v9521_v31 }
 0xb68   :  { %6372 = vmatpush3.bf16.msra.mxu0 %v9508_v52 }
 0xb69   :  { %6330 = vmatpush3.bf16.msra.mxu1 %v9497_v35  ;;  %v9514_v35 = vpack.c.bf16 %v3855_v17, %v3854_v55  ;;  %6373 = vmatprep.subr.bf16.mxu0 %v10027_v3 }
 0xb6a   :  { %6355 = vmatprep.subr.bf16.mxu1 %v10027_v3 }
 0xb6b   :  { %10071 = vst [vmem:[#allocation119_spill] sm:$0xff] %v9514_v35 }
 0xb6c   :  { %6375 = vmatpush3.bf16.msra.mxu0 %v9514_v35  ;;  %v3763_v35 = vld [vmem:[%s10069_s13 + $0x10] sm:$0xff] }
 0xb6d   :  { %6376 = vmatprep.subr.bf16.mxu0 %v10027_v3 }
 0xbcf   :  { %v3742_v43 = vpop.xlane.xlu1 %3741 }
 0xbd0   :  { %v3743_v44 = vmul.f32 0.015625, %v3742_v43  ;;  %v9526_v43 = vpack.c.bf16 %v3764_v25, %v3763_v35  ;;  %v9540_v25 = vld [vmem:[#allocation32] ss:$0 sm:$0xff] }
 0xbd2   :  { %v3744_v9 = vadd.f32 1e-06, %v3743_v44  ;;  %10073 = vst [vmem:[#allocation121_spill] sm:$0xff] %v9526_v43  ;;  %v3765_v44 = vld [vmem:[%s10069_s13 + $0x20] sm:$0xff] }
 0xbd4   :  { %6935 = vrsqrt.f32 %v3744_v9 }
 0xbde   :  { %v6936_v9 = vpop.eup %6935 }
 0xbdf   :  { %v3746_v10 = vmul.f32 %v6936_v9, %v9436_v42 }
 0xc1f   :  { %v3522_v52 = vpop.f32.mrb[16].mxu1 }
 0xc20   :  { %v3523_v55 = vadd.f32 %v5128_v53, %v3522_v52  ;;  %v5664_v17 = vpop.f32.mrb[17].mxu1  ;;  %v3766_v52 = vld [vmem:[%s10069_s13 + $0x28] sm:$0xff]  ;;  %v3768_v53 = vld [vmem:[%s10069_s13 + $0x38] sm:$0xff] }
 0xc21   :  { %v9534_v15 = vpack.c.bf16 %v3766_v52, %v3765_v44  ;;  %v9547_v17 = vld [vmem:[#allocation26] ss:$0 sm:$0xff]  ;;  %v3858_v52 = vld [vmem:[%s10064_s17 + $0x40] sm:$0xff] }
 0xc22   :  { %v3526_v60 = vmax.f32 %v3523_v55, 0.0  ;;  %v3753_v55 = vmul.f32 %v9540_v25, %v3746_v10  ;;  %v3857_v44 = vld [vmem:[%s10064_s17 + $0x38] sm:$0xff]  ;;  %v3859_v10 = vld [vmem:[%s10064_s17 + $0x48] sm:$0xff] }
 0xc23   :  { %10074 = vst [vmem:[#allocation122_spill] sm:$0xff] %v9534_v15 }
 0xc24   :  { %5698 = vmatmul.mubr.f32.vlgmr.msra.gmra.mrb[18].mxu1 %v3526_v60  ;;  %v3767_v60 = vld [vmem:[%s10069_s13 + $0x30] sm:$0xff]  ;;  %v9551_v42 = vadd.f32 %v9547_v17, %v3753_v55  ;;  %v3863_v55 = vld [vmem:[%s10064_s17 + $0x68] sm:$0xff] }
 0xc25   :  { %6357 = vmatpush3.bf16.msra.mxu1 %v9521_v31  ;;  %5751 = vmatprep.mubr.msk.f32.mxu1 %vm7722_vm1, %v10023_v63  ;;  %v9543_v35 = vpack.c.bf16 %v3768_v53, %v3767_v60  ;;  %v3861_v60 = vld [vmem:[%s10064_s17 + $0x58] sm:$0xff]  ;;  %v3862_v53 = vld [vmem:[%s10064_s17 + $0x60] sm:$0xff] }
 0xc26   :  { %6358 = vmatprep.subr.bf16.mxu1 %v10027_v3 }
 0xc27   :  { %10075 = vst [vmem:[#allocation123_spill] sm:$0xff] %v9543_v35 }
 0xc29   :  { %6360 = vmatpush3.bf16.msra.mxu1 %v9526_v43  ;;  %v9601_v43 = vld [vmem:[#allocation28] ss:$0 sm:$0xff] }
 0xc2a   :  { %6361 = vmatprep.subr.bf16.mxu1 %v10027_v3 }
 0xc2d   :  { %6363 = vmatpush3.bf16.msra.mxu1 %v9534_v15 }
 0xc2e   :  { %6364 = vmatprep.subr.bf16.mxu1 %v10027_v3 }
 0xc31   :  { %6366 = vmatpush3.bf16.msra.mxu1 %v9543_v35 }
 0xc32   :  { %6391 = vmatprep.subr.bf16.mxu1 %v10027_v3 }
 0xc34   :  { %5752 = vmatmul.mubr.msk.f32.vlgmr.msra.gmra.mrb[20].mxu1 %vm534_vm0, %v9551_v42 }
 0xc35   :  { %6393 = vmatpush3.bf16.msra.mxu1 %v9017_v48  ;;  %5805 = vmatprep.mubr.msk.f32.mxu1 %vm7722_vm1, %v10023_v63  ;;  %v3856_v48 = vld [vmem:[%s10064_s17 + $0x30] sm:$0xff] }
 0xc36   :  { %6394 = vmatprep.subr.bf16.mxu1 %v10027_v3  ;;  %v9569_v9 = vpack.c.bf16 %v3857_v44, %v3856_v48  ;;  %v9585_v48 = vpack.c.bf16 %v3863_v55, %v3862_v53  ;;  %v3864_v44 = vld [vmem:[%s10064_s17 + $0x70] sm:$0xff] }
 0xc38   :  { %6378 = vmatpush3.bf16.msra.mxu0 %v9569_v9 }
 0xc39   :  { %6396 = vmatpush3.bf16.msra.mxu1 %v9022_v46  ;;  %v9573_v46 = vpack.c.bf16 %v3859_v10, %v3858_v52  ;;  %6379 = vmatprep.subr.bf16.mxu0 %v10027_v3  ;;  %v3865_v52 = vld [vmem:[%s10064_s17 + $0x78] sm:$0xff] }
 0xc3a   :  { %6397 = vmatprep.subr.bf16.mxu1 %v10027_v3  ;;  %v9592_v10 = vpack.c.bf16 %v3865_v52, %v3864_v44 }
 0xc3c   :  { %6381 = vmatpush3.bf16.msra.mxu0 %v9573_v46  ;;  %10076 = vst [vmem:[#allocation124_spill] sm:$0xff] %v9592_v10 }
 0xc3d   :  { %6399 = vmatpush3.bf16.msra.mxu1 %v9027_v37  ;;  %v3860_v37 = vld [vmem:[%s10064_s17 + $0x50] sm:$0xff]  ;;  %6382 = vmatprep.subr.bf16.mxu0 %v10027_v3 }
 0xc3e   :  { %6400 = vmatprep.subr.bf16.mxu1 %v10027_v3 }
 0xc41   :  { %6402 = vmatpush3.bf16.msra.mxu1 %v9033_v24  ;;  %v9579_v24 = vpack.c.bf16 %v3861_v60, %v3860_v37  ;;  %v9596_v37 = vld [vmem:[#allocation22] ss:$0 sm:$0xff] }
 0xc42   :  { %6403 = vmatprep.subr.bf16.mxu1 %v10027_v3 }
 0xc43   :  { %6384 = vmatpush3.bf16.msra.mxu0 %v9579_v24 }
 0xc44   :  { %6385 = vmatprep.subr.bf16.mxu0 %v10027_v3 }
 0xc47   :  { %6387 = vmatpush3.bf16.msra.mxu0 %v9585_v48 }
 0xc48   :  { %6388 = vmatprep.subr.bf16.mxu0 %v10027_v3 }
 0xc4b   :  { %6390 = vmatpush3.bf16.msra.mxu0 %v9592_v10 }
 0xc4c   :  { %6415 = vmatprep.subr.bf16.mxu0 %v10027_v3 }
 0xcf7   :  { %v3616_v60 = vpop.f32.mrb[18].mxu1 }
 0xcf8   :  { %v3617_v53 = vadd.f32 %v9596_v37, %v3616_v60  ;;  %v5699_v55 = vpop.f32.mrb[19].mxu1 }
 0xcfa   :  { %v3620_v35 = vadd.f32 %v3617_v53, %v9447_v40 }
 0xcfc   :  { %v3621_v15 = vsel %vm790_vm9, %v3620_v35, 0.0 }
 0xcfd   :  { %3622 = vadd.xlane.f32.xlu0 %v3621_v15 }
 0xd07   :  { %v3845_v31 = vpop.f32.mrb[20].mxu1 }
 0xd08   :  { %v3846_v44 = vadd.f32 %v9601_v43, %v3845_v31  ;;  %v5753_v52 = vpop.f32.mrb[21].mxu1  ;;  %v9623_v31 = vld [vmem:[#allocation29] ss:$0 sm:$0xff] }
 0xd0a   :  { %v3849_v10 = vmax.f32 %v3846_v44, 0.0 }
 0xd0c   :  { %5787 = vmatmul.mubr.f32.vlgmr.msra.gmra.mrb[20].mxu0 %v3849_v10 }
 0xd0d   :  { %6417 = vmatpush3.bf16.msra.mxu0 %v9119_v38  ;;  %5859 = vmatprep.mubr.msk.f32.mxu0 %vm7722_vm1, %v10023_v63 }
 0xd0e   :  { %6418 = vmatprep.subr.bf16.mxu0 %v10027_v3 }
 0xd11   :  { %6420 = vmatpush3.bf16.msra.mxu0 %v9123_v30 }
 0xd12   :  { %6421 = vmatprep.subr.bf16.mxu0 %v10027_v3 }
 0xd15   :  { %6423 = vmatpush3.bf16.msra.mxu0 %v9129_v12 }
 0xd16   :  { %6424 = vmatprep.subr.bf16.mxu0 %v10027_v3 }
 0xd19   :  { %6426 = vmatpush3.bf16.msra.mxu0 %v9135_v58 }
 0xd1a   :  { %6427 = vmatprep.subr.bf16.mxu0 %v10027_v3 }
 0xd1d   :  { %6429 = vmatpush3.bf16.msra.mxu0 %v9141_v39 }
 0xd1e   :  { %6430 = vmatprep.subr.bf16.mxu0 %v10027_v3 }
 0xd21   :  { %6432 = vmatpush3.bf16.msra.mxu0 %v9147_v18 }
 0xd22   :  { %6433 = vmatprep.subr.bf16.mxu0 %v10027_v3 }
 0xd25   :  { %6435 = vmatpush3.bf16.msra.mxu0 %v9153_v45 }
 0xd26   :  { %6436 = vmatprep.subr.bf16.mxu0 %v10027_v3 }
 0xd29   :  { %6438 = vmatpush3.bf16.msra.mxu0 %v9159_v62 }
 0xd2a   :  { %6463 = vmatprep.subr.bf16.mxu0 %v10027_v3 }
 0xd8a   :  { %v3623_v38 = vpop.xlane.xlu0 %3622 }
 0xd8b   :  { %v3624_v30 = vmul.f32 0.015625, %v3623_v38 }
 0xd8d   :  { %v3625_v12 = vsub.f32 %v3620_v35, %v3624_v30 }
 0xd8f   :  { %v3626_v58 = vmul.f32 %v3625_v12, %v3625_v12 }
 0xd91   :  { %v3627_v39 = vsel %vm790_vm9, %v3626_v58, 0.0 }
 0xd92   :  { %3628 = vadd.xlane.f32.xlu0 %v3627_v39 }
 0xddf   :  { %v3939_v18 = vpop.f32.mrb[20].mxu0 }
 0xde0   :  { %v3940_v40 = vadd.f32 %v9623_v31, %v3939_v18  ;;  %v5788_v15 = vpop.f32.mrb[21].mxu0 }
 0xde2   :  { %v3943_v45 = vadd.f32 %v3940_v40, %v9551_v42 }
 0xde4   :  { %v3944_v10 = vsel %vm790_vm9, %v3943_v45, 0.0 }
 0xde5   :  { %3945 = vadd.xlane.f32.xlu1 %v3944_v10 }
 0xe1f   :  { %v3629_v62 = vpop.xlane.xlu0 %3628 }
 0xe20   :  { %v3630_v60 = vmul.f32 0.015625, %v3629_v62 }
 0xe22   :  { %v3631_v53 = vadd.f32 1e-06, %v3630_v60 }
 0xe24   :  { %6937 = vrsqrt.f32 %v3631_v53 }
 0xe2e   :  { %v6938_v35 = vpop.eup %6937 }
 0xe2f   :  { %v3633_v55 = vmul.f32 %v6938_v35, %v3625_v12 }
 0xe31   :  { %v3634_v44 = vmul.f32 %v9441_v33, %v3633_v55 }
 0xe33   :  { %v3635_v52 = vadd.f32 %v9443_v20, %v3634_v44 }
 0xe35   :  { %5806 = vmatmul.mubr.msk.f32.vlgmr.msra.gmra.mrb[22].mxu1 %vm534_vm0, %v3635_v52 }
 0xe36   :  { %6405 = vmatpush3.bf16.msra.mxu1 %v9044_v5  ;;  %5824 = vmatprep.mubr.msk.f32.mxu1 %vm7722_vm1, %v10023_v63 }
 0xe37   :  { %6406 = vmatprep.subr.bf16.mxu1 %v10027_v3 }
 0xe3a   :  { %6408 = vmatpush3.bf16.msra.mxu1 %v9054_v8 }
 0xe3b   :  { %6409 = vmatprep.subr.bf16.mxu1 %v10027_v3 }
 0xe3e   :  { %6411 = vmatpush3.bf16.msra.mxu1 %v9063_v57 }
 0xe3f   :  { %6412 = vmatprep.subr.bf16.mxu1 %v10027_v3 }
 0xe42   :  { %6414 = vmatpush3.bf16.msra.mxu1 %v9071_v56 }
 0xe43   :  { %6439 = vmatprep.subr.bf16.mxu1 %v10027_v3 }
 0xe72   :  { %v3946_v33 = vpop.xlane.xlu1 %3945 }
 0xe73   :  { %v3947_v20 = vmul.f32 0.015625, %v3946_v33 }
 0xe75   :  { %v3948_v5 = vsub.f32 %v3943_v45, %v3947_v20 }
 0xe77   :  { %v3949_v42 = vmul.f32 %v3948_v5, %v3948_v5 }
 0xe79   :  { %v3950_v38 = vsel %vm790_vm9, %v3949_v42, 0.0 }
 0xe7a   :  { %3951 = vadd.xlane.f32.xlu1 %v3950_v38 }
 0xe8b   :  { %4501 = vrot.lane.b32.xlu1 %v3635_v52, %s7720_s27 }
 0xf07   :  { %v3952_v8 = vpop.xlane.xlu1 %3951 }
 0xf08   :  { %v3953_v30 = vmul.f32 0.015625, %v3952_v8  ;;  %v9643_v12 = vpop.f32.mrb[22].mxu1 }
 0xf09   :  { %v5807_v57 = vpop.f32.mrb[23].mxu1 }
 0xf0a   :  { %v3954_v58 = vadd.f32 1e-06, %v3953_v30 }
 0xf0c   :  { %6939 = vrsqrt.f32 %v3954_v58 }
 0xf16   :  { %v6940_v39 = vpop.eup %6939 }
 0xf17   :  { %v3956_v56 = vmul.f32 %v6940_v39, %v3948_v5 }
 0xf19   :  { %v3957_v18 = vmul.f32 %v9540_v25, %v3956_v56 }
 0xf1b   :  { %v9647_v40 = vadd.f32 %v9547_v17, %v3957_v18 }
 0xf1d   :  { %5825 = vmatmul.mubr.msk.f32.vlgmr.msra.gmra.mrb[24].mxu1 %vm534_vm0, %v9647_v40 }
 0xf1e   :  { %6441 = vmatpush3.bf16.msra.mxu1 %v9211_v2  ;;  %5894 = vmatprep.mubr.msk.f32.mxu1 %vm7722_vm1, %v10023_v63 }
 0xf1f   :  { %6442 = vmatprep.subr.bf16.mxu1 %v10027_v3 }
 0xf22   :  { %6444 = vmatpush3.bf16.msra.mxu1 %v9215_v36  ;;  %v7006_v36 = vld [vmem:[#allocation17] ss:$0 sm:$0xff] }
 0xf23   :  { %6445 = vmatprep.subr.bf16.mxu1 %v10027_v3 }
 0xf26   :  { %6447 = vmatpush3.bf16.msra.mxu1 %v9221_v23 }
 0xf27   :  { %6448 = vmatprep.subr.bf16.mxu1 %v10027_v3 }
 0xf2a   :  { %6450 = vmatpush3.bf16.msra.mxu1 %v9227_v54 }
 0xf2b   :  { %6451 = vmatprep.subr.bf16.mxu1 %v10027_v3 }
 0xf2e   :  { %6453 = vmatpush3.bf16.msra.mxu1 %v9233_v1 }
 0xf2f   :  { %6454 = vmatprep.subr.bf16.mxu1 %v10027_v3 }
 0xf32   :  { %6456 = vmatpush3.bf16.msra.mxu1 %v9239_v59 }
 0xf33   :  { %6457 = vmatprep.subr.bf16.mxu1 %v10027_v3 }
 0xf36   :  { %6459 = vmatpush3.bf16.msra.mxu1 %v9247_v19 }
 0xf37   :  { %6460 = vmatprep.subr.bf16.mxu1 %v10027_v3 }
 0xf3a   :  { %6462 = vmatpush3.bf16.msra.mxu1 %v9254_v27 }
 0xf3b   :  { %6487 = vmatprep.subr.bf16.mxu1 %v10027_v3 }
 0xff0   :  { %v4101_v2 = vpop.f32.mrb[24].mxu1 }
 0xff1   :  { %v4102_v23 = vadd.f32 %v7006_v36, %v4101_v2  ;;  %v5826_v54 = vpop.f32.mrb[25].mxu1 }
 0xff3   :  { %v4229_v1 = vrot.slane %v4102_v23, %v8170_v26 }
 0xff5   :  { %v4230_v15 = vcombine.high %v4229_v1, %v4229_v1  ;;  %v4237_v45 = vrot.slane %v4229_v1, %v8170_v26 }
 0xff7   :  { %v4244_v59 = vrot.slane %v4230_v15, %v8170_v26  ;;  %v4248_v10 = vrot.slane %v4237_v45, %v10035_v4 }
 0xff9   :  { %v4252_v19 = vrot.slane %v4244_v59, %v10035_v4  ;;  %v4255_v62 = vadd.f32 %v4248_v10, %v9170_v29  ;;  %v4297_v27 = vadd.f32 %v4248_v10, %v9100_v50 }
 0xffb   :  { %v4256_v60 = vadd.f32 %v4252_v19, %v9177_v0  ;;  %6941 = vtanh.f32 %v4255_v62  ;;  %v4298_v53 = vadd.f32 %v4252_v19, %v9109_v11 }
 0xffc   :  { %6943 = vtanh.f32 %v4297_v27 }
 0xffd   :  { %6945 = vtanh.f32 %v4256_v60 }
 0xffe   :  { %6947 = vtanh.f32 %v4298_v53 }
0x1005   :  { %v6942_v35 = vpop.eup %6941 }
0x1006   :  { %v6944_v55 = vpop.eup %6943  ;;  %v4259_v44 = vmul.f32 1.442695, %v6942_v35 }
0x1007   :  { %v6946_v52 = vpop.eup %6945  ;;  %v4301_v33 = vmul.f32 1.442695, %v6944_v55 }
0x1008   :  { %v6948_v20 = vpop.eup %6947  ;;  %6949 = vpow2.f32 %v4259_v44  ;;  %v4261_v5 = vmul.f32 1.442695, %v6946_v52 }
0x1009   :  { %6951 = vpow2.f32 %v4301_v33  ;;  %v4303_v29 = vmul.f32 1.442695, %v6948_v20 }
0x100a   :  { %6953 = vpow2.f32 %v4261_v5 }
0x100b   :  { %6955 = vpow2.f32 %v4303_v29 }
0x1012   :  { %v6950_v50 = vpop.eup %6949 }
0x1013   :  { %v6952_v0 = vpop.eup %6951  ;;  %v4263_v42 = vsel %vm534_vm0, %v6950_v50, 0.0 }
0x1014   :  { %v6954_v11 = vpop.eup %6953  ;;  %v4264_v38 = vrot.slane %v4263_v42, 4  ;;  %v4305_v8 = vsel %vm2926_vm10, %v6952_v0, 0.0 }
0x1015   :  { %v6956_v30 = vpop.eup %6955  ;;  %v4270_v57 = vsel %vm534_vm0, %v6954_v11, 0.0  ;;  %v4306_v58 = vrot.slane %v4305_v8, 4 }
0x1016   :  { %v4265_v39 = vadd.f32 %v4264_v38, %v4263_v42  ;;  %v4271_v56 = vrot.slane %v4270_v57, 4  ;;  %v4312_v18 = vsel %vm2926_vm10, %v6956_v30, 0.0 }
0x1017   :  { %v4307_v2 = vadd.f32 %v4306_v58, %v4305_v8  ;;  %v4313_v36 = vrot.slane %v4312_v18, 4 }
0x1018   :  { %v4266_v23 = vrot.slane %v4265_v39, 2  ;;  %v4272_v54 = vadd.f32 %v4271_v56, %v4270_v57 }
0x1019   :  { %v4308_v1 = vrot.slane %v4307_v2, 2  ;;  %v4314_v15 = vadd.f32 %v4313_v36, %v4312_v18 }
0x101a   :  { %v4267_v45 = vadd.f32 %v4266_v23, %v4265_v39  ;;  %v4273_v59 = vrot.slane %v4272_v54, 2  ;;  %v7007_v23 = vld [vmem:[#allocation16] ss:$0 sm:$0xff] }
0x101b   :  { %v4309_v10 = vadd.f32 %v4308_v1, %v4307_v2  ;;  %v4315_v19 = vrot.slane %v4314_v15, 2 }
0x101c   :  { %v4268_v62 = vrot.slane %v4267_v45, 1  ;;  %v4274_v27 = vadd.f32 %v4273_v59, %v4272_v54  ;;  %v4029_v54 = vadd.f32 %v7007_v23, %v9643_v12 }
0x101d   :  { %v4310_v60 = vrot.slane %v4309_v10, 1  ;;  %v4316_v53 = vadd.f32 %v4315_v19, %v4314_v15 }
0x101e   :  { %v4269_v35 = vadd.f32 %v4268_v62, %v4267_v45  ;;  %v4275_v55 = vrot.slane %v4274_v27, 1 }
0x101f   :  { %v4311_v44 = vadd.f32 %v4310_v60, %v4309_v10  ;;  %v4317_v52 = vrot.slane %v4316_v53, 1 }
0x1020   :  { %v4276_v33 = vadd.f32 %v4275_v55, %v4274_v27  ;;  %6957 = vrcp.f32 %v4269_v35 }
0x1021   :  { %v4318_v20 = vadd.f32 %v4317_v52, %v4316_v53  ;;  %6959 = vrcp.f32 %v4311_v44 }
0x1022   :  { %6961 = vrcp.f32 %v4276_v33 }
0x1023   :  { %6963 = vrcp.f32 %v4318_v20 }
0x102a   :  { %v6958_v5 = vpop.eup %6957 }
0x102b   :  { %v6960_v29 = vpop.eup %6959  ;;  %v4279_v42 = vmul.f32 %v6958_v5, %v6950_v50 }
0x102c   :  { %v6962_v38 = vpop.eup %6961  ;;  %v4321_v8 = vmul.f32 %v6960_v29, %v6952_v0 }
0x102d   :  { %v6964_v57 = vpop.eup %6963  ;;  %v4280_v58 = vmul.f32 %v6962_v38, %v6954_v11  ;;  %v4281_v39 = vmul.f32 %v4279_v42, %v9082_v51 }
0x102e   :  { %v4322_v56 = vmul.f32 %v6964_v57, %v6956_v30  ;;  %v4323_v18 = vmul.f32 %v4321_v8, %v9279_v34 }
0x102f   :  { %v4282_v2 = vmul.f32 %v4280_v58, %v9088_v6  ;;  %v4283_v36 = vsel %vm534_vm0, %v4281_v39, 0.0  ;;  %v4112_v6 = vrot.slane %v4029_v54, %v8170_v26  ;;  %v10078_v54 = vld [vmem:[#allocation101_spill] sm:$0xff] }
0x1030   :  { %v4324_v1 = vmul.f32 %v4322_v56, %v9292_v16  ;;  %v4325_v50 = vsel %vm2926_vm10, %v4323_v18, 0.0  ;;  %v4284_v15 = vrot.slane %v4283_v36, 4 }
0x1031   :  { %v4326_v0 = vrot.slane %v4325_v50, 4  ;;  %v4290_v11 = vsel %vm534_vm0, %v4282_v2, 0.0  ;;  %v4113_v35 = vcombine.high %v4112_v6, %v4112_v6  ;;  %v4120_v58 = vrot.slane %v4112_v6, %v8170_v26 }
0x1032   :  { %v4332_v51 = vsel %vm2926_vm10, %v4324_v1, 0.0  ;;  %v4285_v30 = vadd.f32 %v4284_v15, %v4283_v36  ;;  %v4291_v45 = vrot.slane %v4290_v11, 4  ;;  %v10077_v36 = vld [vmem:[#allocation110_spill] sm:$0xff]  ;;  %v10080_v15 = vld [vmem:[#allocation100_spill] sm:$0xff] }
0x1033   :  { %v4327_v34 = vadd.f32 %v4326_v0, %v4325_v50  ;;  %v4333_v59 = vrot.slane %v4332_v51, 4  ;;  %v4127_v29 = vrot.slane %v4113_v35, %v8170_v26  ;;  %v4131_v2 = vrot.slane %v4120_v58, %v10035_v4  ;;  %v10079_v26 = vld [vmem:[#allocation102_spill] sm:$0xff] }
0x1034   :  { %v4286_v10 = vrot.slane %v4285_v30, 2  ;;  %v4292_v19 = vadd.f32 %v4291_v45, %v4290_v11 }
0x1035   :  { %v4328_v62 = vrot.slane %v4327_v34, 2  ;;  %v4334_v12 = vadd.f32 %v4333_v59, %v4332_v51  ;;  %v4135_v18 = vrot.slane %v4127_v29, %v10035_v4  ;;  %v4138_v50 = vadd.f32 %v4131_v2, %v10079_v26 }
0x1036   :  { %v4287_v27 = vadd.f32 %v4286_v10, %v4285_v30  ;;  %v4293_v16 = vrot.slane %v4292_v19, 2  ;;  %v4180_v0 = vadd.f32 %v4131_v2, %v10080_v15 }
0x1037   :  { %v4329_v60 = vadd.f32 %v4328_v62, %v4327_v34  ;;  %v4335_v53 = vrot.slane %v4334_v12, 2  ;;  %v4139_v23 = vadd.f32 %v4135_v18, %v10077_v36  ;;  %v4181_v1 = vadd.f32 %v4135_v18, %v10078_v54 }
0x1038   :  { %v4288_v55 = vrot.slane %v4287_v27, 1  ;;  %v4294_v44 = vadd.f32 %v4293_v16, %v4292_v19 }
0x1039   :  { %v4330_v52 = vrot.slane %v4329_v60, 1  ;;  %v4336_v33 = vadd.f32 %v4335_v53, %v4334_v12  ;;  %6965 = vtanh.f32 %v4139_v23 }
0x103a   :  { %v4295_v20 = vrot.slane %v4294_v44, 1  ;;  %v4289_v42 = vadd.f32 %v4288_v55, %v4287_v27  ;;  %6967 = vtanh.f32 %v4181_v1 }
0x103b   :  { %v4337_v5 = vrot.slane %v4336_v33, 1  ;;  %v4331_v8 = vadd.f32 %v4330_v52, %v4329_v60  ;;  %6969 = vtanh.f32 %v4138_v50 }
0x103c   :  { %v4296_v38 = vadd.f32 %v4295_v20, %v4294_v44  ;;  %6971 = vtanh.f32 %v4180_v0 }
0x103d   :  { %v4338_v57 = vadd.f32 %v4337_v5, %v4336_v33 }
0x103e   :  { %v4345_v39 = vsel %vm1487_vm2, %v4296_v38, %v4289_v42 }
0x103f   :  { %v4422_v56 = vsel %vm1487_vm2, %v4338_v57, %v4331_v8  ;;  %4346 = vrot.lane.b32.xlu0 %v4345_v39, %s7720_s27 }
0x1040   :  { %4423 = vrot.lane.b32.xlu1 %v4422_v56, %s7720_s27 }
0x1043   :  { %4752 = vrot.lane.b32.xlu0 %v9647_v40, %s7720_s27  ;;  %v6966_v11 = vpop.eup %6965 }
0x1044   :  { %v6968_v51 = vpop.eup %6967  ;;  %v4144_v4 = vmul.f32 1.442695, %v6966_v11 }
0x1045   :  { %v6970_v30 = vpop.eup %6969  ;;  %v4186_v34 = vmul.f32 1.442695, %v6968_v51 }
0x1046   :  { %v6972_v45 = vpop.eup %6971  ;;  %v4142_v59 = vmul.f32 1.442695, %v6970_v30  ;;  %6973 = vpow2.f32 %v4144_v4 }
0x1047   :  { %v4184_v40 = vmul.f32 1.442695, %v6972_v45  ;;  %6975 = vpow2.f32 %v4186_v34 }
0x1048   :  { %6977 = vpow2.f32 %v4142_v59 }
0x1049   :  { %6979 = vpow2.f32 %v4184_v40 }
0x1050   :  { %v6974_v6 = vpop.eup %6973 }
0x1051   :  { %v6976_v10 = vpop.eup %6975  ;;  %v4153_v12 = vsel %vm534_vm0, %v6974_v6, 0.0 }
0x1052   :  { %v6978_v19 = vpop.eup %6977  ;;  %v4195_v27 = vsel %vm2926_vm10, %v6976_v10, 0.0  ;;  %v4154_v60 = vrot.slane %v4153_v12, 4 }
0x1053   :  { %v6980_v62 = vpop.eup %6979  ;;  %v4146_v16 = vsel %vm534_vm0, %v6978_v19, 0.0  ;;  %v4196_v35 = vrot.slane %v4195_v27, 4 }
0x1054   :  { %v4188_v53 = vsel %vm2926_vm10, %v6980_v62, 0.0  ;;  %v4147_v55 = vrot.slane %v4146_v16, 4  ;;  %v4155_v52 = vadd.f32 %v4154_v60, %v4153_v12  ;;  %v10081_v12 = vld [vmem:[#allocation99_spill] sm:$0xff] }
0x1055   :  { %v4189_v44 = vrot.slane %v4188_v53, 4  ;;  %v4197_v33 = vadd.f32 %v4196_v35, %v4195_v27 }
0x1056   :  { %v4148_v20 = vadd.f32 %v4147_v55, %v4146_v16  ;;  %v4156_v29 = vrot.slane %v4155_v52, 2 }
0x1057   :  { %v4190_v5 = vadd.f32 %v4189_v44, %v4188_v53  ;;  %v4198_v42 = vrot.slane %v4197_v33, 2 }
0x1058   :  { %v4149_v38 = vrot.slane %v4148_v20, 2  ;;  %v4157_v57 = vadd.f32 %v4156_v29, %v4155_v52 }
0x1059   :  { %v4191_v8 = vrot.slane %v4190_v5, 2  ;;  %v4199_v58 = vadd.f32 %v4198_v42, %v4197_v33 }
0x105a   :  { %v4150_v39 = vadd.f32 %v4149_v38, %v4148_v20  ;;  %v4158_v18 = vrot.slane %v4157_v57, 1 }
0x105b   :  { %v4192_v56 = vadd.f32 %v4191_v8, %v4190_v5  ;;  %v4200_v2 = vrot.slane %v4199_v58, 1 }
0x105c   :  { %v4151_v36 = vrot.slane %v4150_v39, 1  ;;  %v4159_v54 = vadd.f32 %v4158_v18, %v4157_v57 }
0x105d   :  { %v4193_v23 = vrot.slane %v4192_v56, 1  ;;  %v4201_v1 = vadd.f32 %v4200_v2, %v4199_v58  ;;  %v4502_v2 = vpop.permute.xlu1 %4501 }
0x105e   :  { %v4152_v26 = vadd.f32 %v4151_v36, %v4150_v39  ;;  %6981 = vrcp.f32 %v4159_v54 }
0x105f   :  { %v4194_v50 = vadd.f32 %v4193_v23, %v4192_v56  ;;  %6983 = vrcp.f32 %v4201_v1 }
0x1060   :  { %6985 = vrcp.f32 %v4152_v26 }
0x1061   :  { %6987 = vrcp.f32 %v4194_v50 }
0x1068   :  { %v6982_v15 = vpop.eup %6981 }
0x1069   :  { %v6984_v0 = vpop.eup %6983  ;;  %v4163_v30 = vmul.f32 %v6982_v15, %v6974_v6 }
0x106a   :  { %v6986_v11 = vpop.eup %6985  ;;  %v4205_v45 = vmul.f32 %v6984_v0, %v6976_v10 }
0x106b   :  { %v6988_v51 = vpop.eup %6987  ;;  %v4162_v4 = vmul.f32 %v6986_v11, %v6978_v19  ;;  %v4165_v59 = vmul.f32 %v4163_v30, %v9094_v7 }
0x106c   :  { %v4204_v34 = vmul.f32 %v6988_v51, %v6980_v62  ;;  %v4207_v40 = vmul.f32 %v4205_v45, %v9297_v61 }
0x106d   :  { %v4164_v27 = vmul.f32 %v4162_v4, %v10081_v12  ;;  %v4173_v60 = vsel %vm534_vm0, %v4165_v59, 0.0  ;;  %v10087_v59 = vld [vmem:[#allocation106_spill] sm:$0xff]  ;;  %v10089_v12 = vld [vmem:[#allocation107_spill] sm:$0xff] }
0x106e   :  { %v4206_v16 = vmul.f32 %v4204_v34, %v9282_v21  ;;  %v4215_v53 = vsel %vm2926_vm10, %v4207_v40, 0.0  ;;  %v4174_v55 = vrot.slane %v4173_v60, 4  ;;  %v10086_v34 = vld [vmem:[#allocation105_spill] sm:$0xff] }
0x106f   :  { %v4166_v35 = vsel %vm534_vm0, %v4164_v27, 0.0  ;;  %v4216_v10 = vrot.slane %v4215_v53, 4  ;;  %v10088_v40 = vld [vmem:[#allocation97_spill] sm:$0xff]  ;;  %v7009_v27 = vld [vmem:[#allocation14] ss:$0 sm:$0xff] }
0x1070   :  { %v4208_v6 = vsel %vm2926_vm10, %v4206_v16, 0.0  ;;  %v4167_v19 = vrot.slane %v4166_v35, 4  ;;  %v4175_v44 = vadd.f32 %v4174_v55, %v4173_v60  ;;  %v10091_v55 = vld [vmem:[#allocation98_spill] sm:$0xff] }
0x1071   :  { %v4209_v62 = vrot.slane %v4208_v6, 4  ;;  %v4217_v7 = vadd.f32 %v4216_v10, %v4215_v53  ;;  %v10090_v53 = vld [vmem:[#allocation108_spill] sm:$0xff]  ;;  %v10093_v10 = vld [vmem:[#allocation95_spill] sm:$0xff] }
0x1072   :  { %v4168_v52 = vadd.f32 %v4167_v19, %v4166_v35  ;;  %v4176_v33 = vrot.slane %v4175_v44, 2 }
0x1073   :  { %v4210_v61 = vadd.f32 %v4209_v62, %v4208_v6  ;;  %v4218_v20 = vrot.slane %v4217_v7, 2  ;;  %v10092_v6 = vld [vmem:[#allocation109_spill] sm:$0xff] }
0x1074   :  { %v4169_v5 = vrot.slane %v4168_v52, 2  ;;  %v4177_v29 = vadd.f32 %v4176_v33, %v4175_v44  ;;  %v10094_v62 = vld [vmem:[#allocation117_spill] sm:$0xff]  ;;  %v10095_v44 = vld [vmem:[#allocation118_spill] sm:$0xff] }
0x1075   :  { %v4211_v21 = vrot.slane %v4210_v61, 2  ;;  %v4219_v42 = vadd.f32 %v4218_v20, %v4217_v7  ;;  %v10096_v7 = vld [vmem:[#allocation119_spill] sm:$0xff]  ;;  %v7010_v33 = vld [vmem:[#allocation23] ss:$0 sm:$0xff] }
0x1076   :  { %v4170_v38 = vadd.f32 %v4169_v5, %v4168_v52  ;;  %v4178_v57 = vrot.slane %v4177_v29, 1  ;;  %v10097_v52 = vld [vmem:[#allocation124_spill] sm:$0xff] }
0x1077   :  { %v4212_v8 = vadd.f32 %v4211_v21, %v4210_v61  ;;  %v4220_v58 = vrot.slane %v4219_v42, 1 }
0x1078   :  { %v4171_v39 = vrot.slane %v4170_v38, 1  ;;  %v4179_v18 = vadd.f32 %v4178_v57, %v4177_v29 }
0x1079   :  { %v4213_v56 = vrot.slane %v4212_v8, 1  ;;  %v4221_v36 = vadd.f32 %v4220_v58, %v4219_v42 }
0x107a   :  { %v4172_v23 = vadd.f32 %v4171_v39, %v4170_v38  ;;  %v7011_v38 = vld [vmem:[#allocation31] ss:$0 sm:$0xff] }
0x107b   :  { %v4214_v54 = vadd.f32 %v4213_v56, %v4212_v8 }
0x107c   :  { %v4341_v1 = vsel %vm1487_vm2, %v4179_v18, %v4172_v23 }
0x107d   :  { %v4428_v15 = vsel %vm1487_vm2, %v4221_v36, %v4214_v54 }
0x10b1   :  { %v4347_v26 = vpop.permute.xlu0 %4346 }
0x10b2   :  { %v4349_v50 = vsel %vm534_vm0, %v4341_v1, %v4347_v26  ;;  %v4424_v0 = vpop.permute.xlu1 %4423 }
0x10b3   :  { %v4430_v11 = vsel %vm534_vm0, %v4424_v0, %v4428_v15  ;;  %5860 = vmatmul.mubr.f32.vlgmr.msra.gmra.mrb[22].mxu0 %v4349_v50 }
0x10b4   :  { %5895 = vmatmul.mubr.f32.vlgmr.msra.gmra.mrb[26].mxu1 %v4430_v11  ;;  %6465 = vmatpush3.bf16.msra.mxu0 %v9303_v28  ;;  %v10082_v28 = vld [vmem:[#allocation103_spill] sm:$0xff]  ;;  %v9791_v11 = vld [vmem:[#allocation25] ss:$0 sm:$0xff] }
0x10b5   :  { %6466 = vmatprep.subr.bf16.mxu0 %v10027_v3  ;;  %5929 = vmatprep.mubr.msk.f32.mxu0 %vm7722_vm1, %v10023_v63  ;;  %v4753_v60 = vpop.permute.xlu0 %4752 }
0x10b6   :  { %6489 = vmatpush3.bf16.msra.mxu1 %v9415_v41  ;;  %5948 = vmatprep.mubr.msk.f32.mxu1 %vm7722_vm1, %v10023_v63  ;;  %v10085_v41 = vld [vmem:[#allocation96_spill] sm:$0xff] }
0x10b7   :  { %6490 = vmatprep.subr.bf16.mxu1 %v10027_v3 }
0x10b8   :  { %6468 = vmatpush3.bf16.msra.mxu0 %v9308_v47  ;;  %v10083_v47 = vld [vmem:[#allocation104_spill] sm:$0xff] }
0x10b9   :  { %6469 = vmatprep.subr.bf16.mxu0 %v10027_v3 }
0x10ba   :  { %6492 = vmatpush3.bf16.msra.mxu1 %v9419_v22  ;;  %v7008_v22 = vld [vmem:[#allocation13] ss:$0 sm:$0xff] }
0x10bb   :  { %6493 = vmatprep.subr.bf16.mxu1 %v10027_v3 }
0x10bc   :  { %6471 = vmatpush3.bf16.msra.mxu0 %v9314_v13  ;;  %v10084_v13 = vld [vmem:[#allocation94_spill] sm:$0xff] }
0x10bd   :  { %6472 = vmatprep.subr.bf16.mxu0 %v10027_v3 }
0x10be   :  { %6495 = vmatpush3.bf16.msra.mxu1 %v9425_v32 }
0x10bf   :  { %6496 = vmatprep.subr.bf16.mxu1 %v10027_v3 }
0x10c0   :  { %6474 = vmatpush3.bf16.msra.mxu0 %v9321_v49 }
0x10c1   :  { %6475 = vmatprep.subr.bf16.mxu0 %v10027_v3 }
0x10c2   :  { %6498 = vmatpush3.bf16.msra.mxu1 %v9431_v14 }
0x10c3   :  { %6499 = vmatprep.subr.bf16.mxu1 %v10027_v3 }
0x10c4   :  { %6477 = vmatpush3.bf16.msra.mxu0 %v10082_v28 }
0x10c5   :  { %6478 = vmatprep.subr.bf16.mxu0 %v10027_v3 }
0x10c8   :  { %6480 = vmatpush3.bf16.msra.mxu0 %v10083_v47  ;;  %v9794_v47 = vld [vmem:[#allocation19] ss:$0 sm:$0xff] }
0x10c9   :  { %6481 = vmatprep.subr.bf16.mxu0 %v10027_v3 }
0x10cc   :  { %6483 = vmatpush3.bf16.msra.mxu0 %v10084_v13 }
0x10cd   :  { %6484 = vmatprep.subr.bf16.mxu0 %v10027_v3 }
0x10d0   :  { %6486 = vmatpush3.bf16.msra.mxu0 %v10085_v41  ;;  %v10098_v41 = vld [vmem:[#allocation93_spill] sm:$0xff] }
0x10d1   :  { %6523 = vmatprep.subr.bf16.mxu0 %v10027_v3 }
0x1186   :  { %v4416_v49 = vpop.f32.mrb[22].mxu0 }
0x1187   :  { %v4417_v32 = vadd.f32 %v7008_v22, %v4416_v49  ;;  %v4497_v14 = vpop.f32.mrb[26].mxu1  ;;  %v5861_v51 = vpop.f32.mrb[23].mxu0  ;;  %v10099_v49 = vld [vmem:[#allocation92_spill] sm:$0xff]  ;;  %v10100_v22 = vld [vmem:[#allocation111_spill] sm:$0xff] }
0x1188   :  { %v5896_v30 = vpop.f32.mrb[27].mxu1  ;;  %v4498_v16 = vadd.f32 %v7009_v27, %v4497_v14  ;;  %v10102_v14 = vld [vmem:[#allocation113_spill] sm:$0xff]  ;;  %v10103_v51 = vld [vmem:[#allocation114_spill] sm:$0xff] }
0x1189   :  { %v4504_v45 = vsel %vm534_vm0, %v4417_v32, %v4502_v2  ;;  %v10101_v32 = vld [vmem:[#allocation112_spill] sm:$0xff]  ;;  %v10104_v30 = vld [vmem:[#allocation115_spill] sm:$0xff] }
0x118a   :  { %6989 = vtanh.f32 %v4504_v45  ;;  %v4755_v35 = vsel %vm534_vm0, %v4498_v16, %v4753_v60  ;;  %v10105_v45 = vld [vmem:[#allocation116_spill] sm:$0xff] }
0x118b   :  { %6991 = vtanh.f32 %v4755_v35 }
0x1194   :  { %v6990_v4 = vpop.eup %6989 }
0x1195   :  { %5930 = vmatmul.mubr.f32.vlgmr.msra.gmra.mrb[24].mxu0 %v6990_v4  ;;  %v6992_v19 = vpop.eup %6991 }
0x1196   :  { %6525 = vmatpush3.bf16.msra.mxu0 %v10086_v34  ;;  %6018 = vmatprep.mubr.msk.f32.mxu0 %vm7722_vm1, %v10023_v63 }
0x1197   :  { %6526 = vmatprep.subr.bf16.mxu0 %v10027_v3 }
0x119a   :  { %6528 = vmatpush3.bf16.msra.mxu0 %v10087_v59 }
0x119b   :  { %6529 = vmatprep.subr.bf16.mxu0 %v10027_v3 }
0x119e   :  { %6531 = vmatpush3.bf16.msra.mxu0 %v10088_v40 }
0x119f   :  { %6532 = vmatprep.subr.bf16.mxu0 %v10027_v3 }
0x11a2   :  { %6534 = vmatpush3.bf16.msra.mxu0 %v10089_v12  ;;  %v7014_v12 = vld [vmem:[#allocation20] ss:$0 sm:$0xff] }
0x11a3   :  { %6535 = vmatprep.subr.bf16.mxu0 %v10027_v3 }
0x11a6   :  { %6537 = vmatpush3.bf16.msra.mxu0 %v10090_v53  ;;  %v10106_v53 = vld [vmem:[#allocation120_spill] sm:$0xff] }
0x11a7   :  { %6538 = vmatprep.subr.bf16.mxu0 %v10027_v3 }
0x11aa   :  { %6540 = vmatpush3.bf16.msra.mxu0 %v10091_v55  ;;  %v10107_v55 = vld [vmem:[#allocation121_spill] sm:$0xff] }
0x11ab   :  { %6541 = vmatprep.subr.bf16.mxu0 %v10027_v3 }
0x11ae   :  { %6543 = vmatpush3.bf16.msra.mxu0 %v10092_v6 }
0x11af   :  { %6544 = vmatprep.subr.bf16.mxu0 %v10027_v3 }
0x11b2   :  { %6546 = vmatpush3.bf16.msra.mxu0 %v10093_v10  ;;  %v10108_v10 = vld [vmem:[#allocation122_spill] sm:$0xff] }
0x11b3   :  { %6559 = vmatprep.subr.bf16.mxu0 %v10027_v3 }
0x11b5   :  { %6019 = vmatmul.mubr.f32.vlgmr.msra.gmra.mrb[26].mxu0 %v6992_v19 }
0x11b6   :  { %6561 = vmatpush3.bf16.msra.mxu0 %v10094_v62  ;;  %6072 = vmatprep.mubr.msk.f32.mxu0 %vm7722_vm1, %v10023_v63  ;;  %v10109_v62 = vld [vmem:[#allocation123_spill] sm:$0xff] }
0x11b7   :  { %6562 = vmatprep.subr.bf16.mxu0 %v10027_v3 }
0x11ba   :  { %6564 = vmatpush3.bf16.msra.mxu0 %v10095_v44 }
0x11bb   :  { %6565 = vmatprep.subr.bf16.mxu0 %v10027_v3 }
0x11be   :  { %6567 = vmatpush3.bf16.msra.mxu0 %v10096_v7 }
0x11bf   :  { %6568 = vmatprep.subr.bf16.mxu0 %v10027_v3 }
0x11c2   :  { %6570 = vmatpush3.bf16.msra.mxu0 %v9569_v9 }
0x11c3   :  { %6571 = vmatprep.subr.bf16.mxu0 %v10027_v3 }
0x11c6   :  { %6573 = vmatpush3.bf16.msra.mxu0 %v9573_v46 }
0x11c7   :  { %6574 = vmatprep.subr.bf16.mxu0 %v10027_v3 }
0x11ca   :  { %6576 = vmatpush3.bf16.msra.mxu0 %v9579_v24 }
0x11cb   :  { %6577 = vmatprep.subr.bf16.mxu0 %v10027_v3 }
0x11ce   :  { %6579 = vmatpush3.bf16.msra.mxu0 %v9585_v48 }
0x11cf   :  { %6580 = vmatprep.subr.bf16.mxu0 %v10027_v3 }
0x11d2   :  { %6582 = vmatpush3.bf16.msra.mxu0 %v10097_v52 }
0x1268   :  { %v4572_v61 = vpop.f32.mrb[24].mxu0 }
0x1269   :  { %v4573_v20 = vadd.f32 %v7010_v33, %v4572_v61  ;;  %v5931_v9 = vpop.f32.mrb[25].mxu0 }
0x126b   :  { %v4576_v5 = vmax.f32 %v4573_v20, 0.0 }
0x126d   :  { %v4577_v21 = vsel %vm790_vm9, %v4576_v5, 0.0 }
0x126e   :  { %4578 = vadd.xlane.f32.xlu1 %v4577_v21 }
0x1288   :  { %v4823_v46 = vpop.f32.mrb[26].mxu0 }
0x1289   :  { %v6020_v29 = vpop.f32.mrb[27].mxu0  ;;  %v4824_v8 = vadd.f32 %v7011_v38, %v4823_v46 }
0x128b   :  { %v4827_v58 = vmax.f32 %v4824_v8, 0.0 }
0x128d   :  { %v4828_v56 = vsel %vm790_vm9, %v4827_v58, 0.0 }
0x12fb   :  { %v4579_v42 = vpop.xlane.xlu1 %4578 }
0x12fc   :  { %v4580_v24 = vmul.f32 0.015625, %v4579_v42 }
0x12fe   :  { %v4581_v57 = vsub.f32 %v4576_v5, %v4580_v24 }
0x1300   :  { %v4582_v48 = vmul.f32 %v4581_v57, %v4581_v57 }
0x1302   :  { %v4583_v39 = vsel %vm790_vm9, %v4582_v48, 0.0 }
0x1303   :  { %4584 = vadd.xlane.f32.xlu0 %v4583_v39 }
0x1307   :  { %4829 = vadd.xlane.f32.xlu0 %v4828_v56 }
0x1390   :  { %v4585_v18 = vpop.xlane.xlu0 %4584 }
0x1391   :  { %v4586_v2 = vmul.f32 0.015625, %v4585_v18 }
0x1393   :  { %v4587_v36 = vadd.f32 1e-06, %v4586_v2 }
0x1394   :  { %v4830_v23 = vpop.xlane.xlu0 %4829 }
0x1395   :  { %6993 = vrsqrt.f32 %v4587_v36  ;;  %v4831_v54 = vmul.f32 0.015625, %v4830_v23 }
0x1397   :  { %v4832_v1 = vsub.f32 %v4827_v58, %v4831_v54 }
0x1399   :  { %v4833_v26 = vmul.f32 %v4832_v1, %v4832_v1 }
0x139b   :  { %v4834_v50 = vsel %vm790_vm9, %v4833_v26, 0.0 }
0x139c   :  { %4835 = vadd.xlane.f32.xlu1 %v4834_v50 }
0x139f   :  { %v6994_v15 = vpop.eup %6993 }
0x13a0   :  { %v4589_v0 = vmul.f32 %v6994_v15, %v4581_v57 }
0x13a2   :  { %v4590_v28 = vmul.f32 %v9791_v11, %v4589_v0 }
0x13a4   :  { %v4591_v13 = vadd.f32 %v9794_v47, %v4590_v28 }
0x13a6   :  { %5949 = vmatmul.mubr.msk.f32.vlgmr.msra.gmra.mrb[28].mxu1 %vm534_vm0, %v4591_v13 }
0x13a7   :  { %6501 = vmatpush3.bf16.msra.mxu1 %v10098_v41  ;;  %5983 = vmatprep.mubr.msk.f32.mxu1 %vm7722_vm1, %v10023_v63 }
0x13a8   :  { %6502 = vmatprep.subr.bf16.mxu1 %v10027_v3 }
0x13ab   :  { %6504 = vmatpush3.bf16.msra.mxu1 %v10099_v49 }
0x13ac   :  { %6505 = vmatprep.subr.bf16.mxu1 %v10027_v3 }
0x13af   :  { %6507 = vmatpush3.bf16.msra.mxu1 %v10100_v22 }
0x13b0   :  { %6508 = vmatprep.subr.bf16.mxu1 %v10027_v3 }
0x13b3   :  { %6510 = vmatpush3.bf16.msra.mxu1 %v10101_v32 }
0x13b4   :  { %6511 = vmatprep.subr.bf16.mxu1 %v10027_v3 }
0x13b7   :  { %6513 = vmatpush3.bf16.msra.mxu1 %v10102_v14 }
0x13b8   :  { %6514 = vmatprep.subr.bf16.mxu1 %v10027_v3 }
0x13bb   :  { %6516 = vmatpush3.bf16.msra.mxu1 %v10103_v51 }
0x13bc   :  { %6517 = vmatprep.subr.bf16.mxu1 %v10027_v3 }
0x13bf   :  { %6519 = vmatpush3.bf16.msra.mxu1 %v10104_v30 }
0x13c0   :  { %6520 = vmatprep.subr.bf16.mxu1 %v10027_v3 }
0x13c3   :  { %6522 = vmatpush3.bf16.msra.mxu1 %v10105_v45 }
0x13c4   :  { %6547 = vmatprep.subr.bf16.mxu1 %v10027_v3 }
0x1429   :  { %v4836_v4 = vpop.xlane.xlu1 %4835 }
0x142a   :  { %v4837_v34 = vmul.f32 0.015625, %v4836_v4 }
0x142c   :  { %v4838_v59 = vadd.f32 1e-06, %v4837_v34 }
0x142e   :  { %6995 = vrsqrt.f32 %v4838_v59 }
0x1438   :  { %v6996_v35 = vpop.eup %6995 }
0x1439   :  { %v4840_v6 = vmul.f32 %v6996_v35, %v4832_v1 }
0x143b   :  { %v4841_v19 = vmul.f32 %v9540_v25, %v4840_v6 }
0x143d   :  { %v4842_v44 = vadd.f32 %v9547_v17, %v4841_v19 }
0x1479   :  { %v4661_v40 = vpop.f32.mrb[28].mxu1 }
0x147a   :  { %v4662_v27 = vadd.f32 %v7014_v12, %v4661_v40  ;;  %v5950_v16 = vpop.f32.mrb[29].mxu1 }
0x147c   :  { %v4665_v60 = vmax.f32 %v4662_v27, 0.0 }
0x147e   :  { %5984 = vmatmul.mubr.f32.vlgmr.msra.gmra.mrb[30].mxu1 %v4665_v60 }
0x147f   :  { %6549 = vmatpush3.bf16.msra.mxu1 %v10106_v53  ;;  %6037 = vmatprep.mubr.msk.f32.mxu1 %vm7722_vm1, %v10023_v63 }
0x1480   :  { %6550 = vmatprep.subr.bf16.mxu1 %v10027_v3 }
0x1483   :  { %6552 = vmatpush3.bf16.msra.mxu1 %v10107_v55 }
0x1484   :  { %6553 = vmatprep.subr.bf16.mxu1 %v10027_v3 }
0x1487   :  { %6555 = vmatpush3.bf16.msra.mxu1 %v10108_v10 }
0x1488   :  { %6556 = vmatprep.subr.bf16.mxu1 %v10027_v3 }
0x148b   :  { %6558 = vmatpush3.bf16.msra.mxu1 %v10109_v62 }
0x148e   :  { %6038 = vmatmul.mubr.msk.f32.vlgmr.msra.gmra.mrb[32].mxu1 %vm534_vm0, %v4842_v44 }
0x1551   :  { %v4732_v63 = vpop.f32.mrb[30].mxu1 }
0x1552   :  { %v4733_v7 = vadd.f32 %v9596_v37, %v4732_v63  ;;  %v5985_v52 = vpop.f32.mrb[31].mxu1 }
0x1554   :  { %v4736_v61 = vadd.f32 %v4733_v7, %v4591_v13 }
0x1556   :  { %v4737_v33 = vsel %vm790_vm9, %v4736_v61, 0.0 }
0x1557   :  { %4738 = vadd.xlane.f32.xlu0 %v4737_v33 }
0x1561   :  { %v4912_v20 = vpop.f32.mrb[32].mxu1 }
0x1562   :  { %v4913_v9 = vadd.f32 %v9601_v43, %v4912_v20  ;;  %v6039_v3 = vpop.f32.mrb[33].mxu1 }
0x1564   :  { %v4916_v5 = vmax.f32 %v4913_v9, 0.0 }
0x1566   :  { %6073 = vmatmul.mubr.f32.vlgmr.msra.gmra.mrb[28].mxu0 %v4916_v5 }
0x15e4   :  { %v4739_v25 = vpop.xlane.xlu0 %4738 }
0x15e5   :  { %v4740_v21 = vmul.f32 0.015625, %v4739_v25 }
0x15e7   :  { %v4741_v46 = vsub.f32 %v4736_v61, %v4740_v21 }
0x15e9   :  { %v4742_v17 = vmul.f32 %v4741_v46, %v4741_v46 }
0x15eb   :  { %v4743_v29 = vsel %vm790_vm9, %v4742_v17, 0.0 }
0x15ec   :  { %4744 = vadd.xlane.f32.xlu0 %v4743_v29 }
0x1639   :  { %v4983_v42 = vpop.f32.mrb[28].mxu0 }
0x163a   :  { %v4984_v37 = vadd.f32 %v9623_v31, %v4983_v42  ;;  %v6074_v24 = vpop.f32.mrb[29].mxu0 }
0x163c   :  { %v4987_v38 = vadd.f32 %v4984_v37, %v4842_v44 }
0x163e   :  { %v4988_v8 = vsel %vm790_vm9, %v4987_v38, 0.0 }
0x163f   :  { %4989 = vadd.xlane.f32.xlu1 %v4988_v8 }
0x1679   :  { %v4745_v57 = vpop.xlane.xlu0 %4744 }
0x167a   :  { %v4746_v43 = vmul.f32 0.015625, %v4745_v57 }
0x167c   :  { %v4747_v48 = vadd.f32 1e-06, %v4746_v43 }
0x167e   :  { %6997 = vrsqrt.f32 %v4747_v48 }
0x1688   :  { %v6998_v58 = vpop.eup %6997 }
0x1689   :  { %v4749_v39 = vmul.f32 %v6998_v58, %v4741_v46 }
0x168b   :  { %v4750_v56 = vmul.f32 %v9791_v11, %v4749_v39 }
0x168d   :  { %v4751_v18 = vadd.f32 %v9794_v47, %v4750_v56 }
0x168f   :  { %5003 = vst.msk [vmem:[#allocation41] sm:$0x3] %vm790_vm9, %v4751_v18 }
0x16cc   :  { %v4990_v2 = vpop.xlane.xlu1 %4989 }
0x16cd   :  { %v4991_v36 = vmul.f32 0.015625, %v4990_v2 }
0x16cf   :  { %v4992_v31 = vsub.f32 %v4987_v38, %v4991_v36 }
0x16d1   :  { %v4993_v23 = vmul.f32 %v4992_v31, %v4992_v31 }
0x16d3   :  { %v4994_v54 = vsel %vm790_vm9, %v4993_v23, 0.0 }
0x16d4   :  { %4995 = vadd.xlane.f32.xlu1 %v4994_v54 }
0x16d5   :  { %7578 = shalt.err (!%p7575_p8)
}
0x16d6   :  { %s7579_s18 = scalar_lea.hbm %s7978_s24, 32 }
0x16d7   :  { %p7580_p9 = scmp.ne.s32.totalorder %s7978_s24, %s7579_s18  ;;  %p7583_p10 = scmp.lt.u32.totalorder %s7579_s18, %s7978_s24 }
0x16d9   :  { %p7585_p11 = pnand %p7583_p10, %p7580_p9 }
0x16db   :  { %7588 = shalt.err (!%p7585_p11)
}
0x16dc   :  { %5014 = dma.vmem_to_hbm [thread:$0]  %s5012_s12, 32, %s7978_s24, [#allocation4]   ;;  %v7015_v11 = vld [vmem:[#allocation32] ss:$0 sm:$0xff]  ;;  %v7016_v47 = vld [vmem:[#allocation26] ss:$0 sm:$0xff] }
0x16dd   :  { %s7724_s26 = smov [#allocation42]  }
0x16de   :  { %s5021_s8 = sshll.u32 %s7724_s26, 4  ;;  %s5022_s8 = int_to_ptr.vmem [resolvable:$true] %s5021_s8 }
0x16df   :  { %s7589_s22 = scalar_lea.vmem %s5022_s8, 32  ;;  %p7594_p13 = scmp.lt.s32.totalorder %s5022_s8, %s5022_s8 }
0x16e0   :  { %p7590_p12 = scmp.ne.s32.totalorder %s5022_s8, %s7589_s22  ;;  %p7595_p0 = scmp.lt.s32.totalorder %s7589_s22, %s7589_s22 }
0x16e2   :  { %p7596_p1 = por %p7595_p0, %p7594_p13 }
0x16e4   :  { %p7597_p2 = pnand %p7596_p1, %p7590_p12 }
0x1761   :  { %v4996_v1 = vpop.xlane.xlu1 %4995 }
0x1762   :  { %v4997_v26 = vmul.f32 0.015625, %v4996_v1 }
0x1764   :  { %v4998_v50 = vadd.f32 1e-06, %v4997_v26 }
0x1766   :  { %6999 = vrsqrt.f32 %v4998_v50 }
0x1770   :  { %v7000_v15 = vpop.eup %6999 }
0x1771   :  { %v5000_v0 = vmul.f32 %v7000_v15, %v4992_v31 }
0x1773   :  { %v5001_v28 = vmul.f32 %v7015_v11, %v5000_v0 }
0x1775   :  { %v5002_v13 = vadd.f32 %v7016_v47, %v5001_v28 }
0x1777   :  { %5004 = vst.msk [vmem:[#allocation42] sm:$0x3] %vm790_vm9, %v5002_v13 }
0x1778   :  { %7600 = shalt.err (!%p7597_p2)
}
0x1779   :  { %s7601_s24 = scalar_lea.hbm %s7983_s25, 32 }
0x177a   :  { %p7602_p3 = scmp.ne.s32.totalorder %s7983_s25, %s7601_s24  ;;  %p7605_p4 = scmp.lt.u32.totalorder %s7601_s24, %s7983_s25 }
0x177c   :  { %p7607_p5 = pnand %p7605_p4, %p7602_p3 }
0x177e   :  { %7610 = shalt.err (!%p7607_p5)
}
0x177f   :  { %5024 = dma.vmem_to_hbm [thread:$0]  %s5022_s8, 32, %s7983_s25, [#allocation43]  }
0x1780   :  { %7637 = dma.done.wait [#allocation4], 32  }
0x1781   :  { %7638 = vsyncadd [#allocation4], 4294967264 }
0x1782   :  { %7639 = dma.done.wait [#allocation43], 32  }
0x1783   :  { %7640 = vsyncadd [#allocation43], 4294967264 }
0x1784   :  { %5031 = vsyncpa [#allocation3], 1 }
0x1785   :  { %5032 = vsyncpa [#allocation6], 1 }
0x1786   :  { %5033 = vsyncpa [#allocation9], 1 }
0x1787   :  { %5034 = vsyncpa [#allocation12], 1 }
0x1788   :  { %5035 = vsyncpa [#allocation15], 1 }
0x1789   :  { %5036 = vsyncpa [#allocation18], 1 }
0x178a   :  { %5037 = vsyncpa [#allocation21], 1 }
0x178b   :  { %5038 = vsyncpa [#allocation24], 1 }
0x178c   :  { %5039 = vsyncpa [#allocation27], 1 }
0x178d   :  { %5040 = vsyncpa [#allocation30], 1 }
0x178e   :  { %5041 = vsyncpa [#allocation33], 1 }
0x178f   :  { %5042 = vsyncpa [#allocation36], 1 }
0x1790   :  { %5043 = vsyncpa [#allocation39], 1 }
0x1791   :  { %5044 = vsyncpa [#allocation4], 1 }
0x1792   :  { %5045 = vsyncpa [#allocation43], 1 }

</bundles_post_ra>
